<compile_context>
chip_gen: v6e
topology: v6e:2x2x1
jax: 0.10.0
libtpu: 0.0.40
codegen_flags: <defaults>
</compile_context>

<pallas_src>
import functools

import jax
import jax.numpy as jnp
from jax.experimental import pallas as pl
from jax.experimental.pallas import tpu as pltpu


def _round_up(n, m):
    return ((n + m - 1) // m) * m


# ----------------------------------------------------------------------------
# Pallas kernels
# ----------------------------------------------------------------------------
def _conv_taps(x_ref, w_ref, *, kh, kw, wp, cin, m, cout, relu_in):
    """Stream the kh*kw taps from the VMEM-resident flattened image and
    accumulate bf16 MXU dots into an f32 register accumulator (fused im2col)."""
    acc = jnp.zeros((m, cout), jnp.float32)
    for dy in range(kh):
        for dx in range(kw):
            off = dy * wp + dx
            tap = x_ref[off:off + m, :]                       # contiguous rows
            if relu_in:
                tap = jnp.maximum(tap, 0.0)                   # fused input ReLU
            w_tap = w_ref[(dy * kw + dx) * cin:(dy * kw + dx + 1) * cin, :]
            acc = acc + jnp.dot(tap.astype(jnp.bfloat16), w_tap,
                                preferred_element_type=jnp.float32)
    return acc


def _conv_kernel(x_ref, w_ref, b_ref, o_ref, *, kh, kw, wp, cin,
                 relu_in, relu_out):
    m, cout = o_ref.shape
    out = _conv_taps(x_ref, w_ref, kh=kh, kw=kw, wp=wp, cin=cin, m=m,
                     cout=cout, relu_in=relu_in) + b_ref[...]
    if relu_out:
        out = jnp.maximum(out, 0.0)
    o_ref[...] = out


def _conv_res_kernel(x_ref, w_ref, b_ref, r_ref, o_ref, *, kh, kw, wp, cin,
                     relu_in, relu_out):
    m, cout = o_ref.shape
    out = _conv_taps(x_ref, w_ref, kh=kh, kw=kw, wp=wp, cin=cin, m=m,
                     cout=cout, relu_in=relu_in) + b_ref[...] + r_ref[...]
    if relu_out:                                              # fused trailing ReLU
        out = jnp.maximum(out, 0.0)
    o_ref[...] = out


def _quantize_kernel(x_ref, e_ref, et_ref, e2_ref, q_ref, sse_ref):
    # x: (TM, D) f32, e: (D, Np) codebook (lane-padded to 128), et: (Np, D),
    # e2: (1, Np) = ||e||^2 with +1e30 on padded columns.
    # Distances are kept in f32 so code selection / codebook values stay exact.
    x = x_ref[...]
    xe = jnp.dot(x, e_ref[...], preferred_element_type=jnp.float32)
    s = 2.0 * xe - e2_ref[...]            # argmax(s) == argmin(dist); x^2 dropped
    mx = jnp.max(s, axis=1, keepdims=True)
    iota = jax.lax.broadcasted_iota(jnp.int32, s.shape, 1)
    idx = jnp.min(jnp.where(s == mx, iota, jnp.int32(s.shape[1])),
                  axis=1, keepdims=True)
    onehot = (iota == idx).astype(jnp.float32)
    q = jnp.dot(onehot, et_ref[...], preferred_element_type=jnp.float32)
    q_ref[...] = q
    # per-row squared error; summed / normalized outside (padded rows never land)
    sse_ref[...] = jnp.sum((q - x) * (q - x), axis=1, keepdims=True)


# ----------------------------------------------------------------------------
# Conv wrapper: fused stride-1 conv on a flattened, padded NHWC image
# ----------------------------------------------------------------------------
def _conv_core(x, wm, b2, *, kh, kw, ph, pw, relu_in=False, relu_out=False,
               residual=None):
    """x: (N, H, W, Cin) f32; wm: (kh*kw*Cin, Cout) bf16 tap-major; b2: (1, Cout).
    Output: (N, Ho, Wo, Cout) f32.  The image is padded and flattened so every
    tap is a contiguous row slice inside the kernel (columns [Wo, Wp) of every
    output row are wrap-around garbage and sliced off afterwards)."""
    n, h, w, cin = x.shape
    k, cout = wm.shape
    assert k == kh * kw * cin
    hp, wp = h + 2 * ph, w + 2 * pw
    ho, wo = hp - kh + 1, wp - kw + 1
    m = ho * wp                                   # rows computed per image
    min_rows = (hp + 1) * wp                      # +1 row so the last tap's
    xp = jnp.pad(x, ((0, 0), (ph, ph + 1), (pw, pw), (0, 0)))   # overread is safe
    xp = xp.reshape(n, min_rows, cin)

    in_specs = [
        pl.BlockSpec((None, min_rows, cin), lambda i: (i, 0, 0)),
        pl.BlockSpec((k, cout), lambda i: (0, 0)),      # weights stay resident
        pl.BlockSpec((1, cout), lambda i: (0, 0)),
    ]
    args = [xp, wm, b2]
    if residual is not None:
        rp = jnp.pad(residual, ((0, 0), (0, 0), (0, wp - wo), (0, 0)))
        args.append(rp.reshape(n, m, cout))
        in_specs.append(pl.BlockSpec((None, m, cout), lambda i: (i, 0, 0)))
        kern = functools.partial(_conv_res_kernel, kh=kh, kw=kw, wp=wp, cin=cin,
                                 relu_in=relu_in, relu_out=relu_out)
    else:
        kern = functools.partial(_conv_kernel, kh=kh, kw=kw, wp=wp, cin=cin,
                                 relu_in=relu_in, relu_out=relu_out)

    out = pl.pallas_call(
        kern,
        out_shape=jax.ShapeDtypeStruct((n, m, cout), jnp.float32),
        grid=(n,),
        in_specs=in_specs,
        out_specs=pl.BlockSpec((None, m, cout), lambda i: (i, 0, 0)),
        compiler_params=pltpu.CompilerParams(dimension_semantics=("parallel",)),
    )(*args)
    return out.reshape(n, ho, wp, cout)[:, :, :wo, :]


def _phase_pack(x):
    """Split an even-sized image (padded by 1) into 4 stride-2 phases packed on
    the channel dim -> a stride-2 4x4 conv becomes a stride-1 2x2 conv."""
    n, h, w, c = x.shape
    assert h % 2 == 0 and w % 2 == 0
    xp = jnp.pad(x, ((0, 0), (1, 1), (1, 1), (0, 0)))
    phases = [xp[:, ry::2, rx::2, :] for ry in (0, 1) for rx in (0, 1)]
    return jnp.concatenate(phases, axis=-1)


def _pixel_shuffle2(y, cout):
    """(N, H, W, 4*cout) phase outputs (p, q, cout ordering) -> (N, 2H, 2W, cout)."""
    n, h, w, _ = y.shape
    y = y.reshape(n, h, w, 2, 2, cout)
    y = jnp.transpose(y, (0, 1, 3, 2, 4, 5))
    return y.reshape(n, 2 * h, 2 * w, cout)


def apply_conv(x, op, relu_in=False, relu_out=False, residual=None):
    if op['phase_pack']:
        x = _phase_pack(x)
    y = _conv_core(x, op['wm'], op['b'], kh=op['kh'], kw=op['kw'],
                   ph=op['ph'], pw=op['pw'], relu_in=relu_in,
                   relu_out=relu_out, residual=residual)
    if op['pixel_shuffle']:
        y = _pixel_shuffle2(y, op['cout'])
    return y


# ----------------------------------------------------------------------------
# Vector quantization wrapper
# ----------------------------------------------------------------------------
def quantize(x, qp):
    """x: (N, H, W, D) NHWC; returns (quantized NHWC, diff scalar)."""
    n, h, w, d = x.shape
    m = n * h * w
    flat = x.reshape(m, d)
    npad = qp['embed'].shape[1]
    if m >= 16:                                  # >=2 tiles -> v7x 2-core parallel
        tm = min(512, _round_up(pl.cdiv(m, 2), 8))
    else:
        tm = _round_up(m, 8)
    grid = pl.cdiv(m, tm)
    q, sse = pl.pallas_call(
        _quantize_kernel,
        out_shape=(jax.ShapeDtypeStruct((m, d), jnp.float32),
                   jax.ShapeDtypeStruct((m, 1), jnp.float32)),
        grid=(grid,),
        in_specs=[pl.BlockSpec((tm, d), lambda i: (i, 0)),
                  pl.BlockSpec((d, npad), lambda i: (0, 0)),
                  pl.BlockSpec((npad, d), lambda i: (0, 0)),
                  pl.BlockSpec((1, npad), lambda i: (0, 0))],
        out_specs=(pl.BlockSpec((tm, d), lambda i: (i, 0)),
                   pl.BlockSpec((tm, 1), lambda i: (i, 0))),
        compiler_params=pltpu.CompilerParams(dimension_semantics=("parallel",)),
    )(flat, qp['embed'], qp['embed_t'], qp['e2'])
    diff = jnp.sum(sse) / (m * d)                # mean((quantize - input)^2)
    return q.reshape(n, h, w, d), diff


# ----------------------------------------------------------------------------
# Model blocks (forward-only)
# ----------------------------------------------------------------------------
def run_resblocks(x, res_ops, final_relu=True):
    # ResBlock: out = conv1x1(relu(conv3x3(relu(x)))) + x ; the trailing nn.ReLU
    # of the enclosing Encoder/Decoder is fused into the last block's relu_out.
    nres = len(res_ops)
    for i, rp in enumerate(res_ops):
        h = apply_conv(x, rp['c1'], relu_in=True, relu_out=True)
        x = apply_conv(h, rp['c2'], residual=x,
                       relu_out=(final_relu and i == nres - 1))
    return x


def encoder_s4(x, p):
    x = apply_conv(x, p['c1'], relu_out=True)
    x = apply_conv(x, p['c2'], relu_out=True)
    x = apply_conv(x, p['c3'], relu_out=(len(p['res']) == 0))
    return run_resblocks(x, p['res'], final_relu=True)


def encoder_s2(x, p):
    x = apply_conv(x, p['c1'], relu_out=True)
    x = apply_conv(x, p['c2'], relu_out=(len(p['res']) == 0))
    return run_resblocks(x, p['res'], final_relu=True)


def decoder_s2(x, p):
    x = apply_conv(x, p['c1'], relu_out=(len(p['res']) == 0))
    x = run_resblocks(x, p['res'], final_relu=True)
    return apply_conv(x, p['ct'])


def decoder_s4(x, p):
    x = apply_conv(x, p['c1'], relu_out=(len(p['res']) == 0))
    x = run_resblocks(x, p['res'], final_relu=True)
    x = apply_conv(x, p['ct1'], relu_out=True)
    return apply_conv(x, p['ct2'])


def vqvae_forward(x_nchw, pp):
    # interface: NCHW in / NCHW out (like the PyTorch module)
    x = jnp.transpose(x_nchw, (0, 2, 3, 1))      # -> NHWC for the kernels

    # encode
    enc_b = encoder_s4(x, pp['enc_b'])
    enc_t = encoder_s2(enc_b, pp['enc_t'])
    qt_in = apply_conv(enc_t, pp['qconv_t'])
    quant_t, diff_t = quantize(qt_in, pp['quant_t'])
    dec_t = decoder_s2(quant_t, pp['dec_t'])
    cat_b = jnp.concatenate([dec_t, enc_b], axis=-1)
    qb_in = apply_conv(cat_b, pp['qconv_b'])
    quant_b, diff_b = quantize(qb_in, pp['quant_b'])
    diff = jnp.reshape(diff_t + diff_b, (1,))    # diff_t.unsqueeze(0)+diff_b.unsqueeze(0)

    # decode
    up_t = apply_conv(quant_t, pp['upsample_t'])
    quant = jnp.concatenate([up_t, quant_b], axis=-1)
    dec = decoder_s4(quant, pp['dec'])

    return jnp.transpose(dec, (0, 3, 1, 2)), diff


# ----------------------------------------------------------------------------
# Parameter preparation (all weight re-layout hoisted out of the forward pass)
# ----------------------------------------------------------------------------
def _prep_conv(w, b, *, stride=1, pad=0):
    """PyTorch Conv2d weight (Cout, Cin, kH, kW) -> fused stride-1 conv op."""
    cout, cin, kh, kw = w.shape
    if stride == 1:
        wm = jnp.transpose(w, (2, 3, 1, 0)).reshape(kh * kw * cin, cout)
        op = dict(kh=kh, kw=kw, ph=pad, pw=pad, phase_pack=False)
    elif stride == 2:
        assert (kh, kw, pad) == (4, 4, 1)
        # stride-2 4x4 conv == stride-1 2x2 conv over the 4 phase-packed inputs
        wt = jnp.transpose(w, (2, 3, 1, 0))                  # (ky, kx, cin, cout)
        wt = wt.reshape(2, 2, 2, 2, cin, cout)               # (a, ry, b, rx, ...)
        wt = jnp.transpose(wt, (0, 2, 1, 3, 4, 5))           # (a, b, ry, rx, ...)
        wm = wt.reshape(2 * 2 * 4 * cin, cout)
        op = dict(kh=2, kw=2, ph=0, pw=0, phase_pack=True)
    else:
        raise NotImplementedError(stride)
    op.update(wm=wm.astype(jnp.bfloat16),
              b=b.reshape(1, -1).astype(jnp.float32),
              pixel_shuffle=False, cout=cout)
    return op


def _prep_conv_transpose(w, b):
    """ConvTranspose2d(k=4, s=2, p=1) weight (Cin, Cout, 4, 4) -> equivalent
    stride-1 3x3 conv with 4*Cout phase outputs + pixel shuffle."""
    cin, cout, kh, kw = w.shape
    assert (kh, kw) == (4, 4)
    w3 = jnp.zeros((3, 3, cin, 2, 2, cout), jnp.float32)
    for a in range(3):
        for p in range(2):
            ky = 3 + p - 2 * a
            if not 0 <= ky <= 3:
                continue
            for bb in range(3):
                for q in range(2):
                    kx = 3 + q - 2 * bb
                    if not 0 <= kx <= 3:
                        continue
                    w3 = w3.at[a, bb, :, p, q, :].set(w[:, :, ky, kx])
    wm = w3.reshape(9 * cin, 4 * cout)
    return dict(kh=3, kw=3, ph=1, pw=1, phase_pack=False, pixel_shuffle=True,
                cout=cout, wm=wm.astype(jnp.bfloat16),
                b=jnp.tile(b, 4).reshape(1, -1).astype(jnp.float32))


def _prep_quant(embed):
    d, n = embed.shape
    npad = _round_up(n, 128)                       # lane-dense codebook
    e = jnp.pad(embed, ((0, 0), (0, npad - n)))
    e2 = jnp.sum(e * e, axis=0, keepdims=True)
    e2 = e2 + jnp.where(jnp.arange(npad) >= n, 1e30, 0.0).reshape(1, npad)
    return {'embed': e, 'embed_t': jnp.transpose(e), 'e2': e2, 'dim': d}


def prepare_params(params):
    conv = lambda p, **kw: _prep_conv(p['w'], p['b'], **kw)
    convt = lambda p: _prep_conv_transpose(p['w'], p['b'])
    res = lambda rl: [{'c1': conv(r['c1'], pad=1), 'c2': conv(r['c2'])} for r in rl]
    return {
        'enc_b': {'c1': conv(params['enc_b']['c1'], stride=2, pad=1),
                  'c2': conv(params['enc_b']['c2'], stride=2, pad=1),
                  'c3': conv(params['enc_b']['c3'], pad=1),
                  'res': res(params['enc_b']['res'])},
        'enc_t': {'c1': conv(params['enc_t']['c1'], stride=2, pad=1),
                  'c2': conv(params['enc_t']['c2'], pad=1),
                  'res': res(params['enc_t']['res'])},
        'qconv_t': conv(params['qconv_t']),
        'quant_t': _prep_quant(params['embed_t']),
        'dec_t': {'c1': conv(params['dec_t']['c1'], pad=1),
                  'res': res(params['dec_t']['res']),
                  'ct': convt(params['dec_t']['ct'])},
        'qconv_b': conv(params['qconv_b']),
        'quant_b': _prep_quant(params['embed_b']),
        'upsample_t': convt(params['upsample_t']),
        'dec': {'c1': conv(params['dec']['c1'], pad=1),
                'res': res(params['dec']['res']),
                'ct1': convt(params['dec']['ct1']),
                'ct2': convt(params['dec']['ct2'])},
    }


# ----------------------------------------------------------------------------
# Deterministic parameter init (shapes match the PyTorch module __init__)
# ----------------------------------------------------------------------------
class KeyGen:
    def __init__(self, key):
        self.key = key

    def __call__(self):
        self.key, k = jax.random.split(self.key)
        return k


def _conv_p(kg, cout, cin, k):
    return {'w': jax.random.normal(kg(), (cout, cin, k, k), jnp.float32) * 0.05,
            'b': jax.random.normal(kg(), (cout,), jnp.float32) * 0.05}


def _convT_p(kg, cin, cout, k):
    return {'w': jax.random.normal(kg(), (cin, cout, k, k), jnp.float32) * 0.05,
            'b': jax.random.normal(kg(), (cout,), jnp.float32) * 0.05}


def init_params(key, *, in_channel, channel, n_res_block, n_res_channel,
                codebook_dim, codebook_size):
    kg = KeyGen(key)

    def res_p(in_ch, res_ch):
        return {'c1': _conv_p(kg, res_ch, in_ch, 3), 'c2': _conv_p(kg, in_ch, res_ch, 1)}

    params = {}
    params['enc_b'] = {
        'c1': _conv_p(kg, channel // 2, in_channel, 4),
        'c2': _conv_p(kg, channel, channel // 2, 4),
        'c3': _conv_p(kg, channel, channel, 3),
        'res': [res_p(channel, n_res_channel) for _ in range(n_res_block)],
    }
    params['enc_t'] = {
        'c1': _conv_p(kg, channel // 2, channel, 4),
        'c2': _conv_p(kg, channel, channel // 2, 3),
        'res': [res_p(channel, n_res_channel) for _ in range(n_res_block)],
    }
    params['qconv_t'] = _conv_p(kg, codebook_dim, channel, 1)
    params['embed_t'] = jax.random.normal(kg(), (codebook_dim, codebook_size), jnp.float32)
    params['dec_t'] = {
        'c1': _conv_p(kg, channel, codebook_dim, 3),
        'res': [res_p(channel, n_res_channel) for _ in range(n_res_block)],
        'ct': _convT_p(kg, channel, codebook_dim, 4),
    }
    params['qconv_b'] = _conv_p(kg, codebook_dim, codebook_dim + channel, 1)
    params['embed_b'] = jax.random.normal(kg(), (codebook_dim, codebook_size), jnp.float32)
    params['upsample_t'] = _convT_p(kg, codebook_dim, codebook_dim, 4)
    params['dec'] = {
        'c1': _conv_p(kg, channel, codebook_dim + codebook_dim, 3),
        'res': [res_p(channel, n_res_channel) for _ in range(n_res_block)],
        'ct1': _convT_p(kg, channel, channel // 2, 4),
        'ct2': _convT_p(kg, channel // 2, in_channel, 4),
    }
    return params


# ----------------------------------------------------------------------------
if __name__ == "__main__":
    cfg = dict(in_channel=3, channel=32, n_res_block=1, n_res_channel=16,
               codebook_dim=16, codebook_size=64)
    key = jax.random.PRNGKey(0)
    pkey, xkey = jax.random.split(key)
    params = init_params(pkey, **cfg)
    pp = prepare_params(params)          # one-time weight re-layout (hoisted)

    x = jax.random.normal(xkey, (2, 3, 16, 16), jnp.float32)  # NCHW, like PyTorch

    fwd = jax.jit(lambda inp: vqvae_forward(inp, pp))
    dec, diff = fwd(x)
    dec, diff = jax.block_until_ready((dec, diff))

    assert dec.shape == (2, 3, 16, 16), dec.shape
    assert diff.shape == (1,), diff.shape
    assert bool(jnp.isfinite(dec).all()) and bool(jnp.isfinite(diff).all())
    print("KERNEL_OK")
</pallas_src>

<mosaic_0001>
module attributes {stable_mosaic.version = 11 : i64} {
  func.func @_conv_kernel(%arg0: i32, %arg1: memref<1x90x12xf32, #tpu.memory_space<vmem>>, %arg2: memref<48x16xbf16, #tpu.memory_space<vmem>>, %arg3: memref<1x16xf32, #tpu.memory_space<vmem>>, %arg4: memref<1x72x16xf32, #tpu.memory_space<vmem>>) attributes {dimension_semantics = [#tpu.dimension_semantics<parallel>], iteration_bounds = array<i64: 2>, scalar_prefetch = 0 : i64, scratch_operands = 0 : i64, tpu.core_type = #tpu.core_type<tc>, window_params = [{transform_indices = @transform_0, window_bounds = array<i64: 1, 90, 12>}, {pipeline_mode = #tpu.pipeline_mode<synchronous>, transform_indices = @transform_1, window_bounds = array<i64: 48, 16>}, {pipeline_mode = #tpu.pipeline_mode<synchronous>, transform_indices = @transform_2, window_bounds = array<i64: 1, 16>}, {transform_indices = @transform_3, window_bounds = array<i64: 1, 72, 16>}]} {
    %cst = arith.constant 0.000000e+00 : f32
    %0 = vector.broadcast %cst : f32 to vector<72x16xf32>
    %c0 = arith.constant 0 : index
    %c0_0 = arith.constant 0 : index
    %c0_1 = arith.constant 0 : index
    %1 = vector.load %arg1[%c0, %c0_0, %c0_1] : memref<1x90x12xf32, #tpu.memory_space<vmem>>, vector<1x72x12xf32>
    %2 = vector.shape_cast %1 : vector<1x72x12xf32> to vector<72x12xf32>
    %c0_2 = arith.constant 0 : index
    %c0_3 = arith.constant 0 : index
    %3 = vector.load %arg2[%c0_2, %c0_3] : memref<48x16xbf16, #tpu.memory_space<vmem>>, vector<12x16xbf16>
    %4 = arith.truncf %2 : vector<72x12xf32> to vector<72x12xbf16>
    %cst_4 = arith.constant dense<0.000000e+00> : vector<72x16xf32>
    %5 = tpu.matmul %4, %3, %cst_4 {dimension_numbers = #tpu.dot_dimension_numbers<[1], [0], [0], [1], [0, 0, 1, 1], [], []>} : vector<72x12xbf16>, vector<12x16xbf16>, vector<72x16xf32> -> vector<72x16xf32>
    %6 = arith.addf %0, %5 : vector<72x16xf32>
    %c0_5 = arith.constant 0 : index
    %c1 = arith.constant 1 : index
    %c0_6 = arith.constant 0 : index
    %7 = vector.load %arg1[%c0_5, %c1, %c0_6] : memref<1x90x12xf32, #tpu.memory_space<vmem>>, vector<1x72x12xf32>
    %8 = vector.shape_cast %7 : vector<1x72x12xf32> to vector<72x12xf32>
    %c12 = arith.constant 12 : index
    %c0_7 = arith.constant 0 : index
    %9 = vector.load %arg2[%c12, %c0_7] : memref<48x16xbf16, #tpu.memory_space<vmem>>, vector<12x16xbf16>
    %10 = arith.truncf %8 : vector<72x12xf32> to vector<72x12xbf16>
    %cst_8 = arith.constant dense<0.000000e+00> : vector<72x16xf32>
    %11 = tpu.matmul %10, %9, %cst_8 {dimension_numbers = #tpu.dot_dimension_numbers<[1], [0], [0], [1], [0, 0, 1, 1], [], []>} : vector<72x12xbf16>, vector<12x16xbf16>, vector<72x16xf32> -> vector<72x16xf32>
    %12 = arith.addf %6, %11 : vector<72x16xf32>
    %c0_9 = arith.constant 0 : index
    %c9 = arith.constant 9 : index
    %c0_10 = arith.constant 0 : index
    %13 = vector.load %arg1[%c0_9, %c9, %c0_10] : memref<1x90x12xf32, #tpu.memory_space<vmem>>, vector<1x72x12xf32>
    %14 = vector.shape_cast %13 : vector<1x72x12xf32> to vector<72x12xf32>
    %c24 = arith.constant 24 : index
    %c0_11 = arith.constant 0 : index
    %15 = vector.load %arg2[%c24, %c0_11] : memref<48x16xbf16, #tpu.memory_space<vmem>>, vector<12x16xbf16>
    %16 = arith.truncf %14 : vector<72x12xf32> to vector<72x12xbf16>
    %cst_12 = arith.constant dense<0.000000e+00> : vector<72x16xf32>
    %17 = tpu.matmul %16, %15, %cst_12 {dimension_numbers = #tpu.dot_dimension_numbers<[1], [0], [0], [1], [0, 0, 1, 1], [], []>} : vector<72x12xbf16>, vector<12x16xbf16>, vector<72x16xf32> -> vector<72x16xf32>
    %18 = arith.addf %12, %17 : vector<72x16xf32>
    %c0_13 = arith.constant 0 : index
    %c10 = arith.constant 10 : index
    %c0_14 = arith.constant 0 : index
    %19 = vector.load %arg1[%c0_13, %c10, %c0_14] : memref<1x90x12xf32, #tpu.memory_space<vmem>>, vector<1x72x12xf32>
    %20 = vector.shape_cast %19 : vector<1x72x12xf32> to vector<72x12xf32>
    %c36 = arith.constant 36 : index
    %c0_15 = arith.constant 0 : index
    %21 = vector.load %arg2[%c36, %c0_15] : memref<48x16xbf16, #tpu.memory_space<vmem>>, vector<12x16xbf16>
    %22 = arith.truncf %20 : vector<72x12xf32> to vector<72x12xbf16>
    %cst_16 = arith.constant dense<0.000000e+00> : vector<72x16xf32>
    %23 = tpu.matmul %22, %21, %cst_16 {dimension_numbers = #tpu.dot_dimension_numbers<[1], [0], [0], [1], [0, 0, 1, 1], [], []>} : vector<72x12xbf16>, vector<12x16xbf16>, vector<72x16xf32> -> vector<72x16xf32>
    %24 = arith.addf %18, %23 : vector<72x16xf32>
    %c0_17 = arith.constant 0 : index
    %c0_18 = arith.constant 0 : index
    %25 = vector.load %arg3[%c0_17, %c0_18] : memref<1x16xf32, #tpu.memory_space<vmem>>, vector<1x16xf32>
    %26 = vector.broadcast %25 : vector<1x16xf32> to vector<72x16xf32>
    %27 = arith.addf %24, %26 : vector<72x16xf32>
    %cst_19 = arith.constant 0.000000e+00 : f32
    %28 = vector.broadcast %cst_19 : f32 to vector<72x16xf32>
    %29 = arith.maximumf %27, %28 : vector<72x16xf32>
    %c0_20 = arith.constant 0 : index
    %c0_21 = arith.constant 0 : index
    %c0_22 = arith.constant 0 : index
    %30 = vector.load %arg4[%c0_20, %c0_21, %c0_22] : memref<1x72x16xf32, #tpu.memory_space<vmem>>, vector<1x72x16xf32>
    %31 = vector.shape_cast %30 : vector<1x72x16xf32> to vector<72x16xf32>
    %32 = vector.shape_cast %29 : vector<72x16xf32> to vector<1x72x16xf32>
    tpu.vector_store %arg4[%c0_20, %c0_21, %c0_22], %32 {strides = array<i32>} : memref<1x72x16xf32, #tpu.memory_space<vmem>>, vector<1x72x16xf32>,
    return
  }
  func.func @transform_0(%arg0: i32) -> (i32, i32, i32) {
    %c0_i32 = arith.constant 0 : i32
    %c0_i32_0 = arith.constant 0 : i32
    %c0_i32_1 = arith.constant 0 : i32
    return %arg0, %c0_i32, %c0_i32_0 : i32, i32, i32
  }
  func.func @transform_1(%arg0: i32) -> (i32, i32) {
    %c0_i32 = arith.constant 0 : i32
    %c0_i32_0 = arith.constant 0 : i32
    %c0_i32_1 = arith.constant 0 : i32
    return %c0_i32, %c0_i32_0 : i32, i32
  }
  func.func @transform_2(%arg0: i32) -> (i32, i32) {
    %c0_i32 = arith.constant 0 : i32
    %c0_i32_0 = arith.constant 0 : i32
    %c0_i32_1 = arith.constant 0 : i32
    return %c0_i32, %c0_i32_0 : i32, i32
  }
  func.func @transform_3(%arg0: i32) -> (i32, i32, i32) {
    %c0_i32 = arith.constant 0 : i32
    %c0_i32_0 = arith.constant 0 : i32
    %c0_i32_1 = arith.constant 0 : i32
    return %arg0, %c0_i32, %c0_i32_0 : i32, i32, i32
  }
}

module attributes {stable_mosaic.version = 11 : i64} {
  func.func @_conv_kernel(%arg0: i32, %arg1: memref<1x30x64xf32, #tpu.memory_space<vmem>>, %arg2: memref<256x32xbf16, #tpu.memory_space<vmem>>, %arg3: memref<1x32xf32, #tpu.memory_space<vmem>>, %arg4: memref<1x20x32xf32, #tpu.memory_space<vmem>>) attributes {dimension_semantics = [#tpu.dimension_semantics<parallel>], iteration_bounds = array<i64: 2>, scalar_prefetch = 0 : i64, scratch_operands = 0 : i64, tpu.core_type = #tpu.core_type<tc>, window_params = [{transform_indices = @transform_0, window_bounds = array<i64: 1, 30, 64>}, {pipeline_mode = #tpu.pipeline_mode<synchronous>, transform_indices = @transform_1, window_bounds = array<i64: 256, 32>}, {pipeline_mode = #tpu.pipeline_mode<synchronous>, transform_indices = @transform_2, window_bounds = array<i64: 1, 32>}, {transform_indices = @transform_3, window_bounds = array<i64: 1, 20, 32>}]} {
    %cst = arith.constant 0.000000e+00 : f32
    %0 = vector.broadcast %cst : f32 to vector<20x32xf32>
    %c0 = arith.constant 0 : index
    %c0_0 = arith.constant 0 : index
    %c0_1 = arith.constant 0 : index
    %1 = vector.load %arg1[%c0, %c0_0, %c0_1] : memref<1x30x64xf32, #tpu.memory_space<vmem>>, vector<1x20x64xf32>
    %2 = vector.shape_cast %1 : vector<1x20x64xf32> to vector<20x64xf32>
    %c0_2 = arith.constant 0 : index
    %c0_3 = arith.constant 0 : index
    %3 = vector.load %arg2[%c0_2, %c0_3] : memref<256x32xbf16, #tpu.memory_space<vmem>>, vector<64x32xbf16>
    %4 = arith.truncf %2 : vector<20x64xf32> to vector<20x64xbf16>
    %cst_4 = arith.constant dense<0.000000e+00> : vector<20x32xf32>
    %5 = tpu.matmul %4, %3, %cst_4 {dimension_numbers = #tpu.dot_dimension_numbers<[1], [0], [0], [1], [0, 0, 1, 1], [], []>} : vector<20x64xbf16>, vector<64x32xbf16>, vector<20x32xf32> -> vector<20x32xf32>
    %6 = arith.addf %0, %5 : vector<20x32xf32>
    %c0_5 = arith.constant 0 : index
    %c1 = arith.constant 1 : index
    %c0_6 = arith.constant 0 : index
    %7 = vector.load %arg1[%c0_5, %c1, %c0_6] : memref<1x30x64xf32, #tpu.memory_space<vmem>>, vector<1x20x64xf32>
    %8 = vector.shape_cast %7 : vector<1x20x64xf32> to vector<20x64xf32>
    %c64 = arith.constant 64 : index
    %c0_7 = arith.constant 0 : index
    %9 = vector.load %arg2[%c64, %c0_7] : memref<256x32xbf16, #tpu.memory_space<vmem>>, vector<64x32xbf16>
    %10 = arith.truncf %8 : vector<20x64xf32> to vector<20x64xbf16>
    %cst_8 = arith.constant dense<0.000000e+00> : vector<20x32xf32>
    %11 = tpu.matmul %10, %9, %cst_8 {dimension_numbers = #tpu.dot_dimension_numbers<[1], [0], [0], [1], [0, 0, 1, 1], [], []>} : vector<20x64xbf16>, vector<64x32xbf16>, vector<20x32xf32> -> vector<20x32xf32>
    %12 = arith.addf %6, %11 : vector<20x32xf32>
    %c0_9 = arith.constant 0 : index
    %c5 = arith.constant 5 : index
    %c0_10 = arith.constant 0 : index
    %13 = vector.load %arg1[%c0_9, %c5, %c0_10] : memref<1x30x64xf32, #tpu.memory_space<vmem>>, vector<1x20x64xf32>
    %14 = vector.shape_cast %13 : vector<1x20x64xf32> to vector<20x64xf32>
    %c128 = arith.constant 128 : index
    %c0_11 = arith.constant 0 : index
    %15 = vector.load %arg2[%c128, %c0_11] : memref<256x32xbf16, #tpu.memory_space<vmem>>, vector<64x32xbf16>
    %16 = arith.truncf %14 : vector<20x64xf32> to vector<20x64xbf16>
    %cst_12 = arith.constant dense<0.000000e+00> : vector<20x32xf32>
    %17 = tpu.matmul %16, %15, %cst_12 {dimension_numbers = #tpu.dot_dimension_numbers<[1], [0], [0], [1], [0, 0, 1, 1], [], []>} : vector<20x64xbf16>, vector<64x32xbf16>, vector<20x32xf32> -> vector<20x32xf32>
    %18 = arith.addf %12, %17 : vector<20x32xf32>
    %c0_13 = arith.constant 0 : index
    %c6 = arith.constant 6 : index
    %c0_14 = arith.constant 0 : index
    %19 = vector.load %arg1[%c0_13, %c6, %c0_14] : memref<1x30x64xf32, #tpu.memory_space<vmem>>, vector<1x20x64xf32>
    %20 = vector.shape_cast %19 : vector<1x20x64xf32> to vector<20x64xf32>
    %c192 = arith.constant 192 : index
    %c0_15 = arith.constant 0 : index
    %21 = vector.load %arg2[%c192, %c0_15] : memref<256x32xbf16, #tpu.memory_space<vmem>>, vector<64x32xbf16>
    %22 = arith.truncf %20 : vector<20x64xf32> to vector<20x64xbf16>
    %cst_16 = arith.constant dense<0.000000e+00> : vector<20x32xf32>
    %23 = tpu.matmul %22, %21, %cst_16 {dimension_numbers = #tpu.dot_dimension_numbers<[1], [0], [0], [1], [0, 0, 1, 1], [], []>} : vector<20x64xbf16>, vector<64x32xbf16>, vector<20x32xf32> -> vector<20x32xf32>
    %24 = arith.addf %18, %23 : vector<20x32xf32>
    %c0_17 = arith.constant 0 : index
    %c0_18 = arith.constant 0 : index
    %25 = vector.load %arg3[%c0_17, %c0_18] : memref<1x32xf32, #tpu.memory_space<vmem>>, vector<1x32xf32>
    %26 = vector.broadcast %25 : vector<1x32xf32> to vector<20x32xf32>
    %27 = arith.addf %24, %26 : vector<20x32xf32>
    %cst_19 = arith.constant 0.000000e+00 : f32
    %28 = vector.broadcast %cst_19 : f32 to vector<20x32xf32>
    %29 = arith.maximumf %27, %28 : vector<20x32xf32>
    %c0_20 = arith.constant 0 : index
    %c0_21 = arith.constant 0 : index
    %c0_22 = arith.constant 0 : index
    %30 = vector.load %arg4[%c0_20, %c0_21, %c0_22] : memref<1x20x32xf32, #tpu.memory_space<vmem>>, vector<1x20x32xf32>
    %31 = vector.shape_cast %30 : vector<1x20x32xf32> to vector<20x32xf32>
    %32 = vector.shape_cast %29 : vector<20x32xf32> to vector<1x20x32xf32>
    tpu.vector_store %arg4[%c0_20, %c0_21, %c0_22], %32 {strides = array<i32>} : memref<1x20x32xf32, #tpu.memory_space<vmem>>, vector<1x20x32xf32>,
    return
  }
  func.func @transform_0(%arg0: i32) -> (i32, i32, i32) {
    %c0_i32 = arith.constant 0 : i32
    %c0_i32_0 = arith.constant 0 : i32
    %c0_i32_1 = arith.constant 0 : i32
    return %arg0, %c0_i32, %c0_i32_0 : i32, i32, i32
  }
  func.func @transform_1(%arg0: i32) -> (i32, i32) {
    %c0_i32 = arith.constant 0 : i32
    %c0_i32_0 = arith.constant 0 : i32
    %c0_i32_1 = arith.constant 0 : i32
    return %c0_i32, %c0_i32_0 : i32, i32
  }
  func.func @transform_2(%arg0: i32) -> (i32, i32) {
    %c0_i32 = arith.constant 0 : i32
    %c0_i32_0 = arith.constant 0 : i32
    %c0_i32_1 = arith.constant 0 : i32
    return %c0_i32, %c0_i32_0 : i32, i32
  }
  func.func @transform_3(%arg0: i32) -> (i32, i32, i32) {
    %c0_i32 = arith.constant 0 : i32
    %c0_i32_0 = arith.constant 0 : i32
    %c0_i32_1 = arith.constant 0 : i32
    return %arg0, %c0_i32, %c0_i32_0 : i32, i32, i32
  }
}

module attributes {stable_mosaic.version = 11 : i64} {
  func.func @_conv_kernel(%arg0: i32, %arg1: memref<1x42x32xf32, #tpu.memory_space<vmem>>, %arg2: memref<288x32xbf16, #tpu.memory_space<vmem>>, %arg3: memref<1x32xf32, #tpu.memory_space<vmem>>, %arg4: memref<1x24x32xf32, #tpu.memory_space<vmem>>) attributes {dimension_semantics = [#tpu.dimension_semantics<parallel>], iteration_bounds = array<i64: 2>, scalar_prefetch = 0 : i64, scratch_operands = 0 : i64, tpu.core_type = #tpu.core_type<tc>, window_params = [{transform_indices = @transform_0, window_bounds = array<i64: 1, 42, 32>}, {pipeline_mode = #tpu.pipeline_mode<synchronous>, transform_indices = @transform_1, window_bounds = array<i64: 288, 32>}, {pipeline_mode = #tpu.pipeline_mode<synchronous>, transform_indices = @transform_2, window_bounds = array<i64: 1, 32>}, {transform_indices = @transform_3, window_bounds = array<i64: 1, 24, 32>}]} {
    %cst = arith.constant 0.000000e+00 : f32
    %0 = vector.broadcast %cst : f32 to vector<24x32xf32>
    %c0 = arith.constant 0 : index
    %c0_0 = arith.constant 0 : index
    %c0_1 = arith.constant 0 : index
    %1 = vector.load %arg1[%c0, %c0_0, %c0_1] : memref<1x42x32xf32, #tpu.memory_space<vmem>>, vector<1x24x32xf32>
    %2 = vector.shape_cast %1 : vector<1x24x32xf32> to vector<24x32xf32>
    %c0_2 = arith.constant 0 : index
    %c0_3 = arith.constant 0 : index
    %3 = vector.load %arg2[%c0_2, %c0_3] : memref<288x32xbf16, #tpu.memory_space<vmem>>, vector<32x32xbf16>
    %4 = arith.truncf %2 : vector<24x32xf32> to vector<24x32xbf16>
    %cst_4 = arith.constant dense<0.000000e+00> : vector<24x32xf32>
    %5 = tpu.matmul %4, %3, %cst_4 {dimension_numbers = #tpu.dot_dimension_numbers<[1], [0], [0], [1], [0, 0, 1, 1], [], []>} : vector<24x32xbf16>, vector<32x32xbf16>, vector<24x32xf32> -> vector<24x32xf32>
    %6 = arith.addf %0, %5 : vector<24x32xf32>
    %c0_5 = arith.constant 0 : index
    %c1 = arith.constant 1 : index
    %c0_6 = arith.constant 0 : index
    %7 = vector.load %arg1[%c0_5, %c1, %c0_6] : memref<1x42x32xf32, #tpu.memory_space<vmem>>, vector<1x24x32xf32>
    %8 = vector.shape_cast %7 : vector<1x24x32xf32> to vector<24x32xf32>
    %c32 = arith.constant 32 : index
    %c0_7 = arith.constant 0 : index
    %9 = vector.load %arg2[%c32, %c0_7] : memref<288x32xbf16, #tpu.memory_space<vmem>>, vector<32x32xbf16>
    %10 = arith.truncf %8 : vector<24x32xf32> to vector<24x32xbf16>
    %cst_8 = arith.constant dense<0.000000e+00> : vector<24x32xf32>
    %11 = tpu.matmul %10, %9, %cst_8 {dimension_numbers = #tpu.dot_dimension_numbers<[1], [0], [0], [1], [0, 0, 1, 1], [], []>} : vector<24x32xbf16>, vector<32x32xbf16>, vector<24x32xf32> -> vector<24x32xf32>
    %12 = arith.addf %6, %11 : vector<24x32xf32>
    %c0_9 = arith.constant 0 : index
    %c2 = arith.constant 2 : index
    %c0_10 = arith.constant 0 : index
    %13 = vector.load %arg1[%c0_9, %c2, %c0_10] : memref<1x42x32xf32, #tpu.memory_space<vmem>>, vector<1x24x32xf32>
    %14 = vector.shape_cast %13 : vector<1x24x32xf32> to vector<24x32xf32>
    %c64 = arith.constant 64 : index
    %c0_11 = arith.constant 0 : index
    %15 = vector.load %arg2[%c64, %c0_11] : memref<288x32xbf16, #tpu.memory_space<vmem>>, vector<32x32xbf16>
    %16 = arith.truncf %14 : vector<24x32xf32> to vector<24x32xbf16>
    %cst_12 = arith.constant dense<0.000000e+00> : vector<24x32xf32>
    %17 = tpu.matmul %16, %15, %cst_12 {dimension_numbers = #tpu.dot_dimension_numbers<[1], [0], [0], [1], [0, 0, 1, 1], [], []>} : vector<24x32xbf16>, vector<32x32xbf16>, vector<24x32xf32> -> vector<24x32xf32>
    %18 = arith.addf %12, %17 : vector<24x32xf32>
    %c0_13 = arith.constant 0 : index
    %c6 = arith.constant 6 : index
    %c0_14 = arith.constant 0 : index
    %19 = vector.load %arg1[%c0_13, %c6, %c0_14] : memref<1x42x32xf32, #tpu.memory_space<vmem>>, vector<1x24x32xf32>
    %20 = vector.shape_cast %19 : vector<1x24x32xf32> to vector<24x32xf32>
    %c96 = arith.constant 96 : index
    %c0_15 = arith.constant 0 : index
    %21 = vector.load %arg2[%c96, %c0_15] : memref<288x32xbf16, #tpu.memory_space<vmem>>, vector<32x32xbf16>
    %22 = arith.truncf %20 : vector<24x32xf32> to vector<24x32xbf16>
    %cst_16 = arith.constant dense<0.000000e+00> : vector<24x32xf32>
    %23 = tpu.matmul %22, %21, %cst_16 {dimension_numbers = #tpu.dot_dimension_numbers<[1], [0], [0], [1], [0, 0, 1, 1], [], []>} : vector<24x32xbf16>, vector<32x32xbf16>, vector<24x32xf32> -> vector<24x32xf32>
    %24 = arith.addf %18, %23 : vector<24x32xf32>
    %c0_17 = arith.constant 0 : index
    %c7 = arith.constant 7 : index
    %c0_18 = arith.constant 0 : index
    %25 = vector.load %arg1[%c0_17, %c7, %c0_18] : memref<1x42x32xf32, #tpu.memory_space<vmem>>, vector<1x24x32xf32>
    %26 = vector.shape_cast %25 : vector<1x24x32xf32> to vector<24x32xf32>
    %c128 = arith.constant 128 : index
    %c0_19 = arith.constant 0 : index
    %27 = vector.load %arg2[%c128, %c0_19] : memref<288x32xbf16, #tpu.memory_space<vmem>>, vector<32x32xbf16>
    %28 = arith.truncf %26 : vector<24x32xf32> to vector<24x32xbf16>
    %cst_20 = arith.constant dense<0.000000e+00> : vector<24x32xf32>
    %29 = tpu.matmul %28, %27, %cst_20 {dimension_numbers = #tpu.dot_dimension_numbers<[1], [0], [0], [1], [0, 0, 1, 1], [], []>} : vector<24x32xbf16>, vector<32x32xbf16>, vector<24x32xf32> -> vector<24x32xf32>
    %30 = arith.addf %24, %29 : vector<24x32xf32>
    %c0_21 = arith.constant 0 : index
    %c8 = arith.constant 8 : index
    %c0_22 = arith.constant 0 : index
    %31 = vector.load %arg1[%c0_21, %c8, %c0_22] : memref<1x42x32xf32, #tpu.memory_space<vmem>>, vector<1x24x32xf32>
    %32 = vector.shape_cast %31 : vector<1x24x32xf32> to vector<24x32xf32>
    %c160 = arith.constant 160 : index
    %c0_23 = arith.constant 0 : index
    %33 = vector.load %arg2[%c160, %c0_23] : memref<288x32xbf16, #tpu.memory_space<vmem>>, vector<32x32xbf16>
    %34 = arith.truncf %32 : vector<24x32xf32> to vector<24x32xbf16>
    %cst_24 = arith.constant dense<0.000000e+00> : vector<24x32xf32>
    %35 = tpu.matmul %34, %33, %cst_24 {dimension_numbers = #tpu.dot_dimension_numbers<[1], [0], [0], [1], [0, 0, 1, 1], [], []>} : vector<24x32xbf16>, vector<32x32xbf16>, vector<24x32xf32> -> vector<24x32xf32>
    %36 = arith.addf %30, %35 : vector<24x32xf32>
    %c0_25 = arith.constant 0 : index
    %c12 = arith.constant 12 : index
    %c0_26 = arith.constant 0 : index
    %37 = vector.load %arg1[%c0_25, %c12, %c0_26] : memref<1x42x32xf32, #tpu.memory_space<vmem>>, vector<1x24x32xf32>
    %38 = vector.shape_cast %37 : vector<1x24x32xf32> to vector<24x32xf32>
    %c192 = arith.constant 192 : index
    %c0_27 = arith.constant 0 : index
    %39 = vector.load %arg2[%c192, %c0_27] : memref<288x32xbf16, #tpu.memory_space<vmem>>, vector<32x32xbf16>
    %40 = arith.truncf %38 : vector<24x32xf32> to vector<24x32xbf16>
    %cst_28 = arith.constant dense<0.000000e+00> : vector<24x32xf32>
    %41 = tpu.matmul %40, %39, %cst_28 {dimension_numbers = #tpu.dot_dimension_numbers<[1], [0], [0], [1], [0, 0, 1, 1], [], []>} : vector<24x32xbf16>, vector<32x32xbf16>, vector<24x32xf32> -> vector<24x32xf32>
    %42 = arith.addf %36, %41 : vector<24x32xf32>
    %c0_29 = arith.constant 0 : index
    %c13 = arith.constant 13 : index
    %c0_30 = arith.constant 0 : index
    %43 = vector.load %arg1[%c0_29, %c13, %c0_30] : memref<1x42x32xf32, #tpu.memory_space<vmem>>, vector<1x24x32xf32>
    %44 = vector.shape_cast %43 : vector<1x24x32xf32> to vector<24x32xf32>
    %c224 = arith.constant 224 : index
    %c0_31 = arith.constant 0 : index
    %45 = vector.load %arg2[%c224, %c0_31] : memref<288x32xbf16, #tpu.memory_space<vmem>>, vector<32x32xbf16>
    %46 = arith.truncf %44 : vector<24x32xf32> to vector<24x32xbf16>
    %cst_32 = arith.constant dense<0.000000e+00> : vector<24x32xf32>
    %47 = tpu.matmul %46, %45, %cst_32 {dimension_numbers = #tpu.dot_dimension_numbers<[1], [0], [0], [1], [0, 0, 1, 1], [], []>} : vector<24x32xbf16>, vector<32x32xbf16>, vector<24x32xf32> -> vector<24x32xf32>
    %48 = arith.addf %42, %47 : vector<24x32xf32>
    %c0_33 = arith.constant 0 : index
    %c14 = arith.constant 14 : index
    %c0_34 = arith.constant 0 : index
    %49 = vector.load %arg1[%c0_33, %c14, %c0_34] : memref<1x42x32xf32, #tpu.memory_space<vmem>>, vector<1x24x32xf32>
    %50 = vector.shape_cast %49 : vector<1x24x32xf32> to vector<24x32xf32>
    %c256 = arith.constant 256 : index
    %c0_35 = arith.constant 0 : index
    %51 = vector.load %arg2[%c256, %c0_35] : memref<288x32xbf16, #tpu.memory_space<vmem>>, vector<32x32xbf16>
    %52 = arith.truncf %50 : vector<24x32xf32> to vector<24x32xbf16>
    %cst_36 = arith.constant dense<0.000000e+00> : vector<24x32xf32>
    %53 = tpu.matmul %52, %51, %cst_36 {dimension_numbers = #tpu.dot_dimension_numbers<[1], [0], [0], [1], [0, 0, 1, 1], [], []>} : vector<24x32xbf16>, vector<32x32xbf16>, vector<24x32xf32> -> vector<24x32xf32>
    %54 = arith.addf %48, %53 : vector<24x32xf32>
    %c0_37 = arith.constant 0 : index
    %c0_38 = arith.constant 0 : index
    %55 = vector.load %arg3[%c0_37, %c0_38] : memref<1x32xf32, #tpu.memory_space<vmem>>, vector<1x32xf32>
    %56 = vector.broadcast %55 : vector<1x32xf32> to vector<24x32xf32>
    %57 = arith.addf %54, %56 : vector<24x32xf32>
    %c0_39 = arith.constant 0 : index
    %c0_40 = arith.constant 0 : index
    %c0_41 = arith.constant 0 : index
    %58 = vector.load %arg4[%c0_39, %c0_40, %c0_41] : memref<1x24x32xf32, #tpu.memory_space<vmem>>, vector<1x24x32xf32>
    %59 = vector.shape_cast %58 : vector<1x24x32xf32> to vector<24x32xf32>
    %60 = vector.shape_cast %57 : vector<24x32xf32> to vector<1x24x32xf32>
    tpu.vector_store %arg4[%c0_39, %c0_40, %c0_41], %60 {strides = array<i32>} : memref<1x24x32xf32, #tpu.memory_space<vmem>>, vector<1x24x32xf32>,
    return
  }
  func.func @transform_0(%arg0: i32) -> (i32, i32, i32) {
    %c0_i32 = arith.constant 0 : i32
    %c0_i32_0 = arith.constant 0 : i32
    %c0_i32_1 = arith.constant 0 : i32
    return %arg0, %c0_i32, %c0_i32_0 : i32, i32, i32
  }
  func.func @transform_1(%arg0: i32) -> (i32, i32) {
    %c0_i32 = arith.constant 0 : i32
    %c0_i32_0 = arith.constant 0 : i32
    %c0_i32_1 = arith.constant 0 : i32
    return %c0_i32, %c0_i32_0 : i32, i32
  }
  func.func @transform_2(%arg0: i32) -> (i32, i32) {
    %c0_i32 = arith.constant 0 : i32
    %c0_i32_0 = arith.constant 0 : i32
    %c0_i32_1 = arith.constant 0 : i32
    return %c0_i32, %c0_i32_0 : i32, i32
  }
  func.func @transform_3(%arg0: i32) -> (i32, i32, i32) {
    %c0_i32 = arith.constant 0 : i32
    %c0_i32_0 = arith.constant 0 : i32
    %c0_i32_1 = arith.constant 0 : i32
    return %arg0, %c0_i32, %c0_i32_0 : i32, i32, i32
  }
}

module attributes {stable_mosaic.version = 11 : i64} {
  func.func @_conv_kernel(%arg0: i32, %arg1: memref<1x42x32xf32, #tpu.memory_space<vmem>>, %arg2: memref<288x16xbf16, #tpu.memory_space<vmem>>, %arg3: memref<1x16xf32, #tpu.memory_space<vmem>>, %arg4: memref<1x24x16xf32, #tpu.memory_space<vmem>>) attributes {dimension_semantics = [#tpu.dimension_semantics<parallel>], iteration_bounds = array<i64: 2>, scalar_prefetch = 0 : i64, scratch_operands = 0 : i64, tpu.core_type = #tpu.core_type<tc>, window_params = [{transform_indices = @transform_0, window_bounds = array<i64: 1, 42, 32>}, {pipeline_mode = #tpu.pipeline_mode<synchronous>, transform_indices = @transform_1, window_bounds = array<i64: 288, 16>}, {pipeline_mode = #tpu.pipeline_mode<synchronous>, transform_indices = @transform_2, window_bounds = array<i64: 1, 16>}, {transform_indices = @transform_3, window_bounds = array<i64: 1, 24, 16>}]} {
    %cst = arith.constant 0.000000e+00 : f32
    %0 = vector.broadcast %cst : f32 to vector<24x16xf32>
    %c0 = arith.constant 0 : index
    %c0_0 = arith.constant 0 : index
    %c0_1 = arith.constant 0 : index
    %1 = vector.load %arg1[%c0, %c0_0, %c0_1] : memref<1x42x32xf32, #tpu.memory_space<vmem>>, vector<1x24x32xf32>
    %2 = vector.shape_cast %1 : vector<1x24x32xf32> to vector<24x32xf32>
    %cst_2 = arith.constant 0.000000e+00 : f32
    %3 = vector.broadcast %cst_2 : f32 to vector<24x32xf32>
    %4 = arith.maximumf %2, %3 : vector<24x32xf32>
    %c0_3 = arith.constant 0 : index
    %c0_4 = arith.constant 0 : index
    %5 = vector.load %arg2[%c0_3, %c0_4] : memref<288x16xbf16, #tpu.memory_space<vmem>>, vector<32x16xbf16>
    %6 = arith.truncf %4 : vector<24x32xf32> to vector<24x32xbf16>
    %cst_5 = arith.constant dense<0.000000e+00> : vector<24x16xf32>
    %7 = tpu.matmul %6, %5, %cst_5 {dimension_numbers = #tpu.dot_dimension_numbers<[1], [0], [0], [1], [0, 0, 1, 1], [], []>} : vector<24x32xbf16>, vector<32x16xbf16>, vector<24x16xf32> -> vector<24x16xf32>
    %8 = arith.addf %0, %7 : vector<24x16xf32>
    %c0_6 = arith.constant 0 : index
    %c1 = arith.constant 1 : index
    %c0_7 = arith.constant 0 : index
    %9 = vector.load %arg1[%c0_6, %c1, %c0_7] : memref<1x42x32xf32, #tpu.memory_space<vmem>>, vector<1x24x32xf32>
    %10 = vector.shape_cast %9 : vector<1x24x32xf32> to vector<24x32xf32>
    %cst_8 = arith.constant 0.000000e+00 : f32
    %11 = vector.broadcast %cst_8 : f32 to vector<24x32xf32>
    %12 = arith.maximumf %10, %11 : vector<24x32xf32>
    %c32 = arith.constant 32 : index
    %c0_9 = arith.constant 0 : index
    %13 = vector.load %arg2[%c32, %c0_9] : memref<288x16xbf16, #tpu.memory_space<vmem>>, vector<32x16xbf16>
    %14 = arith.truncf %12 : vector<24x32xf32> to vector<24x32xbf16>
    %cst_10 = arith.constant dense<0.000000e+00> : vector<24x16xf32>
    %15 = tpu.matmul %14, %13, %cst_10 {dimension_numbers = #tpu.dot_dimension_numbers<[1], [0], [0], [1], [0, 0, 1, 1], [], []>} : vector<24x32xbf16>, vector<32x16xbf16>, vector<24x16xf32> -> vector<24x16xf32>
    %16 = arith.addf %8, %15 : vector<24x16xf32>
    %c0_11 = arith.constant 0 : index
    %c2 = arith.constant 2 : index
    %c0_12 = arith.constant 0 : index
    %17 = vector.load %arg1[%c0_11, %c2, %c0_12] : memref<1x42x32xf32, #tpu.memory_space<vmem>>, vector<1x24x32xf32>
    %18 = vector.shape_cast %17 : vector<1x24x32xf32> to vector<24x32xf32>
    %cst_13 = arith.constant 0.000000e+00 : f32
    %19 = vector.broadcast %cst_13 : f32 to vector<24x32xf32>
    %20 = arith.maximumf %18, %19 : vector<24x32xf32>
    %c64 = arith.constant 64 : index
    %c0_14 = arith.constant 0 : index
    %21 = vector.load %arg2[%c64, %c0_14] : memref<288x16xbf16, #tpu.memory_space<vmem>>, vector<32x16xbf16>
    %22 = arith.truncf %20 : vector<24x32xf32> to vector<24x32xbf16>
    %cst_15 = arith.constant dense<0.000000e+00> : vector<24x16xf32>
    %23 = tpu.matmul %22, %21, %cst_15 {dimension_numbers = #tpu.dot_dimension_numbers<[1], [0], [0], [1], [0, 0, 1, 1], [], []>} : vector<24x32xbf16>, vector<32x16xbf16>, vector<24x16xf32> -> vector<24x16xf32>
    %24 = arith.addf %16, %23 : vector<24x16xf32>
    %c0_16 = arith.constant 0 : index
    %c6 = arith.constant 6 : index
    %c0_17 = arith.constant 0 : index
    %25 = vector.load %arg1[%c0_16, %c6, %c0_17] : memref<1x42x32xf32, #tpu.memory_space<vmem>>, vector<1x24x32xf32>
    %26 = vector.shape_cast %25 : vector<1x24x32xf32> to vector<24x32xf32>
    %cst_18 = arith.constant 0.000000e+00 : f32
    %27 = vector.broadcast %cst_18 : f32 to vector<24x32xf32>
    %28 = arith.maximumf %26, %27 : vector<24x32xf32>
    %c96 = arith.constant 96 : index
    %c0_19 = arith.constant 0 : index
    %29 = vector.load %arg2[%c96, %c0_19] : memref<288x16xbf16, #tpu.memory_space<vmem>>, vector<32x16xbf16>
    %30 = arith.truncf %28 : vector<24x32xf32> to vector<24x32xbf16>
    %cst_20 = arith.constant dense<0.000000e+00> : vector<24x16xf32>
    %31 = tpu.matmul %30, %29, %cst_20 {dimension_numbers = #tpu.dot_dimension_numbers<[1], [0], [0], [1], [0, 0, 1, 1], [], []>} : vector<24x32xbf16>, vector<32x16xbf16>, vector<24x16xf32> -> vector<24x16xf32>
    %32 = arith.addf %24, %31 : vector<24x16xf32>
    %c0_21 = arith.constant 0 : index
    %c7 = arith.constant 7 : index
    %c0_22 = arith.constant 0 : index
    %33 = vector.load %arg1[%c0_21, %c7, %c0_22] : memref<1x42x32xf32, #tpu.memory_space<vmem>>, vector<1x24x32xf32>
    %34 = vector.shape_cast %33 : vector<1x24x32xf32> to vector<24x32xf32>
    %cst_23 = arith.constant 0.000000e+00 : f32
    %35 = vector.broadcast %cst_23 : f32 to vector<24x32xf32>
    %36 = arith.maximumf %34, %35 : vector<24x32xf32>
    %c128 = arith.constant 128 : index
    %c0_24 = arith.constant 0 : index
    %37 = vector.load %arg2[%c128, %c0_24] : memref<288x16xbf16, #tpu.memory_space<vmem>>, vector<32x16xbf16>
    %38 = arith.truncf %36 : vector<24x32xf32> to vector<24x32xbf16>
    %cst_25 = arith.constant dense<0.000000e+00> : vector<24x16xf32>
    %39 = tpu.matmul %38, %37, %cst_25 {dimension_numbers = #tpu.dot_dimension_numbers<[1], [0], [0], [1], [0, 0, 1, 1], [], []>} : vector<24x32xbf16>, vector<32x16xbf16>, vector<24x16xf32> -> vector<24x16xf32>
    %40 = arith.addf %32, %39 : vector<24x16xf32>
    %c0_26 = arith.constant 0 : index
    %c8 = arith.constant 8 : index
    %c0_27 = arith.constant 0 : index
    %41 = vector.load %arg1[%c0_26, %c8, %c0_27] : memref<1x42x32xf32, #tpu.memory_space<vmem>>, vector<1x24x32xf32>
    %42 = vector.shape_cast %41 : vector<1x24x32xf32> to vector<24x32xf32>
    %cst_28 = arith.constant 0.000000e+00 : f32
    %43 = vector.broadcast %cst_28 : f32 to vector<24x32xf32>
    %44 = arith.maximumf %42, %43 : vector<24x32xf32>
    %c160 = arith.constant 160 : index
    %c0_29 = arith.constant 0 : index
    %45 = vector.load %arg2[%c160, %c0_29] : memref<288x16xbf16, #tpu.memory_space<vmem>>, vector<32x16xbf16>
    %46 = arith.truncf %44 : vector<24x32xf32> to vector<24x32xbf16>
    %cst_30 = arith.constant dense<0.000000e+00> : vector<24x16xf32>
    %47 = tpu.matmul %46, %45, %cst_30 {dimension_numbers = #tpu.dot_dimension_numbers<[1], [0], [0], [1], [0, 0, 1, 1], [], []>} : vector<24x32xbf16>, vector<32x16xbf16>, vector<24x16xf32> -> vector<24x16xf32>
    %48 = arith.addf %40, %47 : vector<24x16xf32>
    %c0_31 = arith.constant 0 : index
    %c12 = arith.constant 12 : index
    %c0_32 = arith.constant 0 : index
    %49 = vector.load %arg1[%c0_31, %c12, %c0_32] : memref<1x42x32xf32, #tpu.memory_space<vmem>>, vector<1x24x32xf32>
    %50 = vector.shape_cast %49 : vector<1x24x32xf32> to vector<24x32xf32>
    %cst_33 = arith.constant 0.000000e+00 : f32
    %51 = vector.broadcast %cst_33 : f32 to vector<24x32xf32>
    %52 = arith.maximumf %50, %51 : vector<24x32xf32>
    %c192 = arith.constant 192 : index
    %c0_34 = arith.constant 0 : index
    %53 = vector.load %arg2[%c192, %c0_34] : memref<288x16xbf16, #tpu.memory_space<vmem>>, vector<32x16xbf16>
    %54 = arith.truncf %52 : vector<24x32xf32> to vector<24x32xbf16>
    %cst_35 = arith.constant dense<0.000000e+00> : vector<24x16xf32>
    %55 = tpu.matmul %54, %53, %cst_35 {dimension_numbers = #tpu.dot_dimension_numbers<[1], [0], [0], [1], [0, 0, 1, 1], [], []>} : vector<24x32xbf16>, vector<32x16xbf16>, vector<24x16xf32> -> vector<24x16xf32>
    %56 = arith.addf %48, %55 : vector<24x16xf32>
    %c0_36 = arith.constant 0 : index
    %c13 = arith.constant 13 : index
    %c0_37 = arith.constant 0 : index
    %57 = vector.load %arg1[%c0_36, %c13, %c0_37] : memref<1x42x32xf32, #tpu.memory_space<vmem>>, vector<1x24x32xf32>
    %58 = vector.shape_cast %57 : vector<1x24x32xf32> to vector<24x32xf32>
    %cst_38 = arith.constant 0.000000e+00 : f32
    %59 = vector.broadcast %cst_38 : f32 to vector<24x32xf32>
    %60 = arith.maximumf %58, %59 : vector<24x32xf32>
    %c224 = arith.constant 224 : index
    %c0_39 = arith.constant 0 : index
    %61 = vector.load %arg2[%c224, %c0_39] : memref<288x16xbf16, #tpu.memory_space<vmem>>, vector<32x16xbf16>
    %62 = arith.truncf %60 : vector<24x32xf32> to vector<24x32xbf16>
    %cst_40 = arith.constant dense<0.000000e+00> : vector<24x16xf32>
    %63 = tpu.matmul %62, %61, %cst_40 {dimension_numbers = #tpu.dot_dimension_numbers<[1], [0], [0], [1], [0, 0, 1, 1], [], []>} : vector<24x32xbf16>, vector<32x16xbf16>, vector<24x16xf32> -> vector<24x16xf32>
    %64 = arith.addf %56, %63 : vector<24x16xf32>
    %c0_41 = arith.constant 0 : index
    %c14 = arith.constant 14 : index
    %c0_42 = arith.constant 0 : index
    %65 = vector.load %arg1[%c0_41, %c14, %c0_42] : memref<1x42x32xf32, #tpu.memory_space<vmem>>, vector<1x24x32xf32>
    %66 = vector.shape_cast %65 : vector<1x24x32xf32> to vector<24x32xf32>
    %cst_43 = arith.constant 0.000000e+00 : f32
    %67 = vector.broadcast %cst_43 : f32 to vector<24x32xf32>
    %68 = arith.maximumf %66, %67 : vector<24x32xf32>
    %c256 = arith.constant 256 : index
    %c0_44 = arith.constant 0 : index
    %69 = vector.load %arg2[%c256, %c0_44] : memref<288x16xbf16, #tpu.memory_space<vmem>>, vector<32x16xbf16>
    %70 = arith.truncf %68 : vector<24x32xf32> to vector<24x32xbf16>
    %cst_45 = arith.constant dense<0.000000e+00> : vector<24x16xf32>
    %71 = tpu.matmul %70, %69, %cst_45 {dimension_numbers = #tpu.dot_dimension_numbers<[1], [0], [0], [1], [0, 0, 1, 1], [], []>} : vector<24x32xbf16>, vector<32x16xbf16>, vector<24x16xf32> -> vector<24x16xf32>
    %72 = arith.addf %64, %71 : vector<24x16xf32>
    %c0_46 = arith.constant 0 : index
    %c0_47 = arith.constant 0 : index
    %73 = vector.load %arg3[%c0_46, %c0_47] : memref<1x16xf32, #tpu.memory_space<vmem>>, vector<1x16xf32>
    %74 = vector.broadcast %73 : vector<1x16xf32> to vector<24x16xf32>
    %75 = arith.addf %72, %74 : vector<24x16xf32>
    %cst_48 = arith.constant 0.000000e+00 : f32
    %76 = vector.broadcast %cst_48 : f32 to vector<24x16xf32>
    %77 = arith.maximumf %75, %76 : vector<24x16xf32>
    %c0_49 = arith.constant 0 : index
    %c0_50 = arith.constant 0 : index
    %c0_51 = arith.constant 0 : index
    %78 = vector.load %arg4[%c0_49, %c0_50, %c0_51] : memref<1x24x16xf32, #tpu.memory_space<vmem>>, vector<1x24x16xf32>
    %79 = vector.shape_cast %78 : vector<1x24x16xf32> to vector<24x16xf32>
    %80 = vector.shape_cast %77 : vector<24x16xf32> to vector<1x24x16xf32>
    tpu.vector_store %arg4[%c0_49, %c0_50, %c0_51], %80 {strides = array<i32>} : memref<1x24x16xf32, #tpu.memory_space<vmem>>, vector<1x24x16xf32>,
    return
  }
  func.func @transform_0(%arg0: i32) -> (i32, i32, i32) {
    %c0_i32 = arith.constant 0 : i32
    %c0_i32_0 = arith.constant 0 : i32
    %c0_i32_1 = arith.constant 0 : i32
    return %arg0, %c0_i32, %c0_i32_0 : i32, i32, i32
  }
  func.func @transform_1(%arg0: i32) -> (i32, i32) {
    %c0_i32 = arith.constant 0 : i32
    %c0_i32_0 = arith.constant 0 : i32
    %c0_i32_1 = arith.constant 0 : i32
    return %c0_i32, %c0_i32_0 : i32, i32
  }
  func.func @transform_2(%arg0: i32) -> (i32, i32) {
    %c0_i32 = arith.constant 0 : i32
    %c0_i32_0 = arith.constant 0 : i32
    %c0_i32_1 = arith.constant 0 : i32
    return %c0_i32, %c0_i32_0 : i32, i32
  }
  func.func @transform_3(%arg0: i32) -> (i32, i32, i32) {
    %c0_i32 = arith.constant 0 : i32
    %c0_i32_0 = arith.constant 0 : i32
    %c0_i32_1 = arith.constant 0 : i32
    return %arg0, %c0_i32, %c0_i32_0 : i32, i32, i32
  }
}

module attributes {stable_mosaic.version = 11 : i64} {
  func.func @_conv_res_kernel(%arg0: i32, %arg1: memref<1x20x16xf32, #tpu.memory_space<vmem>>, %arg2: memref<16x32xbf16, #tpu.memory_space<vmem>>, %arg3: memref<1x32xf32, #tpu.memory_space<vmem>>, %arg4: memref<1x16x32xf32, #tpu.memory_space<vmem>>, %arg5: memref<1x16x32xf32, #tpu.memory_space<vmem>>) attributes {dimension_semantics = [#tpu.dimension_semantics<parallel>], iteration_bounds = array<i64: 2>, scalar_prefetch = 0 : i64, scratch_operands = 0 : i64, tpu.core_type = #tpu.core_type<tc>, window_params = [{transform_indices = @transform_0, window_bounds = array<i64: 1, 20, 16>}, {pipeline_mode = #tpu.pipeline_mode<synchronous>, transform_indices = @transform_1, window_bounds = array<i64: 16, 32>}, {pipeline_mode = #tpu.pipeline_mode<synchronous>, transform_indices = @transform_2, window_bounds = array<i64: 1, 32>}, {transform_indices = @transform_3, window_bounds = array<i64: 1, 16, 32>}, {transform_indices = @transform_4, window_bounds = array<i64: 1, 16, 32>}]} {
    %cst = arith.constant 0.000000e+00 : f32
    %0 = vector.broadcast %cst : f32 to vector<16x32xf32>
    %c0 = arith.constant 0 : index
    %c0_0 = arith.constant 0 : index
    %c0_1 = arith.constant 0 : index
    %1 = vector.load %arg1[%c0, %c0_0, %c0_1] : memref<1x20x16xf32, #tpu.memory_space<vmem>>, vector<1x16x16xf32>
    %2 = vector.shape_cast %1 : vector<1x16x16xf32> to vector<16x16xf32>
    %c0_2 = arith.constant 0 : index
    %c0_3 = arith.constant 0 : index
    %3 = vector.load %arg2[%c0_2, %c0_3] : memref<16x32xbf16, #tpu.memory_space<vmem>>, vector<16x32xbf16>
    %4 = arith.truncf %2 : vector<16x16xf32> to vector<16x16xbf16>
    %cst_4 = arith.constant dense<0.000000e+00> : vector<16x32xf32>
    %5 = tpu.matmul %4, %3, %cst_4 {dimension_numbers = #tpu.dot_dimension_numbers<[1], [0], [0], [1], [0, 0, 1, 1], [], []>} : vector<16x16xbf16>, vector<16x32xbf16>, vector<16x32xf32> -> vector<16x32xf32>
    %6 = arith.addf %0, %5 : vector<16x32xf32>
    %c0_5 = arith.constant 0 : index
    %c0_6 = arith.constant 0 : index
    %7 = vector.load %arg3[%c0_5, %c0_6] : memref<1x32xf32, #tpu.memory_space<vmem>>, vector<1x32xf32>
    %8 = vector.broadcast %7 : vector<1x32xf32> to vector<16x32xf32>
    %9 = arith.addf %6, %8 : vector<16x32xf32>
    %c0_7 = arith.constant 0 : index
    %c0_8 = arith.constant 0 : index
    %c0_9 = arith.constant 0 : index
    %10 = vector.load %arg4[%c0_7, %c0_8, %c0_9] : memref<1x16x32xf32, #tpu.memory_space<vmem>>, vector<1x16x32xf32>
    %11 = vector.shape_cast %10 : vector<1x16x32xf32> to vector<16x32xf32>
    %12 = arith.addf %9, %11 : vector<16x32xf32>
    %cst_10 = arith.constant 0.000000e+00 : f32
    %13 = vector.broadcast %cst_10 : f32 to vector<16x32xf32>
    %14 = arith.maximumf %12, %13 : vector<16x32xf32>
    %c0_11 = arith.constant 0 : index
    %c0_12 = arith.constant 0 : index
    %c0_13 = arith.constant 0 : index
    %15 = vector.load %arg5[%c0_11, %c0_12, %c0_13] : memref<1x16x32xf32, #tpu.memory_space<vmem>>, vector<1x16x32xf32>
    %16 = vector.shape_cast %15 : vector<1x16x32xf32> to vector<16x32xf32>
    %17 = vector.shape_cast %14 : vector<16x32xf32> to vector<1x16x32xf32>
    tpu.vector_store %arg5[%c0_11, %c0_12, %c0_13], %17 {strides = array<i32>} : memref<1x16x32xf32, #tpu.memory_space<vmem>>, vector<1x16x32xf32>,
    return
  }
  func.func @transform_0(%arg0: i32) -> (i32, i32, i32) {
    %c0_i32 = arith.constant 0 : i32
    %c0_i32_0 = arith.constant 0 : i32
    %c0_i32_1 = arith.constant 0 : i32
    return %arg0, %c0_i32, %c0_i32_0 : i32, i32, i32
  }
  func.func @transform_1(%arg0: i32) -> (i32, i32) {
    %c0_i32 = arith.constant 0 : i32
    %c0_i32_0 = arith.constant 0 : i32
    %c0_i32_1 = arith.constant 0 : i32
    return %c0_i32, %c0_i32_0 : i32, i32
  }
  func.func @transform_2(%arg0: i32) -> (i32, i32) {
    %c0_i32 = arith.constant 0 : i32
    %c0_i32_0 = arith.constant 0 : i32
    %c0_i32_1 = arith.constant 0 : i32
    return %c0_i32, %c0_i32_0 : i32, i32
  }
  func.func @transform_3(%arg0: i32) -> (i32, i32, i32) {
    %c0_i32 = arith.constant 0 : i32
    %c0_i32_0 = arith.constant 0 : i32
    %c0_i32_1 = arith.constant 0 : i32
    return %arg0, %c0_i32, %c0_i32_0 : i32, i32, i32
  }
  func.func @transform_4(%arg0: i32) -> (i32, i32, i32) {
    %c0_i32 = arith.constant 0 : i32
    %c0_i32_0 = arith.constant 0 : i32
    %c0_i32_1 = arith.constant 0 : i32
    return %arg0, %c0_i32, %c0_i32_0 : i32, i32, i32
  }
}

module attributes {stable_mosaic.version = 11 : i64} {
  func.func @_conv_kernel(%arg0: i32, %arg1: memref<1x20x32xf32, #tpu.memory_space<vmem>>, %arg2: memref<288x16xbf16, #tpu.memory_space<vmem>>, %arg3: memref<1x16xf32, #tpu.memory_space<vmem>>, %arg4: memref<1x8x16xf32, #tpu.memory_space<vmem>>) attributes {dimension_semantics = [#tpu.dimension_semantics<parallel>], iteration_bounds = array<i64: 2>, scalar_prefetch = 0 : i64, scratch_operands = 0 : i64, tpu.core_type = #tpu.core_type<tc>, window_params = [{transform_indices = @transform_0, window_bounds = array<i64: 1, 20, 32>}, {pipeline_mode = #tpu.pipeline_mode<synchronous>, transform_indices = @transform_1, window_bounds = array<i64: 288, 16>}, {pipeline_mode = #tpu.pipeline_mode<synchronous>, transform_indices = @transform_2, window_bounds = array<i64: 1, 16>}, {transform_indices = @transform_3, window_bounds = array<i64: 1, 8, 16>}]} {
    %cst = arith.constant 0.000000e+00 : f32
    %0 = vector.broadcast %cst : f32 to vector<8x16xf32>
    %c0 = arith.constant 0 : index
    %c0_0 = arith.constant 0 : index
    %c0_1 = arith.constant 0 : index
    %1 = vector.load %arg1[%c0, %c0_0, %c0_1] : memref<1x20x32xf32, #tpu.memory_space<vmem>>, vector<1x8x32xf32>
    %2 = vector.shape_cast %1 : vector<1x8x32xf32> to vector<8x32xf32>
    %cst_2 = arith.constant 0.000000e+00 : f32
    %3 = vector.broadcast %cst_2 : f32 to vector<8x32xf32>
    %4 = arith.maximumf %2, %3 : vector<8x32xf32>
    %c0_3 = arith.constant 0 : index
    %c0_4 = arith.constant 0 : index
    %5 = vector.load %arg2[%c0_3, %c0_4] : memref<288x16xbf16, #tpu.memory_space<vmem>>, vector<32x16xbf16>
    %6 = arith.truncf %4 : vector<8x32xf32> to vector<8x32xbf16>
    %cst_5 = arith.constant dense<0.000000e+00> : vector<8x16xf32>
    %7 = tpu.matmul %6, %5, %cst_5 {dimension_numbers = #tpu.dot_dimension_numbers<[1], [0], [0], [1], [0, 0, 1, 1], [], []>} : vector<8x32xbf16>, vector<32x16xbf16>, vector<8x16xf32> -> vector<8x16xf32>
    %8 = arith.addf %0, %7 : vector<8x16xf32>
    %c0_6 = arith.constant 0 : index
    %c1 = arith.constant 1 : index
    %c0_7 = arith.constant 0 : index
    %9 = vector.load %arg1[%c0_6, %c1, %c0_7] : memref<1x20x32xf32, #tpu.memory_space<vmem>>, vector<1x8x32xf32>
    %10 = vector.shape_cast %9 : vector<1x8x32xf32> to vector<8x32xf32>
    %cst_8 = arith.constant 0.000000e+00 : f32
    %11 = vector.broadcast %cst_8 : f32 to vector<8x32xf32>
    %12 = arith.maximumf %10, %11 : vector<8x32xf32>
    %c32 = arith.constant 32 : index
    %c0_9 = arith.constant 0 : index
    %13 = vector.load %arg2[%c32, %c0_9] : memref<288x16xbf16, #tpu.memory_space<vmem>>, vector<32x16xbf16>
    %14 = arith.truncf %12 : vector<8x32xf32> to vector<8x32xbf16>
    %cst_10 = arith.constant dense<0.000000e+00> : vector<8x16xf32>
    %15 = tpu.matmul %14, %13, %cst_10 {dimension_numbers = #tpu.dot_dimension_numbers<[1], [0], [0], [1], [0, 0, 1, 1], [], []>} : vector<8x32xbf16>, vector<32x16xbf16>, vector<8x16xf32> -> vector<8x16xf32>
    %16 = arith.addf %8, %15 : vector<8x16xf32>
    %c0_11 = arith.constant 0 : index
    %c2 = arith.constant 2 : index
    %c0_12 = arith.constant 0 : index
    %17 = vector.load %arg1[%c0_11, %c2, %c0_12] : memref<1x20x32xf32, #tpu.memory_space<vmem>>, vector<1x8x32xf32>
    %18 = vector.shape_cast %17 : vector<1x8x32xf32> to vector<8x32xf32>
    %cst_13 = arith.constant 0.000000e+00 : f32
    %19 = vector.broadcast %cst_13 : f32 to vector<8x32xf32>
    %20 = arith.maximumf %18, %19 : vector<8x32xf32>
    %c64 = arith.constant 64 : index
    %c0_14 = arith.constant 0 : index
    %21 = vector.load %arg2[%c64, %c0_14] : memref<288x16xbf16, #tpu.memory_space<vmem>>, vector<32x16xbf16>
    %22 = arith.truncf %20 : vector<8x32xf32> to vector<8x32xbf16>
    %cst_15 = arith.constant dense<0.000000e+00> : vector<8x16xf32>
    %23 = tpu.matmul %22, %21, %cst_15 {dimension_numbers = #tpu.dot_dimension_numbers<[1], [0], [0], [1], [0, 0, 1, 1], [], []>} : vector<8x32xbf16>, vector<32x16xbf16>, vector<8x16xf32> -> vector<8x16xf32>
    %24 = arith.addf %16, %23 : vector<8x16xf32>
    %c0_16 = arith.constant 0 : index
    %c4 = arith.constant 4 : index
    %c0_17 = arith.constant 0 : index
    %25 = vector.load %arg1[%c0_16, %c4, %c0_17] : memref<1x20x32xf32, #tpu.memory_space<vmem>>, vector<1x8x32xf32>
    %26 = vector.shape_cast %25 : vector<1x8x32xf32> to vector<8x32xf32>
    %cst_18 = arith.constant 0.000000e+00 : f32
    %27 = vector.broadcast %cst_18 : f32 to vector<8x32xf32>
    %28 = arith.maximumf %26, %27 : vector<8x32xf32>
    %c96 = arith.constant 96 : index
    %c0_19 = arith.constant 0 : index
    %29 = vector.load %arg2[%c96, %c0_19] : memref<288x16xbf16, #tpu.memory_space<vmem>>, vector<32x16xbf16>
    %30 = arith.truncf %28 : vector<8x32xf32> to vector<8x32xbf16>
    %cst_20 = arith.constant dense<0.000000e+00> : vector<8x16xf32>
    %31 = tpu.matmul %30, %29, %cst_20 {dimension_numbers = #tpu.dot_dimension_numbers<[1], [0], [0], [1], [0, 0, 1, 1], [], []>} : vector<8x32xbf16>, vector<32x16xbf16>, vector<8x16xf32> -> vector<8x16xf32>
    %32 = arith.addf %24, %31 : vector<8x16xf32>
    %c0_21 = arith.constant 0 : index
    %c5 = arith.constant 5 : index
    %c0_22 = arith.constant 0 : index
    %33 = vector.load %arg1[%c0_21, %c5, %c0_22] : memref<1x20x32xf32, #tpu.memory_space<vmem>>, vector<1x8x32xf32>
    %34 = vector.shape_cast %33 : vector<1x8x32xf32> to vector<8x32xf32>
    %cst_23 = arith.constant 0.000000e+00 : f32
    %35 = vector.broadcast %cst_23 : f32 to vector<8x32xf32>
    %36 = arith.maximumf %34, %35 : vector<8x32xf32>
    %c128 = arith.constant 128 : index
    %c0_24 = arith.constant 0 : index
    %37 = vector.load %arg2[%c128, %c0_24] : memref<288x16xbf16, #tpu.memory_space<vmem>>, vector<32x16xbf16>
    %38 = arith.truncf %36 : vector<8x32xf32> to vector<8x32xbf16>
    %cst_25 = arith.constant dense<0.000000e+00> : vector<8x16xf32>
    %39 = tpu.matmul %38, %37, %cst_25 {dimension_numbers = #tpu.dot_dimension_numbers<[1], [0], [0], [1], [0, 0, 1, 1], [], []>} : vector<8x32xbf16>, vector<32x16xbf16>, vector<8x16xf32> -> vector<8x16xf32>
    %40 = arith.addf %32, %39 : vector<8x16xf32>
    %c0_26 = arith.constant 0 : index
    %c6 = arith.constant 6 : index
    %c0_27 = arith.constant 0 : index
    %41 = vector.load %arg1[%c0_26, %c6, %c0_27] : memref<1x20x32xf32, #tpu.memory_space<vmem>>, vector<1x8x32xf32>
    %42 = vector.shape_cast %41 : vector<1x8x32xf32> to vector<8x32xf32>
    %cst_28 = arith.constant 0.000000e+00 : f32
    %43 = vector.broadcast %cst_28 : f32 to vector<8x32xf32>
    %44 = arith.maximumf %42, %43 : vector<8x32xf32>
    %c160 = arith.constant 160 : index
    %c0_29 = arith.constant 0 : index
    %45 = vector.load %arg2[%c160, %c0_29] : memref<288x16xbf16, #tpu.memory_space<vmem>>, vector<32x16xbf16>
    %46 = arith.truncf %44 : vector<8x32xf32> to vector<8x32xbf16>
    %cst_30 = arith.constant dense<0.000000e+00> : vector<8x16xf32>
    %47 = tpu.matmul %46, %45, %cst_30 {dimension_numbers = #tpu.dot_dimension_numbers<[1], [0], [0], [1], [0, 0, 1, 1], [], []>} : vector<8x32xbf16>, vector<32x16xbf16>, vector<8x16xf32> -> vector<8x16xf32>
    %48 = arith.addf %40, %47 : vector<8x16xf32>
    %c0_31 = arith.constant 0 : index
    %c8 = arith.constant 8 : index
    %c0_32 = arith.constant 0 : index
    %49 = vector.load %arg1[%c0_31, %c8, %c0_32] : memref<1x20x32xf32, #tpu.memory_space<vmem>>, vector<1x8x32xf32>
    %50 = vector.shape_cast %49 : vector<1x8x32xf32> to vector<8x32xf32>
    %cst_33 = arith.constant 0.000000e+00 : f32
    %51 = vector.broadcast %cst_33 : f32 to vector<8x32xf32>
    %52 = arith.maximumf %50, %51 : vector<8x32xf32>
    %c192 = arith.constant 192 : index
    %c0_34 = arith.constant 0 : index
    %53 = vector.load %arg2[%c192, %c0_34] : memref<288x16xbf16, #tpu.memory_space<vmem>>, vector<32x16xbf16>
    %54 = arith.truncf %52 : vector<8x32xf32> to vector<8x32xbf16>
    %cst_35 = arith.constant dense<0.000000e+00> : vector<8x16xf32>
    %55 = tpu.matmul %54, %53, %cst_35 {dimension_numbers = #tpu.dot_dimension_numbers<[1], [0], [0], [1], [0, 0, 1, 1], [], []>} : vector<8x32xbf16>, vector<32x16xbf16>, vector<8x16xf32> -> vector<8x16xf32>
    %56 = arith.addf %48, %55 : vector<8x16xf32>
    %c0_36 = arith.constant 0 : index
    %c9 = arith.constant 9 : index
    %c0_37 = arith.constant 0 : index
    %57 = vector.load %arg1[%c0_36, %c9, %c0_37] : memref<1x20x32xf32, #tpu.memory_space<vmem>>, vector<1x8x32xf32>
    %58 = vector.shape_cast %57 : vector<1x8x32xf32> to vector<8x32xf32>
    %cst_38 = arith.constant 0.000000e+00 : f32
    %59 = vector.broadcast %cst_38 : f32 to vector<8x32xf32>
    %60 = arith.maximumf %58, %59 : vector<8x32xf32>
    %c224 = arith.constant 224 : index
    %c0_39 = arith.constant 0 : index
    %61 = vector.load %arg2[%c224, %c0_39] : memref<288x16xbf16, #tpu.memory_space<vmem>>, vector<32x16xbf16>
    %62 = arith.truncf %60 : vector<8x32xf32> to vector<8x32xbf16>
    %cst_40 = arith.constant dense<0.000000e+00> : vector<8x16xf32>
    %63 = tpu.matmul %62, %61, %cst_40 {dimension_numbers = #tpu.dot_dimension_numbers<[1], [0], [0], [1], [0, 0, 1, 1], [], []>} : vector<8x32xbf16>, vector<32x16xbf16>, vector<8x16xf32> -> vector<8x16xf32>
    %64 = arith.addf %56, %63 : vector<8x16xf32>
    %c0_41 = arith.constant 0 : index
    %c10 = arith.constant 10 : index
    %c0_42 = arith.constant 0 : index
    %65 = vector.load %arg1[%c0_41, %c10, %c0_42] : memref<1x20x32xf32, #tpu.memory_space<vmem>>, vector<1x8x32xf32>
    %66 = vector.shape_cast %65 : vector<1x8x32xf32> to vector<8x32xf32>
    %cst_43 = arith.constant 0.000000e+00 : f32
    %67 = vector.broadcast %cst_43 : f32 to vector<8x32xf32>
    %68 = arith.maximumf %66, %67 : vector<8x32xf32>
    %c256 = arith.constant 256 : index
    %c0_44 = arith.constant 0 : index
    %69 = vector.load %arg2[%c256, %c0_44] : memref<288x16xbf16, #tpu.memory_space<vmem>>, vector<32x16xbf16>
    %70 = arith.truncf %68 : vector<8x32xf32> to vector<8x32xbf16>
    %cst_45 = arith.constant dense<0.000000e+00> : vector<8x16xf32>
    %71 = tpu.matmul %70, %69, %cst_45 {dimension_numbers = #tpu.dot_dimension_numbers<[1], [0], [0], [1], [0, 0, 1, 1], [], []>} : vector<8x32xbf16>, vector<32x16xbf16>, vector<8x16xf32> -> vector<8x16xf32>
    %72 = arith.addf %64, %71 : vector<8x16xf32>
    %c0_46 = arith.constant 0 : index
    %c0_47 = arith.constant 0 : index
    %73 = vector.load %arg3[%c0_46, %c0_47] : memref<1x16xf32, #tpu.memory_space<vmem>>, vector<1x16xf32>
    %74 = vector.broadcast %73 : vector<1x16xf32> to vector<8x16xf32>
    %75 = arith.addf %72, %74 : vector<8x16xf32>
    %cst_48 = arith.constant 0.000000e+00 : f32
    %76 = vector.broadcast %cst_48 : f32 to vector<8x16xf32>
    %77 = arith.maximumf %75, %76 : vector<8x16xf32>
    %c0_49 = arith.constant 0 : index
    %c0_50 = arith.constant 0 : index
    %c0_51 = arith.constant 0 : index
    %78 = vector.load %arg4[%c0_49, %c0_50, %c0_51] : memref<1x8x16xf32, #tpu.memory_space<vmem>>, vector<1x8x16xf32>
    %79 = vector.shape_cast %78 : vector<1x8x16xf32> to vector<8x16xf32>
    %80 = vector.shape_cast %77 : vector<8x16xf32> to vector<1x8x16xf32>
    tpu.vector_store %arg4[%c0_49, %c0_50, %c0_51], %80 {strides = array<i32>} : memref<1x8x16xf32, #tpu.memory_space<vmem>>, vector<1x8x16xf32>,
    return
  }
  func.func @transform_0(%arg0: i32) -> (i32, i32, i32) {
    %c0_i32 = arith.constant 0 : i32
    %c0_i32_0 = arith.constant 0 : i32
    %c0_i32_1 = arith.constant 0 : i32
    return %arg0, %c0_i32, %c0_i32_0 : i32, i32, i32
  }
  func.func @transform_1(%arg0: i32) -> (i32, i32) {
    %c0_i32 = arith.constant 0 : i32
    %c0_i32_0 = arith.constant 0 : i32
    %c0_i32_1 = arith.constant 0 : i32
    return %c0_i32, %c0_i32_0 : i32, i32
  }
  func.func @transform_2(%arg0: i32) -> (i32, i32) {
    %c0_i32 = arith.constant 0 : i32
    %c0_i32_0 = arith.constant 0 : i32
    %c0_i32_1 = arith.constant 0 : i32
    return %c0_i32, %c0_i32_0 : i32, i32
  }
  func.func @transform_3(%arg0: i32) -> (i32, i32, i32) {
    %c0_i32 = arith.constant 0 : i32
    %c0_i32_0 = arith.constant 0 : i32
    %c0_i32_1 = arith.constant 0 : i32
    return %arg0, %c0_i32, %c0_i32_0 : i32, i32, i32
  }
}

module attributes {stable_mosaic.version = 11 : i64} {
  func.func @_conv_kernel(%arg0: i32, %arg1: memref<1x12x128xf32, #tpu.memory_space<vmem>>, %arg2: memref<512x16xbf16, #tpu.memory_space<vmem>>, %arg3: memref<1x16xf32, #tpu.memory_space<vmem>>, %arg4: memref<1x6x16xf32, #tpu.memory_space<vmem>>) attributes {dimension_semantics = [#tpu.dimension_semantics<parallel>], iteration_bounds = array<i64: 2>, scalar_prefetch = 0 : i64, scratch_operands = 0 : i64, tpu.core_type = #tpu.core_type<tc>, window_params = [{transform_indices = @transform_0, window_bounds = array<i64: 1, 12, 128>}, {pipeline_mode = #tpu.pipeline_mode<synchronous>, transform_indices = @transform_1, window_bounds = array<i64: 512, 16>}, {pipeline_mode = #tpu.pipeline_mode<synchronous>, transform_indices = @transform_2, window_bounds = array<i64: 1, 16>}, {transform_indices = @transform_3, window_bounds = array<i64: 1, 6, 16>}]} {
    %cst = arith.constant 0.000000e+00 : f32
    %0 = vector.broadcast %cst : f32 to vector<6x16xf32>
    %c0 = arith.constant 0 : index
    %c0_0 = arith.constant 0 : index
    %c0_1 = arith.constant 0 : index
    %1 = vector.load %arg1[%c0, %c0_0, %c0_1] : memref<1x12x128xf32, #tpu.memory_space<vmem>>, vector<1x6x128xf32>
    %2 = vector.shape_cast %1 : vector<1x6x128xf32> to vector<6x128xf32>
    %c0_2 = arith.constant 0 : index
    %c0_3 = arith.constant 0 : index
    %3 = vector.load %arg2[%c0_2, %c0_3] : memref<512x16xbf16, #tpu.memory_space<vmem>>, vector<128x16xbf16>
    %4 = arith.truncf %2 : vector<6x128xf32> to vector<6x128xbf16>
    %cst_4 = arith.constant dense<0.000000e+00> : vector<6x16xf32>
    %5 = tpu.matmul %4, %3, %cst_4 {dimension_numbers = #tpu.dot_dimension_numbers<[1], [0], [0], [1], [0, 0, 1, 1], [], []>} : vector<6x128xbf16>, vector<128x16xbf16>, vector<6x16xf32> -> vector<6x16xf32>
    %6 = arith.addf %0, %5 : vector<6x16xf32>
    %c0_5 = arith.constant 0 : index
    %c1 = arith.constant 1 : index
    %c0_6 = arith.constant 0 : index
    %7 = vector.load %arg1[%c0_5, %c1, %c0_6] : memref<1x12x128xf32, #tpu.memory_space<vmem>>, vector<1x6x128xf32>
    %8 = vector.shape_cast %7 : vector<1x6x128xf32> to vector<6x128xf32>
    %c128 = arith.constant 128 : index
    %c0_7 = arith.constant 0 : index
    %9 = vector.load %arg2[%c128, %c0_7] : memref<512x16xbf16, #tpu.memory_space<vmem>>, vector<128x16xbf16>
    %10 = arith.truncf %8 : vector<6x128xf32> to vector<6x128xbf16>
    %cst_8 = arith.constant dense<0.000000e+00> : vector<6x16xf32>
    %11 = tpu.matmul %10, %9, %cst_8 {dimension_numbers = #tpu.dot_dimension_numbers<[1], [0], [0], [1], [0, 0, 1, 1], [], []>} : vector<6x128xbf16>, vector<128x16xbf16>, vector<6x16xf32> -> vector<6x16xf32>
    %12 = arith.addf %6, %11 : vector<6x16xf32>
    %c0_9 = arith.constant 0 : index
    %c3 = arith.constant 3 : index
    %c0_10 = arith.constant 0 : index
    %13 = vector.load %arg1[%c0_9, %c3, %c0_10] : memref<1x12x128xf32, #tpu.memory_space<vmem>>, vector<1x6x128xf32>
    %14 = vector.shape_cast %13 : vector<1x6x128xf32> to vector<6x128xf32>
    %c256 = arith.constant 256 : index
    %c0_11 = arith.constant 0 : index
    %15 = vector.load %arg2[%c256, %c0_11] : memref<512x16xbf16, #tpu.memory_space<vmem>>, vector<128x16xbf16>
    %16 = arith.truncf %14 : vector<6x128xf32> to vector<6x128xbf16>
    %cst_12 = arith.constant dense<0.000000e+00> : vector<6x16xf32>
    %17 = tpu.matmul %16, %15, %cst_12 {dimension_numbers = #tpu.dot_dimension_numbers<[1], [0], [0], [1], [0, 0, 1, 1], [], []>} : vector<6x128xbf16>, vector<128x16xbf16>, vector<6x16xf32> -> vector<6x16xf32>
    %18 = arith.addf %12, %17 : vector<6x16xf32>
    %c0_13 = arith.constant 0 : index
    %c4 = arith.constant 4 : index
    %c0_14 = arith.constant 0 : index
    %19 = vector.load %arg1[%c0_13, %c4, %c0_14] : memref<1x12x128xf32, #tpu.memory_space<vmem>>, vector<1x6x128xf32>
    %20 = vector.shape_cast %19 : vector<1x6x128xf32> to vector<6x128xf32>
    %c384 = arith.constant 384 : index
    %c0_15 = arith.constant 0 : index
    %21 = vector.load %arg2[%c384, %c0_15] : memref<512x16xbf16, #tpu.memory_space<vmem>>, vector<128x16xbf16>
    %22 = arith.truncf %20 : vector<6x128xf32> to vector<6x128xbf16>
    %cst_16 = arith.constant dense<0.000000e+00> : vector<6x16xf32>
    %23 = tpu.matmul %22, %21, %cst_16 {dimension_numbers = #tpu.dot_dimension_numbers<[1], [0], [0], [1], [0, 0, 1, 1], [], []>} : vector<6x128xbf16>, vector<128x16xbf16>, vector<6x16xf32> -> vector<6x16xf32>
    %24 = arith.addf %18, %23 : vector<6x16xf32>
    %c0_17 = arith.constant 0 : index
    %c0_18 = arith.constant 0 : index
    %25 = vector.load %arg3[%c0_17, %c0_18] : memref<1x16xf32, #tpu.memory_space<vmem>>, vector<1x16xf32>
    %26 = vector.broadcast %25 : vector<1x16xf32> to vector<6x16xf32>
    %27 = arith.addf %24, %26 : vector<6x16xf32>
    %cst_19 = arith.constant 0.000000e+00 : f32
    %28 = vector.broadcast %cst_19 : f32 to vector<6x16xf32>
    %29 = arith.maximumf %27, %28 : vector<6x16xf32>
    %c0_20 = arith.constant 0 : index
    %c0_21 = arith.constant 0 : index
    %c0_22 = arith.constant 0 : index
    %30 = vector.load %arg4[%c0_20, %c0_21, %c0_22] : memref<1x6x16xf32, #tpu.memory_space<vmem>>, vector<1x6x16xf32>
    %31 = vector.shape_cast %30 : vector<1x6x16xf32> to vector<6x16xf32>
    %32 = vector.shape_cast %29 : vector<6x16xf32> to vector<1x6x16xf32>
    tpu.vector_store %arg4[%c0_20, %c0_21, %c0_22], %32 {strides = array<i32>} : memref<1x6x16xf32, #tpu.memory_space<vmem>>, vector<1x6x16xf32>,
    return
  }
  func.func @transform_0(%arg0: i32) -> (i32, i32, i32) {
    %c0_i32 = arith.constant 0 : i32
    %c0_i32_0 = arith.constant 0 : i32
    %c0_i32_1 = arith.constant 0 : i32
    return %arg0, %c0_i32, %c0_i32_0 : i32, i32, i32
  }
  func.func @transform_1(%arg0: i32) -> (i32, i32) {
    %c0_i32 = arith.constant 0 : i32
    %c0_i32_0 = arith.constant 0 : i32
    %c0_i32_1 = arith.constant 0 : i32
    return %c0_i32, %c0_i32_0 : i32, i32
  }
  func.func @transform_2(%arg0: i32) -> (i32, i32) {
    %c0_i32 = arith.constant 0 : i32
    %c0_i32_0 = arith.constant 0 : i32
    %c0_i32_1 = arith.constant 0 : i32
    return %c0_i32, %c0_i32_0 : i32, i32
  }
  func.func @transform_3(%arg0: i32) -> (i32, i32, i32) {
    %c0_i32 = arith.constant 0 : i32
    %c0_i32_0 = arith.constant 0 : i32
    %c0_i32_1 = arith.constant 0 : i32
    return %arg0, %c0_i32, %c0_i32_0 : i32, i32, i32
  }
}

module attributes {stable_mosaic.version = 11 : i64} {
  func.func @_conv_kernel(%arg0: i32, %arg1: memref<1x20x16xf32, #tpu.memory_space<vmem>>, %arg2: memref<144x32xbf16, #tpu.memory_space<vmem>>, %arg3: memref<1x32xf32, #tpu.memory_space<vmem>>, %arg4: memref<1x8x32xf32, #tpu.memory_space<vmem>>) attributes {dimension_semantics = [#tpu.dimension_semantics<parallel>], iteration_bounds = array<i64: 2>, scalar_prefetch = 0 : i64, scratch_operands = 0 : i64, tpu.core_type = #tpu.core_type<tc>, window_params = [{transform_indices = @transform_0, window_bounds = array<i64: 1, 20, 16>}, {pipeline_mode = #tpu.pipeline_mode<synchronous>, transform_indices = @transform_1, window_bounds = array<i64: 144, 32>}, {pipeline_mode = #tpu.pipeline_mode<synchronous>, transform_indices = @transform_2, window_bounds = array<i64: 1, 32>}, {transform_indices = @transform_3, window_bounds = array<i64: 1, 8, 32>}]} {
    %cst = arith.constant 0.000000e+00 : f32
    %0 = vector.broadcast %cst : f32 to vector<8x32xf32>
    %c0 = arith.constant 0 : index
    %c0_0 = arith.constant 0 : index
    %c0_1 = arith.constant 0 : index
    %1 = vector.load %arg1[%c0, %c0_0, %c0_1] : memref<1x20x16xf32, #tpu.memory_space<vmem>>, vector<1x8x16xf32>
    %2 = vector.shape_cast %1 : vector<1x8x16xf32> to vector<8x16xf32>
    %c0_2 = arith.constant 0 : index
    %c0_3 = arith.constant 0 : index
    %3 = vector.load %arg2[%c0_2, %c0_3] : memref<144x32xbf16, #tpu.memory_space<vmem>>, vector<16x32xbf16>
    %4 = arith.truncf %2 : vector<8x16xf32> to vector<8x16xbf16>
    %cst_4 = arith.constant dense<0.000000e+00> : vector<8x32xf32>
    %5 = tpu.matmul %4, %3, %cst_4 {dimension_numbers = #tpu.dot_dimension_numbers<[1], [0], [0], [1], [0, 0, 1, 1], [], []>} : vector<8x16xbf16>, vector<16x32xbf16>, vector<8x32xf32> -> vector<8x32xf32>
    %6 = arith.addf %0, %5 : vector<8x32xf32>
    %c0_5 = arith.constant 0 : index
    %c1 = arith.constant 1 : index
    %c0_6 = arith.constant 0 : index
    %7 = vector.load %arg1[%c0_5, %c1, %c0_6] : memref<1x20x16xf32, #tpu.memory_space<vmem>>, vector<1x8x16xf32>
    %8 = vector.shape_cast %7 : vector<1x8x16xf32> to vector<8x16xf32>
    %c16 = arith.constant 16 : index
    %c0_7 = arith.constant 0 : index
    %9 = vector.load %arg2[%c16, %c0_7] : memref<144x32xbf16, #tpu.memory_space<vmem>>, vector<16x32xbf16>
    %10 = arith.truncf %8 : vector<8x16xf32> to vector<8x16xbf16>
    %cst_8 = arith.constant dense<0.000000e+00> : vector<8x32xf32>
    %11 = tpu.matmul %10, %9, %cst_8 {dimension_numbers = #tpu.dot_dimension_numbers<[1], [0], [0], [1], [0, 0, 1, 1], [], []>} : vector<8x16xbf16>, vector<16x32xbf16>, vector<8x32xf32> -> vector<8x32xf32>
    %12 = arith.addf %6, %11 : vector<8x32xf32>
    %c0_9 = arith.constant 0 : index
    %c2 = arith.constant 2 : index
    %c0_10 = arith.constant 0 : index
    %13 = vector.load %arg1[%c0_9, %c2, %c0_10] : memref<1x20x16xf32, #tpu.memory_space<vmem>>, vector<1x8x16xf32>
    %14 = vector.shape_cast %13 : vector<1x8x16xf32> to vector<8x16xf32>
    %c32 = arith.constant 32 : index
    %c0_11 = arith.constant 0 : index
    %15 = vector.load %arg2[%c32, %c0_11] : memref<144x32xbf16, #tpu.memory_space<vmem>>, vector<16x32xbf16>
    %16 = arith.truncf %14 : vector<8x16xf32> to vector<8x16xbf16>
    %cst_12 = arith.constant dense<0.000000e+00> : vector<8x32xf32>
    %17 = tpu.matmul %16, %15, %cst_12 {dimension_numbers = #tpu.dot_dimension_numbers<[1], [0], [0], [1], [0, 0, 1, 1], [], []>} : vector<8x16xbf16>, vector<16x32xbf16>, vector<8x32xf32> -> vector<8x32xf32>
    %18 = arith.addf %12, %17 : vector<8x32xf32>
    %c0_13 = arith.constant 0 : index
    %c4 = arith.constant 4 : index
    %c0_14 = arith.constant 0 : index
    %19 = vector.load %arg1[%c0_13, %c4, %c0_14] : memref<1x20x16xf32, #tpu.memory_space<vmem>>, vector<1x8x16xf32>
    %20 = vector.shape_cast %19 : vector<1x8x16xf32> to vector<8x16xf32>
    %c48 = arith.constant 48 : index
    %c0_15 = arith.constant 0 : index
    %21 = vector.load %arg2[%c48, %c0_15] : memref<144x32xbf16, #tpu.memory_space<vmem>>, vector<16x32xbf16>
    %22 = arith.truncf %20 : vector<8x16xf32> to vector<8x16xbf16>
    %cst_16 = arith.constant dense<0.000000e+00> : vector<8x32xf32>
    %23 = tpu.matmul %22, %21, %cst_16 {dimension_numbers = #tpu.dot_dimension_numbers<[1], [0], [0], [1], [0, 0, 1, 1], [], []>} : vector<8x16xbf16>, vector<16x32xbf16>, vector<8x32xf32> -> vector<8x32xf32>
    %24 = arith.addf %18, %23 : vector<8x32xf32>
    %c0_17 = arith.constant 0 : index
    %c5 = arith.constant 5 : index
    %c0_18 = arith.constant 0 : index
    %25 = vector.load %arg1[%c0_17, %c5, %c0_18] : memref<1x20x16xf32, #tpu.memory_space<vmem>>, vector<1x8x16xf32>
    %26 = vector.shape_cast %25 : vector<1x8x16xf32> to vector<8x16xf32>
    %c64 = arith.constant 64 : index
    %c0_19 = arith.constant 0 : index
    %27 = vector.load %arg2[%c64, %c0_19] : memref<144x32xbf16, #tpu.memory_space<vmem>>, vector<16x32xbf16>
    %28 = arith.truncf %26 : vector<8x16xf32> to vector<8x16xbf16>
    %cst_20 = arith.constant dense<0.000000e+00> : vector<8x32xf32>
    %29 = tpu.matmul %28, %27, %cst_20 {dimension_numbers = #tpu.dot_dimension_numbers<[1], [0], [0], [1], [0, 0, 1, 1], [], []>} : vector<8x16xbf16>, vector<16x32xbf16>, vector<8x32xf32> -> vector<8x32xf32>
    %30 = arith.addf %24, %29 : vector<8x32xf32>
    %c0_21 = arith.constant 0 : index
    %c6 = arith.constant 6 : index
    %c0_22 = arith.constant 0 : index
    %31 = vector.load %arg1[%c0_21, %c6, %c0_22] : memref<1x20x16xf32, #tpu.memory_space<vmem>>, vector<1x8x16xf32>
    %32 = vector.shape_cast %31 : vector<1x8x16xf32> to vector<8x16xf32>
    %c80 = arith.constant 80 : index
    %c0_23 = arith.constant 0 : index
    %33 = vector.load %arg2[%c80, %c0_23] : memref<144x32xbf16, #tpu.memory_space<vmem>>, vector<16x32xbf16>
    %34 = arith.truncf %32 : vector<8x16xf32> to vector<8x16xbf16>
    %cst_24 = arith.constant dense<0.000000e+00> : vector<8x32xf32>
    %35 = tpu.matmul %34, %33, %cst_24 {dimension_numbers = #tpu.dot_dimension_numbers<[1], [0], [0], [1], [0, 0, 1, 1], [], []>} : vector<8x16xbf16>, vector<16x32xbf16>, vector<8x32xf32> -> vector<8x32xf32>
    %36 = arith.addf %30, %35 : vector<8x32xf32>
    %c0_25 = arith.constant 0 : index
    %c8 = arith.constant 8 : index
    %c0_26 = arith.constant 0 : index
    %37 = vector.load %arg1[%c0_25, %c8, %c0_26] : memref<1x20x16xf32, #tpu.memory_space<vmem>>, vector<1x8x16xf32>
    %38 = vector.shape_cast %37 : vector<1x8x16xf32> to vector<8x16xf32>
    %c96 = arith.constant 96 : index
    %c0_27 = arith.constant 0 : index
    %39 = vector.load %arg2[%c96, %c0_27] : memref<144x32xbf16, #tpu.memory_space<vmem>>, vector<16x32xbf16>
    %40 = arith.truncf %38 : vector<8x16xf32> to vector<8x16xbf16>
    %cst_28 = arith.constant dense<0.000000e+00> : vector<8x32xf32>
    %41 = tpu.matmul %40, %39, %cst_28 {dimension_numbers = #tpu.dot_dimension_numbers<[1], [0], [0], [1], [0, 0, 1, 1], [], []>} : vector<8x16xbf16>, vector<16x32xbf16>, vector<8x32xf32> -> vector<8x32xf32>
    %42 = arith.addf %36, %41 : vector<8x32xf32>
    %c0_29 = arith.constant 0 : index
    %c9 = arith.constant 9 : index
    %c0_30 = arith.constant 0 : index
    %43 = vector.load %arg1[%c0_29, %c9, %c0_30] : memref<1x20x16xf32, #tpu.memory_space<vmem>>, vector<1x8x16xf32>
    %44 = vector.shape_cast %43 : vector<1x8x16xf32> to vector<8x16xf32>
    %c112 = arith.constant 112 : index
    %c0_31 = arith.constant 0 : index
    %45 = vector.load %arg2[%c112, %c0_31] : memref<144x32xbf16, #tpu.memory_space<vmem>>, vector<16x32xbf16>
    %46 = arith.truncf %44 : vector<8x16xf32> to vector<8x16xbf16>
    %cst_32 = arith.constant dense<0.000000e+00> : vector<8x32xf32>
    %47 = tpu.matmul %46, %45, %cst_32 {dimension_numbers = #tpu.dot_dimension_numbers<[1], [0], [0], [1], [0, 0, 1, 1], [], []>} : vector<8x16xbf16>, vector<16x32xbf16>, vector<8x32xf32> -> vector<8x32xf32>
    %48 = arith.addf %42, %47 : vector<8x32xf32>
    %c0_33 = arith.constant 0 : index
    %c10 = arith.constant 10 : index
    %c0_34 = arith.constant 0 : index
    %49 = vector.load %arg1[%c0_33, %c10, %c0_34] : memref<1x20x16xf32, #tpu.memory_space<vmem>>, vector<1x8x16xf32>
    %50 = vector.shape_cast %49 : vector<1x8x16xf32> to vector<8x16xf32>
    %c128 = arith.constant 128 : index
    %c0_35 = arith.constant 0 : index
    %51 = vector.load %arg2[%c128, %c0_35] : memref<144x32xbf16, #tpu.memory_space<vmem>>, vector<16x32xbf16>
    %52 = arith.truncf %50 : vector<8x16xf32> to vector<8x16xbf16>
    %cst_36 = arith.constant dense<0.000000e+00> : vector<8x32xf32>
    %53 = tpu.matmul %52, %51, %cst_36 {dimension_numbers = #tpu.dot_dimension_numbers<[1], [0], [0], [1], [0, 0, 1, 1], [], []>} : vector<8x16xbf16>, vector<16x32xbf16>, vector<8x32xf32> -> vector<8x32xf32>
    %54 = arith.addf %48, %53 : vector<8x32xf32>
    %c0_37 = arith.constant 0 : index
    %c0_38 = arith.constant 0 : index
    %55 = vector.load %arg3[%c0_37, %c0_38] : memref<1x32xf32, #tpu.memory_space<vmem>>, vector<1x32xf32>
    %56 = vector.broadcast %55 : vector<1x32xf32> to vector<8x32xf32>
    %57 = arith.addf %54, %56 : vector<8x32xf32>
    %c0_39 = arith.constant 0 : index
    %c0_40 = arith.constant 0 : index
    %c0_41 = arith.constant 0 : index
    %58 = vector.load %arg4[%c0_39, %c0_40, %c0_41] : memref<1x8x32xf32, #tpu.memory_space<vmem>>, vector<1x8x32xf32>
    %59 = vector.shape_cast %58 : vector<1x8x32xf32> to vector<8x32xf32>
    %60 = vector.shape_cast %57 : vector<8x32xf32> to vector<1x8x32xf32>
    tpu.vector_store %arg4[%c0_39, %c0_40, %c0_41], %60 {strides = array<i32>} : memref<1x8x32xf32, #tpu.memory_space<vmem>>, vector<1x8x32xf32>,
    return
  }
  func.func @transform_0(%arg0: i32) -> (i32, i32, i32) {
    %c0_i32 = arith.constant 0 : i32
    %c0_i32_0 = arith.constant 0 : i32
    %c0_i32_1 = arith.constant 0 : i32
    return %arg0, %c0_i32, %c0_i32_0 : i32, i32, i32
  }
  func.func @transform_1(%arg0: i32) -> (i32, i32) {
    %c0_i32 = arith.constant 0 : i32
    %c0_i32_0 = arith.constant 0 : i32
    %c0_i32_1 = arith.constant 0 : i32
    return %c0_i32, %c0_i32_0 : i32, i32
  }
  func.func @transform_2(%arg0: i32) -> (i32, i32) {
    %c0_i32 = arith.constant 0 : i32
    %c0_i32_0 = arith.constant 0 : i32
    %c0_i32_1 = arith.constant 0 : i32
    return %c0_i32, %c0_i32_0 : i32, i32
  }
  func.func @transform_3(%arg0: i32) -> (i32, i32, i32) {
    %c0_i32 = arith.constant 0 : i32
    %c0_i32_0 = arith.constant 0 : i32
    %c0_i32_1 = arith.constant 0 : i32
    return %arg0, %c0_i32, %c0_i32_0 : i32, i32, i32
  }
}

module attributes {stable_mosaic.version = 11 : i64} {
  func.func @_conv_res_kernel(%arg0: i32, %arg1: memref<1x6x16xf32, #tpu.memory_space<vmem>>, %arg2: memref<16x32xbf16, #tpu.memory_space<vmem>>, %arg3: memref<1x32xf32, #tpu.memory_space<vmem>>, %arg4: memref<1x4x32xf32, #tpu.memory_space<vmem>>, %arg5: memref<1x4x32xf32, #tpu.memory_space<vmem>>) attributes {dimension_semantics = [#tpu.dimension_semantics<parallel>], iteration_bounds = array<i64: 2>, scalar_prefetch = 0 : i64, scratch_operands = 0 : i64, tpu.core_type = #tpu.core_type<tc>, window_params = [{transform_indices = @transform_0, window_bounds = array<i64: 1, 6, 16>}, {pipeline_mode = #tpu.pipeline_mode<synchronous>, transform_indices = @transform_1, window_bounds = array<i64: 16, 32>}, {pipeline_mode = #tpu.pipeline_mode<synchronous>, transform_indices = @transform_2, window_bounds = array<i64: 1, 32>}, {transform_indices = @transform_3, window_bounds = array<i64: 1, 4, 32>}, {transform_indices = @transform_4, window_bounds = array<i64: 1, 4, 32>}]} {
    %cst = arith.constant 0.000000e+00 : f32
    %0 = vector.broadcast %cst : f32 to vector<4x32xf32>
    %c0 = arith.constant 0 : index
    %c0_0 = arith.constant 0 : index
    %c0_1 = arith.constant 0 : index
    %1 = vector.load %arg1[%c0, %c0_0, %c0_1] : memref<1x6x16xf32, #tpu.memory_space<vmem>>, vector<1x4x16xf32>
    %2 = vector.shape_cast %1 : vector<1x4x16xf32> to vector<4x16xf32>
    %c0_2 = arith.constant 0 : index
    %c0_3 = arith.constant 0 : index
    %3 = vector.load %arg2[%c0_2, %c0_3] : memref<16x32xbf16, #tpu.memory_space<vmem>>, vector<16x32xbf16>
    %4 = arith.truncf %2 : vector<4x16xf32> to vector<4x16xbf16>
    %cst_4 = arith.constant dense<0.000000e+00> : vector<4x32xf32>
    %5 = tpu.matmul %4, %3, %cst_4 {dimension_numbers = #tpu.dot_dimension_numbers<[1], [0], [0], [1], [0, 0, 1, 1], [], []>} : vector<4x16xbf16>, vector<16x32xbf16>, vector<4x32xf32> -> vector<4x32xf32>
    %6 = arith.addf %0, %5 : vector<4x32xf32>
    %c0_5 = arith.constant 0 : index
    %c0_6 = arith.constant 0 : index
    %7 = vector.load %arg3[%c0_5, %c0_6] : memref<1x32xf32, #tpu.memory_space<vmem>>, vector<1x32xf32>
    %8 = vector.broadcast %7 : vector<1x32xf32> to vector<4x32xf32>
    %9 = arith.addf %6, %8 : vector<4x32xf32>
    %c0_7 = arith.constant 0 : index
    %c0_8 = arith.constant 0 : index
    %c0_9 = arith.constant 0 : index
    %10 = vector.load %arg4[%c0_7, %c0_8, %c0_9] : memref<1x4x32xf32, #tpu.memory_space<vmem>>, vector<1x4x32xf32>
    %11 = vector.shape_cast %10 : vector<1x4x32xf32> to vector<4x32xf32>
    %12 = arith.addf %9, %11 : vector<4x32xf32>
    %cst_10 = arith.constant 0.000000e+00 : f32
    %13 = vector.broadcast %cst_10 : f32 to vector<4x32xf32>
    %14 = arith.maximumf %12, %13 : vector<4x32xf32>
    %c0_11 = arith.constant 0 : index
    %c0_12 = arith.constant 0 : index
    %c0_13 = arith.constant 0 : index
    %15 = vector.load %arg5[%c0_11, %c0_12, %c0_13] : memref<1x4x32xf32, #tpu.memory_space<vmem>>, vector<1x4x32xf32>
    %16 = vector.shape_cast %15 : vector<1x4x32xf32> to vector<4x32xf32>
    %17 = vector.shape_cast %14 : vector<4x32xf32> to vector<1x4x32xf32>
    tpu.vector_store %arg5[%c0_11, %c0_12, %c0_13], %17 {strides = array<i32>} : memref<1x4x32xf32, #tpu.memory_space<vmem>>, vector<1x4x32xf32>,
    return
  }
  func.func @transform_0(%arg0: i32) -> (i32, i32, i32) {
    %c0_i32 = arith.constant 0 : i32
    %c0_i32_0 = arith.constant 0 : i32
    %c0_i32_1 = arith.constant 0 : i32
    return %arg0, %c0_i32, %c0_i32_0 : i32, i32, i32
  }
  func.func @transform_1(%arg0: i32) -> (i32, i32) {
    %c0_i32 = arith.constant 0 : i32
    %c0_i32_0 = arith.constant 0 : i32
    %c0_i32_1 = arith.constant 0 : i32
    return %c0_i32, %c0_i32_0 : i32, i32
  }
  func.func @transform_2(%arg0: i32) -> (i32, i32) {
    %c0_i32 = arith.constant 0 : i32
    %c0_i32_0 = arith.constant 0 : i32
    %c0_i32_1 = arith.constant 0 : i32
    return %c0_i32, %c0_i32_0 : i32, i32
  }
  func.func @transform_3(%arg0: i32) -> (i32, i32, i32) {
    %c0_i32 = arith.constant 0 : i32
    %c0_i32_0 = arith.constant 0 : i32
    %c0_i32_1 = arith.constant 0 : i32
    return %arg0, %c0_i32, %c0_i32_0 : i32, i32, i32
  }
  func.func @transform_4(%arg0: i32) -> (i32, i32, i32) {
    %c0_i32 = arith.constant 0 : i32
    %c0_i32_0 = arith.constant 0 : i32
    %c0_i32_1 = arith.constant 0 : i32
    return %arg0, %c0_i32, %c0_i32_0 : i32, i32, i32
  }
}

module attributes {stable_mosaic.version = 11 : i64} {
  func.func @_conv_kernel(%arg0: i32, %arg1: memref<1x6x32xf32, #tpu.memory_space<vmem>>, %arg2: memref<32x16xbf16, #tpu.memory_space<vmem>>, %arg3: memref<1x16xf32, #tpu.memory_space<vmem>>, %arg4: memref<1x4x16xf32, #tpu.memory_space<vmem>>) attributes {dimension_semantics = [#tpu.dimension_semantics<parallel>], iteration_bounds = array<i64: 2>, scalar_prefetch = 0 : i64, scratch_operands = 0 : i64, tpu.core_type = #tpu.core_type<tc>, window_params = [{transform_indices = @transform_0, window_bounds = array<i64: 1, 6, 32>}, {pipeline_mode = #tpu.pipeline_mode<synchronous>, transform_indices = @transform_1, window_bounds = array<i64: 32, 16>}, {pipeline_mode = #tpu.pipeline_mode<synchronous>, transform_indices = @transform_2, window_bounds = array<i64: 1, 16>}, {transform_indices = @transform_3, window_bounds = array<i64: 1, 4, 16>}]} {
    %cst = arith.constant 0.000000e+00 : f32
    %0 = vector.broadcast %cst : f32 to vector<4x16xf32>
    %c0 = arith.constant 0 : index
    %c0_0 = arith.constant 0 : index
    %c0_1 = arith.constant 0 : index
    %1 = vector.load %arg1[%c0, %c0_0, %c0_1] : memref<1x6x32xf32, #tpu.memory_space<vmem>>, vector<1x4x32xf32>
    %2 = vector.shape_cast %1 : vector<1x4x32xf32> to vector<4x32xf32>
    %c0_2 = arith.constant 0 : index
    %c0_3 = arith.constant 0 : index
    %3 = vector.load %arg2[%c0_2, %c0_3] : memref<32x16xbf16, #tpu.memory_space<vmem>>, vector<32x16xbf16>
    %4 = arith.truncf %2 : vector<4x32xf32> to vector<4x32xbf16>
    %cst_4 = arith.constant dense<0.000000e+00> : vector<4x16xf32>
    %5 = tpu.matmul %4, %3, %cst_4 {dimension_numbers = #tpu.dot_dimension_numbers<[1], [0], [0], [1], [0, 0, 1, 1], [], []>} : vector<4x32xbf16>, vector<32x16xbf16>, vector<4x16xf32> -> vector<4x16xf32>
    %6 = arith.addf %0, %5 : vector<4x16xf32>
    %c0_5 = arith.constant 0 : index
    %c0_6 = arith.constant 0 : index
    %7 = vector.load %arg3[%c0_5, %c0_6] : memref<1x16xf32, #tpu.memory_space<vmem>>, vector<1x16xf32>
    %8 = vector.broadcast %7 : vector<1x16xf32> to vector<4x16xf32>
    %9 = arith.addf %6, %8 : vector<4x16xf32>
    %c0_7 = arith.constant 0 : index
    %c0_8 = arith.constant 0 : index
    %c0_9 = arith.constant 0 : index
    %10 = vector.load %arg4[%c0_7, %c0_8, %c0_9] : memref<1x4x16xf32, #tpu.memory_space<vmem>>, vector<1x4x16xf32>
    %11 = vector.shape_cast %10 : vector<1x4x16xf32> to vector<4x16xf32>
    %12 = vector.shape_cast %9 : vector<4x16xf32> to vector<1x4x16xf32>
    tpu.vector_store %arg4[%c0_7, %c0_8, %c0_9], %12 {strides = array<i32>} : memref<1x4x16xf32, #tpu.memory_space<vmem>>, vector<1x4x16xf32>,
    return
  }
  func.func @transform_0(%arg0: i32) -> (i32, i32, i32) {
    %c0_i32 = arith.constant 0 : i32
    %c0_i32_0 = arith.constant 0 : i32
    %c0_i32_1 = arith.constant 0 : i32
    return %arg0, %c0_i32, %c0_i32_0 : i32, i32, i32
  }
  func.func @transform_1(%arg0: i32) -> (i32, i32) {
    %c0_i32 = arith.constant 0 : i32
    %c0_i32_0 = arith.constant 0 : i32
    %c0_i32_1 = arith.constant 0 : i32
    return %c0_i32, %c0_i32_0 : i32, i32
  }
  func.func @transform_2(%arg0: i32) -> (i32, i32) {
    %c0_i32 = arith.constant 0 : i32
    %c0_i32_0 = arith.constant 0 : i32
    %c0_i32_1 = arith.constant 0 : i32
    return %c0_i32, %c0_i32_0 : i32, i32
  }
  func.func @transform_3(%arg0: i32) -> (i32, i32, i32) {
    %c0_i32 = arith.constant 0 : i32
    %c0_i32_0 = arith.constant 0 : i32
    %c0_i32_1 = arith.constant 0 : i32
    return %arg0, %c0_i32, %c0_i32_0 : i32, i32, i32
  }
}

module attributes {stable_mosaic.version = 11 : i64} {
  func.func @_conv_kernel(%arg0: i32, %arg1: memref<1x20x16xf32, #tpu.memory_space<vmem>>, %arg2: memref<144x64xbf16, #tpu.memory_space<vmem>>, %arg3: memref<1x64xf32, #tpu.memory_space<vmem>>, %arg4: memref<1x8x64xf32, #tpu.memory_space<vmem>>) attributes {dimension_semantics = [#tpu.dimension_semantics<parallel>], iteration_bounds = array<i64: 2>, scalar_prefetch = 0 : i64, scratch_operands = 0 : i64, tpu.core_type = #tpu.core_type<tc>, window_params = [{transform_indices = @transform_0, window_bounds = array<i64: 1, 20, 16>}, {pipeline_mode = #tpu.pipeline_mode<synchronous>, transform_indices = @transform_1, window_bounds = array<i64: 144, 64>}, {pipeline_mode = #tpu.pipeline_mode<synchronous>, transform_indices = @transform_2, window_bounds = array<i64: 1, 64>}, {transform_indices = @transform_3, window_bounds = array<i64: 1, 8, 64>}]} {
    %cst = arith.constant 0.000000e+00 : f32
    %0 = vector.broadcast %cst : f32 to vector<8x64xf32>
    %c0 = arith.constant 0 : index
    %c0_0 = arith.constant 0 : index
    %c0_1 = arith.constant 0 : index
    %1 = vector.load %arg1[%c0, %c0_0, %c0_1] : memref<1x20x16xf32, #tpu.memory_space<vmem>>, vector<1x8x16xf32>
    %2 = vector.shape_cast %1 : vector<1x8x16xf32> to vector<8x16xf32>
    %c0_2 = arith.constant 0 : index
    %c0_3 = arith.constant 0 : index
    %3 = vector.load %arg2[%c0_2, %c0_3] : memref<144x64xbf16, #tpu.memory_space<vmem>>, vector<16x64xbf16>
    %4 = arith.truncf %2 : vector<8x16xf32> to vector<8x16xbf16>
    %cst_4 = arith.constant dense<0.000000e+00> : vector<8x64xf32>
    %5 = tpu.matmul %4, %3, %cst_4 {dimension_numbers = #tpu.dot_dimension_numbers<[1], [0], [0], [1], [0, 0, 1, 1], [], []>} : vector<8x16xbf16>, vector<16x64xbf16>, vector<8x64xf32> -> vector<8x64xf32>
    %6 = arith.addf %0, %5 : vector<8x64xf32>
    %c0_5 = arith.constant 0 : index
    %c1 = arith.constant 1 : index
    %c0_6 = arith.constant 0 : index
    %7 = vector.load %arg1[%c0_5, %c1, %c0_6] : memref<1x20x16xf32, #tpu.memory_space<vmem>>, vector<1x8x16xf32>
    %8 = vector.shape_cast %7 : vector<1x8x16xf32> to vector<8x16xf32>
    %c16 = arith.constant 16 : index
    %c0_7 = arith.constant 0 : index
    %9 = vector.load %arg2[%c16, %c0_7] : memref<144x64xbf16, #tpu.memory_space<vmem>>, vector<16x64xbf16>
    %10 = arith.truncf %8 : vector<8x16xf32> to vector<8x16xbf16>
    %cst_8 = arith.constant dense<0.000000e+00> : vector<8x64xf32>
    %11 = tpu.matmul %10, %9, %cst_8 {dimension_numbers = #tpu.dot_dimension_numbers<[1], [0], [0], [1], [0, 0, 1, 1], [], []>} : vector<8x16xbf16>, vector<16x64xbf16>, vector<8x64xf32> -> vector<8x64xf32>
    %12 = arith.addf %6, %11 : vector<8x64xf32>
    %c0_9 = arith.constant 0 : index
    %c2 = arith.constant 2 : index
    %c0_10 = arith.constant 0 : index
    %13 = vector.load %arg1[%c0_9, %c2, %c0_10] : memref<1x20x16xf32, #tpu.memory_space<vmem>>, vector<1x8x16xf32>
    %14 = vector.shape_cast %13 : vector<1x8x16xf32> to vector<8x16xf32>
    %c32 = arith.constant 32 : index
    %c0_11 = arith.constant 0 : index
    %15 = vector.load %arg2[%c32, %c0_11] : memref<144x64xbf16, #tpu.memory_space<vmem>>, vector<16x64xbf16>
    %16 = arith.truncf %14 : vector<8x16xf32> to vector<8x16xbf16>
    %cst_12 = arith.constant dense<0.000000e+00> : vector<8x64xf32>
    %17 = tpu.matmul %16, %15, %cst_12 {dimension_numbers = #tpu.dot_dimension_numbers<[1], [0], [0], [1], [0, 0, 1, 1], [], []>} : vector<8x16xbf16>, vector<16x64xbf16>, vector<8x64xf32> -> vector<8x64xf32>
    %18 = arith.addf %12, %17 : vector<8x64xf32>
    %c0_13 = arith.constant 0 : index
    %c4 = arith.constant 4 : index
    %c0_14 = arith.constant 0 : index
    %19 = vector.load %arg1[%c0_13, %c4, %c0_14] : memref<1x20x16xf32, #tpu.memory_space<vmem>>, vector<1x8x16xf32>
    %20 = vector.shape_cast %19 : vector<1x8x16xf32> to vector<8x16xf32>
    %c48 = arith.constant 48 : index
    %c0_15 = arith.constant 0 : index
    %21 = vector.load %arg2[%c48, %c0_15] : memref<144x64xbf16, #tpu.memory_space<vmem>>, vector<16x64xbf16>
    %22 = arith.truncf %20 : vector<8x16xf32> to vector<8x16xbf16>
    %cst_16 = arith.constant dense<0.000000e+00> : vector<8x64xf32>
    %23 = tpu.matmul %22, %21, %cst_16 {dimension_numbers = #tpu.dot_dimension_numbers<[1], [0], [0], [1], [0, 0, 1, 1], [], []>} : vector<8x16xbf16>, vector<16x64xbf16>, vector<8x64xf32> -> vector<8x64xf32>
    %24 = arith.addf %18, %23 : vector<8x64xf32>
    %c0_17 = arith.constant 0 : index
    %c5 = arith.constant 5 : index
    %c0_18 = arith.constant 0 : index
    %25 = vector.load %arg1[%c0_17, %c5, %c0_18] : memref<1x20x16xf32, #tpu.memory_space<vmem>>, vector<1x8x16xf32>
    %26 = vector.shape_cast %25 : vector<1x8x16xf32> to vector<8x16xf32>
    %c64 = arith.constant 64 : index
    %c0_19 = arith.constant 0 : index
    %27 = vector.load %arg2[%c64, %c0_19] : memref<144x64xbf16, #tpu.memory_space<vmem>>, vector<16x64xbf16>
    %28 = arith.truncf %26 : vector<8x16xf32> to vector<8x16xbf16>
    %cst_20 = arith.constant dense<0.000000e+00> : vector<8x64xf32>
    %29 = tpu.matmul %28, %27, %cst_20 {dimension_numbers = #tpu.dot_dimension_numbers<[1], [0], [0], [1], [0, 0, 1, 1], [], []>} : vector<8x16xbf16>, vector<16x64xbf16>, vector<8x64xf32> -> vector<8x64xf32>
    %30 = arith.addf %24, %29 : vector<8x64xf32>
    %c0_21 = arith.constant 0 : index
    %c6 = arith.constant 6 : index
    %c0_22 = arith.constant 0 : index
    %31 = vector.load %arg1[%c0_21, %c6, %c0_22] : memref<1x20x16xf32, #tpu.memory_space<vmem>>, vector<1x8x16xf32>
    %32 = vector.shape_cast %31 : vector<1x8x16xf32> to vector<8x16xf32>
    %c80 = arith.constant 80 : index
    %c0_23 = arith.constant 0 : index
    %33 = vector.load %arg2[%c80, %c0_23] : memref<144x64xbf16, #tpu.memory_space<vmem>>, vector<16x64xbf16>
    %34 = arith.truncf %32 : vector<8x16xf32> to vector<8x16xbf16>
    %cst_24 = arith.constant dense<0.000000e+00> : vector<8x64xf32>
    %35 = tpu.matmul %34, %33, %cst_24 {dimension_numbers = #tpu.dot_dimension_numbers<[1], [0], [0], [1], [0, 0, 1, 1], [], []>} : vector<8x16xbf16>, vector<16x64xbf16>, vector<8x64xf32> -> vector<8x64xf32>
    %36 = arith.addf %30, %35 : vector<8x64xf32>
    %c0_25 = arith.constant 0 : index
    %c8 = arith.constant 8 : index
    %c0_26 = arith.constant 0 : index
    %37 = vector.load %arg1[%c0_25, %c8, %c0_26] : memref<1x20x16xf32, #tpu.memory_space<vmem>>, vector<1x8x16xf32>
    %38 = vector.shape_cast %37 : vector<1x8x16xf32> to vector<8x16xf32>
    %c96 = arith.constant 96 : index
    %c0_27 = arith.constant 0 : index
    %39 = vector.load %arg2[%c96, %c0_27] : memref<144x64xbf16, #tpu.memory_space<vmem>>, vector<16x64xbf16>
    %40 = arith.truncf %38 : vector<8x16xf32> to vector<8x16xbf16>
    %cst_28 = arith.constant dense<0.000000e+00> : vector<8x64xf32>
    %41 = tpu.matmul %40, %39, %cst_28 {dimension_numbers = #tpu.dot_dimension_numbers<[1], [0], [0], [1], [0, 0, 1, 1], [], []>} : vector<8x16xbf16>, vector<16x64xbf16>, vector<8x64xf32> -> vector<8x64xf32>
    %42 = arith.addf %36, %41 : vector<8x64xf32>
    %c0_29 = arith.constant 0 : index
    %c9 = arith.constant 9 : index
    %c0_30 = arith.constant 0 : index
    %43 = vector.load %arg1[%c0_29, %c9, %c0_30] : memref<1x20x16xf32, #tpu.memory_space<vmem>>, vector<1x8x16xf32>
    %44 = vector.shape_cast %43 : vector<1x8x16xf32> to vector<8x16xf32>
    %c112 = arith.constant 112 : index
    %c0_31 = arith.constant 0 : index
    %45 = vector.load %arg2[%c112, %c0_31] : memref<144x64xbf16, #tpu.memory_space<vmem>>, vector<16x64xbf16>
    %46 = arith.truncf %44 : vector<8x16xf32> to vector<8x16xbf16>
    %cst_32 = arith.constant dense<0.000000e+00> : vector<8x64xf32>
    %47 = tpu.matmul %46, %45, %cst_32 {dimension_numbers = #tpu.dot_dimension_numbers<[1], [0], [0], [1], [0, 0, 1, 1], [], []>} : vector<8x16xbf16>, vector<16x64xbf16>, vector<8x64xf32> -> vector<8x64xf32>
    %48 = arith.addf %42, %47 : vector<8x64xf32>
    %c0_33 = arith.constant 0 : index
    %c10 = arith.constant 10 : index
    %c0_34 = arith.constant 0 : index
    %49 = vector.load %arg1[%c0_33, %c10, %c0_34] : memref<1x20x16xf32, #tpu.memory_space<vmem>>, vector<1x8x16xf32>
    %50 = vector.shape_cast %49 : vector<1x8x16xf32> to vector<8x16xf32>
    %c128 = arith.constant 128 : index
    %c0_35 = arith.constant 0 : index
    %51 = vector.load %arg2[%c128, %c0_35] : memref<144x64xbf16, #tpu.memory_space<vmem>>, vector<16x64xbf16>
    %52 = arith.truncf %50 : vector<8x16xf32> to vector<8x16xbf16>
    %cst_36 = arith.constant dense<0.000000e+00> : vector<8x64xf32>
    %53 = tpu.matmul %52, %51, %cst_36 {dimension_numbers = #tpu.dot_dimension_numbers<[1], [0], [0], [1], [0, 0, 1, 1], [], []>} : vector<8x16xbf16>, vector<16x64xbf16>, vector<8x64xf32> -> vector<8x64xf32>
    %54 = arith.addf %48, %53 : vector<8x64xf32>
    %c0_37 = arith.constant 0 : index
    %c0_38 = arith.constant 0 : index
    %55 = vector.load %arg3[%c0_37, %c0_38] : memref<1x64xf32, #tpu.memory_space<vmem>>, vector<1x64xf32>
    %56 = vector.broadcast %55 : vector<1x64xf32> to vector<8x64xf32>
    %57 = arith.addf %54, %56 : vector<8x64xf32>
    %c0_39 = arith.constant 0 : index
    %c0_40 = arith.constant 0 : index
    %c0_41 = arith.constant 0 : index
    %58 = vector.load %arg4[%c0_39, %c0_40, %c0_41] : memref<1x8x64xf32, #tpu.memory_space<vmem>>, vector<1x8x64xf32>
    %59 = vector.shape_cast %58 : vector<1x8x64xf32> to vector<8x64xf32>
    %60 = vector.shape_cast %57 : vector<8x64xf32> to vector<1x8x64xf32>
    tpu.vector_store %arg4[%c0_39, %c0_40, %c0_41], %60 {strides = array<i32>} : memref<1x8x64xf32, #tpu.memory_space<vmem>>, vector<1x8x64xf32>,
    return
  }
  func.func @transform_0(%arg0: i32) -> (i32, i32, i32) {
    %c0_i32 = arith.constant 0 : i32
    %c0_i32_0 = arith.constant 0 : i32
    %c0_i32_1 = arith.constant 0 : i32
    return %arg0, %c0_i32, %c0_i32_0 : i32, i32, i32
  }
  func.func @transform_1(%arg0: i32) -> (i32, i32) {
    %c0_i32 = arith.constant 0 : i32
    %c0_i32_0 = arith.constant 0 : i32
    %c0_i32_1 = arith.constant 0 : i32
    return %c0_i32, %c0_i32_0 : i32, i32
  }
  func.func @transform_2(%arg0: i32) -> (i32, i32) {
    %c0_i32 = arith.constant 0 : i32
    %c0_i32_0 = arith.constant 0 : i32
    %c0_i32_1 = arith.constant 0 : i32
    return %c0_i32, %c0_i32_0 : i32, i32
  }
  func.func @transform_3(%arg0: i32) -> (i32, i32, i32) {
    %c0_i32 = arith.constant 0 : i32
    %c0_i32_0 = arith.constant 0 : i32
    %c0_i32_1 = arith.constant 0 : i32
    return %arg0, %c0_i32, %c0_i32_0 : i32, i32, i32
  }
}

module attributes {stable_mosaic.version = 11 : i64} {
  func.func @_quantize_kernel(%arg0: i32, %arg1: memref<8x16xf32, #tpu.memory_space<vmem>>, %arg2: memref<16x128xf32, #tpu.memory_space<vmem>>, %arg3: memref<128x16xf32, #tpu.memory_space<vmem>>, %arg4: memref<1x128xf32, #tpu.memory_space<vmem>>, %arg5: memref<8x16xf32, #tpu.memory_space<vmem>>, %arg6: memref<8x1xf32, #tpu.memory_space<vmem>>) attributes {dimension_semantics = [#tpu.dimension_semantics<parallel>], iteration_bounds = array<i64: 1>, scalar_prefetch = 0 : i64, scratch_operands = 0 : i64, tpu.core_type = #tpu.core_type<tc>, window_params = [{transform_indices = @transform_0, window_bounds = array<i64: 8, 16>}, {pipeline_mode = #tpu.pipeline_mode<synchronous>, transform_indices = @transform_1, window_bounds = array<i64: 16, 128>}, {pipeline_mode = #tpu.pipeline_mode<synchronous>, transform_indices = @transform_2, window_bounds = array<i64: 128, 16>}, {pipeline_mode = #tpu.pipeline_mode<synchronous>, transform_indices = @transform_3, window_bounds = array<i64: 1, 128>}, {transform_indices = @transform_4, window_bounds = array<i64: 8, 16>}, {transform_indices = @transform_5, window_bounds = array<i64: 8, 1>}]} {
    %c0 = arith.constant 0 : index
    %c0_0 = arith.constant 0 : index
    %0 = vector.load %arg1[%c0, %c0_0] : memref<8x16xf32, #tpu.memory_space<vmem>>, vector<8x16xf32>
    %c0_1 = arith.constant 0 : index
    %c0_2 = arith.constant 0 : index
    %1 = vector.load %arg2[%c0_1, %c0_2] : memref<16x128xf32, #tpu.memory_space<vmem>>, vector<16x128xf32>
    %cst = arith.constant dense<0.000000e+00> : vector<8x128xf32>
    %2 = tpu.matmul %0, %1, %cst {dimension_numbers = #tpu.dot_dimension_numbers<[1], [0], [0], [1], [0, 0, 1, 1], [], []>} : vector<8x16xf32>, vector<16x128xf32>, vector<8x128xf32> -> vector<8x128xf32>
    %cst_3 = arith.constant 2.000000e+00 : f32
    %3 = vector.broadcast %cst_3 : f32 to vector<8x128xf32>
    %4 = arith.mulf %3, %2 : vector<8x128xf32>
    %c0_4 = arith.constant 0 : index
    %c0_5 = arith.constant 0 : index
    %5 = vector.load %arg4[%c0_4, %c0_5] : memref<1x128xf32, #tpu.memory_space<vmem>>, vector<1x128xf32>
    %6 = vector.broadcast %5 : vector<1x128xf32> to vector<8x128xf32>
    %7 = arith.subf %4, %6 : vector<8x128xf32>
    %cst_6 = arith.constant dense<0xFF800000> : vector<8xf32>
    %8 = vector.multi_reduction <maximumf>, %7, %cst_6 [1] : vector<8x128xf32> to vector<8xf32>
    %9 = vector.shape_cast %8 : vector<8xf32> to vector<8x1xf32>
    %10 = tpu.iota {dimensions = array<i32: 1>} : vector<8x128xi32>
    %11 = vector.broadcast %9 : vector<8x1xf32> to vector<8x128xf32>
    %12 = arith.cmpf oeq, %7, %11 : vector<8x128xf32>
    %c128_i32 = arith.constant 128 : i32
    %13 = vector.broadcast %c128_i32 : i32 to vector<8x128xi32>
    %14 = arith.select %12, %10, %13 : vector<8x128xi1>, vector<8x128xi32>
    %cst_7 = arith.constant dense<2147483647> : vector<8xi32>
    %15 = vector.multi_reduction <minsi>, %14, %cst_7 [1] : vector<8x128xi32> to vector<8xi32>
    %16 = vector.shape_cast %15 : vector<8xi32> to vector<8x1xi32>
    %17 = vector.broadcast %16 : vector<8x1xi32> to vector<8x128xi32>
    %18 = arith.cmpi eq, %10, %17 : vector<8x128xi32>
    %19 = arith.extui %18 : vector<8x128xi1> to vector<8x128xi32>
    %20 = arith.sitofp %19 : vector<8x128xi32> to vector<8x128xf32>
    %c0_8 = arith.constant 0 : index
    %c0_9 = arith.constant 0 : index
    %21 = vector.load %arg3[%c0_8, %c0_9] : memref<128x16xf32, #tpu.memory_space<vmem>>, vector<128x16xf32>
    %cst_10 = arith.constant dense<0.000000e+00> : vector<8x16xf32>
    %22 = tpu.matmul %20, %21, %cst_10 {dimension_numbers = #tpu.dot_dimension_numbers<[1], [0], [0], [1], [0, 0, 1, 1], [], []>} : vector<8x128xf32>, vector<128x16xf32>, vector<8x16xf32> -> vector<8x16xf32>
    %c0_11 = arith.constant 0 : index
    %c0_12 = arith.constant 0 : index
    %23 = vector.load %arg5[%c0_11, %c0_12] : memref<8x16xf32, #tpu.memory_space<vmem>>, vector<8x16xf32>
    tpu.vector_store %arg5[%c0_11, %c0_12], %22 {strides = array<i32>} : memref<8x16xf32, #tpu.memory_space<vmem>>, vector<8x16xf32>,
    %24 = arith.subf %22, %0 : vector<8x16xf32>
    %25 = arith.subf %22, %0 : vector<8x16xf32>
    %26 = arith.mulf %24, %25 : vector<8x16xf32>
    %cst_13 = arith.constant dense<0.000000e+00> : vector<8xf32>
    %27 = vector.multi_reduction <add>, %26, %cst_13 [1] : vector<8x16xf32> to vector<8xf32>
    %28 = vector.shape_cast %27 : vector<8xf32> to vector<8x1xf32>
    %c0_14 = arith.constant 0 : index
    %c0_15 = arith.constant 0 : index
    %29 = vector.load %arg6[%c0_14, %c0_15] : memref<8x1xf32, #tpu.memory_space<vmem>>, vector<8x1xf32>
    tpu.vector_store %arg6[%c0_14, %c0_15], %28 {strides = array<i32>} : memref<8x1xf32, #tpu.memory_space<vmem>>, vector<8x1xf32>,
    return
  }
  func.func @transform_0(%arg0: i32) -> (i32, i32) {
    %c0_i32 = arith.constant 0 : i32
    %c0_i32_0 = arith.constant 0 : i32
    return %arg0, %c0_i32 : i32, i32
  }
  func.func @transform_1(%arg0: i32) -> (i32, i32) {
    %c0_i32 = arith.constant 0 : i32
    %c0_i32_0 = arith.constant 0 : i32
    %c0_i32_1 = arith.constant 0 : i32
    return %c0_i32, %c0_i32_0 : i32, i32
  }
  func.func @transform_2(%arg0: i32) -> (i32, i32) {
    %c0_i32 = arith.constant 0 : i32
    %c0_i32_0 = arith.constant 0 : i32
    %c0_i32_1 = arith.constant 0 : i32
    return %c0_i32, %c0_i32_0 : i32, i32
  }
  func.func @transform_3(%arg0: i32) -> (i32, i32) {
    %c0_i32 = arith.constant 0 : i32
    %c0_i32_0 = arith.constant 0 : i32
    %c0_i32_1 = arith.constant 0 : i32
    return %c0_i32, %c0_i32_0 : i32, i32
  }
  func.func @transform_4(%arg0: i32) -> (i32, i32) {
    %c0_i32 = arith.constant 0 : i32
    %c0_i32_0 = arith.constant 0 : i32
    return %arg0, %c0_i32 : i32, i32
  }
  func.func @transform_5(%arg0: i32) -> (i32, i32) {
    %c0_i32 = arith.constant 0 : i32
    %c0_i32_0 = arith.constant 0 : i32
    return %arg0, %c0_i32 : i32, i32
  }
}

module attributes {stable_mosaic.version = 11 : i64} {
  func.func @_conv_kernel(%arg0: i32, %arg1: memref<1x20x32xf32, #tpu.memory_space<vmem>>, %arg2: memref<288x64xbf16, #tpu.memory_space<vmem>>, %arg3: memref<1x64xf32, #tpu.memory_space<vmem>>, %arg4: memref<1x8x64xf32, #tpu.memory_space<vmem>>) attributes {dimension_semantics = [#tpu.dimension_semantics<parallel>], iteration_bounds = array<i64: 2>, scalar_prefetch = 0 : i64, scratch_operands = 0 : i64, tpu.core_type = #tpu.core_type<tc>, window_params = [{transform_indices = @transform_0, window_bounds = array<i64: 1, 20, 32>}, {pipeline_mode = #tpu.pipeline_mode<synchronous>, transform_indices = @transform_1, window_bounds = array<i64: 288, 64>}, {pipeline_mode = #tpu.pipeline_mode<synchronous>, transform_indices = @transform_2, window_bounds = array<i64: 1, 64>}, {transform_indices = @transform_3, window_bounds = array<i64: 1, 8, 64>}]} {
    %cst = arith.constant 0.000000e+00 : f32
    %0 = vector.broadcast %cst : f32 to vector<8x64xf32>
    %c0 = arith.constant 0 : index
    %c0_0 = arith.constant 0 : index
    %c0_1 = arith.constant 0 : index
    %1 = vector.load %arg1[%c0, %c0_0, %c0_1] : memref<1x20x32xf32, #tpu.memory_space<vmem>>, vector<1x8x32xf32>
    %2 = vector.shape_cast %1 : vector<1x8x32xf32> to vector<8x32xf32>
    %c0_2 = arith.constant 0 : index
    %c0_3 = arith.constant 0 : index
    %3 = vector.load %arg2[%c0_2, %c0_3] : memref<288x64xbf16, #tpu.memory_space<vmem>>, vector<32x64xbf16>
    %4 = arith.truncf %2 : vector<8x32xf32> to vector<8x32xbf16>
    %cst_4 = arith.constant dense<0.000000e+00> : vector<8x64xf32>
    %5 = tpu.matmul %4, %3, %cst_4 {dimension_numbers = #tpu.dot_dimension_numbers<[1], [0], [0], [1], [0, 0, 1, 1], [], []>} : vector<8x32xbf16>, vector<32x64xbf16>, vector<8x64xf32> -> vector<8x64xf32>
    %6 = arith.addf %0, %5 : vector<8x64xf32>
    %c0_5 = arith.constant 0 : index
    %c1 = arith.constant 1 : index
    %c0_6 = arith.constant 0 : index
    %7 = vector.load %arg1[%c0_5, %c1, %c0_6] : memref<1x20x32xf32, #tpu.memory_space<vmem>>, vector<1x8x32xf32>
    %8 = vector.shape_cast %7 : vector<1x8x32xf32> to vector<8x32xf32>
    %c32 = arith.constant 32 : index
    %c0_7 = arith.constant 0 : index
    %9 = vector.load %arg2[%c32, %c0_7] : memref<288x64xbf16, #tpu.memory_space<vmem>>, vector<32x64xbf16>
    %10 = arith.truncf %8 : vector<8x32xf32> to vector<8x32xbf16>
    %cst_8 = arith.constant dense<0.000000e+00> : vector<8x64xf32>
    %11 = tpu.matmul %10, %9, %cst_8 {dimension_numbers = #tpu.dot_dimension_numbers<[1], [0], [0], [1], [0, 0, 1, 1], [], []>} : vector<8x32xbf16>, vector<32x64xbf16>, vector<8x64xf32> -> vector<8x64xf32>
    %12 = arith.addf %6, %11 : vector<8x64xf32>
    %c0_9 = arith.constant 0 : index
    %c2 = arith.constant 2 : index
    %c0_10 = arith.constant 0 : index
    %13 = vector.load %arg1[%c0_9, %c2, %c0_10] : memref<1x20x32xf32, #tpu.memory_space<vmem>>, vector<1x8x32xf32>
    %14 = vector.shape_cast %13 : vector<1x8x32xf32> to vector<8x32xf32>
    %c64 = arith.constant 64 : index
    %c0_11 = arith.constant 0 : index
    %15 = vector.load %arg2[%c64, %c0_11] : memref<288x64xbf16, #tpu.memory_space<vmem>>, vector<32x64xbf16>
    %16 = arith.truncf %14 : vector<8x32xf32> to vector<8x32xbf16>
    %cst_12 = arith.constant dense<0.000000e+00> : vector<8x64xf32>
    %17 = tpu.matmul %16, %15, %cst_12 {dimension_numbers = #tpu.dot_dimension_numbers<[1], [0], [0], [1], [0, 0, 1, 1], [], []>} : vector<8x32xbf16>, vector<32x64xbf16>, vector<8x64xf32> -> vector<8x64xf32>
    %18 = arith.addf %12, %17 : vector<8x64xf32>
    %c0_13 = arith.constant 0 : index
    %c4 = arith.constant 4 : index
    %c0_14 = arith.constant 0 : index
    %19 = vector.load %arg1[%c0_13, %c4, %c0_14] : memref<1x20x32xf32, #tpu.memory_space<vmem>>, vector<1x8x32xf32>
    %20 = vector.shape_cast %19 : vector<1x8x32xf32> to vector<8x32xf32>
    %c96 = arith.constant 96 : index
    %c0_15 = arith.constant 0 : index
    %21 = vector.load %arg2[%c96, %c0_15] : memref<288x64xbf16, #tpu.memory_space<vmem>>, vector<32x64xbf16>
    %22 = arith.truncf %20 : vector<8x32xf32> to vector<8x32xbf16>
    %cst_16 = arith.constant dense<0.000000e+00> : vector<8x64xf32>
    %23 = tpu.matmul %22, %21, %cst_16 {dimension_numbers = #tpu.dot_dimension_numbers<[1], [0], [0], [1], [0, 0, 1, 1], [], []>} : vector<8x32xbf16>, vector<32x64xbf16>, vector<8x64xf32> -> vector<8x64xf32>
    %24 = arith.addf %18, %23 : vector<8x64xf32>
    %c0_17 = arith.constant 0 : index
    %c5 = arith.constant 5 : index
    %c0_18 = arith.constant 0 : index
    %25 = vector.load %arg1[%c0_17, %c5, %c0_18] : memref<1x20x32xf32, #tpu.memory_space<vmem>>, vector<1x8x32xf32>
    %26 = vector.shape_cast %25 : vector<1x8x32xf32> to vector<8x32xf32>
    %c128 = arith.constant 128 : index
    %c0_19 = arith.constant 0 : index
    %27 = vector.load %arg2[%c128, %c0_19] : memref<288x64xbf16, #tpu.memory_space<vmem>>, vector<32x64xbf16>
    %28 = arith.truncf %26 : vector<8x32xf32> to vector<8x32xbf16>
    %cst_20 = arith.constant dense<0.000000e+00> : vector<8x64xf32>
    %29 = tpu.matmul %28, %27, %cst_20 {dimension_numbers = #tpu.dot_dimension_numbers<[1], [0], [0], [1], [0, 0, 1, 1], [], []>} : vector<8x32xbf16>, vector<32x64xbf16>, vector<8x64xf32> -> vector<8x64xf32>
    %30 = arith.addf %24, %29 : vector<8x64xf32>
    %c0_21 = arith.constant 0 : index
    %c6 = arith.constant 6 : index
    %c0_22 = arith.constant 0 : index
    %31 = vector.load %arg1[%c0_21, %c6, %c0_22] : memref<1x20x32xf32, #tpu.memory_space<vmem>>, vector<1x8x32xf32>
    %32 = vector.shape_cast %31 : vector<1x8x32xf32> to vector<8x32xf32>
    %c160 = arith.constant 160 : index
    %c0_23 = arith.constant 0 : index
    %33 = vector.load %arg2[%c160, %c0_23] : memref<288x64xbf16, #tpu.memory_space<vmem>>, vector<32x64xbf16>
    %34 = arith.truncf %32 : vector<8x32xf32> to vector<8x32xbf16>
    %cst_24 = arith.constant dense<0.000000e+00> : vector<8x64xf32>
    %35 = tpu.matmul %34, %33, %cst_24 {dimension_numbers = #tpu.dot_dimension_numbers<[1], [0], [0], [1], [0, 0, 1, 1], [], []>} : vector<8x32xbf16>, vector<32x64xbf16>, vector<8x64xf32> -> vector<8x64xf32>
    %36 = arith.addf %30, %35 : vector<8x64xf32>
    %c0_25 = arith.constant 0 : index
    %c8 = arith.constant 8 : index
    %c0_26 = arith.constant 0 : index
    %37 = vector.load %arg1[%c0_25, %c8, %c0_26] : memref<1x20x32xf32, #tpu.memory_space<vmem>>, vector<1x8x32xf32>
    %38 = vector.shape_cast %37 : vector<1x8x32xf32> to vector<8x32xf32>
    %c192 = arith.constant 192 : index
    %c0_27 = arith.constant 0 : index
    %39 = vector.load %arg2[%c192, %c0_27] : memref<288x64xbf16, #tpu.memory_space<vmem>>, vector<32x64xbf16>
    %40 = arith.truncf %38 : vector<8x32xf32> to vector<8x32xbf16>
    %cst_28 = arith.constant dense<0.000000e+00> : vector<8x64xf32>
    %41 = tpu.matmul %40, %39, %cst_28 {dimension_numbers = #tpu.dot_dimension_numbers<[1], [0], [0], [1], [0, 0, 1, 1], [], []>} : vector<8x32xbf16>, vector<32x64xbf16>, vector<8x64xf32> -> vector<8x64xf32>
    %42 = arith.addf %36, %41 : vector<8x64xf32>
    %c0_29 = arith.constant 0 : index
    %c9 = arith.constant 9 : index
    %c0_30 = arith.constant 0 : index
    %43 = vector.load %arg1[%c0_29, %c9, %c0_30] : memref<1x20x32xf32, #tpu.memory_space<vmem>>, vector<1x8x32xf32>
    %44 = vector.shape_cast %43 : vector<1x8x32xf32> to vector<8x32xf32>
    %c224 = arith.constant 224 : index
    %c0_31 = arith.constant 0 : index
    %45 = vector.load %arg2[%c224, %c0_31] : memref<288x64xbf16, #tpu.memory_space<vmem>>, vector<32x64xbf16>
    %46 = arith.truncf %44 : vector<8x32xf32> to vector<8x32xbf16>
    %cst_32 = arith.constant dense<0.000000e+00> : vector<8x64xf32>
    %47 = tpu.matmul %46, %45, %cst_32 {dimension_numbers = #tpu.dot_dimension_numbers<[1], [0], [0], [1], [0, 0, 1, 1], [], []>} : vector<8x32xbf16>, vector<32x64xbf16>, vector<8x64xf32> -> vector<8x64xf32>
    %48 = arith.addf %42, %47 : vector<8x64xf32>
    %c0_33 = arith.constant 0 : index
    %c10 = arith.constant 10 : index
    %c0_34 = arith.constant 0 : index
    %49 = vector.load %arg1[%c0_33, %c10, %c0_34] : memref<1x20x32xf32, #tpu.memory_space<vmem>>, vector<1x8x32xf32>
    %50 = vector.shape_cast %49 : vector<1x8x32xf32> to vector<8x32xf32>
    %c256 = arith.constant 256 : index
    %c0_35 = arith.constant 0 : index
    %51 = vector.load %arg2[%c256, %c0_35] : memref<288x64xbf16, #tpu.memory_space<vmem>>, vector<32x64xbf16>
    %52 = arith.truncf %50 : vector<8x32xf32> to vector<8x32xbf16>
    %cst_36 = arith.constant dense<0.000000e+00> : vector<8x64xf32>
    %53 = tpu.matmul %52, %51, %cst_36 {dimension_numbers = #tpu.dot_dimension_numbers<[1], [0], [0], [1], [0, 0, 1, 1], [], []>} : vector<8x32xbf16>, vector<32x64xbf16>, vector<8x64xf32> -> vector<8x64xf32>
    %54 = arith.addf %48, %53 : vector<8x64xf32>
    %c0_37 = arith.constant 0 : index
    %c0_38 = arith.constant 0 : index
    %55 = vector.load %arg3[%c0_37, %c0_38] : memref<1x64xf32, #tpu.memory_space<vmem>>, vector<1x64xf32>
    %56 = vector.broadcast %55 : vector<1x64xf32> to vector<8x64xf32>
    %57 = arith.addf %54, %56 : vector<8x64xf32>
    %c0_39 = arith.constant 0 : index
    %c0_40 = arith.constant 0 : index
    %c0_41 = arith.constant 0 : index
    %58 = vector.load %arg4[%c0_39, %c0_40, %c0_41] : memref<1x8x64xf32, #tpu.memory_space<vmem>>, vector<1x8x64xf32>
    %59 = vector.shape_cast %58 : vector<1x8x64xf32> to vector<8x64xf32>
    %60 = vector.shape_cast %57 : vector<8x64xf32> to vector<1x8x64xf32>
    tpu.vector_store %arg4[%c0_39, %c0_40, %c0_41], %60 {strides = array<i32>} : memref<1x8x64xf32, #tpu.memory_space<vmem>>, vector<1x8x64xf32>,
    return
  }
  func.func @transform_0(%arg0: i32) -> (i32, i32, i32) {
    %c0_i32 = arith.constant 0 : i32
    %c0_i32_0 = arith.constant 0 : i32
    %c0_i32_1 = arith.constant 0 : i32
    return %arg0, %c0_i32, %c0_i32_0 : i32, i32, i32
  }
  func.func @transform_1(%arg0: i32) -> (i32, i32) {
    %c0_i32 = arith.constant 0 : i32
    %c0_i32_0 = arith.constant 0 : i32
    %c0_i32_1 = arith.constant 0 : i32
    return %c0_i32, %c0_i32_0 : i32, i32
  }
  func.func @transform_2(%arg0: i32) -> (i32, i32) {
    %c0_i32 = arith.constant 0 : i32
    %c0_i32_0 = arith.constant 0 : i32
    %c0_i32_1 = arith.constant 0 : i32
    return %c0_i32, %c0_i32_0 : i32, i32
  }
  func.func @transform_3(%arg0: i32) -> (i32, i32, i32) {
    %c0_i32 = arith.constant 0 : i32
    %c0_i32_0 = arith.constant 0 : i32
    %c0_i32_1 = arith.constant 0 : i32
    return %arg0, %c0_i32, %c0_i32_0 : i32, i32, i32
  }
}

module attributes {stable_mosaic.version = 11 : i64} {
  func.func @_conv_kernel(%arg0: i32, %arg1: memref<1x20x48xf32, #tpu.memory_space<vmem>>, %arg2: memref<48x16xbf16, #tpu.memory_space<vmem>>, %arg3: memref<1x16xf32, #tpu.memory_space<vmem>>, %arg4: memref<1x16x16xf32, #tpu.memory_space<vmem>>) attributes {dimension_semantics = [#tpu.dimension_semantics<parallel>], iteration_bounds = array<i64: 2>, scalar_prefetch = 0 : i64, scratch_operands = 0 : i64, tpu.core_type = #tpu.core_type<tc>, window_params = [{transform_indices = @transform_0, window_bounds = array<i64: 1, 20, 48>}, {pipeline_mode = #tpu.pipeline_mode<synchronous>, transform_indices = @transform_1, window_bounds = array<i64: 48, 16>}, {pipeline_mode = #tpu.pipeline_mode<synchronous>, transform_indices = @transform_2, window_bounds = array<i64: 1, 16>}, {transform_indices = @transform_3, window_bounds = array<i64: 1, 16, 16>}]} {
    %cst = arith.constant 0.000000e+00 : f32
    %0 = vector.broadcast %cst : f32 to vector<16x16xf32>
    %c0 = arith.constant 0 : index
    %c0_0 = arith.constant 0 : index
    %c0_1 = arith.constant 0 : index
    %1 = vector.load %arg1[%c0, %c0_0, %c0_1] : memref<1x20x48xf32, #tpu.memory_space<vmem>>, vector<1x16x48xf32>
    %2 = vector.shape_cast %1 : vector<1x16x48xf32> to vector<16x48xf32>
    %c0_2 = arith.constant 0 : index
    %c0_3 = arith.constant 0 : index
    %3 = vector.load %arg2[%c0_2, %c0_3] : memref<48x16xbf16, #tpu.memory_space<vmem>>, vector<48x16xbf16>
    %4 = arith.truncf %2 : vector<16x48xf32> to vector<16x48xbf16>
    %cst_4 = arith.constant dense<0.000000e+00> : vector<16x16xf32>
    %5 = tpu.matmul %4, %3, %cst_4 {dimension_numbers = #tpu.dot_dimension_numbers<[1], [0], [0], [1], [0, 0, 1, 1], [], []>} : vector<16x48xbf16>, vector<48x16xbf16>, vector<16x16xf32> -> vector<16x16xf32>
    %6 = arith.addf %0, %5 : vector<16x16xf32>
    %c0_5 = arith.constant 0 : index
    %c0_6 = arith.constant 0 : index
    %7 = vector.load %arg3[%c0_5, %c0_6] : memref<1x16xf32, #tpu.memory_space<vmem>>, vector<1x16xf32>
    %8 = vector.broadcast %7 : vector<1x16xf32> to vector<16x16xf32>
    %9 = arith.addf %6, %8 : vector<16x16xf32>
    %c0_7 = arith.constant 0 : index
    %c0_8 = arith.constant 0 : index
    %c0_9 = arith.constant 0 : index
    %10 = vector.load %arg4[%c0_7, %c0_8, %c0_9] : memref<1x16x16xf32, #tpu.memory_space<vmem>>, vector<1x16x16xf32>
    %11 = vector.shape_cast %10 : vector<1x16x16xf32> to vector<16x16xf32>
    %12 = vector.shape_cast %9 : vector<16x16xf32> to vector<1x16x16xf32>
    tpu.vector_store %arg4[%c0_7, %c0_8, %c0_9], %12 {strides = array<i32>} : memref<1x16x16xf32, #tpu.memory_space<vmem>>, vector<1x16x16xf32>,
    return
  }
  func.func @transform_0(%arg0: i32) -> (i32, i32, i32) {
    %c0_i32 = arith.constant 0 : i32
    %c0_i32_0 = arith.constant 0 : i32
    %c0_i32_1 = arith.constant 0 : i32
    return %arg0, %c0_i32, %c0_i32_0 : i32, i32, i32
  }
  func.func @transform_1(%arg0: i32) -> (i32, i32) {
    %c0_i32 = arith.constant 0 : i32
    %c0_i32_0 = arith.constant 0 : i32
    %c0_i32_1 = arith.constant 0 : i32
    return %c0_i32, %c0_i32_0 : i32, i32
  }
  func.func @transform_2(%arg0: i32) -> (i32, i32) {
    %c0_i32 = arith.constant 0 : i32
    %c0_i32_0 = arith.constant 0 : i32
    %c0_i32_1 = arith.constant 0 : i32
    return %c0_i32, %c0_i32_0 : i32, i32
  }
  func.func @transform_3(%arg0: i32) -> (i32, i32, i32) {
    %c0_i32 = arith.constant 0 : i32
    %c0_i32_0 = arith.constant 0 : i32
    %c0_i32_1 = arith.constant 0 : i32
    return %arg0, %c0_i32, %c0_i32_0 : i32, i32, i32
  }
}

module attributes {stable_mosaic.version = 11 : i64} {
  func.func @_quantize_kernel(%arg0: i32, %arg1: memref<16x16xf32, #tpu.memory_space<vmem>>, %arg2: memref<16x128xf32, #tpu.memory_space<vmem>>, %arg3: memref<128x16xf32, #tpu.memory_space<vmem>>, %arg4: memref<1x128xf32, #tpu.memory_space<vmem>>, %arg5: memref<16x16xf32, #tpu.memory_space<vmem>>, %arg6: memref<16x1xf32, #tpu.memory_space<vmem>>) attributes {dimension_semantics = [#tpu.dimension_semantics<parallel>], iteration_bounds = array<i64: 2>, scalar_prefetch = 0 : i64, scratch_operands = 0 : i64, tpu.core_type = #tpu.core_type<tc>, window_params = [{transform_indices = @transform_0, window_bounds = array<i64: 16, 16>}, {pipeline_mode = #tpu.pipeline_mode<synchronous>, transform_indices = @transform_1, window_bounds = array<i64: 16, 128>}, {pipeline_mode = #tpu.pipeline_mode<synchronous>, transform_indices = @transform_2, window_bounds = array<i64: 128, 16>}, {pipeline_mode = #tpu.pipeline_mode<synchronous>, transform_indices = @transform_3, window_bounds = array<i64: 1, 128>}, {transform_indices = @transform_4, window_bounds = array<i64: 16, 16>}, {transform_indices = @transform_5, window_bounds = array<i64: 16, 1>}]} {
    %c0 = arith.constant 0 : index
    %c0_0 = arith.constant 0 : index
    %0 = vector.load %arg1[%c0, %c0_0] : memref<16x16xf32, #tpu.memory_space<vmem>>, vector<16x16xf32>
    %c0_1 = arith.constant 0 : index
    %c0_2 = arith.constant 0 : index
    %1 = vector.load %arg2[%c0_1, %c0_2] : memref<16x128xf32, #tpu.memory_space<vmem>>, vector<16x128xf32>
    %cst = arith.constant dense<0.000000e+00> : vector<16x128xf32>
    %2 = tpu.matmul %0, %1, %cst {dimension_numbers = #tpu.dot_dimension_numbers<[1], [0], [0], [1], [0, 0, 1, 1], [], []>} : vector<16x16xf32>, vector<16x128xf32>, vector<16x128xf32> -> vector<16x128xf32>
    %cst_3 = arith.constant 2.000000e+00 : f32
    %3 = vector.broadcast %cst_3 : f32 to vector<16x128xf32>
    %4 = arith.mulf %3, %2 : vector<16x128xf32>
    %c0_4 = arith.constant 0 : index
    %c0_5 = arith.constant 0 : index
    %5 = vector.load %arg4[%c0_4, %c0_5] : memref<1x128xf32, #tpu.memory_space<vmem>>, vector<1x128xf32>
    %6 = vector.broadcast %5 : vector<1x128xf32> to vector<16x128xf32>
    %7 = arith.subf %4, %6 : vector<16x128xf32>
    %cst_6 = arith.constant dense<0xFF800000> : vector<16xf32>
    %8 = vector.multi_reduction <maximumf>, %7, %cst_6 [1] : vector<16x128xf32> to vector<16xf32>
    %9 = vector.shape_cast %8 : vector<16xf32> to vector<16x1xf32>
    %10 = tpu.iota {dimensions = array<i32: 1>} : vector<16x128xi32>
    %11 = vector.broadcast %9 : vector<16x1xf32> to vector<16x128xf32>
    %12 = arith.cmpf oeq, %7, %11 : vector<16x128xf32>
    %c128_i32 = arith.constant 128 : i32
    %13 = vector.broadcast %c128_i32 : i32 to vector<16x128xi32>
    %14 = arith.select %12, %10, %13 : vector<16x128xi1>, vector<16x128xi32>
    %cst_7 = arith.constant dense<2147483647> : vector<16xi32>
    %15 = vector.multi_reduction <minsi>, %14, %cst_7 [1] : vector<16x128xi32> to vector<16xi32>
    %16 = vector.shape_cast %15 : vector<16xi32> to vector<16x1xi32>
    %17 = vector.broadcast %16 : vector<16x1xi32> to vector<16x128xi32>
    %18 = arith.cmpi eq, %10, %17 : vector<16x128xi32>
    %19 = arith.extui %18 : vector<16x128xi1> to vector<16x128xi32>
    %20 = arith.sitofp %19 : vector<16x128xi32> to vector<16x128xf32>
    %c0_8 = arith.constant 0 : index
    %c0_9 = arith.constant 0 : index
    %21 = vector.load %arg3[%c0_8, %c0_9] : memref<128x16xf32, #tpu.memory_space<vmem>>, vector<128x16xf32>
    %cst_10 = arith.constant dense<0.000000e+00> : vector<16x16xf32>
    %22 = tpu.matmul %20, %21, %cst_10 {dimension_numbers = #tpu.dot_dimension_numbers<[1], [0], [0], [1], [0, 0, 1, 1], [], []>} : vector<16x128xf32>, vector<128x16xf32>, vector<16x16xf32> -> vector<16x16xf32>
    %c0_11 = arith.constant 0 : index
    %c0_12 = arith.constant 0 : index
    %23 = vector.load %arg5[%c0_11, %c0_12] : memref<16x16xf32, #tpu.memory_space<vmem>>, vector<16x16xf32>
    tpu.vector_store %arg5[%c0_11, %c0_12], %22 {strides = array<i32>} : memref<16x16xf32, #tpu.memory_space<vmem>>, vector<16x16xf32>,
    %24 = arith.subf %22, %0 : vector<16x16xf32>
    %25 = arith.subf %22, %0 : vector<16x16xf32>
    %26 = arith.mulf %24, %25 : vector<16x16xf32>
    %cst_13 = arith.constant dense<0.000000e+00> : vector<16xf32>
    %27 = vector.multi_reduction <add>, %26, %cst_13 [1] : vector<16x16xf32> to vector<16xf32>
    %28 = vector.shape_cast %27 : vector<16xf32> to vector<16x1xf32>
    %c0_14 = arith.constant 0 : index
    %c0_15 = arith.constant 0 : index
    %29 = vector.load %arg6[%c0_14, %c0_15] : memref<16x1xf32, #tpu.memory_space<vmem>>, vector<16x1xf32>
    tpu.vector_store %arg6[%c0_14, %c0_15], %28 {strides = array<i32>} : memref<16x1xf32, #tpu.memory_space<vmem>>, vector<16x1xf32>,
    return
  }
  func.func @transform_0(%arg0: i32) -> (i32, i32) {
    %c0_i32 = arith.constant 0 : i32
    %c0_i32_0 = arith.constant 0 : i32
    return %arg0, %c0_i32 : i32, i32
  }
  func.func @transform_1(%arg0: i32) -> (i32, i32) {
    %c0_i32 = arith.constant 0 : i32
    %c0_i32_0 = arith.constant 0 : i32
    %c0_i32_1 = arith.constant 0 : i32
    return %c0_i32, %c0_i32_0 : i32, i32
  }
  func.func @transform_2(%arg0: i32) -> (i32, i32) {
    %c0_i32 = arith.constant 0 : i32
    %c0_i32_0 = arith.constant 0 : i32
    %c0_i32_1 = arith.constant 0 : i32
    return %c0_i32, %c0_i32_0 : i32, i32
  }
  func.func @transform_3(%arg0: i32) -> (i32, i32) {
    %c0_i32 = arith.constant 0 : i32
    %c0_i32_0 = arith.constant 0 : i32
    %c0_i32_1 = arith.constant 0 : i32
    return %c0_i32, %c0_i32_0 : i32, i32
  }
  func.func @transform_4(%arg0: i32) -> (i32, i32) {
    %c0_i32 = arith.constant 0 : i32
    %c0_i32_0 = arith.constant 0 : i32
    return %arg0, %c0_i32 : i32, i32
  }
  func.func @transform_5(%arg0: i32) -> (i32, i32) {
    %c0_i32 = arith.constant 0 : i32
    %c0_i32_0 = arith.constant 0 : i32
    return %arg0, %c0_i32 : i32, i32
  }
}

module attributes {stable_mosaic.version = 11 : i64} {
  func.func @_conv_kernel(%arg0: i32, %arg1: memref<1x42x32xf32, #tpu.memory_space<vmem>>, %arg2: memref<288x64xbf16, #tpu.memory_space<vmem>>, %arg3: memref<1x64xf32, #tpu.memory_space<vmem>>, %arg4: memref<1x24x64xf32, #tpu.memory_space<vmem>>) attributes {dimension_semantics = [#tpu.dimension_semantics<parallel>], iteration_bounds = array<i64: 2>, scalar_prefetch = 0 : i64, scratch_operands = 0 : i64, tpu.core_type = #tpu.core_type<tc>, window_params = [{transform_indices = @transform_0, window_bounds = array<i64: 1, 42, 32>}, {pipeline_mode = #tpu.pipeline_mode<synchronous>, transform_indices = @transform_1, window_bounds = array<i64: 288, 64>}, {pipeline_mode = #tpu.pipeline_mode<synchronous>, transform_indices = @transform_2, window_bounds = array<i64: 1, 64>}, {transform_indices = @transform_3, window_bounds = array<i64: 1, 24, 64>}]} {
    %cst = arith.constant 0.000000e+00 : f32
    %0 = vector.broadcast %cst : f32 to vector<24x64xf32>
    %c0 = arith.constant 0 : index
    %c0_0 = arith.constant 0 : index
    %c0_1 = arith.constant 0 : index
    %1 = vector.load %arg1[%c0, %c0_0, %c0_1] : memref<1x42x32xf32, #tpu.memory_space<vmem>>, vector<1x24x32xf32>
    %2 = vector.shape_cast %1 : vector<1x24x32xf32> to vector<24x32xf32>
    %c0_2 = arith.constant 0 : index
    %c0_3 = arith.constant 0 : index
    %3 = vector.load %arg2[%c0_2, %c0_3] : memref<288x64xbf16, #tpu.memory_space<vmem>>, vector<32x64xbf16>
    %4 = arith.truncf %2 : vector<24x32xf32> to vector<24x32xbf16>
    %cst_4 = arith.constant dense<0.000000e+00> : vector<24x64xf32>
    %5 = tpu.matmul %4, %3, %cst_4 {dimension_numbers = #tpu.dot_dimension_numbers<[1], [0], [0], [1], [0, 0, 1, 1], [], []>} : vector<24x32xbf16>, vector<32x64xbf16>, vector<24x64xf32> -> vector<24x64xf32>
    %6 = arith.addf %0, %5 : vector<24x64xf32>
    %c0_5 = arith.constant 0 : index
    %c1 = arith.constant 1 : index
    %c0_6 = arith.constant 0 : index
    %7 = vector.load %arg1[%c0_5, %c1, %c0_6] : memref<1x42x32xf32, #tpu.memory_space<vmem>>, vector<1x24x32xf32>
    %8 = vector.shape_cast %7 : vector<1x24x32xf32> to vector<24x32xf32>
    %c32 = arith.constant 32 : index
    %c0_7 = arith.constant 0 : index
    %9 = vector.load %arg2[%c32, %c0_7] : memref<288x64xbf16, #tpu.memory_space<vmem>>, vector<32x64xbf16>
    %10 = arith.truncf %8 : vector<24x32xf32> to vector<24x32xbf16>
    %cst_8 = arith.constant dense<0.000000e+00> : vector<24x64xf32>
    %11 = tpu.matmul %10, %9, %cst_8 {dimension_numbers = #tpu.dot_dimension_numbers<[1], [0], [0], [1], [0, 0, 1, 1], [], []>} : vector<24x32xbf16>, vector<32x64xbf16>, vector<24x64xf32> -> vector<24x64xf32>
    %12 = arith.addf %6, %11 : vector<24x64xf32>
    %c0_9 = arith.constant 0 : index
    %c2 = arith.constant 2 : index
    %c0_10 = arith.constant 0 : index
    %13 = vector.load %arg1[%c0_9, %c2, %c0_10] : memref<1x42x32xf32, #tpu.memory_space<vmem>>, vector<1x24x32xf32>
    %14 = vector.shape_cast %13 : vector<1x24x32xf32> to vector<24x32xf32>
    %c64 = arith.constant 64 : index
    %c0_11 = arith.constant 0 : index
    %15 = vector.load %arg2[%c64, %c0_11] : memref<288x64xbf16, #tpu.memory_space<vmem>>, vector<32x64xbf16>
    %16 = arith.truncf %14 : vector<24x32xf32> to vector<24x32xbf16>
    %cst_12 = arith.constant dense<0.000000e+00> : vector<24x64xf32>
    %17 = tpu.matmul %16, %15, %cst_12 {dimension_numbers = #tpu.dot_dimension_numbers<[1], [0], [0], [1], [0, 0, 1, 1], [], []>} : vector<24x32xbf16>, vector<32x64xbf16>, vector<24x64xf32> -> vector<24x64xf32>
    %18 = arith.addf %12, %17 : vector<24x64xf32>
    %c0_13 = arith.constant 0 : index
    %c6 = arith.constant 6 : index
    %c0_14 = arith.constant 0 : index
    %19 = vector.load %arg1[%c0_13, %c6, %c0_14] : memref<1x42x32xf32, #tpu.memory_space<vmem>>, vector<1x24x32xf32>
    %20 = vector.shape_cast %19 : vector<1x24x32xf32> to vector<24x32xf32>
    %c96 = arith.constant 96 : index
    %c0_15 = arith.constant 0 : index
    %21 = vector.load %arg2[%c96, %c0_15] : memref<288x64xbf16, #tpu.memory_space<vmem>>, vector<32x64xbf16>
    %22 = arith.truncf %20 : vector<24x32xf32> to vector<24x32xbf16>
    %cst_16 = arith.constant dense<0.000000e+00> : vector<24x64xf32>
    %23 = tpu.matmul %22, %21, %cst_16 {dimension_numbers = #tpu.dot_dimension_numbers<[1], [0], [0], [1], [0, 0, 1, 1], [], []>} : vector<24x32xbf16>, vector<32x64xbf16>, vector<24x64xf32> -> vector<24x64xf32>
    %24 = arith.addf %18, %23 : vector<24x64xf32>
    %c0_17 = arith.constant 0 : index
    %c7 = arith.constant 7 : index
    %c0_18 = arith.constant 0 : index
    %25 = vector.load %arg1[%c0_17, %c7, %c0_18] : memref<1x42x32xf32, #tpu.memory_space<vmem>>, vector<1x24x32xf32>
    %26 = vector.shape_cast %25 : vector<1x24x32xf32> to vector<24x32xf32>
    %c128 = arith.constant 128 : index
    %c0_19 = arith.constant 0 : index
    %27 = vector.load %arg2[%c128, %c0_19] : memref<288x64xbf16, #tpu.memory_space<vmem>>, vector<32x64xbf16>
    %28 = arith.truncf %26 : vector<24x32xf32> to vector<24x32xbf16>
    %cst_20 = arith.constant dense<0.000000e+00> : vector<24x64xf32>
    %29 = tpu.matmul %28, %27, %cst_20 {dimension_numbers = #tpu.dot_dimension_numbers<[1], [0], [0], [1], [0, 0, 1, 1], [], []>} : vector<24x32xbf16>, vector<32x64xbf16>, vector<24x64xf32> -> vector<24x64xf32>
    %30 = arith.addf %24, %29 : vector<24x64xf32>
    %c0_21 = arith.constant 0 : index
    %c8 = arith.constant 8 : index
    %c0_22 = arith.constant 0 : index
    %31 = vector.load %arg1[%c0_21, %c8, %c0_22] : memref<1x42x32xf32, #tpu.memory_space<vmem>>, vector<1x24x32xf32>
    %32 = vector.shape_cast %31 : vector<1x24x32xf32> to vector<24x32xf32>
    %c160 = arith.constant 160 : index
    %c0_23 = arith.constant 0 : index
    %33 = vector.load %arg2[%c160, %c0_23] : memref<288x64xbf16, #tpu.memory_space<vmem>>, vector<32x64xbf16>
    %34 = arith.truncf %32 : vector<24x32xf32> to vector<24x32xbf16>
    %cst_24 = arith.constant dense<0.000000e+00> : vector<24x64xf32>
    %35 = tpu.matmul %34, %33, %cst_24 {dimension_numbers = #tpu.dot_dimension_numbers<[1], [0], [0], [1], [0, 0, 1, 1], [], []>} : vector<24x32xbf16>, vector<32x64xbf16>, vector<24x64xf32> -> vector<24x64xf32>
    %36 = arith.addf %30, %35 : vector<24x64xf32>
    %c0_25 = arith.constant 0 : index
    %c12 = arith.constant 12 : index
    %c0_26 = arith.constant 0 : index
    %37 = vector.load %arg1[%c0_25, %c12, %c0_26] : memref<1x42x32xf32, #tpu.memory_space<vmem>>, vector<1x24x32xf32>
    %38 = vector.shape_cast %37 : vector<1x24x32xf32> to vector<24x32xf32>
    %c192 = arith.constant 192 : index
    %c0_27 = arith.constant 0 : index
    %39 = vector.load %arg2[%c192, %c0_27] : memref<288x64xbf16, #tpu.memory_space<vmem>>, vector<32x64xbf16>
    %40 = arith.truncf %38 : vector<24x32xf32> to vector<24x32xbf16>
    %cst_28 = arith.constant dense<0.000000e+00> : vector<24x64xf32>
    %41 = tpu.matmul %40, %39, %cst_28 {dimension_numbers = #tpu.dot_dimension_numbers<[1], [0], [0], [1], [0, 0, 1, 1], [], []>} : vector<24x32xbf16>, vector<32x64xbf16>, vector<24x64xf32> -> vector<24x64xf32>
    %42 = arith.addf %36, %41 : vector<24x64xf32>
    %c0_29 = arith.constant 0 : index
    %c13 = arith.constant 13 : index
    %c0_30 = arith.constant 0 : index
    %43 = vector.load %arg1[%c0_29, %c13, %c0_30] : memref<1x42x32xf32, #tpu.memory_space<vmem>>, vector<1x24x32xf32>
    %44 = vector.shape_cast %43 : vector<1x24x32xf32> to vector<24x32xf32>
    %c224 = arith.constant 224 : index
    %c0_31 = arith.constant 0 : index
    %45 = vector.load %arg2[%c224, %c0_31] : memref<288x64xbf16, #tpu.memory_space<vmem>>, vector<32x64xbf16>
    %46 = arith.truncf %44 : vector<24x32xf32> to vector<24x32xbf16>
    %cst_32 = arith.constant dense<0.000000e+00> : vector<24x64xf32>
    %47 = tpu.matmul %46, %45, %cst_32 {dimension_numbers = #tpu.dot_dimension_numbers<[1], [0], [0], [1], [0, 0, 1, 1], [], []>} : vector<24x32xbf16>, vector<32x64xbf16>, vector<24x64xf32> -> vector<24x64xf32>
    %48 = arith.addf %42, %47 : vector<24x64xf32>
    %c0_33 = arith.constant 0 : index
    %c14 = arith.constant 14 : index
    %c0_34 = arith.constant 0 : index
    %49 = vector.load %arg1[%c0_33, %c14, %c0_34] : memref<1x42x32xf32, #tpu.memory_space<vmem>>, vector<1x24x32xf32>
    %50 = vector.shape_cast %49 : vector<1x24x32xf32> to vector<24x32xf32>
    %c256 = arith.constant 256 : index
    %c0_35 = arith.constant 0 : index
    %51 = vector.load %arg2[%c256, %c0_35] : memref<288x64xbf16, #tpu.memory_space<vmem>>, vector<32x64xbf16>
    %52 = arith.truncf %50 : vector<24x32xf32> to vector<24x32xbf16>
    %cst_36 = arith.constant dense<0.000000e+00> : vector<24x64xf32>
    %53 = tpu.matmul %52, %51, %cst_36 {dimension_numbers = #tpu.dot_dimension_numbers<[1], [0], [0], [1], [0, 0, 1, 1], [], []>} : vector<24x32xbf16>, vector<32x64xbf16>, vector<24x64xf32> -> vector<24x64xf32>
    %54 = arith.addf %48, %53 : vector<24x64xf32>
    %c0_37 = arith.constant 0 : index
    %c0_38 = arith.constant 0 : index
    %55 = vector.load %arg3[%c0_37, %c0_38] : memref<1x64xf32, #tpu.memory_space<vmem>>, vector<1x64xf32>
    %56 = vector.broadcast %55 : vector<1x64xf32> to vector<24x64xf32>
    %57 = arith.addf %54, %56 : vector<24x64xf32>
    %cst_39 = arith.constant 0.000000e+00 : f32
    %58 = vector.broadcast %cst_39 : f32 to vector<24x64xf32>
    %59 = arith.maximumf %57, %58 : vector<24x64xf32>
    %c0_40 = arith.constant 0 : index
    %c0_41 = arith.constant 0 : index
    %c0_42 = arith.constant 0 : index
    %60 = vector.load %arg4[%c0_40, %c0_41, %c0_42] : memref<1x24x64xf32, #tpu.memory_space<vmem>>, vector<1x24x64xf32>
    %61 = vector.shape_cast %60 : vector<1x24x64xf32> to vector<24x64xf32>
    %62 = vector.shape_cast %59 : vector<24x64xf32> to vector<1x24x64xf32>
    tpu.vector_store %arg4[%c0_40, %c0_41, %c0_42], %62 {strides = array<i32>} : memref<1x24x64xf32, #tpu.memory_space<vmem>>, vector<1x24x64xf32>,
    return
  }
  func.func @transform_0(%arg0: i32) -> (i32, i32, i32) {
    %c0_i32 = arith.constant 0 : i32
    %c0_i32_0 = arith.constant 0 : i32
    %c0_i32_1 = arith.constant 0 : i32
    return %arg0, %c0_i32, %c0_i32_0 : i32, i32, i32
  }
  func.func @transform_1(%arg0: i32) -> (i32, i32) {
    %c0_i32 = arith.constant 0 : i32
    %c0_i32_0 = arith.constant 0 : i32
    %c0_i32_1 = arith.constant 0 : i32
    return %c0_i32, %c0_i32_0 : i32, i32
  }
  func.func @transform_2(%arg0: i32) -> (i32, i32) {
    %c0_i32 = arith.constant 0 : i32
    %c0_i32_0 = arith.constant 0 : i32
    %c0_i32_1 = arith.constant 0 : i32
    return %c0_i32, %c0_i32_0 : i32, i32
  }
  func.func @transform_3(%arg0: i32) -> (i32, i32, i32) {
    %c0_i32 = arith.constant 0 : i32
    %c0_i32_0 = arith.constant 0 : i32
    %c0_i32_1 = arith.constant 0 : i32
    return %arg0, %c0_i32, %c0_i32_0 : i32, i32, i32
  }
}

module attributes {stable_mosaic.version = 11 : i64} {
  func.func @_conv_kernel(%arg0: i32, %arg1: memref<1x110x16xf32, #tpu.memory_space<vmem>>, %arg2: memref<144x12xbf16, #tpu.memory_space<vmem>>, %arg3: memref<1x12xf32, #tpu.memory_space<vmem>>, %arg4: memref<1x80x12xf32, #tpu.memory_space<vmem>>) attributes {dimension_semantics = [#tpu.dimension_semantics<parallel>], iteration_bounds = array<i64: 2>, scalar_prefetch = 0 : i64, scratch_operands = 0 : i64, tpu.core_type = #tpu.core_type<tc>, window_params = [{transform_indices = @transform_0, window_bounds = array<i64: 1, 110, 16>}, {pipeline_mode = #tpu.pipeline_mode<synchronous>, transform_indices = @transform_1, window_bounds = array<i64: 144, 12>}, {pipeline_mode = #tpu.pipeline_mode<synchronous>, transform_indices = @transform_2, window_bounds = array<i64: 1, 12>}, {transform_indices = @transform_3, window_bounds = array<i64: 1, 80, 12>}]} {
    %cst = arith.constant 0.000000e+00 : f32
    %0 = vector.broadcast %cst : f32 to vector<80x12xf32>
    %c0 = arith.constant 0 : index
    %c0_0 = arith.constant 0 : index
    %c0_1 = arith.constant 0 : index
    %1 = vector.load %arg1[%c0, %c0_0, %c0_1] : memref<1x110x16xf32, #tpu.memory_space<vmem>>, vector<1x80x16xf32>
    %2 = vector.shape_cast %1 : vector<1x80x16xf32> to vector<80x16xf32>
    %c0_2 = arith.constant 0 : index
    %c0_3 = arith.constant 0 : index
    %3 = vector.load %arg2[%c0_2, %c0_3] : memref<144x12xbf16, #tpu.memory_space<vmem>>, vector<16x12xbf16>
    %4 = arith.truncf %2 : vector<80x16xf32> to vector<80x16xbf16>
    %cst_4 = arith.constant dense<0.000000e+00> : vector<80x12xf32>
    %5 = tpu.matmul %4, %3, %cst_4 {dimension_numbers = #tpu.dot_dimension_numbers<[1], [0], [0], [1], [0, 0, 1, 1], [], []>} : vector<80x16xbf16>, vector<16x12xbf16>, vector<80x12xf32> -> vector<80x12xf32>
    %6 = arith.addf %0, %5 : vector<80x12xf32>
    %c0_5 = arith.constant 0 : index
    %c1 = arith.constant 1 : index
    %c0_6 = arith.constant 0 : index
    %7 = vector.load %arg1[%c0_5, %c1, %c0_6] : memref<1x110x16xf32, #tpu.memory_space<vmem>>, vector<1x80x16xf32>
    %8 = vector.shape_cast %7 : vector<1x80x16xf32> to vector<80x16xf32>
    %c16 = arith.constant 16 : index
    %c0_7 = arith.constant 0 : index
    %9 = vector.load %arg2[%c16, %c0_7] : memref<144x12xbf16, #tpu.memory_space<vmem>>, vector<16x12xbf16>
    %10 = arith.truncf %8 : vector<80x16xf32> to vector<80x16xbf16>
    %cst_8 = arith.constant dense<0.000000e+00> : vector<80x12xf32>
    %11 = tpu.matmul %10, %9, %cst_8 {dimension_numbers = #tpu.dot_dimension_numbers<[1], [0], [0], [1], [0, 0, 1, 1], [], []>} : vector<80x16xbf16>, vector<16x12xbf16>, vector<80x12xf32> -> vector<80x12xf32>
    %12 = arith.addf %6, %11 : vector<80x12xf32>
    %c0_9 = arith.constant 0 : index
    %c2 = arith.constant 2 : index
    %c0_10 = arith.constant 0 : index
    %13 = vector.load %arg1[%c0_9, %c2, %c0_10] : memref<1x110x16xf32, #tpu.memory_space<vmem>>, vector<1x80x16xf32>
    %14 = vector.shape_cast %13 : vector<1x80x16xf32> to vector<80x16xf32>
    %c32 = arith.constant 32 : index
    %c0_11 = arith.constant 0 : index
    %15 = vector.load %arg2[%c32, %c0_11] : memref<144x12xbf16, #tpu.memory_space<vmem>>, vector<16x12xbf16>
    %16 = arith.truncf %14 : vector<80x16xf32> to vector<80x16xbf16>
    %cst_12 = arith.constant dense<0.000000e+00> : vector<80x12xf32>
    %17 = tpu.matmul %16, %15, %cst_12 {dimension_numbers = #tpu.dot_dimension_numbers<[1], [0], [0], [1], [0, 0, 1, 1], [], []>} : vector<80x16xbf16>, vector<16x12xbf16>, vector<80x12xf32> -> vector<80x12xf32>
    %18 = arith.addf %12, %17 : vector<80x12xf32>
    %c0_13 = arith.constant 0 : index
    %c10 = arith.constant 10 : index
    %c0_14 = arith.constant 0 : index
    %19 = vector.load %arg1[%c0_13, %c10, %c0_14] : memref<1x110x16xf32, #tpu.memory_space<vmem>>, vector<1x80x16xf32>
    %20 = vector.shape_cast %19 : vector<1x80x16xf32> to vector<80x16xf32>
    %c48 = arith.constant 48 : index
    %c0_15 = arith.constant 0 : index
    %21 = vector.load %arg2[%c48, %c0_15] : memref<144x12xbf16, #tpu.memory_space<vmem>>, vector<16x12xbf16>
    %22 = arith.truncf %20 : vector<80x16xf32> to vector<80x16xbf16>
    %cst_16 = arith.constant dense<0.000000e+00> : vector<80x12xf32>
    %23 = tpu.matmul %22, %21, %cst_16 {dimension_numbers = #tpu.dot_dimension_numbers<[1], [0], [0], [1], [0, 0, 1, 1], [], []>} : vector<80x16xbf16>, vector<16x12xbf16>, vector<80x12xf32> -> vector<80x12xf32>
    %24 = arith.addf %18, %23 : vector<80x12xf32>
    %c0_17 = arith.constant 0 : index
    %c11 = arith.constant 11 : index
    %c0_18 = arith.constant 0 : index
    %25 = vector.load %arg1[%c0_17, %c11, %c0_18] : memref<1x110x16xf32, #tpu.memory_space<vmem>>, vector<1x80x16xf32>
    %26 = vector.shape_cast %25 : vector<1x80x16xf32> to vector<80x16xf32>
    %c64 = arith.constant 64 : index
    %c0_19 = arith.constant 0 : index
    %27 = vector.load %arg2[%c64, %c0_19] : memref<144x12xbf16, #tpu.memory_space<vmem>>, vector<16x12xbf16>
    %28 = arith.truncf %26 : vector<80x16xf32> to vector<80x16xbf16>
    %cst_20 = arith.constant dense<0.000000e+00> : vector<80x12xf32>
    %29 = tpu.matmul %28, %27, %cst_20 {dimension_numbers = #tpu.dot_dimension_numbers<[1], [0], [0], [1], [0, 0, 1, 1], [], []>} : vector<80x16xbf16>, vector<16x12xbf16>, vector<80x12xf32> -> vector<80x12xf32>
    %30 = arith.addf %24, %29 : vector<80x12xf32>
    %c0_21 = arith.constant 0 : index
    %c12 = arith.constant 12 : index
    %c0_22 = arith.constant 0 : index
    %31 = vector.load %arg1[%c0_21, %c12, %c0_22] : memref<1x110x16xf32, #tpu.memory_space<vmem>>, vector<1x80x16xf32>
    %32 = vector.shape_cast %31 : vector<1x80x16xf32> to vector<80x16xf32>
    %c80 = arith.constant 80 : index
    %c0_23 = arith.constant 0 : index
    %33 = vector.load %arg2[%c80, %c0_23] : memref<144x12xbf16, #tpu.memory_space<vmem>>, vector<16x12xbf16>
    %34 = arith.truncf %32 : vector<80x16xf32> to vector<80x16xbf16>
    %cst_24 = arith.constant dense<0.000000e+00> : vector<80x12xf32>
    %35 = tpu.matmul %34, %33, %cst_24 {dimension_numbers = #tpu.dot_dimension_numbers<[1], [0], [0], [1], [0, 0, 1, 1], [], []>} : vector<80x16xbf16>, vector<16x12xbf16>, vector<80x12xf32> -> vector<80x12xf32>
    %36 = arith.addf %30, %35 : vector<80x12xf32>
    %c0_25 = arith.constant 0 : index
    %c20 = arith.constant 20 : index
    %c0_26 = arith.constant 0 : index
    %37 = vector.load %arg1[%c0_25, %c20, %c0_26] : memref<1x110x16xf32, #tpu.memory_space<vmem>>, vector<1x80x16xf32>
    %38 = vector.shape_cast %37 : vector<1x80x16xf32> to vector<80x16xf32>
    %c96 = arith.constant 96 : index
    %c0_27 = arith.constant 0 : index
    %39 = vector.load %arg2[%c96, %c0_27] : memref<144x12xbf16, #tpu.memory_space<vmem>>, vector<16x12xbf16>
    %40 = arith.truncf %38 : vector<80x16xf32> to vector<80x16xbf16>
    %cst_28 = arith.constant dense<0.000000e+00> : vector<80x12xf32>
    %41 = tpu.matmul %40, %39, %cst_28 {dimension_numbers = #tpu.dot_dimension_numbers<[1], [0], [0], [1], [0, 0, 1, 1], [], []>} : vector<80x16xbf16>, vector<16x12xbf16>, vector<80x12xf32> -> vector<80x12xf32>
    %42 = arith.addf %36, %41 : vector<80x12xf32>
    %c0_29 = arith.constant 0 : index
    %c21 = arith.constant 21 : index
    %c0_30 = arith.constant 0 : index
    %43 = vector.load %arg1[%c0_29, %c21, %c0_30] : memref<1x110x16xf32, #tpu.memory_space<vmem>>, vector<1x80x16xf32>
    %44 = vector.shape_cast %43 : vector<1x80x16xf32> to vector<80x16xf32>
    %c112 = arith.constant 112 : index
    %c0_31 = arith.constant 0 : index
    %45 = vector.load %arg2[%c112, %c0_31] : memref<144x12xbf16, #tpu.memory_space<vmem>>, vector<16x12xbf16>
    %46 = arith.truncf %44 : vector<80x16xf32> to vector<80x16xbf16>
    %cst_32 = arith.constant dense<0.000000e+00> : vector<80x12xf32>
    %47 = tpu.matmul %46, %45, %cst_32 {dimension_numbers = #tpu.dot_dimension_numbers<[1], [0], [0], [1], [0, 0, 1, 1], [], []>} : vector<80x16xbf16>, vector<16x12xbf16>, vector<80x12xf32> -> vector<80x12xf32>
    %48 = arith.addf %42, %47 : vector<80x12xf32>
    %c0_33 = arith.constant 0 : index
    %c22 = arith.constant 22 : index
    %c0_34 = arith.constant 0 : index
    %49 = vector.load %arg1[%c0_33, %c22, %c0_34] : memref<1x110x16xf32, #tpu.memory_space<vmem>>, vector<1x80x16xf32>
    %50 = vector.shape_cast %49 : vector<1x80x16xf32> to vector<80x16xf32>
    %c128 = arith.constant 128 : index
    %c0_35 = arith.constant 0 : index
    %51 = vector.load %arg2[%c128, %c0_35] : memref<144x12xbf16, #tpu.memory_space<vmem>>, vector<16x12xbf16>
    %52 = arith.truncf %50 : vector<80x16xf32> to vector<80x16xbf16>
    %cst_36 = arith.constant dense<0.000000e+00> : vector<80x12xf32>
    %53 = tpu.matmul %52, %51, %cst_36 {dimension_numbers = #tpu.dot_dimension_numbers<[1], [0], [0], [1], [0, 0, 1, 1], [], []>} : vector<80x16xbf16>, vector<16x12xbf16>, vector<80x12xf32> -> vector<80x12xf32>
    %54 = arith.addf %48, %53 : vector<80x12xf32>
    %c0_37 = arith.constant 0 : index
    %c0_38 = arith.constant 0 : index
    %55 = vector.load %arg3[%c0_37, %c0_38] : memref<1x12xf32, #tpu.memory_space<vmem>>, vector<1x12xf32>
    %56 = vector.broadcast %55 : vector<1x12xf32> to vector<80x12xf32>
    %57 = arith.addf %54, %56 : vector<80x12xf32>
    %c0_39 = arith.constant 0 : index
    %c0_40 = arith.constant 0 : index
    %c0_41 = arith.constant 0 : index
    %58 = vector.load %arg4[%c0_39, %c0_40, %c0_41] : memref<1x80x12xf32, #tpu.memory_space<vmem>>, vector<1x80x12xf32>
    %59 = vector.shape_cast %58 : vector<1x80x12xf32> to vector<80x12xf32>
    %60 = vector.shape_cast %57 : vector<80x12xf32> to vector<1x80x12xf32>
    tpu.vector_store %arg4[%c0_39, %c0_40, %c0_41], %60 {strides = array<i32>} : memref<1x80x12xf32, #tpu.memory_space<vmem>>, vector<1x80x12xf32>,
    return
  }
  func.func @transform_0(%arg0: i32) -> (i32, i32, i32) {
    %c0_i32 = arith.constant 0 : i32
    %c0_i32_0 = arith.constant 0 : i32
    %c0_i32_1 = arith.constant 0 : i32
    return %arg0, %c0_i32, %c0_i32_0 : i32, i32, i32
  }
  func.func @transform_1(%arg0: i32) -> (i32, i32) {
    %c0_i32 = arith.constant 0 : i32
    %c0_i32_0 = arith.constant 0 : i32
    %c0_i32_1 = arith.constant 0 : i32
    return %c0_i32, %c0_i32_0 : i32, i32
  }
  func.func @transform_2(%arg0: i32) -> (i32, i32) {
    %c0_i32 = arith.constant 0 : i32
    %c0_i32_0 = arith.constant 0 : i32
    %c0_i32_1 = arith.constant 0 : i32
    return %c0_i32, %c0_i32_0 : i32, i32
  }
  func.func @transform_3(%arg0: i32) -> (i32, i32, i32) {
    %c0_i32 = arith.constant 0 : i32
    %c0_i32_0 = arith.constant 0 : i32
    %c0_i32_1 = arith.constant 0 : i32
    return %arg0, %c0_i32, %c0_i32_0 : i32, i32, i32
  }
}

</mosaic_0001>

<bundles_post_ra>
// kernel: _lambda_.23
= control target key start
LH: loop header
LB: loop body
LE: loop exit
PB: predicated region body
PF: predicated region fallthrough
CT: control target
= control target key end

     0   :  { %s920_s12 = smov 0   ;;  %s1109_s0 = inlined_call_operand.vmem [shape: f32[2,90,12], index: 0, kind: input, shape index: {}]   ;;  %s1110_s1 = inlined_call_operand.vmem [shape: bf16[48,16], index: 1, kind: input, shape index: {}]   ;;  %s1111_s2 = inlined_call_operand.vmem [shape: f32[1,16], index: 2, kind: input, shape index: {}]   ;;  %s1112_s3 = inlined_call_operand.vmem [shape: f32[2,72,16], index: 3, kind: output, shape index: {}]  }
   0x1 LB: > { %s728_s13 = sadd.s32 4294967295, %s896_s12   ;;  %p732_p0 = scmp.ge.s32.totalorder %s896_s12, 1  ;;  %s896_s12 = sphi %s920_s12, %s13_s12  }
   0x2   : > { %p137_p1 = scmp.lt.s32.totalorder %s896_s12, 3 }
   0x4   : > { %p138_p2 = pnand %p732_p0, %p137_p1 }
   0x5   : > { %p161_p3 = scmp.lt.s32.totalorder (!%p138_p2), %s728_s13, 1 }
   0x6   : > { %141 = sbr.rel (%p138_p2) target bundleno = 293 (0x125), region = 32 }
   0xb   : > { %vm226_vm0 = vcmask 1045504   ;;  %v898_v0 = vmov 0.0   ;;  %v886_v1 = vld [vmem:[%s1110_s1 + $0x4] sm:$0xfc]   ;;  %v887_v2 = vld [vmem:[%s1110_s1] sm:$0x3f]  }
   0xc   : > { %786 = vmatprep.subr.bf16.mxu0 %v898_v0  ;;  %808 = vmatprep.subr.bf16.mxu1 %v898_v0  ;;  %v209_v3 = vrot.slane %v886_v1, 2  ;;  %vm899_vm1 = vmmov 0   ;;  %v323_v4 = vsel %vm226_vm0, %v887_v2, 0  ;;  %s1114_s13 = smov (!%p161_p3, %s728_s13), 1  ;;  %v889_v6 = vld [vmem:[%s1110_s1 + $0x10] sm:$0xfc]  }
   0xd   : > { %788 = vmatprep.mubr.msk.bf16.mxu0 %vm899_vm1, %v898_v0  ;;  %810 = vmatprep.mubr.msk.bf16.mxu1 %vm899_vm1, %v898_v0  ;;  %s874_s20 = smul.u32 96, %s1114_s13  ;;  %v888_v7 = vld [vmem:[%s1110_s1 + $0xc] sm:$0x3f]   ;;  %v538_v8 = vrot.slane %v889_v6, 2  ;;  %vm210_vm2 = vcmask 97280   ;;  %vm663_vm3 = vcmask 130048  }
   0xe   : > { %v228_v5 = vsel %vm226_vm0, %v209_v3, 0  ;;  %809 = vmatpush3.bf16.msra.mxu1 %v323_v4  ;;  %v434_v14 = vsel %vm226_vm0, %v888_v7, 0  ;;  %s875_s26 = smul.u32 72, %s1114_s13 }
   0xf   : > { %787 = vmatpush3.bf16.msra.mxu0 %v228_v5  ;;  %852 = vmatprep.subr.bf16.mxu1 %v898_v0  ;;  %s956_s25 = scalar_lea.vmem %s1109_s0, %s874_s20  ;;  %v555_v16 = vsel %vm226_vm0, %v538_v8, 0 }
  0x10   : > { %830 = vmatprep.subr.bf16.mxu0 %v898_v0  ;;  %v188_v9 = vld [vmem:[%s956_s25 + $0x1] sm:$0xff]  ;;  %v189_v10 = vld [vmem:[%s956_s25 + $0x9] sm:$0xff]  ;;  %v190_v17 = vld [vmem:[%s956_s25 + $0x11] sm:$0xff]  ;;  %s1070_s4 = scalar_lea.vmem %s1112_s3, %s875_s26 }
  0x11   : > { %v172_v11 = vld [vmem:[%s956_s25] sm:$0xff]  ;;  %v199_v12 = vpack.c.bf16 %v189_v10, %v188_v9  ;;  %v173_v13 = vld [vmem:[%s956_s25 + $0x8] sm:$0xff]  ;;  %v174_v19 = vld [vmem:[%s956_s25 + $0x10] sm:$0xff]  ;;  %v408_v41 = vpack.c.bf16 %v190_v17, %v189_v10 }
  0x12   : > { %v183_v15 = vpack.c.bf16 %v173_v13, %v172_v11  ;;  %v191_v18 = vld [vmem:[%s956_s25 + $0x19] sm:$0xff]  ;;  %v192_v23 = vld [vmem:[%s956_s25 + $0x21] sm:$0xff]  ;;  %v193_v24 = vld [vmem:[%s956_s25 + $0x29] sm:$0xff] }
  0x13   : > { %789 = vmatmul.mubr.msk.bf16.vlgmr.msra.gmra.mxu0 %vm210_vm2, %v199_v12  ;;  %v175_v20 = vld [vmem:[%s956_s25 + $0x18] sm:$0xff]  ;;  %v200_v21 = vpack.c.bf16 %v191_v18, %v190_v17  ;;  %v176_v25 = vld [vmem:[%s956_s25 + $0x20] sm:$0xff]  ;;  %v177_v26 = vld [vmem:[%s956_s25 + $0x28] sm:$0xff]  ;;  %v201_v27 = vpack.c.bf16 %v193_v24, %v192_v23  ;;  %v409_v45 = vpack.c.bf16 %v192_v23, %v191_v18 }
  0x14   : > { %811 = vmatmul.mubr.msk.bf16.vlgmr.msra.gmra.mxu1 %vm210_vm2, %v183_v15  ;;  %831 = vmatpush3.bf16.msra.mxu0 %v434_v14  ;;  %v184_v22 = vpack.c.bf16 %v175_v20, %v174_v19  ;;  %v185_v28 = vpack.c.bf16 %v177_v26, %v176_v25  ;;  %v194_v29 = vld [vmem:[%s956_s25 + $0x31] sm:$0xff]  ;;  %v195_v30 = vld [vmem:[%s956_s25 + $0x39] sm:$0xff]  ;;  %v196_v35 = vld [vmem:[%s956_s25 + $0x41] sm:$0xff] }
  0x15   : > { %853 = vmatpush3.bf16.msra.mxu1 %v555_v16  ;;  %792 = vmatprep.mubr.msk.bf16.mxu0 %vm899_vm1, %v898_v0  ;;  %v178_v31 = vld [vmem:[%s956_s25 + $0x30] sm:$0xff]  ;;  %v179_v32 = vld [vmem:[%s956_s25 + $0x38] sm:$0xff]  ;;  %v202_v33 = vpack.c.bf16 %v195_v30, %v194_v29  ;;  %v180_v36 = vld [vmem:[%s956_s25 + $0x40] sm:$0xff]  ;;  %v203_v37 = vpack.c.bf16 %v196_v35, %v196_v35  ;;  %v410_v49 = vpack.c.bf16 %v194_v29, %v193_v24 }
  0x16   : > { %814 = vmatprep.mubr.msk.bf16.mxu1 %vm899_vm1, %v898_v0  ;;  %v186_v34 = vpack.c.bf16 %v179_v32, %v178_v31  ;;  %v187_v38 = vpack.c.bf16 %v180_v36, %v180_v36  ;;  %v517_v39 = vld [vmem:[%s956_s25 + $0xa] sm:$0xff]  ;;  %v518_v40 = vld [vmem:[%s956_s25 + $0x12] sm:$0xff]  ;;  %v519_v43 = vld [vmem:[%s956_s25 + $0x1a] sm:$0xff]  ;;  %v411_v53 = vpack.c.bf16 %v196_v35, %v195_v30 }
  0x17   : > { %v528_v42 = vpack.c.bf16 %v518_v40, %v517_v39  ;;  %v520_v44 = vld [vmem:[%s956_s25 + $0x22] sm:$0xff]  ;;  %v521_v47 = vld [vmem:[%s956_s25 + $0x2a] sm:$0xff]  ;;  %v522_v48 = vld [vmem:[%s956_s25 + $0x32] sm:$0xff] }
  0x18   : > { %v529_v46 = vpack.c.bf16 %v520_v44, %v519_v43  ;;  %v530_v50 = vpack.c.bf16 %v522_v48, %v521_v47  ;;  %v523_v51 = vld [vmem:[%s956_s25 + $0x3a] sm:$0xff]  ;;  %v524_v52 = vld [vmem:[%s956_s25 + $0x42] sm:$0xff]  ;;  %v525_v56 = vld [vmem:[%s956_s25 + $0x4a] sm:$0xff] }
  0x19   : > { %v531_v54 = vpack.c.bf16 %v524_v52, %v523_v51  ;;  %v405_v55 = vld [vmem:[%s956_s25 + $0x49] sm:$0xff]  ;;  %v532_v58 = vpack.c.bf16 %v525_v56, %v525_v56  ;;  %v1064_v39 = vld [vmem:[%s1111_s2] ss:$0 sm:$0xff] }
  0x1a   : > { %v412_v57 = vpack.c.bf16 %v405_v55, %v405_v55 }
  0x1b   : > { %793 = vmatmul.mubr.msk.bf16.gmra.mxu0 %vm210_vm2, %v200_v21 }
  0x1c   : > { %815 = vmatmul.mubr.msk.bf16.gmra.mxu1 %vm210_vm2, %v184_v22  ;;  %796 = vmatprep.mubr.msk.bf16.mxu0 %vm899_vm1, %v898_v0 }
  0x1d   : > { %818 = vmatprep.mubr.msk.bf16.mxu1 %vm899_vm1, %v898_v0 }
  0x23   : > { %797 = vmatmul.mubr.msk.bf16.gmra.mxu0 %vm210_vm2, %v201_v27 }
  0x24   : > { %819 = vmatmul.mubr.msk.bf16.gmra.mxu1 %vm210_vm2, %v185_v28  ;;  %800 = vmatprep.mubr.msk.bf16.mxu0 %vm899_vm1, %v898_v0 }
  0x25   : > { %822 = vmatprep.mubr.msk.bf16.mxu1 %vm899_vm1, %v898_v0 }
  0x2b   : > { %801 = vmatmul.mubr.msk.bf16.gmra.mxu0 %vm210_vm2, %v202_v33 }
  0x2c   : > { %823 = vmatmul.mubr.msk.bf16.gmra.mxu1 %vm210_vm2, %v186_v34  ;;  %804 = vmatprep.mubr.msk.bf16.mxu0 %vm899_vm1, %v898_v0 }
  0x2d   : > { %826 = vmatprep.mubr.msk.bf16.mxu1 %vm899_vm1, %v898_v0 }
  0x33   : > { %805 = vmatmul.mubr.msk.bf16.gmra.mxu0 %vm210_vm2, %v203_v37 }
  0x34   : > { %827 = vmatmul.mubr.msk.bf16.gmra.mxu1 %vm210_vm2, %v187_v38  ;;  %832 = vmatprep.mubr.msk.bf16.mxu0 %vm899_vm1, %v898_v0 }
  0x35   : > { %854 = vmatprep.mubr.msk.bf16.mxu1 %vm899_vm1, %v898_v0 }
  0x3b   : > { %833 = vmatmul.mubr.msk.bf16.vlgmr.msra.gmra.mxu0 %vm210_vm2, %v408_v41 }
  0x3c   : > { %855 = vmatmul.mubr.msk.bf16.vlgmr.msra.gmra.mxu1 %vm210_vm2, %v528_v42  ;;  %836 = vmatprep.mubr.msk.bf16.mxu0 %vm899_vm1, %v898_v0 }
  0x3d   : > { %858 = vmatprep.mubr.msk.bf16.mxu1 %vm899_vm1, %v898_v0 }
  0x43   : > { %837 = vmatmul.mubr.msk.bf16.gmra.mxu0 %vm210_vm2, %v409_v45 }
  0x44   : > { %859 = vmatmul.mubr.msk.bf16.gmra.mxu1 %vm210_vm2, %v529_v46  ;;  %840 = vmatprep.mubr.msk.bf16.mxu0 %vm899_vm1, %v898_v0 }
  0x45   : > { %862 = vmatprep.mubr.msk.bf16.mxu1 %vm899_vm1, %v898_v0 }
  0x4b   : > { %841 = vmatmul.mubr.msk.bf16.gmra.mxu0 %vm210_vm2, %v410_v49 }
  0x4c   : > { %863 = vmatmul.mubr.msk.bf16.gmra.mxu1 %vm210_vm2, %v530_v50  ;;  %844 = vmatprep.mubr.msk.bf16.mxu0 %vm899_vm1, %v898_v0 }
  0x4d   : > { %866 = vmatprep.mubr.msk.bf16.mxu1 %vm899_vm1, %v898_v0 }
  0x53   : > { %845 = vmatmul.mubr.msk.bf16.gmra.mxu0 %vm210_vm2, %v411_v53 }
  0x54   : > { %867 = vmatmul.mubr.msk.bf16.gmra.mxu1 %vm210_vm2, %v531_v54  ;;  %848 = vmatprep.mubr.msk.bf16.mxu0 %vm899_vm1, %v898_v0 }
  0x55   : > { %870 = vmatprep.mubr.msk.bf16.mxu1 %vm899_vm1, %v898_v0 }
  0x5b   : > { %849 = vmatmul.mubr.msk.bf16.gmra.mxu0 %vm210_vm2, %v412_v57 }
  0x5c   : > { %871 = vmatmul.mubr.msk.bf16.gmra.mxu1 %vm210_vm2, %v532_v58 }
  0xd3   : > { %v264_v59 = vpop.f32.mrf.mxu0 }
  0xd4   : > { %v359_v60 = vpop.f32.mrf.mxu1 }
  0xd5   : > { %v790_v61 = vpop.f32.mrf.mxu0  ;;  %v360_v34 = vadd.f32 %v359_v60, %v264_v59 }
  0xd6   : > { %v812_v62 = vpop.f32.mrf.mxu1 }
  0xd7   : > { %v267_v63 = vpop.f32.mrf.mxu0 }
  0xd8   : > { %v362_v1 = vpop.f32.mrf.mxu1 }
  0xd9   : > { %v791_v2 = vpop.f32.mrf.mxu0  ;;  %v363_v41 = vadd.f32 %v362_v1, %v267_v63 }
  0xda   : > { %v813_v3 = vpop.f32.mrf.mxu1 }
  0xdb   : > { %v272_v4 = vpop.f32.mrf.mxu0 }
  0xdc   : > { %v367_v5 = vpop.f32.mrf.mxu1 }
  0xdd   : > { %v794_v6 = vpop.f32.mrf.mxu0  ;;  %v368_v49 = vadd.f32 %v367_v5, %v272_v4 }
  0xde   : > { %v816_v7 = vpop.f32.mrf.mxu1 }
  0xdf   : > { %v275_v0 = vpop.f32.mrf.mxu0 }
  0xe0   : > { %v370_v8 = vpop.f32.mrf.mxu1 }
  0xe1   : > { %v795_v9 = vpop.f32.mrf.mxu0  ;;  %v371_v58 = vadd.f32 %v370_v8, %v275_v0 }
  0xe2   : > { %v817_v10 = vpop.f32.mrf.mxu1 }
  0xe3   : > { %v280_v11 = vpop.f32.mrf.mxu0 }
  0xe4   : > { %v375_v12 = vpop.f32.mrf.mxu1 }
  0xe5   : > { %v798_v13 = vpop.f32.mrf.mxu0  ;;  %v376_v4 = vadd.f32 %v375_v12, %v280_v11 }
  0xe6   : > { %v820_v14 = vpop.f32.mrf.mxu1 }
  0xe7   : > { %v1044_v15 = vpop.f32.mrf.mxu0 }
  0xe8   : > { %v1046_v16 = vpop.f32.mrf.mxu1 }
  0xe9   : > { %v799_v17 = vpop.f32.mrf.mxu0  ;;  %v379_v14 = vadd.f32 %v1046_v16, %v1044_v15 }
  0xea   : > { %v821_v18 = vpop.f32.mrf.mxu1 }
  0xeb   : > { %v1048_v19 = vpop.f32.mrf.mxu0 }
  0xec   : > { %v1050_v20 = vpop.f32.mrf.mxu1 }
  0xed   : > { %v802_v21 = vpop.f32.mrf.mxu0 }
  0xee   : > { %v824_v22 = vpop.f32.mrf.mxu1 }
  0xef   : > { %v1052_v23 = vpop.f32.mrf.mxu0 }
  0xf0   : > { %v1054_v24 = vpop.f32.mrf.mxu1 }
  0xf1   : > { %v803_v25 = vpop.f32.mrf.mxu0 }
  0xf2   : > { %v825_v26 = vpop.f32.mrf.mxu1 }
  0xf3   : > { %v1056_v27 = vpop.f32.mrf.mxu0 }
  0xf4   : > { %v1058_v28 = vpop.f32.mrf.mxu1 }
  0xf5   : > { %v806_v29 = vpop.f32.mrf.mxu0 }
  0xf6   : > { %v828_v30 = vpop.f32.mrf.mxu1  ;;  %v384_v29 = vadd.f32 %v1050_v20, %v1048_v19 }
  0xf7   : > { %v299_v31 = vpop.f32.mrf.mxu0 }
  0xf8   : > { %v394_v32 = vpop.f32.mrf.mxu1 }
  0xf9   : > { %v807_v33 = vpop.f32.mrf.mxu0 }
  0xfa   : > { %v829_v35 = vpop.f32.mrf.mxu1 }
  0xfb   : > { %v470_v36 = vpop.f32.mrf.mxu0 }
  0xfc   : > { %v508_v37 = vadd.f32 %v470_v36, %v360_v34  ;;  %v591_v38 = vpop.f32.mrf.mxu1  ;;  %v387_v36 = vadd.f32 %v1054_v24, %v1052_v23 }
  0xfd   : > { %v834_v40 = vpop.f32.mrf.mxu0 }
  0xfe   : > { %v629_v42 = vadd.f32 %v591_v38, %v508_v37  ;;  %v856_v43 = vpop.f32.mrf.mxu1 }
  0xff   : > { %v473_v44 = vpop.f32.mrf.mxu0 }
 0x100   : > { %v645_v45 = vadd.f32 %v1064_v39, %v629_v42  ;;  %v509_v46 = vadd.f32 %v473_v44, %v363_v41  ;;  %v594_v47 = vpop.f32.mrf.mxu1  ;;  %v392_v44 = vadd.f32 %v1058_v28, %v1056_v27 }
 0x101   : > { %v835_v48 = vpop.f32.mrf.mxu0 }
 0x102   : > { %v654_v50 = vmax.f32 %v645_v45, 0.0  ;;  %v630_v51 = vadd.f32 %v594_v47, %v509_v46  ;;  %v857_v52 = vpop.f32.mrf.mxu1 }
 0x103   : > { %v478_v53 = vpop.f32.mrf.mxu0 }
 0x104   : > { %664 = vst.msk [vmem:[%s1070_s4] sm:$0xff] %vm663_vm3, %v654_v50  ;;  %v646_v54 = vadd.f32 %v1064_v39, %v630_v51  ;;  %v510_v55 = vadd.f32 %v478_v53, %v368_v49  ;;  %v599_v56 = vpop.f32.mrf.mxu1 }
 0x105   : > { %v838_v57 = vpop.f32.mrf.mxu0 }
 0x106   : > { %v655_v59 = vmax.f32 %v646_v54, 0.0  ;;  %v631_v60 = vadd.f32 %v599_v56, %v510_v55  ;;  %v860_v61 = vpop.f32.mrf.mxu1 }
 0x107   : > { %v481_v62 = vpop.f32.mrf.mxu0 }
 0x108   : > { %665 = vst.msk [vmem:[%s1070_s4 + $0x8] sm:$0xff] %vm663_vm3, %v655_v59  ;;  %v647_v63 = vadd.f32 %v1064_v39, %v631_v60  ;;  %v511_v1 = vadd.f32 %v481_v62, %v371_v58  ;;  %v602_v2 = vpop.f32.mrf.mxu1 }
 0x109   : > { %v839_v3 = vpop.f32.mrf.mxu0 }
 0x10a   : > { %v656_v5 = vmax.f32 %v647_v63, 0.0  ;;  %v632_v6 = vadd.f32 %v602_v2, %v511_v1  ;;  %v861_v7 = vpop.f32.mrf.mxu1 }
 0x10b   : > { %v486_v9 = vpop.f32.mrf.mxu0 }
 0x10c   : > { %666 = vst.msk [vmem:[%s1070_s4 + $0x10] sm:$0xff] %vm663_vm3, %v656_v5  ;;  %v648_v0 = vadd.f32 %v1064_v39, %v632_v6  ;;  %v512_v8 = vadd.f32 %v486_v9, %v376_v4  ;;  %v607_v10 = vpop.f32.mrf.mxu1 }
 0x10d   : > { %v842_v13 = vpop.f32.mrf.mxu0 }
 0x10e   : > { %v657_v17 = vmax.f32 %v648_v0, 0.0  ;;  %v633_v18 = vadd.f32 %v607_v10, %v512_v8  ;;  %v864_v21 = vpop.f32.mrf.mxu1 }
 0x10f   : > { %v489_v22 = vpop.f32.mrf.mxu0 }
 0x110   : > { %667 = vst.msk [vmem:[%s1070_s4 + $0x18] sm:$0xff] %vm663_vm3, %v657_v17  ;;  %v649_v11 = vadd.f32 %v1064_v39, %v633_v18  ;;  %v513_v12 = vadd.f32 %v489_v22, %v379_v14  ;;  %v610_v25 = vpop.f32.mrf.mxu1 }
 0x111   : > { %v843_v26 = vpop.f32.mrf.mxu0 }
 0x112   : > { %v658_v30 = vmax.f32 %v649_v11, 0.0  ;;  %v634_v31 = vadd.f32 %v610_v25, %v513_v12  ;;  %v865_v32 = vpop.f32.mrf.mxu1 }
 0x113   : > { %v494_v33 = vpop.f32.mrf.mxu0 }
 0x114   : > { %668 = vst.msk [vmem:[%s1070_s4 + $0x20] sm:$0xff] %vm663_vm3, %v658_v30  ;;  %v650_v15 = vadd.f32 %v1064_v39, %v634_v31  ;;  %v514_v16 = vadd.f32 %v494_v33, %v384_v29  ;;  %v615_v34 = vpop.f32.mrf.mxu1 }
 0x115   : > { %v846_v35 = vpop.f32.mrf.mxu0 }
 0x116   : > { %v659_v37 = vmax.f32 %v650_v15, 0.0  ;;  %v635_v38 = vadd.f32 %v615_v34, %v514_v16  ;;  %v868_v40 = vpop.f32.mrf.mxu1 }
 0x117   : > { %v497_v41 = vpop.f32.mrf.mxu0 }
 0x118   : > { %669 = vst.msk [vmem:[%s1070_s4 + $0x28] sm:$0xff] %vm663_vm3, %v659_v37  ;;  %v651_v19 = vadd.f32 %v1064_v39, %v635_v38  ;;  %v515_v20 = vadd.f32 %v497_v41, %v387_v36  ;;  %v618_v42 = vpop.f32.mrf.mxu1 }
 0x119   : > { %v847_v43 = vpop.f32.mrf.mxu0 }
 0x11a   : > { %v660_v45 = vmax.f32 %v651_v19, 0.0  ;;  %v636_v46 = vadd.f32 %v618_v42, %v515_v20  ;;  %v869_v47 = vpop.f32.mrf.mxu1 }
 0x11b   : > { %v502_v48 = vpop.f32.mrf.mxu0 }
 0x11c   : > { %670 = vst.msk [vmem:[%s1070_s4 + $0x30] sm:$0xff] %vm663_vm3, %v660_v45  ;;  %v652_v23 = vadd.f32 %v1064_v39, %v636_v46  ;;  %v516_v24 = vadd.f32 %v502_v48, %v392_v44  ;;  %v623_v49 = vpop.f32.mrf.mxu1 }
 0x11d   : > { %v850_v50 = vpop.f32.mrf.mxu0 }
 0x11e   : > { %v661_v51 = vmax.f32 %v652_v23, 0.0  ;;  %v637_v52 = vadd.f32 %v623_v49, %v516_v24  ;;  %v872_v53 = vpop.f32.mrf.mxu1 }
 0x11f   : > { %v505_v54 = vpop.f32.mrf.mxu0 }
 0x120   : > { %671 = vst.msk [vmem:[%s1070_s4 + $0x38] sm:$0xff] %vm663_vm3, %v661_v51  ;;  %v653_v27 = vadd.f32 %v1064_v39, %v637_v52  ;;  %v626_v28 = vpop.f32.mrf.mxu1 }
 0x121   : > { %v851_v55 = vpop.f32.mrf.mxu0 }
 0x122   : > { %v662_v56 = vmax.f32 %v653_v27, 0.0  ;;  %v873_v57 = vpop.f32.mrf.mxu1 }
 0x124   : > { %672 = vst.msk [vmem:[%s1070_s4 + $0x40] sm:$0xff] %vm663_vm3, %v662_v56 }
 0x125 PF: > { %s13_s12 = sadd.s32 1, %s896_s12  }
 0x126   : > { %p10_p4 = scmp.ge.s32.totalorder %s13_s12, 4  }
 0x128   :  { %12 = sbr.rel (!%p10_p4) target bundleno = 1 (0x1), region = 62 }

// kernel: _lambda_.24
= control target key start
LH: loop header
LB: loop body
LE: loop exit
PB: predicated region body
PF: predicated region fallthrough
CT: control target
= control target key end

     0   :  { %s777_s12 = smov 0   ;;  %s871_s0 = inlined_call_operand.vmem [shape: f32[2,30,64], index: 0, kind: input, shape index: {}]   ;;  %s872_s1 = inlined_call_operand.vmem [shape: bf16[256,32], index: 1, kind: input, shape index: {}]   ;;  %s873_s2 = inlined_call_operand.vmem [shape: f32[1,32], index: 2, kind: input, shape index: {}]   ;;  %s874_s3 = inlined_call_operand.vmem [shape: f32[2,20,32], index: 3, kind: output, shape index: {}]  }
   0x1 LB: > { %s616_s13 = sadd.s32 4294967295, %s755_s12   ;;  %p620_p0 = scmp.ge.s32.totalorder %s755_s12, 1  ;;  %s755_s12 = sphi %s777_s12, %s13_s12  }
   0x2   : > { %p137_p1 = scmp.lt.s32.totalorder %s755_s12, 3 }
   0x4   : > { %p138_p2 = pnand %p620_p0, %p137_p1 }
   0x5   : > { %p161_p3 = scmp.lt.s32.totalorder (!%p138_p2), %s616_s13, 1 }
   0x6   : > { %141 = sbr.rel (%p138_p2) target bundleno = 252 (0xfc), region = 32 }
   0xb   : > { %v733_v0 = vld [vmem:[%s872_s1 + $0x38] sm:$0xff]   ;;  %v735_v2 = vld [vmem:[%s872_s1 + $0x30] sm:$0xff]   ;;  %s876_s13 = smov (!%p161_p3, %s616_s13), 1  ;;  %v737_v4 = vld [vmem:[%s872_s1 + $0x28] sm:$0xff]   ;;  %vm222_vm0 = vcmask 523264   ;;  %vm559_vm1 = vcmask 257024  }
   0xc   : > { %v734_v1 = vld [vmem:[%s872_s1 + $0x18] sm:$0xff]   ;;  %676 = vmatprep.subr.bf16.mxu0 %v733_v0  ;;  %v736_v3 = vld [vmem:[%s872_s1 + $0x10] sm:$0xff]   ;;  %s651_s24 = sshll.u32 %s876_s13, 5  ;;  %v738_v5 = vld [vmem:[%s872_s1 + $0x8] sm:$0xff]   ;;  %s724_s25 = smul.u32 24, %s876_s13  ;;  %vm556_vm2 = vcmask 261120  }
   0xd   : > { %688 = vmatprep.subr.bf16.mxu1 %v734_v1  ;;  %677 = vmatpush3.bf16.msra.mxu0 %v733_v0  ;;  %s809_s29 = scalar_lea.vmem %s871_s0, %s651_s24  ;;  %v739_v6 = vld [vmem:[%s872_s1 + $0x20] sm:$0xff]   ;;  %v741_v16 = vld [vmem:[%s872_s1 + $0x58] sm:$0xff]   ;;  %v743_v20 = vld [vmem:[%s872_s1 + $0x50] sm:$0xff]  }
   0xe   : > { %689 = vmatpush3.bf16.msra.mxu1 %v734_v1  ;;  %678 = vmatprep.subr.bf16.mxu0 %v735_v2  ;;  %v185_v7 = vld [vmem:[%s809_s29 + $0x1] sm:$0xff]  ;;  %v186_v8 = vld [vmem:[%s809_s29 + $0x9] sm:$0xff]  ;;  %v187_v14 = vld [vmem:[%s809_s29 + $0x11] sm:$0xf]  ;;  %s170_s30 = scalar_lea.vmem %s874_s3, %s724_s25 }
   0xf   : > { %690 = vmatprep.subr.bf16.mxu1 %v736_v3  ;;  %v172_v9 = vld [vmem:[%s809_s29] sm:$0xff]  ;;  %v196_v11 = vpack.c.bf16 %v186_v8, %v185_v7  ;;  %v173_v12 = vld [vmem:[%s809_s29 + $0x8] sm:$0xff]  ;;  %v174_v15 = vld [vmem:[%s809_s29 + $0x10] sm:$0xf]  ;;  %v197_v18 = vpack.c.bf16 %v187_v14, %v187_v14 }
  0x10   : > { %v740_v10 = vld [vmem:[%s872_s1] sm:$0xff]   ;;  %v183_v13 = vpack.c.bf16 %v173_v12, %v172_v9  ;;  %v742_v17 = vld [vmem:[%s872_s1 + $0x78] sm:$0xff]   ;;  %v184_v19 = vpack.c.bf16 %v174_v15, %v174_v15  ;;  %v744_v21 = vld [vmem:[%s872_s1 + $0x70] sm:$0xff]  }
  0x11   : > { %679 = vmatpush3.bf16.msra.mxu0 %v735_v2  ;;  %684 = vmatprep.mubr.msk.bf16.mxu0 %vm222_vm0, %v196_v11  ;;  %v355_v22 = vld [vmem:[%s809_s29 + $0x5] sm:$0xff]  ;;  %v356_v23 = vld [vmem:[%s809_s29 + $0xd] sm:$0xff]  ;;  %v357_v32 = vld [vmem:[%s809_s29 + $0x15] sm:$0xf] }
  0x12   : > { %691 = vmatpush3.bf16.msra.mxu1 %v736_v3  ;;  %680 = vmatprep.subr.bf16.mxu0 %v737_v4  ;;  %v449_v24 = vld [vmem:[%s809_s29 + $0x6] sm:$0xff]  ;;  %v366_v25 = vpack.c.bf16 %v356_v23, %v355_v22  ;;  %v450_v26 = vld [vmem:[%s809_s29 + $0xe] sm:$0xff]  ;;  %v451_v33 = vld [vmem:[%s809_s29 + $0x16] sm:$0xf]  ;;  %v367_v34 = vpack.c.bf16 %v357_v32, %v357_v32 }
  0x13   : > { %692 = vmatprep.subr.bf16.mxu1 %v738_v5  ;;  %696 = vmatprep.mubr.msk.bf16.mxu1 %vm222_vm0, %v183_v13  ;;  %v745_v27 = vld [vmem:[%s872_s1 + $0x48] sm:$0xff]   ;;  %v460_v28 = vpack.c.bf16 %v450_v26, %v449_v24  ;;  %v747_v30 = vld [vmem:[%s872_s1 + $0x40] sm:$0xff]   ;;  %v461_v35 = vpack.c.bf16 %v451_v33, %v451_v33 }
  0x14   : > { %v746_v29 = vld [vmem:[%s872_s1 + $0x68] sm:$0xff]   ;;  %v748_v31 = vld [vmem:[%s872_s1 + $0x60] sm:$0xff]  }
  0x15   : > { %681 = vmatpush3.bf16.msra.mxu0 %v737_v4  ;;  %v648_v49 = vld [vmem:[%s873_s2] ss:$0 sm:$0xff] }
  0x16   : > { %693 = vmatpush3.bf16.msra.mxu1 %v738_v5  ;;  %682 = vmatprep.subr.bf16.mxu0 %v739_v6 }
  0x17   : > { %694 = vmatprep.subr.bf16.mxu1 %v740_v10 }
  0x19   : > { %683 = vmatpush3.bf16.msra.mxu0 %v739_v6 }
  0x1a   : > { %695 = vmatpush3.bf16.msra.mxu1 %v740_v10  ;;  %700 = vmatprep.subr.bf16.mxu0 %v741_v16 }
  0x1b   : > { %712 = vmatprep.subr.bf16.mxu1 %v742_v17 }
  0x1c   : > { %685 = vmatmul.mubr.msk.bf16.vlgmr.msra.gmra.mxu0 %vm222_vm0, %v197_v18 }
  0x1d   : > { %697 = vmatmul.mubr.msk.bf16.vlgmr.msra.gmra.mxu1 %vm222_vm0, %v184_v19  ;;  %701 = vmatpush3.bf16.msra.mxu0 %v741_v16 }
  0x1e   : > { %713 = vmatpush3.bf16.msra.mxu1 %v742_v17  ;;  %702 = vmatprep.subr.bf16.mxu0 %v743_v20 }
  0x1f   : > { %714 = vmatprep.subr.bf16.mxu1 %v744_v21  ;;  %708 = vmatprep.mubr.msk.bf16.mxu0 %vm222_vm0, %v366_v25 }
  0x20   : > { %720 = vmatprep.mubr.msk.bf16.mxu1 %vm222_vm0, %v460_v28 }
  0x21   : > { %703 = vmatpush3.bf16.msra.mxu0 %v743_v20 }
  0x22   : > { %715 = vmatpush3.bf16.msra.mxu1 %v744_v21  ;;  %704 = vmatprep.subr.bf16.mxu0 %v745_v27 }
  0x23   : > { %716 = vmatprep.subr.bf16.mxu1 %v746_v29 }
  0x25   : > { %705 = vmatpush3.bf16.msra.mxu0 %v745_v27 }
  0x26   : > { %717 = vmatpush3.bf16.msra.mxu1 %v746_v29  ;;  %706 = vmatprep.subr.bf16.mxu0 %v747_v30 }
  0x27   : > { %718 = vmatprep.subr.bf16.mxu1 %v748_v31 }
  0x29   : > { %707 = vmatpush3.bf16.msra.mxu0 %v747_v30 }
  0x2a   : > { %719 = vmatpush3.bf16.msra.mxu1 %v748_v31 }
  0x2c   : > { %709 = vmatmul.mubr.msk.bf16.vlgmr.msra.gmra.mxu0 %vm222_vm0, %v367_v34 }
  0x2d   : > { %721 = vmatmul.mubr.msk.bf16.vlgmr.msra.gmra.mxu1 %vm222_vm0, %v461_v35 }
  0xdc   : > { %v686_v36 = vpop.f32.mrf.mxu0 }
  0xdd   : > { %v698_v37 = vpop.f32.mrf.mxu1 }
  0xde   : > { %v263_v38 = vpop.f32.mrf.mxu0  ;;  %v350_v43 = vadd.f32 %v698_v37, %v686_v36 }
  0xdf   : > { %v341_v39 = vpop.f32.mrf.mxu1 }
  0xe0   : > { %v687_v40 = vpop.f32.mrf.mxu0  ;;  %v342_v46 = vadd.f32 %v341_v39, %v263_v38 }
  0xe1   : > { %v699_v41 = vpop.f32.mrf.mxu1 }
  0xe2   : > { %v266_v42 = vpop.f32.mrf.mxu0 }
  0xe3   : > { %v344_v44 = vpop.f32.mrf.mxu1 }
  0xe4   : > { %v345_v55 = vadd.f32 %v344_v44, %v266_v42 }
  0xec   : > { %v710_v45 = vpop.f32.mrf.mxu0 }
  0xed   : > { %v448_v47 = vadd.f32 %v710_v45, %v350_v43  ;;  %v722_v48 = vpop.f32.mrf.mxu1 }
  0xee   : > { %v432_v50 = vpop.f32.mrf.mxu0 }
  0xef   : > { %v542_v51 = vadd.f32 %v722_v48, %v448_v47  ;;  %v446_v52 = vadd.f32 %v432_v50, %v342_v46  ;;  %v526_v53 = vpop.f32.mrf.mxu1 }
  0xf0   : > { %v711_v54 = vpop.f32.mrf.mxu0 }
  0xf1   : > { %v552_v56 = vadd.f32 %v648_v49, %v542_v51  ;;  %v540_v57 = vadd.f32 %v526_v53, %v446_v52  ;;  %v723_v58 = vpop.f32.mrf.mxu1 }
  0xf2   : > { %v435_v59 = vpop.f32.mrf.mxu0 }
  0xf3   : > { %v555_v60 = vmax.f32 %v552_v56, 0.0  ;;  %v550_v61 = vadd.f32 %v648_v49, %v540_v57  ;;  %v447_v62 = vadd.f32 %v435_v59, %v345_v55  ;;  %v529_v63 = vpop.f32.mrf.mxu1 }
  0xf5   : > { %560 = vst.msk [vmem:[%s170_s30 + $0x10] sm:$0xf] %vm559_vm1, %v555_v60  ;;  %v553_v0 = vmax.f32 %v550_v61, 0.0  ;;  %v541_v1 = vadd.f32 %v529_v63, %v447_v62 }
  0xf7   : > { %557 = vst.msk [vmem:[%s170_s30] sm:$0xff] %vm556_vm2, %v553_v0  ;;  %v551_v2 = vadd.f32 %v648_v49, %v541_v1 }
  0xf9   : > { %v554_v3 = vmax.f32 %v551_v2, 0.0 }
  0xfb   : > { %558 = vst.msk [vmem:[%s170_s30 + $0x8] sm:$0xff] %vm556_vm2, %v554_v3 }
  0xfc PF: > { %s13_s12 = sadd.s32 1, %s755_s12  }
  0xfd   : > { %p10_p4 = scmp.ge.s32.totalorder %s13_s12, 4  }
  0xff   :  { %12 = sbr.rel (!%p10_p4) target bundleno = 1 (0x1), region = 62 }

// kernel: _lambda_.25
= control target key start
LH: loop header
LB: loop body
LE: loop exit
PB: predicated region body
PF: predicated region fallthrough
CT: control target
= control target key end

     0   :  { %s1147_s12 = smov 0   ;;  %s1280_s0 = inlined_call_operand.vmem [shape: f32[2,42,32], index: 0, kind: input, shape index: {}]   ;;  %s1281_s1 = inlined_call_operand.vmem [shape: bf16[288,32], index: 1, kind: input, shape index: {}]   ;;  %s1282_s2 = inlined_call_operand.vmem [shape: f32[1,32], index: 2, kind: input, shape index: {}]   ;;  %s1283_s3 = inlined_call_operand.vmem [shape: f32[2,24,32], index: 3, kind: output, shape index: {}]  }
   0x1 LB: > { %s937_s13 = sadd.s32 4294967295, %s1125_s12   ;;  %p941_p0 = scmp.ge.s32.totalorder %s1125_s12, 1  ;;  %s1125_s12 = sphi %s1147_s12, %s13_s12  }
   0x2   : > { %p137_p1 = scmp.lt.s32.totalorder %s1125_s12, 3 }
   0x4   : > { %p138_p2 = pnand %p941_p0, %p137_p1 }
   0x5   : > { %p161_p3 = scmp.lt.s32.totalorder (!%p138_p2), %s937_s13, 1 }
   0x6   : > { %141 = sbr.rel (%p138_p2) target bundleno = 256 (0x100), region = 32 }
   0xb   : > { %v1101_v0 = vld [vmem:[%s1281_s1 + $0x18] sm:$0xff]   ;;  %v1102_v1 = vld [vmem:[%s1281_s1 + $0x8] sm:$0xff]   ;;  %v1103_v2 = vld [vmem:[%s1281_s1 + $0x10] sm:$0xff]   ;;  %s1285_s13 = smov (!%p161_p3, %s937_s13), 1  ;;  %vm202_vm0 = vcmask 261120  }
   0xc   : > { %1019 = vmatprep.subr.bf16.mxu0 %v1101_v0  ;;  %1027 = vmatprep.subr.bf16.mxu1 %v1102_v1  ;;  %v1104_v3 = vld [vmem:[%s1281_s1] sm:$0xff]   ;;  %s1091_s22 = smul.u32 48, %s1285_s13  ;;  %v1105_v4 = vld [vmem:[%s1281_s1 + $0x28] sm:$0xff]   ;;  %v1106_v5 = vld [vmem:[%s1281_s1 + $0x38] sm:$0xff]  }
   0xd   : > { %1020 = vmatpush3.bf16.msra.mxu0 %v1101_v0  ;;  %1028 = vmatpush3.bf16.msra.mxu1 %v1102_v1  ;;  %v1107_v16 = vld [vmem:[%s1281_s1 + $0x20] sm:$0xff]   ;;  %v1108_v17 = vld [vmem:[%s1281_s1 + $0x30] sm:$0xff]   ;;  %v1109_v25 = vld [vmem:[%s1281_s1 + $0x48] sm:$0xff]  }
   0xe   : > { %1021 = vmatprep.subr.bf16.mxu0 %v1103_v2  ;;  %1029 = vmatprep.subr.bf16.mxu1 %v1104_v3  ;;  %s1179_s29 = scalar_lea.vmem %s1280_s0, %s1091_s22  ;;  %v1110_v27 = vld [vmem:[%s1281_s1 + $0x58] sm:$0xff]   ;;  %v1111_v32 = vld [vmem:[%s1281_s1 + $0x40] sm:$0xff]   ;;  %v1112_v33 = vld [vmem:[%s1281_s1 + $0x50] sm:$0xff]  }
   0xf   : > { %v181_v6 = vld [vmem:[%s1179_s29 + $0x1] sm:$0xff]  ;;  %v182_v7 = vld [vmem:[%s1179_s29 + $0x9] sm:$0xff]  ;;  %v183_v11 = vld [vmem:[%s1179_s29 + $0x11] sm:$0xff] }
  0x10   : > { %v172_v8 = vld [vmem:[%s1179_s29] sm:$0xff]  ;;  %v188_v9 = vpack.c.bf16 %v182_v7, %v181_v6  ;;  %v173_v10 = vld [vmem:[%s1179_s29 + $0x8] sm:$0xff]  ;;  %v174_v12 = vld [vmem:[%s1179_s29 + $0x10] sm:$0xff]  ;;  %v189_v14 = vpack.c.bf16 %v183_v11, %v183_v11 }
  0x11   : > { %1022 = vmatpush3.bf16.msra.mxu0 %v1103_v2  ;;  %1030 = vmatpush3.bf16.msra.mxu1 %v1104_v3  ;;  %v179_v13 = vpack.c.bf16 %v173_v10, %v172_v8  ;;  %v180_v15 = vpack.c.bf16 %v174_v12, %v174_v12  ;;  %v323_v18 = vld [vmem:[%s1179_s29 + $0x2] sm:$0xff]  ;;  %v324_v19 = vld [vmem:[%s1179_s29 + $0xa] sm:$0xff]  ;;  %v325_v23 = vld [vmem:[%s1179_s29 + $0x12] sm:$0xff]  ;;  %v564_v35 = vpack.c.bf16 %v174_v12, %v173_v10 }
  0x12   : > { %1035 = vmatprep.subr.bf16.mxu0 %v1105_v4  ;;  %1043 = vmatprep.subr.bf16.mxu1 %v1106_v5  ;;  %v330_v20 = vpack.c.bf16 %v324_v19, %v323_v18  ;;  %v401_v21 = vld [vmem:[%s1179_s29 + $0x6] sm:$0xff]  ;;  %v1200_v22 = vld [vmem:[%s1179_s29 + $0xe] sm:$0xff]  ;;  %v1209_v26 = vld [vmem:[%s1179_s29 + $0x16] sm:$0xff]  ;;  %v331_v28 = vpack.c.bf16 %v325_v23, %v325_v23 }
  0x13   : > { %1023 = vmatprep.mubr.msk.bf16.mxu0 %vm202_vm0, %v188_v9  ;;  %1031 = vmatprep.mubr.msk.bf16.mxu1 %vm202_vm0, %v179_v13  ;;  %v408_v24 = vpack.c.bf16 %v1200_v22, %v401_v21  ;;  %v409_v29 = vpack.c.bf16 %v1209_v26, %v1209_v26  ;;  %v479_v30 = vld [vmem:[%s1179_s29 + $0x7] sm:$0xff]  ;;  %v480_v31 = vld [vmem:[%s1179_s29 + $0xf] sm:$0xff]  ;;  %v481_v36 = vld [vmem:[%s1179_s29 + $0x17] sm:$0xff]  ;;  %v798_v56 = vpack.c.bf16 %v1209_v26, %v1200_v22 }
  0x14   : > { %1024 = vmatmul.mubr.msk.bf16.vlgmr.msra.gmra.mxu0 %vm202_vm0, %v189_v14  ;;  %1032 = vmatmul.mubr.msk.bf16.vlgmr.msra.gmra.mxu1 %vm202_vm0, %v180_v15  ;;  %v486_v34 = vpack.c.bf16 %v480_v31, %v479_v30  ;;  %v1113_v37 = vld [vmem:[%s1281_s1 + $0x68] sm:$0xff]   ;;  %v559_v38 = vld [vmem:[%s1179_s29 + $0x18] sm:$0xff]  ;;  %v487_v42 = vpack.c.bf16 %v481_v36, %v481_v36  ;;  %v1115_v46 = vld [vmem:[%s1281_s1 + $0x60] sm:$0xff]  }
  0x15   : > { %1036 = vmatpush3.bf16.msra.mxu0 %v1105_v4  ;;  %1044 = vmatpush3.bf16.msra.mxu1 %v1106_v5  ;;  %v1114_v39 = vld [vmem:[%s1281_s1 + $0x78] sm:$0xff]   ;;  %v635_v40 = vld [vmem:[%s1179_s29 + $0xc] sm:$0xff]  ;;  %v565_v44 = vpack.c.bf16 %v559_v38, %v559_v38  ;;  %v1118_v55 = vld [vmem:[%s1281_s1 + $0x80] sm:$0xff]  }
  0x16   : > { %1037 = vmatprep.subr.bf16.mxu0 %v1107_v16  ;;  %1045 = vmatprep.subr.bf16.mxu1 %v1108_v17  ;;  %v636_v41 = vld [vmem:[%s1179_s29 + $0x14] sm:$0xff]  ;;  %v637_v50 = vld [vmem:[%s1179_s29 + $0x1c] sm:$0xff]  ;;  %v1117_v51 = vld [vmem:[%s1281_s1 + $0x88] sm:$0xff]  }
  0x17   : > { %1039 = vmatprep.mubr.msk.bf16.mxu0 %vm202_vm0, %v330_v20  ;;  %1047 = vmatprep.mubr.msk.bf16.mxu1 %vm202_vm0, %v408_v24  ;;  %v713_v43 = vld [vmem:[%s1179_s29 + $0xd] sm:$0xff]  ;;  %v714_v45 = vld [vmem:[%s1179_s29 + $0x15] sm:$0xff]  ;;  %v642_v48 = vpack.c.bf16 %v636_v41, %v635_v40  ;;  %v715_v52 = vld [vmem:[%s1179_s29 + $0x1d] sm:$0xff]  ;;  %v643_v53 = vpack.c.bf16 %v637_v50, %v637_v50 }
  0x18   : > { %v1116_v47 = vld [vmem:[%s1281_s1 + $0x70] sm:$0xff]   ;;  %v720_v49 = vpack.c.bf16 %v714_v45, %v713_v43  ;;  %v721_v54 = vpack.c.bf16 %v715_v52, %v715_v52  ;;  %v793_v57 = vld [vmem:[%s1179_s29 + $0x1e] sm:$0xff]  ;;  %s1092_s29 = smul.u32 24, %s1285_s13 }
  0x19   : > { %1038 = vmatpush3.bf16.msra.mxu0 %v1107_v16  ;;  %1046 = vmatpush3.bf16.msra.mxu1 %v1108_v17  ;;  %v799_v58 = vpack.c.bf16 %v793_v57, %v793_v57  ;;  %v980_v45 = vld [vmem:[%s1282_s2] ss:$0 sm:$0xff] }
  0x1a   : > { %1051 = vmatprep.subr.bf16.mxu0 %v1109_v25  ;;  %1059 = vmatprep.subr.bf16.mxu1 %v1110_v27  ;;  %s170_s7 = scalar_lea.vmem %s1283_s3, %s1092_s29 }
  0x1c   : > { %1040 = vmatmul.mubr.msk.bf16.vlgmr.msra.gmra.mxu0 %vm202_vm0, %v331_v28  ;;  %1048 = vmatmul.mubr.msk.bf16.vlgmr.msra.gmra.mxu1 %vm202_vm0, %v409_v29 }
  0x1d   : > { %1052 = vmatpush3.bf16.msra.mxu0 %v1109_v25  ;;  %1060 = vmatpush3.bf16.msra.mxu1 %v1110_v27 }
  0x1e   : > { %1053 = vmatprep.subr.bf16.mxu0 %v1111_v32  ;;  %1061 = vmatprep.subr.bf16.mxu1 %v1112_v33 }
  0x1f   : > { %1055 = vmatprep.mubr.msk.bf16.mxu0 %vm202_vm0, %v486_v34  ;;  %1063 = vmatprep.mubr.msk.bf16.mxu1 %vm202_vm0, %v564_v35 }
  0x21   : > { %1054 = vmatpush3.bf16.msra.mxu0 %v1111_v32  ;;  %1062 = vmatpush3.bf16.msra.mxu1 %v1112_v33 }
  0x22   : > { %1067 = vmatprep.subr.bf16.mxu0 %v1113_v37  ;;  %1075 = vmatprep.subr.bf16.mxu1 %v1114_v39 }
  0x24   : > { %1056 = vmatmul.mubr.msk.bf16.vlgmr.msra.gmra.mxu0 %vm202_vm0, %v487_v42  ;;  %1064 = vmatmul.mubr.msk.bf16.vlgmr.msra.gmra.mxu1 %vm202_vm0, %v565_v44 }
  0x25   : > { %1068 = vmatpush3.bf16.msra.mxu0 %v1113_v37  ;;  %1076 = vmatpush3.bf16.msra.mxu1 %v1114_v39 }
  0x26   : > { %1069 = vmatprep.subr.bf16.mxu0 %v1115_v46  ;;  %1077 = vmatprep.subr.bf16.mxu1 %v1116_v47 }
  0x27   : > { %1071 = vmatprep.mubr.msk.bf16.mxu0 %vm202_vm0, %v642_v48  ;;  %1079 = vmatprep.mubr.msk.bf16.mxu1 %vm202_vm0, %v720_v49 }
  0x29   : > { %1070 = vmatpush3.bf16.msra.mxu0 %v1115_v46  ;;  %1078 = vmatpush3.bf16.msra.mxu1 %v1116_v47 }
  0x2a   : > { %1083 = vmatprep.subr.bf16.mxu0 %v1117_v51 }
  0x2c   : > { %1072 = vmatmul.mubr.msk.bf16.vlgmr.msra.gmra.mxu0 %vm202_vm0, %v643_v53  ;;  %1080 = vmatmul.mubr.msk.bf16.vlgmr.msra.gmra.mxu1 %vm202_vm0, %v721_v54 }
  0x2d   : > { %1084 = vmatpush3.bf16.msra.mxu0 %v1117_v51  ;;  %1087 = vmatprep.mubr.msk.bf16.mxu0 %vm202_vm0, %v798_v56 }
  0x2e   : > { %1085 = vmatprep.subr.bf16.mxu0 %v1118_v55 }
  0x31   : > { %1086 = vmatpush3.bf16.msra.mxu0 %v1118_v55 }
  0x34   : > { %1088 = vmatmul.mubr.msk.bf16.vlgmr.msra.gmra.mxu0 %vm202_vm0, %v799_v58 }
  0xd4   : > { %v1025_v59 = vpop.f32.mrf.mxu0  ;;  %v1033_v60 = vpop.f32.mrf.mxu1 }
  0xd5   : > { %v318_v8 = vadd.f32 %v1033_v60, %v1025_v59 }
  0xd6   : > { %v243_v61 = vpop.f32.mrf.mxu0  ;;  %v309_v62 = vpop.f32.mrf.mxu1 }
  0xd7   : > { %v310_v11 = vadd.f32 %v309_v62, %v243_v61 }
  0xd8   : > { %v1026_v63 = vpop.f32.mrf.mxu0  ;;  %v1034_v0 = vpop.f32.mrf.mxu1 }
  0xda   : > { %v246_v1 = vpop.f32.mrf.mxu0  ;;  %v312_v2 = vpop.f32.mrf.mxu1 }
  0xdb   : > { %v313_v18 = vadd.f32 %v312_v2, %v246_v1 }
  0xdc   : > { %v1041_v3 = vpop.f32.mrf.mxu0  ;;  %v1049_v4 = vpop.f32.mrf.mxu1 }
  0xdd   : > { %v400_v12 = vadd.f32 %v1041_v3, %v318_v8 }
  0xde   : > { %v384_v5 = vpop.f32.mrf.mxu0  ;;  %v462_v6 = vpop.f32.mrf.mxu1 }
  0xdf   : > { %v398_v15 = vadd.f32 %v384_v5, %v310_v11  ;;  %v478_v19 = vadd.f32 %v1049_v4, %v400_v12 }
  0xe0   : > { %v1042_v7 = vpop.f32.mrf.mxu0  ;;  %v1050_v9 = vpop.f32.mrf.mxu1 }
  0xe1   : > { %v476_v22 = vadd.f32 %v462_v6, %v398_v15 }
  0xe2   : > { %v387_v10 = vpop.f32.mrf.mxu0  ;;  %v465_v13 = vpop.f32.mrf.mxu1 }
  0xe3   : > { %v399_v23 = vadd.f32 %v387_v10, %v313_v18 }
  0xe4   : > { %v1057_v14 = vpop.f32.mrf.mxu0  ;;  %v1065_v16 = vpop.f32.mrf.mxu1 }
  0xe5   : > { %v556_v24 = vadd.f32 %v1057_v14, %v478_v19  ;;  %v477_v30 = vadd.f32 %v465_v13, %v399_v23 }
  0xe6   : > { %v540_v17 = vpop.f32.mrf.mxu0  ;;  %v618_v20 = vpop.f32.mrf.mxu1 }
  0xe7   : > { %v554_v27 = vadd.f32 %v540_v17, %v476_v22  ;;  %v634_v31 = vadd.f32 %v1065_v16, %v556_v24 }
  0xe8   : > { %v1058_v21 = vpop.f32.mrf.mxu0  ;;  %v1066_v25 = vpop.f32.mrf.mxu1 }
  0xe9   : > { %v632_v34 = vadd.f32 %v618_v20, %v554_v27 }
  0xea   : > { %v543_v26 = vpop.f32.mrf.mxu0  ;;  %v621_v28 = vpop.f32.mrf.mxu1 }
  0xeb   : > { %v555_v35 = vadd.f32 %v543_v26, %v477_v30 }
  0xec   : > { %v1073_v29 = vpop.f32.mrf.mxu0  ;;  %v1081_v32 = vpop.f32.mrf.mxu1 }
  0xed   : > { %v712_v36 = vadd.f32 %v1073_v29, %v634_v31  ;;  %v633_v42 = vadd.f32 %v621_v28, %v555_v35 }
  0xee   : > { %v696_v33 = vpop.f32.mrf.mxu0  ;;  %v774_v37 = vpop.f32.mrf.mxu1 }
  0xef   : > { %v710_v39 = vadd.f32 %v696_v33, %v632_v34  ;;  %v790_v43 = vadd.f32 %v1081_v32, %v712_v36 }
  0xf0   : > { %v1074_v38 = vpop.f32.mrf.mxu0  ;;  %v1082_v40 = vpop.f32.mrf.mxu1 }
  0xf1   : > { %v788_v46 = vadd.f32 %v774_v37, %v710_v39 }
  0xf2   : > { %v699_v41 = vpop.f32.mrf.mxu0  ;;  %v777_v52 = vpop.f32.mrf.mxu1 }
  0xf3   : > { %v711_v47 = vadd.f32 %v699_v41, %v633_v42 }
  0xf4   : > { %v1089_v44 = vpop.f32.mrf.mxu0 }
  0xf5   : > { %v868_v48 = vadd.f32 %v1089_v44, %v790_v43  ;;  %v789_v54 = vadd.f32 %v777_v52, %v711_v47 }
  0xf6   : > { %v852_v49 = vpop.f32.mrf.mxu0 }
  0xf7   : > { %v878_v50 = vadd.f32 %v980_v45, %v868_v48  ;;  %v866_v51 = vadd.f32 %v852_v49, %v788_v46 }
  0xf8   : > { %v1090_v53 = vpop.f32.mrf.mxu0 }
  0xf9   : > { %881 = vst.msk [vmem:[%s170_s7 + $0x10] sm:$0xff] %vm202_vm0, %v878_v50  ;;  %v876_v55 = vadd.f32 %v980_v45, %v866_v51 }
  0xfa   : > { %v855_v56 = vpop.f32.mrf.mxu0 }
  0xfb   : > { %879 = vst.msk [vmem:[%s170_s7] sm:$0xff] %vm202_vm0, %v876_v55  ;;  %v867_v57 = vadd.f32 %v855_v56, %v789_v54 }
  0xfd   : > { %v877_v58 = vadd.f32 %v980_v45, %v867_v57 }
  0xff   : > { %880 = vst.msk [vmem:[%s170_s7 + $0x8] sm:$0xff] %vm202_vm0, %v877_v58 }
 0x100 PF: > { %s13_s12 = sadd.s32 1, %s1125_s12  }
 0x101   : > { %p10_p4 = scmp.ge.s32.totalorder %s13_s12, 4  }
 0x103   :  { %12 = sbr.rel (!%p10_p4) target bundleno = 1 (0x1), region = 62 }

// kernel: _lambda_.27
= control target key start
LH: loop header
LB: loop body
LE: loop exit
PB: predicated region body
PF: predicated region fallthrough
CT: control target
= control target key end

     0   :  { %s430_s15 = smov 0   ;;  %s456_s0 = inlined_call_operand.vmem [shape: f32[2,20,16], index: 0, kind: input, shape index: {}]   ;;  %s457_s1 = inlined_call_operand.vmem [shape: bf16[16,32], index: 1, kind: input, shape index: {}]   ;;  %s458_s2 = inlined_call_operand.vmem [shape: f32[1,32], index: 2, kind: input, shape index: {}]   ;;  %s459_s3 = inlined_call_operand.vmem [shape: f32[2,16,32], index: 3, kind: input, shape index: {}]   ;;  %s460_s4 = inlined_call_operand.vmem [shape: f32[2,16,32], index: 4, kind: output, shape index: {}]  }
   0x1 LB: > { %s358_s16 = sadd.s32 4294967295, %s401_s15   ;;  %p362_p0 = scmp.ge.s32.totalorder %s401_s15, 1  ;;  %s401_s15 = sphi %s430_s15, %s14_s15  }
   0x2   : > { %p172_p1 = scmp.lt.s32.totalorder %s401_s15, 3 }
   0x4   : > { %p173_p2 = pnand %p362_p0, %p172_p1 }
   0x5   : > { %p203_p3 = scmp.lt.s32.totalorder (!%p173_p2), %s358_s16, 1 }
   0x6   : > { %176 = sbr.rel (%p173_p2) target bundleno = 222 (0xde), region = 36 }
   0xb   : > { %v394_v0 = vld [vmem:[%s457_s1] sm:$0xff]   ;;  %v403_v1 = vmov 0.0   ;;  %vm404_vm0 = vmmov 0   ;;  %s462_s16 = smov (!%p203_p3, %s358_s16), 1  ;;  %vm237_vm1 = vcmask 130048   ;;  %vm288_vm2 = vcmask 261120  }
   0xc   : > { %377 = vmatprep.subr.bf16.mxu0 %v403_v1  ;;  %379 = vmatprep.mubr.msk.bf16.mxu0 %vm404_vm0, %v403_v1  ;;  %s383_s19 = smul.u32 24, %s462_s16  ;;  %s373_s23 = sshll.u32 %s462_s16, 4  ;;  %v368_v5 = vld [vmem:[%s458_s2] ss:$0 sm:$0xff] }
   0xd   : > { %378 = vmatpush3.bf16.msra.mxu0 %v394_v0  ;;  %s212_s26 = scalar_lea.vmem %s459_s3, %s373_s23  ;;  %s217_s5 = scalar_lea.vmem %s460_s4, %s373_s23 }
   0xe   : > { %s207_s22 = scalar_lea.vmem %s456_s0, %s383_s19  ;;  %v282_v7 = vld [vmem:[%s212_s26] sm:$0xff]  ;;  %v283_v12 = vld [vmem:[%s212_s26 + $0x8] sm:$0xff] }
   0xf   : > { %v219_v2 = vld [vmem:[%s207_s22] sm:$0xff]  ;;  %v220_v3 = vld [vmem:[%s207_s22 + $0x8] sm:$0xff] }
  0x10   : > { %v223_v4 = vpack.c.bf16 %v220_v3, %v219_v2 }
  0x12   : > { %380 = vmatmul.mubr.msk.bf16.vlgmr.msra.gmra.mxu0 %vm237_vm1, %v223_v4 }
  0xd2   : > { %v275_v6 = vpop.f32.mrf.mxu0 }
  0xd3   : > { %v276_v8 = vadd.f32 %v368_v5, %v275_v6 }
  0xd4   : > { %v381_v9 = vpop.f32.mrf.mxu0 }
  0xd5   : > { %v284_v10 = vadd.f32 %v282_v7, %v276_v8 }
  0xd6   : > { %v278_v11 = vpop.f32.mrf.mxu0 }
  0xd7   : > { %v286_v13 = vmax.f32 %v284_v10, 0.0  ;;  %v279_v14 = vadd.f32 %v368_v5, %v278_v11 }
  0xd8   : > { %v382_v15 = vpop.f32.mrf.mxu0 }
  0xd9   : > { %289 = vst.msk [vmem:[%s217_s5] sm:$0xff] %vm288_vm2, %v286_v13  ;;  %v285_v16 = vadd.f32 %v283_v12, %v279_v14 }
  0xdb   : > { %v287_v17 = vmax.f32 %v285_v16, 0.0 }
  0xdd   : > { %290 = vst.msk [vmem:[%s217_s5 + $0x8] sm:$0xff] %vm288_vm2, %v287_v17 }
  0xde PF: > { %s14_s15 = sadd.s32 1, %s401_s15  }
  0xdf   : > { %p11_p4 = scmp.ge.s32.totalorder %s14_s15, 4  }
  0xe1   :  { %13 = sbr.rel (!%p11_p4) target bundleno = 1 (0x1), region = 69 }

// kernel: _lambda_.26
= control target key start
LH: loop header
LB: loop body
LE: loop exit
PB: predicated region body
PF: predicated region fallthrough
CT: control target
= control target key end

     0   :  { %s1178_s12 = smov 0   ;;  %s1311_s0 = inlined_call_operand.vmem [shape: f32[2,42,32], index: 0, kind: input, shape index: {}]   ;;  %s1312_s1 = inlined_call_operand.vmem [shape: bf16[288,16], index: 1, kind: input, shape index: {}]   ;;  %s1313_s2 = inlined_call_operand.vmem [shape: f32[1,16], index: 2, kind: input, shape index: {}]   ;;  %s1314_s3 = inlined_call_operand.vmem [shape: f32[2,24,16], index: 3, kind: output, shape index: {}]  }
   0x1 LB: > { %s968_s13 = sadd.s32 4294967295, %s1156_s12   ;;  %p972_p0 = scmp.ge.s32.totalorder %s1156_s12, 1  ;;  %s1156_s12 = sphi %s1178_s12, %s13_s12  }
   0x2   : > { %p137_p1 = scmp.lt.s32.totalorder %s1156_s12, 3 }
   0x4   : > { %p138_p2 = pnand %p972_p0, %p137_p1 }
   0x5   : > { %p161_p3 = scmp.lt.s32.totalorder (!%p138_p2), %s968_s13, 1 }
   0x6   : > { %141 = sbr.rel (%p138_p2) target bundleno = 259 (0x103), region = 32 }
   0xb   : > { %v1132_v0 = vld [vmem:[%s1312_s1 + $0x18] sm:$0xff]   ;;  %v1133_v1 = vld [vmem:[%s1312_s1 + $0x8] sm:$0xff]   ;;  %v1134_v2 = vld [vmem:[%s1312_s1 + $0x10] sm:$0xff]   ;;  %s1316_s13 = smov (!%p161_p3, %s968_s13), 1  ;;  %vm208_vm0 = vcmask 261120   ;;  %vm909_vm1 = vcmask 130048  }
   0xc   : > { %1050 = vmatprep.subr.bf16.mxu0 %v1132_v0  ;;  %1058 = vmatprep.subr.bf16.mxu1 %v1133_v1  ;;  %v1135_v3 = vld [vmem:[%s1312_s1] sm:$0xff]   ;;  %s1122_s22 = smul.u32 48, %s1316_s13  ;;  %v1136_v4 = vld [vmem:[%s1312_s1 + $0x28] sm:$0xff]   ;;  %v1137_v5 = vld [vmem:[%s1312_s1 + $0x38] sm:$0xff]  }
   0xd   : > { %1051 = vmatpush3.bf16.msra.mxu0 %v1132_v0  ;;  %1059 = vmatpush3.bf16.msra.mxu1 %v1133_v1  ;;  %v1138_v18 = vld [vmem:[%s1312_s1 + $0x20] sm:$0xff]   ;;  %v1139_v28 = vld [vmem:[%s1312_s1 + $0x30] sm:$0xff]   ;;  %v1140_v36 = vld [vmem:[%s1312_s1 + $0x48] sm:$0xff]  }
   0xe   : > { %1052 = vmatprep.subr.bf16.mxu0 %v1134_v2  ;;  %1060 = vmatprep.subr.bf16.mxu1 %v1135_v3  ;;  %s1210_s29 = scalar_lea.vmem %s1311_s0, %s1122_s22  ;;  %v1141_v39 = vld [vmem:[%s1312_s1 + $0x58] sm:$0xff]   ;;  %v1142_v45 = vld [vmem:[%s1312_s1 + $0x40] sm:$0xff]   ;;  %v1143_v49 = vld [vmem:[%s1312_s1 + $0x50] sm:$0xff]  }
   0xf   : > { %v184_v6 = vld [vmem:[%s1210_s29 + $0x1] sm:$0xff]  ;;  %v185_v7 = vld [vmem:[%s1210_s29 + $0x9] sm:$0xff]  ;;  %v186_v13 = vld [vmem:[%s1210_s29 + $0x11] sm:$0xff] }
  0x10   : > { %v172_v8 = vld [vmem:[%s1210_s29] sm:$0xff]  ;;  %v187_v9 = vmax.f32 %v184_v6, 0.0  ;;  %v188_v10 = vmax.f32 %v185_v7, 0.0  ;;  %v173_v11 = vld [vmem:[%s1210_s29 + $0x8] sm:$0xff]  ;;  %v174_v14 = vld [vmem:[%s1210_s29 + $0x10] sm:$0xff]  ;;  %v189_v16 = vmax.f32 %v186_v13, 0.0 }
  0x11   : > { %1053 = vmatpush3.bf16.msra.mxu0 %v1134_v2  ;;  %1061 = vmatpush3.bf16.msra.mxu1 %v1135_v3  ;;  %v175_v12 = vmax.f32 %v172_v8, 0.0  ;;  %v176_v15 = vmax.f32 %v173_v11, 0.0  ;;  %v177_v17 = vmax.f32 %v174_v14, 0.0  ;;  %v329_v20 = vld [vmem:[%s1210_s29 + $0x2] sm:$0xff]  ;;  %v330_v21 = vld [vmem:[%s1210_s29 + $0xa] sm:$0xff]  ;;  %v331_v32 = vld [vmem:[%s1210_s29 + $0x12] sm:$0xff] }
  0x12   : > { %1066 = vmatprep.subr.bf16.mxu0 %v1136_v4  ;;  %1074 = vmatprep.subr.bf16.mxu1 %v1137_v5  ;;  %v194_v19 = vpack.c.bf16 %v188_v10, %v187_v9  ;;  %v195_v23 = vpack.c.bf16 %v189_v16, %v189_v16  ;;  %v332_v25 = vmax.f32 %v329_v20, 0.0  ;;  %v410_v26 = vld [vmem:[%s1210_s29 + $0x6] sm:$0xff]  ;;  %v1225_v27 = vld [vmem:[%s1210_s29 + $0xe] sm:$0xff]  ;;  %v333_v29 = vmax.f32 %v330_v21, 0.0  ;;  %v412_v33 = vld [vmem:[%s1210_s29 + $0x16] sm:$0xff] }
  0x13   : > { %v182_v22 = vpack.c.bf16 %v176_v15, %v175_v12  ;;  %v183_v24 = vpack.c.bf16 %v177_v17, %v177_v17  ;;  %v413_v30 = vmax.f32 %v410_v26, 0.0  ;;  %v414_v31 = vmax.f32 %v1225_v27, 0.0  ;;  %v491_v40 = vld [vmem:[%s1210_s29 + $0x7] sm:$0xff]  ;;  %v492_v42 = vld [vmem:[%s1210_s29 + $0xf] sm:$0xff]  ;;  %v493_v47 = vld [vmem:[%s1210_s29 + $0x17] sm:$0xff] }
  0x14   : > { %1054 = vmatprep.mubr.msk.bf16.mxu0 %vm208_vm0, %v194_v19  ;;  %v339_v34 = vpack.c.bf16 %v333_v29, %v332_v25  ;;  %v334_v37 = vmax.f32 %v331_v32, 0.0  ;;  %v1242_v38 = vmax.f32 %v412_v33, 0.0  ;;  %v494_v43 = vmax.f32 %v491_v40, 0.0  ;;  %v574_v48 = vld [vmem:[%s1210_s29 + $0x18] sm:$0xff]  ;;  %v1144_v53 = vld [vmem:[%s1312_s1 + $0x68] sm:$0xff]   ;;  %v1146_v3 = vld [vmem:[%s1312_s1 + $0x60] sm:$0xff]  }
  0x15   : > { %1062 = vmatprep.mubr.msk.bf16.mxu1 %vm208_vm0, %v182_v22  ;;  %1055 = vmatmul.mubr.msk.bf16.vlgmr.msra.gmra.mxu0 %vm208_vm0, %v195_v23  ;;  %v420_v35 = vpack.c.bf16 %v414_v31, %v413_v30  ;;  %v495_v46 = vmax.f32 %v492_v42, 0.0  ;;  %v582_v51 = vpack.c.bf16 %v177_v17, %v176_v15  ;;  %v496_v52 = vmax.f32 %v493_v47, 0.0  ;;  %v653_v55 = vld [vmem:[%s1210_s29 + $0xc] sm:$0xff]  ;;  %v654_v56 = vld [vmem:[%s1210_s29 + $0x14] sm:$0xff]  ;;  %v655_v2 = vld [vmem:[%s1210_s29 + $0x1c] sm:$0xff] }
  0x16   : > { %1063 = vmatmul.mubr.msk.bf16.vlgmr.msra.gmra.mxu1 %vm208_vm0, %v183_v24  ;;  %1067 = vmatpush3.bf16.msra.mxu0 %v1136_v4  ;;  %v340_v41 = vpack.c.bf16 %v334_v37, %v334_v37  ;;  %v421_v44 = vpack.c.bf16 %v1242_v38, %v1242_v38  ;;  %v577_v54 = vmax.f32 %v574_v48, 0.0  ;;  %v734_v57 = vld [vmem:[%s1210_s29 + $0xd] sm:$0xff]  ;;  %v735_v58 = vld [vmem:[%s1210_s29 + $0x15] sm:$0xff]  ;;  %v656_v60 = vmax.f32 %v653_v55, 0.0  ;;  %v736_v4 = vld [vmem:[%s1210_s29 + $0x1d] sm:$0xff] }
  0x17   : > { %1075 = vmatpush3.bf16.msra.mxu1 %v1137_v5  ;;  %1068 = vmatprep.subr.bf16.mxu0 %v1138_v18  ;;  %v501_v50 = vpack.c.bf16 %v495_v46, %v494_v43  ;;  %v1145_v59 = vld [vmem:[%s1312_s1 + $0x78] sm:$0xff]   ;;  %v657_v61 = vmax.f32 %v654_v56, 0.0  ;;  %v502_v62 = vpack.c.bf16 %v496_v52, %v496_v52  ;;  %v737_v63 = vmax.f32 %v734_v57, 0.0  ;;  %v1147_v5 = vld [vmem:[%s1312_s1 + $0x70] sm:$0xff]   ;;  %v1148_v10 = vld [vmem:[%s1312_s1 + $0x88] sm:$0xff]  }
  0x18   : > { %1076 = vmatprep.subr.bf16.mxu1 %v1139_v28  ;;  %1070 = vmatprep.mubr.msk.bf16.mxu0 %vm208_vm0, %v339_v34  ;;  %v738_v0 = vmax.f32 %v735_v58, 0.0  ;;  %v583_v1 = vpack.c.bf16 %v577_v54, %v577_v54  ;;  %v658_v8 = vmax.f32 %v655_v2, 0.0  ;;  %v739_v9 = vmax.f32 %v736_v4, 0.0  ;;  %v817_v13 = vld [vmem:[%s1210_s29 + $0x1e] sm:$0xff]  ;;  %s1123_s29 = smul.u32 24, %s1316_s13 }
  0x19   : > { %1078 = vmatprep.mubr.msk.bf16.mxu1 %vm208_vm0, %v420_v35  ;;  %v663_v6 = vpack.c.bf16 %v657_v61, %v656_v60  ;;  %v1149_v14 = vld [vmem:[%s1312_s1 + $0x80] sm:$0xff]   ;;  %v825_v15 = vpack.c.bf16 %v1242_v38, %v414_v31  ;;  %v820_v16 = vmax.f32 %v817_v13, 0.0 }
  0x1a   : > { %1069 = vmatpush3.bf16.msra.mxu0 %v1138_v18  ;;  %v744_v7 = vpack.c.bf16 %v738_v0, %v737_v63  ;;  %v664_v11 = vpack.c.bf16 %v658_v8, %v658_v8  ;;  %v745_v12 = vpack.c.bf16 %v739_v9, %v739_v9  ;;  %v1011_v4 = vld [vmem:[%s1313_s2] ss:$0 sm:$0xff]  ;;  %s170_s7 = scalar_lea.vmem %s1314_s3, %s1123_s29 }
  0x1b   : > { %1077 = vmatpush3.bf16.msra.mxu1 %v1139_v28  ;;  %1082 = vmatprep.subr.bf16.mxu0 %v1140_v36  ;;  %v826_v17 = vpack.c.bf16 %v820_v16, %v820_v16 }
  0x1c   : > { %1090 = vmatprep.subr.bf16.mxu1 %v1141_v39 }
  0x1d   : > { %1071 = vmatmul.mubr.msk.bf16.vlgmr.msra.gmra.mxu0 %vm208_vm0, %v340_v41 }
  0x1e   : > { %1079 = vmatmul.mubr.msk.bf16.vlgmr.msra.gmra.mxu1 %vm208_vm0, %v421_v44  ;;  %1083 = vmatpush3.bf16.msra.mxu0 %v1140_v36 }
  0x1f   : > { %1091 = vmatpush3.bf16.msra.mxu1 %v1141_v39  ;;  %1084 = vmatprep.subr.bf16.mxu0 %v1142_v45 }
  0x20   : > { %1092 = vmatprep.subr.bf16.mxu1 %v1143_v49  ;;  %1086 = vmatprep.mubr.msk.bf16.mxu0 %vm208_vm0, %v501_v50 }
  0x21   : > { %1094 = vmatprep.mubr.msk.bf16.mxu1 %vm208_vm0, %v582_v51 }
  0x22   : > { %1085 = vmatpush3.bf16.msra.mxu0 %v1142_v45 }
  0x23   : > { %1093 = vmatpush3.bf16.msra.mxu1 %v1143_v49  ;;  %1098 = vmatprep.subr.bf16.mxu0 %v1144_v53 }
  0x24   : > { %1106 = vmatprep.subr.bf16.mxu1 %v1145_v59 }
  0x25   : > { %1087 = vmatmul.mubr.msk.bf16.vlgmr.msra.gmra.mxu0 %vm208_vm0, %v502_v62 }
  0x26   : > { %1095 = vmatmul.mubr.msk.bf16.vlgmr.msra.gmra.mxu1 %vm208_vm0, %v583_v1  ;;  %1099 = vmatpush3.bf16.msra.mxu0 %v1144_v53 }
  0x27   : > { %1107 = vmatpush3.bf16.msra.mxu1 %v1145_v59  ;;  %1100 = vmatprep.subr.bf16.mxu0 %v1146_v3 }
  0x28   : > { %1108 = vmatprep.subr.bf16.mxu1 %v1147_v5  ;;  %1102 = vmatprep.mubr.msk.bf16.mxu0 %vm208_vm0, %v663_v6 }
  0x29   : > { %1110 = vmatprep.mubr.msk.bf16.mxu1 %vm208_vm0, %v744_v7 }
  0x2a   : > { %1101 = vmatpush3.bf16.msra.mxu0 %v1146_v3 }
  0x2b   : > { %1109 = vmatpush3.bf16.msra.mxu1 %v1147_v5  ;;  %1114 = vmatprep.subr.bf16.mxu0 %v1148_v10 }
  0x2d   : > { %1103 = vmatmul.mubr.msk.bf16.vlgmr.msra.gmra.mxu0 %vm208_vm0, %v664_v11 }
  0x2e   : > { %1111 = vmatmul.mubr.msk.bf16.vlgmr.msra.gmra.mxu1 %vm208_vm0, %v745_v12  ;;  %1115 = vmatpush3.bf16.msra.mxu0 %v1148_v10 }
  0x2f   : > { %1116 = vmatprep.subr.bf16.mxu0 %v1149_v14  ;;  %1118 = vmatprep.mubr.msk.bf16.mxu0 %vm208_vm0, %v825_v15 }
  0x32   : > { %1117 = vmatpush3.bf16.msra.mxu0 %v1149_v14 }
  0x35   : > { %1119 = vmatmul.mubr.msk.bf16.vlgmr.msra.gmra.mxu0 %vm208_vm0, %v826_v17 }
  0xd5   : > { %v1056_v18 = vpop.f32.mrf.mxu0 }
  0xd6   : > { %v1064_v19 = vpop.f32.mrf.mxu1 }
  0xd7   : > { %v249_v20 = vpop.f32.mrf.mxu0  ;;  %v324_v31 = vadd.f32 %v1064_v19, %v1056_v18 }
  0xd8   : > { %v315_v21 = vpop.f32.mrf.mxu1 }
  0xd9   : > { %v1057_v22 = vpop.f32.mrf.mxu0  ;;  %v316_v34 = vadd.f32 %v315_v21, %v249_v20 }
  0xda   : > { %v1065_v23 = vpop.f32.mrf.mxu1 }
  0xdb   : > { %v252_v24 = vpop.f32.mrf.mxu0 }
  0xdc   : > { %v318_v25 = vpop.f32.mrf.mxu1 }
  0xdd   : > { %v1072_v26 = vpop.f32.mrf.mxu0  ;;  %v319_v41 = vadd.f32 %v318_v25, %v252_v24 }
  0xde   : > { %v1080_v27 = vpop.f32.mrf.mxu1  ;;  %v409_v35 = vadd.f32 %v1072_v26, %v324_v31 }
  0xdf   : > { %v393_v28 = vpop.f32.mrf.mxu0 }
  0xe0   : > { %v474_v29 = vpop.f32.mrf.mxu1  ;;  %v407_v38 = vadd.f32 %v393_v28, %v316_v34  ;;  %v490_v42 = vadd.f32 %v1080_v27, %v409_v35 }
  0xe1   : > { %v1073_v30 = vpop.f32.mrf.mxu0 }
  0xe2   : > { %v1081_v32 = vpop.f32.mrf.mxu1  ;;  %v488_v45 = vadd.f32 %v474_v29, %v407_v38 }
  0xe3   : > { %v396_v33 = vpop.f32.mrf.mxu0 }
  0xe4   : > { %v477_v36 = vpop.f32.mrf.mxu1  ;;  %v408_v46 = vadd.f32 %v396_v33, %v319_v41 }
  0xe5   : > { %v1088_v37 = vpop.f32.mrf.mxu0 }
  0xe6   : > { %v1096_v39 = vpop.f32.mrf.mxu1  ;;  %v571_v47 = vadd.f32 %v1088_v37, %v490_v42  ;;  %v489_v53 = vadd.f32 %v477_v36, %v408_v46 }
  0xe7   : > { %v555_v40 = vpop.f32.mrf.mxu0 }
  0xe8   : > { %v636_v43 = vpop.f32.mrf.mxu1  ;;  %v569_v50 = vadd.f32 %v555_v40, %v488_v45  ;;  %v652_v54 = vadd.f32 %v1096_v39, %v571_v47 }
  0xe9   : > { %v1089_v44 = vpop.f32.mrf.mxu0 }
  0xea   : > { %v1097_v48 = vpop.f32.mrf.mxu1  ;;  %v650_v57 = vadd.f32 %v636_v43, %v569_v50 }
  0xeb   : > { %v558_v49 = vpop.f32.mrf.mxu0 }
  0xec   : > { %v639_v51 = vpop.f32.mrf.mxu1  ;;  %v570_v58 = vadd.f32 %v558_v49, %v489_v53 }
  0xed   : > { %v1104_v52 = vpop.f32.mrf.mxu0 }
  0xee   : > { %v1112_v55 = vpop.f32.mrf.mxu1  ;;  %v733_v59 = vadd.f32 %v1104_v52, %v652_v54  ;;  %v651_v1 = vadd.f32 %v639_v51, %v570_v58 }
  0xef   : > { %v717_v56 = vpop.f32.mrf.mxu0 }
  0xf0   : > { %v798_v60 = vpop.f32.mrf.mxu1  ;;  %v731_v62 = vadd.f32 %v717_v56, %v650_v57  ;;  %v814_v2 = vadd.f32 %v1112_v55, %v733_v59 }
  0xf1   : > { %v1105_v61 = vpop.f32.mrf.mxu0 }
  0xf2   : > { %v1113_v63 = vpop.f32.mrf.mxu1  ;;  %v812_v5 = vadd.f32 %v798_v60, %v731_v62 }
  0xf3   : > { %v720_v0 = vpop.f32.mrf.mxu0 }
  0xf4   : > { %v732_v6 = vadd.f32 %v720_v0, %v651_v1  ;;  %v801_v11 = vpop.f32.mrf.mxu1 }
  0xf5   : > { %v1120_v3 = vpop.f32.mrf.mxu0 }
  0xf6   : > { %v895_v7 = vadd.f32 %v1120_v3, %v814_v2  ;;  %v813_v13 = vadd.f32 %v801_v11, %v732_v6 }
  0xf7   : > { %v879_v8 = vpop.f32.mrf.mxu0 }
  0xf8   : > { %v905_v9 = vadd.f32 %v1011_v4, %v895_v7  ;;  %v893_v10 = vadd.f32 %v879_v8, %v812_v5 }
  0xf9   : > { %v1121_v12 = vpop.f32.mrf.mxu0 }
  0xfa   : > { %v908_v14 = vmax.f32 %v905_v9, 0.0  ;;  %v903_v15 = vadd.f32 %v1011_v4, %v893_v10 }
  0xfb   : > { %v882_v16 = vpop.f32.mrf.mxu0 }
  0xfc   : > { %912 = vst.msk [vmem:[%s170_s7 + $0x10] sm:$0xff] %vm909_vm1, %v908_v14  ;;  %v906_v17 = vmax.f32 %v903_v15, 0.0  ;;  %v894_v18 = vadd.f32 %v882_v16, %v813_v13 }
  0xfe   : > { %910 = vst.msk [vmem:[%s170_s7] sm:$0xff] %vm909_vm1, %v906_v17  ;;  %v904_v19 = vadd.f32 %v1011_v4, %v894_v18 }
 0x100   : > { %v907_v20 = vmax.f32 %v904_v19, 0.0 }
 0x102   : > { %911 = vst.msk [vmem:[%s170_s7 + $0x8] sm:$0xff] %vm909_vm1, %v907_v20 }
 0x103 PF: > { %s13_s12 = sadd.s32 1, %s1156_s12  }
 0x104   : > { %p10_p4 = scmp.ge.s32.totalorder %s13_s12, 4  }
 0x106   :  { %12 = sbr.rel (!%p10_p4) target bundleno = 1 (0x1), region = 62 }

// kernel: _lambda_.31
= control target key start
LH: loop header
LB: loop body
LE: loop exit
PB: predicated region body
PF: predicated region fallthrough
CT: control target
= control target key end

     0   :  { %s409_s15 = smov 0   ;;  %s435_s0 = inlined_call_operand.vmem [shape: f32[2,6,16], index: 0, kind: input, shape index: {}]   ;;  %s436_s1 = inlined_call_operand.vmem [shape: bf16[16,32], index: 1, kind: input, shape index: {}]   ;;  %s437_s2 = inlined_call_operand.vmem [shape: f32[1,32], index: 2, kind: input, shape index: {}]   ;;  %s438_s3 = inlined_call_operand.vmem [shape: f32[2,4,32], index: 3, kind: input, shape index: {}]   ;;  %s439_s4 = inlined_call_operand.vmem [shape: f32[2,4,32], index: 4, kind: output, shape index: {}]  }
   0x1 LB: > { %s342_s16 = sadd.s32 4294967295, %s380_s15   ;;  %p346_p0 = scmp.ge.s32.totalorder %s380_s15, 1  ;;  %s380_s15 = sphi %s409_s15, %s14_s15  }
   0x2   : > { %p170_p1 = scmp.lt.s32.totalorder %s380_s15, 3 }
   0x4   : > { %p171_p2 = pnand %p346_p0, %p170_p1 }
   0x5   : > { %p198_p3 = scmp.lt.s32.totalorder (!%p171_p2), %s342_s16, 1 }
   0x6   : > { %174 = sbr.rel (%p171_p2) target bundleno = 217 (0xd9), region = 36 }
   0xb   : > { %v373_v0 = vld [vmem:[%s436_s1] sm:$0xff]   ;;  %v382_v1 = vmov 0.0   ;;  %vm383_vm0 = vmmov 0   ;;  %s441_s16 = smov (!%p198_p3, %s342_s16), 1  ;;  %vm228_vm1 = vcmask 130048   ;;  %vm275_vm2 = vcmask 257024  }
   0xc   : > { %357 = vmatprep.subr.bf16.mxu0 %v382_v1  ;;  %359 = vmatprep.mubr.msk.bf16.mxu0 %vm383_vm0, %v382_v1  ;;  %s347_s19 = sshll.u32 %s441_s16, 3  ;;  %s348_s23 = sshll.u32 %s441_s16, 2  ;;  %v350_v4 = vld [vmem:[%s437_s2] ss:$0 sm:$0xff] }
   0xd   : > { %358 = vmatpush3.bf16.msra.mxu0 %v373_v0  ;;  %s201_s22 = scalar_lea.vmem %s435_s0, %s347_s19  ;;  %s205_s26 = scalar_lea.vmem %s438_s3, %s348_s23 }
   0xe   : > { %v211_v2 = vld [vmem:[%s201_s22] sm:$0xf]  ;;  %s209_s5 = scalar_lea.vmem %s439_s4, %s348_s23 }
   0xf   : > { %v214_v3 = vpack.c.bf16 %v211_v2, %v211_v2  ;;  %v272_v6 = vld [vmem:[%s205_s26] sm:$0xf] }
  0x11   : > { %360 = vmatmul.mubr.msk.bf16.vlgmr.msra.gmra.mxu0 %vm228_vm1, %v214_v3 }
  0xd1   : > { %v266_v5 = vpop.f32.mrf.mxu0 }
  0xd2   : > { %v267_v7 = vadd.f32 %v350_v4, %v266_v5 }
  0xd3   : > { %v361_v8 = vpop.f32.mrf.mxu0 }
  0xd4   : > { %v273_v9 = vadd.f32 %v272_v6, %v267_v7 }
  0xd5   : > { %v269_v10 = vpop.f32.mrf.mxu0 }
  0xd6   : > { %v274_v11 = vmax.f32 %v273_v9, 0.0 }
  0xd7   : > { %v362_v12 = vpop.f32.mrf.mxu0 }
  0xd8   : > { %276 = vst.msk [vmem:[%s209_s5] sm:$0xf] %vm275_vm2, %v274_v11 }
  0xd9 PF: > { %s14_s15 = sadd.s32 1, %s380_s15  }
  0xda   : > { %p11_p4 = scmp.ge.s32.totalorder %s14_s15, 4  }
  0xdc   :  { %13 = sbr.rel (!%p11_p4) target bundleno = 1 (0x1), region = 69 }

// kernel: _lambda_.29
= control target key start
LH: loop header
LB: loop body
LE: loop exit
PB: predicated region body
PF: predicated region fallthrough
CT: control target
= control target key end

     0   :  { %s868_s12 = smov 0   ;;  %s966_s0 = inlined_call_operand.vmem [shape: f32[2,20,16], index: 0, kind: input, shape index: {}]   ;;  %s967_s1 = inlined_call_operand.vmem [shape: bf16[144,32], index: 1, kind: input, shape index: {}]   ;;  %s968_s2 = inlined_call_operand.vmem [shape: f32[1,32], index: 2, kind: input, shape index: {}]   ;;  %s969_s3 = inlined_call_operand.vmem [shape: f32[2,8,32], index: 3, kind: output, shape index: {}]  }
   0x1 LB: > { %s718_s13 = sadd.s32 4294967295, %s844_s12   ;;  %p722_p0 = scmp.ge.s32.totalorder %s844_s12, 1  ;;  %s844_s12 = sphi %s868_s12, %s13_s12  }
   0x2   : > { %p137_p1 = scmp.lt.s32.totalorder %s844_s12, 3 }
   0x4   : > { %p138_p2 = pnand %p722_p0, %p137_p1 }
   0x5   : > { %p160_p3 = scmp.lt.s32.totalorder (!%p138_p2), %s718_s13, 1 }
   0x6   : > { %141 = sbr.rel (%p138_p2) target bundleno = 249 (0xf9), region = 32 }
   0xb   : > { %v829_v0 = vld [vmem:[%s967_s1 + $0x8] sm:$0xff]   ;;  %v846_v1 = vmov 0.0   ;;  %v830_v2 = vld [vmem:[%s967_s1] sm:$0xff]   ;;  %vm847_vm0 = vmmov 0   ;;  %s971_s13 = smov (!%p160_p3, %s718_s13), 1  ;;  %v831_v3 = vld [vmem:[%s967_s1 + $0x10] sm:$0xff]  }
   0xc   : > { %764 = vmatprep.subr.bf16.mxu0 %v846_v1  ;;  %770 = vmatprep.subr.bf16.mxu1 %v846_v1  ;;  %s818_s18 = smul.u32 24, %s971_s13  ;;  %vm184_vm1 = vcmask 130048   ;;  %v832_v6 = vld [vmem:[%s967_s1 + $0x18] sm:$0xff]   ;;  %v833_v13 = vld [vmem:[%s967_s1 + $0x20] sm:$0xff]   ;;  %v834_v14 = vld [vmem:[%s967_s1 + $0x28] sm:$0xff]   ;;  %s724_s9 = sshll.u32 %s971_s13, 3 }
   0xd   : > { %765 = vmatpush3.bf16.msra.mxu0 %v829_v0  ;;  %766 = vmatprep.mubr.msk.bf16.mxu0 %vm847_vm0, %v846_v1  ;;  %v835_v19 = vld [vmem:[%s967_s1 + $0x30] sm:$0xff]   ;;  %v836_v20 = vld [vmem:[%s967_s1 + $0x38] sm:$0xff]   ;;  %v837_v25 = vld [vmem:[%s967_s1 + $0x40] sm:$0xff]   ;;  %s168_s16 = scalar_lea.vmem %s969_s3, %s724_s9  ;;  %vm663_vm2 = vcmask 261120  }
   0xe   : > { %771 = vmatpush3.bf16.msra.mxu1 %v830_v2  ;;  %772 = vmatprep.mubr.msk.bf16.mxu1 %vm847_vm0, %v846_v1  ;;  %s896_s21 = scalar_lea.vmem %s966_s0, %s818_s18 }
   0xf   : > { %776 = vmatprep.subr.bf16.mxu0 %v846_v1  ;;  %782 = vmatprep.subr.bf16.mxu1 %v846_v1  ;;  %v174_v4 = vld [vmem:[%s896_s21 + $0x1] sm:$0xff]  ;;  %v547_v22 = vld [vmem:[%s896_s21 + $0x9] sm:$0xff] }
  0x10   : > { %v170_v5 = vld [vmem:[%s896_s21] sm:$0xff]  ;;  %v177_v7 = vpack.c.bf16 %v174_v4, %v174_v4  ;;  %v493_v21 = vld [vmem:[%s896_s21 + $0x8] sm:$0xff]  ;;  %v550_v24 = vpack.c.bf16 %v547_v22, %v547_v22 }
  0x11   : > { %v173_v8 = vpack.c.bf16 %v170_v5, %v170_v5  ;;  %v277_v9 = vld [vmem:[%s896_s21 + $0x2] sm:$0xff]  ;;  %v496_v23 = vpack.c.bf16 %v493_v21, %v493_v21  ;;  %v601_v26 = vld [vmem:[%s896_s21 + $0xa] sm:$0xff]  ;;  %v743_v4 = vld [vmem:[%s968_s2] ss:$0 sm:$0xff] }
  0x12   : > { %767 = vmatmul.mubr.msk.bf16.vlgmr.msra.gmra.mxu0 %vm184_vm1, %v177_v7  ;;  %v331_v10 = vld [vmem:[%s896_s21 + $0x4] sm:$0xff]  ;;  %v280_v11 = vpack.c.bf16 %v277_v9, %v277_v9  ;;  %v604_v27 = vpack.c.bf16 %v601_v26, %v601_v26 }
  0x13   : > { %773 = vmatmul.mubr.msk.bf16.vlgmr.msra.gmra.mxu1 %vm184_vm1, %v173_v8  ;;  %777 = vmatpush3.bf16.msra.mxu0 %v831_v3  ;;  %v334_v12 = vpack.c.bf16 %v331_v10, %v331_v10  ;;  %v385_v15 = vld [vmem:[%s896_s21 + $0x5] sm:$0xff] }
  0x14   : > { %783 = vmatpush3.bf16.msra.mxu1 %v832_v6  ;;  %778 = vmatprep.mubr.msk.bf16.mxu0 %vm847_vm0, %v846_v1  ;;  %v439_v16 = vld [vmem:[%s896_s21 + $0x6] sm:$0xff]  ;;  %v388_v17 = vpack.c.bf16 %v385_v15, %v385_v15 }
  0x15   : > { %788 = vmatprep.subr.bf16.mxu0 %v846_v1  ;;  %784 = vmatprep.mubr.msk.bf16.mxu1 %vm847_vm0, %v846_v1  ;;  %v442_v18 = vpack.c.bf16 %v439_v16, %v439_v16 }
  0x16   : > { %794 = vmatprep.subr.bf16.mxu1 %v846_v1 }
  0x1a   : > { %779 = vmatmul.mubr.msk.bf16.vlgmr.msra.gmra.mxu0 %vm184_vm1, %v280_v11 }
  0x1b   : > { %785 = vmatmul.mubr.msk.bf16.vlgmr.msra.gmra.mxu1 %vm184_vm1, %v334_v12  ;;  %789 = vmatpush3.bf16.msra.mxu0 %v833_v13 }
  0x1c   : > { %795 = vmatpush3.bf16.msra.mxu1 %v834_v14  ;;  %790 = vmatprep.mubr.msk.bf16.mxu0 %vm847_vm0, %v846_v1 }
  0x1d   : > { %800 = vmatprep.subr.bf16.mxu0 %v846_v1  ;;  %796 = vmatprep.mubr.msk.bf16.mxu1 %vm847_vm0, %v846_v1 }
  0x1e   : > { %806 = vmatprep.subr.bf16.mxu1 %v846_v1 }
  0x22   : > { %791 = vmatmul.mubr.msk.bf16.vlgmr.msra.gmra.mxu0 %vm184_vm1, %v388_v17 }
  0x23   : > { %797 = vmatmul.mubr.msk.bf16.vlgmr.msra.gmra.mxu1 %vm184_vm1, %v442_v18  ;;  %801 = vmatpush3.bf16.msra.mxu0 %v835_v19 }
  0x24   : > { %807 = vmatpush3.bf16.msra.mxu1 %v836_v20  ;;  %802 = vmatprep.mubr.msk.bf16.mxu0 %vm847_vm0, %v846_v1 }
  0x25   : > { %812 = vmatprep.subr.bf16.mxu0 %v846_v1  ;;  %808 = vmatprep.mubr.msk.bf16.mxu1 %vm847_vm0, %v846_v1 }
  0x2a   : > { %803 = vmatmul.mubr.msk.bf16.vlgmr.msra.gmra.mxu0 %vm184_vm1, %v496_v23 }
  0x2b   : > { %809 = vmatmul.mubr.msk.bf16.vlgmr.msra.gmra.mxu1 %vm184_vm1, %v550_v24  ;;  %813 = vmatpush3.bf16.msra.mxu0 %v837_v25 }
  0x2c   : > { %814 = vmatprep.mubr.msk.bf16.mxu0 %vm847_vm0, %v846_v1 }
  0x32   : > { %815 = vmatmul.mubr.msk.bf16.vlgmr.msra.gmra.mxu0 %vm184_vm1, %v604_v27 }
  0xd2   : > { %v222_v28 = vpop.f32.mrf.mxu0 }
  0xd3   : > { %v271_v29 = vpop.f32.mrf.mxu1 }
  0xd4   : > { %v768_v30 = vpop.f32.mrf.mxu0  ;;  %v272_v42 = vadd.f32 %v271_v29, %v222_v28 }
  0xd5   : > { %v774_v31 = vpop.f32.mrf.mxu1 }
  0xd6   : > { %v225_v32 = vpop.f32.mrf.mxu0 }
  0xd7   : > { %v274_v33 = vpop.f32.mrf.mxu1 }
  0xd8   : > { %v769_v34 = vpop.f32.mrf.mxu0 }
  0xd9   : > { %v775_v35 = vpop.f32.mrf.mxu1 }
  0xda   : > { %v324_v36 = vpop.f32.mrf.mxu0 }
  0xdb   : > { %v378_v37 = vpop.f32.mrf.mxu1  ;;  %v330_v45 = vadd.f32 %v324_v36, %v272_v42 }
  0xdc   : > { %v780_v38 = vpop.f32.mrf.mxu0 }
  0xdd   : > { %v786_v39 = vpop.f32.mrf.mxu1  ;;  %v384_v50 = vadd.f32 %v378_v37, %v330_v45 }
  0xde   : > { %v327_v40 = vpop.f32.mrf.mxu0 }
  0xdf   : > { %v381_v41 = vpop.f32.mrf.mxu1 }
  0xe0   : > { %v781_v43 = vpop.f32.mrf.mxu0 }
  0xe1   : > { %v787_v44 = vpop.f32.mrf.mxu1 }
  0xe2   : > { %v432_v46 = vpop.f32.mrf.mxu0 }
  0xe3   : > { %v486_v47 = vpop.f32.mrf.mxu1  ;;  %v438_v53 = vadd.f32 %v432_v46, %v384_v50 }
  0xe4   : > { %v792_v48 = vpop.f32.mrf.mxu0 }
  0xe5   : > { %v798_v49 = vpop.f32.mrf.mxu1  ;;  %v492_v58 = vadd.f32 %v486_v47, %v438_v53 }
  0xe6   : > { %v435_v51 = vpop.f32.mrf.mxu0 }
  0xe7   : > { %v489_v52 = vpop.f32.mrf.mxu1 }
  0xe8   : > { %v793_v54 = vpop.f32.mrf.mxu0 }
  0xe9   : > { %v799_v55 = vpop.f32.mrf.mxu1 }
  0xea   : > { %v540_v56 = vpop.f32.mrf.mxu0 }
  0xeb   : > { %v594_v57 = vpop.f32.mrf.mxu1  ;;  %v546_v61 = vadd.f32 %v540_v56, %v492_v58 }
  0xec   : > { %v804_v59 = vpop.f32.mrf.mxu0 }
  0xed   : > { %v810_v60 = vpop.f32.mrf.mxu1  ;;  %v600_v2 = vadd.f32 %v594_v57, %v546_v61 }
  0xee   : > { %v543_v62 = vpop.f32.mrf.mxu0 }
  0xef   : > { %v597_v63 = vpop.f32.mrf.mxu1 }
  0xf0   : > { %v805_v0 = vpop.f32.mrf.mxu0 }
  0xf1   : > { %v811_v1 = vpop.f32.mrf.mxu1 }
  0xf2   : > { %v648_v3 = vpop.f32.mrf.mxu0 }
  0xf3   : > { %v654_v5 = vadd.f32 %v648_v3, %v600_v2 }
  0xf4   : > { %v816_v6 = vpop.f32.mrf.mxu0 }
  0xf5   : > { %v662_v7 = vadd.f32 %v743_v4, %v654_v5 }
  0xf6   : > { %v651_v8 = vpop.f32.mrf.mxu0 }
  0xf7   : > { %664 = vst.msk [vmem:[%s168_s16] sm:$0xff] %vm663_vm2, %v662_v7 }
  0xf8   : > { %v817_v9 = vpop.f32.mrf.mxu0 }
  0xf9 PF: > { %s13_s12 = sadd.s32 1, %s844_s12  }
  0xfa   : > { %p10_p4 = scmp.ge.s32.totalorder %s13_s12, 4  }
  0xfc   :  { %12 = sbr.rel (!%p10_p4) target bundleno = 1 (0x1), region = 62 }

// kernel: _lambda_.28
= control target key start
LH: loop header
LB: loop body
LE: loop exit
PB: predicated region body
PF: predicated region fallthrough
CT: control target
= control target key end

     0   :  { %s892_s12 = smov 0   ;;  %s1062_s0 = inlined_call_operand.vmem [shape: f32[2,12,128], index: 0, kind: input, shape index: {}]   ;;  %s1063_s1 = inlined_call_operand.vmem [shape: bf16[512,16], index: 1, kind: input, shape index: {}]   ;;  %s1064_s2 = inlined_call_operand.vmem [shape: f32[1,16], index: 2, kind: input, shape index: {}]   ;;  %s1065_s3 = inlined_call_operand.vmem [shape: f32[2,6,16], index: 3, kind: output, shape index: {}]  }
   0x1 LB: > { %s660_s13 = sadd.s32 4294967295, %s868_s12   ;;  %p664_p0 = scmp.ge.s32.totalorder %s868_s12, 1  ;;  %s868_s12 = sphi %s892_s12, %s13_s12  }
   0x2   : > { %p137_p1 = scmp.lt.s32.totalorder %s868_s12, 3 }
   0x4   : > { %p138_p2 = pnand %p664_p0, %p137_p1 }
   0x5   : > { %p160_p3 = scmp.lt.s32.totalorder (!%p138_p2), %s660_s13, 1 }
   0x6   : > { %141 = sbr.rel (%p138_p2) target bundleno = 278 (0x116), region = 32 }
   0xb   : > { %v830_v0 = vld [vmem:[%s1063_s1 + $0x78] sm:$0xff]   ;;  %v870_v1 = vmov 0.0   ;;  %v832_v3 = vld [vmem:[%s1063_s1 + $0x70] sm:$0xff]   ;;  %vm871_vm0 = vmmov 0   ;;  %v834_v5 = vld [vmem:[%s1063_s1 + $0x68] sm:$0xff]   ;;  %s1067_s13 = smov (!%p160_p3, %s660_s13), 1 }
   0xc   : > { %740 = vmatprep.subr.bf16.mxu0 %v870_v1  ;;  %760 = vmatprep.subr.bf16.mxu1 %v870_v1  ;;  %v831_v2 = vld [vmem:[%s1063_s1 + $0x38] sm:$0xff]   ;;  %v833_v4 = vld [vmem:[%s1063_s1 + $0x30] sm:$0xff]   ;;  %v835_v6 = vld [vmem:[%s1063_s1 + $0x28] sm:$0xff]   ;;  %s703_s11 = sshll.u32 %s1067_s13, 4  ;;  %s667_s7 = sshll.u32 %s1067_s13, 3  ;;  %vm605_vm1 = vcmask 128000  }
   0xd   : > { %741 = vmatpush3.bf16.msra.mxu0 %v830_v0  ;;  %756 = vmatprep.mubr.msk.bf16.mxu0 %vm871_vm0, %v870_v1  ;;  %v836_v7 = vld [vmem:[%s1063_s1 + $0x60] sm:$0xff]   ;;  %v838_v9 = vld [vmem:[%s1063_s1 + $0x58] sm:$0xff]   ;;  %v840_v11 = vld [vmem:[%s1063_s1 + $0x50] sm:$0xff]   ;;  %s969_s20 = scalar_lea.vmem %s1062_s0, %s703_s11  ;;  %s168_s10 = scalar_lea.vmem %s1065_s3, %s667_s7 }
   0xe   : > { %761 = vmatpush3.bf16.msra.mxu1 %v831_v2  ;;  %742 = vmatprep.subr.bf16.mxu0 %v870_v1  ;;  %v837_v8 = vld [vmem:[%s1063_s1 + $0x20] sm:$0xff]   ;;  %v839_v10 = vld [vmem:[%s1063_s1 + $0x18] sm:$0xff]   ;;  %v841_v12 = vld [vmem:[%s1063_s1 + $0x10] sm:$0xff]  }
   0xf   : > { %762 = vmatprep.subr.bf16.mxu1 %v870_v1  ;;  %776 = vmatprep.mubr.msk.bf16.mxu1 %vm871_vm0, %v870_v1  ;;  %v842_v13 = vld [vmem:[%s1063_s1 + $0x48] sm:$0xff]   ;;  %v844_v15 = vld [vmem:[%s1063_s1 + $0x40] sm:$0xff]   ;;  %v846_v21 = vld [vmem:[%s1063_s1 + $0xb8] sm:$0xff]  }
  0x10   : > { %v843_v14 = vld [vmem:[%s1063_s1 + $0x8] sm:$0xff]   ;;  %v845_v16 = vld [vmem:[%s1063_s1] sm:$0xff]   ;;  %v847_v22 = vld [vmem:[%s1063_s1 + $0xf8] sm:$0xff]  }
  0x11   : > { %743 = vmatpush3.bf16.msra.mxu0 %v832_v3  ;;  %v188_v17 = vld [vmem:[%s969_s20 + $0x1] sm:$0x3f]  ;;  %v848_v23 = vld [vmem:[%s1063_s1 + $0xb0] sm:$0xff]   ;;  %v850_v25 = vld [vmem:[%s1063_s1 + $0xa8] sm:$0xff]  }
  0x12   : > { %763 = vmatpush3.bf16.msra.mxu1 %v833_v4  ;;  %744 = vmatprep.subr.bf16.mxu0 %v870_v1  ;;  %v170_v18 = vld [vmem:[%s969_s20] sm:$0x3f]  ;;  %v205_v19 = vpack.c.bf16 %v188_v17, %v188_v17  ;;  %v849_v24 = vld [vmem:[%s1063_s1 + $0xf0] sm:$0xff]   ;;  %v851_v26 = vld [vmem:[%s1063_s1 + $0xe8] sm:$0xff]  }
  0x13   : > { %764 = vmatprep.subr.bf16.mxu1 %v870_v1  ;;  %v187_v20 = vpack.c.bf16 %v170_v18, %v170_v18  ;;  %v852_v27 = vld [vmem:[%s1063_s1 + $0xa0] sm:$0xff]   ;;  %v854_v29 = vld [vmem:[%s1063_s1 + $0x98] sm:$0xff]   ;;  %v856_v31 = vld [vmem:[%s1063_s1 + $0x90] sm:$0xff]  }
  0x14   : > { %v853_v28 = vld [vmem:[%s1063_s1 + $0xe0] sm:$0xff]   ;;  %v855_v30 = vld [vmem:[%s1063_s1 + $0xd8] sm:$0xff]   ;;  %v857_v32 = vld [vmem:[%s1063_s1 + $0xd0] sm:$0xff]  }
  0x15   : > { %745 = vmatpush3.bf16.msra.mxu0 %v834_v5  ;;  %v858_v33 = vld [vmem:[%s1063_s1 + $0x88] sm:$0xff]   ;;  %v860_v35 = vld [vmem:[%s1063_s1 + $0x80] sm:$0xff]  }
  0x16   : > { %765 = vmatpush3.bf16.msra.mxu1 %v835_v6  ;;  %746 = vmatprep.subr.bf16.mxu0 %v870_v1  ;;  %v859_v34 = vld [vmem:[%s1063_s1 + $0xc8] sm:$0xff]   ;;  %v861_v37 = vld [vmem:[%s1063_s1 + $0xc0] sm:$0xff]  }
  0x17   : > { %766 = vmatprep.subr.bf16.mxu1 %v870_v1  ;;  %v382_v36 = vld [vmem:[%s969_s20 + $0x3] sm:$0x3f]  ;;  %v700_v53 = vld [vmem:[%s1064_s2] ss:$0 sm:$0xff] }
  0x18   : > { %v489_v38 = vld [vmem:[%s969_s20 + $0x4] sm:$0x3f]  ;;  %v399_v39 = vpack.c.bf16 %v382_v36, %v382_v36 }
  0x19   : > { %747 = vmatpush3.bf16.msra.mxu0 %v836_v7  ;;  %v506_v40 = vpack.c.bf16 %v489_v38, %v489_v38 }
  0x1a   : > { %767 = vmatpush3.bf16.msra.mxu1 %v837_v8  ;;  %748 = vmatprep.subr.bf16.mxu0 %v870_v1 }
  0x1b   : > { %768 = vmatprep.subr.bf16.mxu1 %v870_v1 }
  0x1d   : > { %749 = vmatpush3.bf16.msra.mxu0 %v838_v9 }
  0x1e   : > { %769 = vmatpush3.bf16.msra.mxu1 %v839_v10  ;;  %750 = vmatprep.subr.bf16.mxu0 %v870_v1 }
  0x1f   : > { %770 = vmatprep.subr.bf16.mxu1 %v870_v1 }
  0x21   : > { %751 = vmatpush3.bf16.msra.mxu0 %v840_v11 }
  0x22   : > { %771 = vmatpush3.bf16.msra.mxu1 %v841_v12  ;;  %752 = vmatprep.subr.bf16.mxu0 %v870_v1 }
  0x23   : > { %772 = vmatprep.subr.bf16.mxu1 %v870_v1 }
  0x25   : > { %753 = vmatpush3.bf16.msra.mxu0 %v842_v13 }
  0x26   : > { %773 = vmatpush3.bf16.msra.mxu1 %v843_v14  ;;  %754 = vmatprep.subr.bf16.mxu0 %v870_v1 }
  0x27   : > { %774 = vmatprep.subr.bf16.mxu1 %v870_v1 }
  0x29   : > { %755 = vmatpush3.bf16.msra.mxu0 %v844_v15 }
  0x2a   : > { %775 = vmatpush3.bf16.msra.mxu1 %v845_v16  ;;  %780 = vmatprep.subr.bf16.mxu0 %v870_v1 }
  0x2b   : > { %800 = vmatprep.subr.bf16.mxu1 %v870_v1 }
  0x2c   : > { %757 = vmatmul.mubr.bf16.vlgmr.msra.gmra.mxu0 %v205_v19 }
  0x2d   : > { %777 = vmatmul.mubr.bf16.vlgmr.msra.gmra.mxu1 %v187_v20  ;;  %781 = vmatpush3.bf16.msra.mxu0 %v846_v21 }
  0x2e   : > { %801 = vmatpush3.bf16.msra.mxu1 %v847_v22  ;;  %782 = vmatprep.subr.bf16.mxu0 %v870_v1 }
  0x2f   : > { %802 = vmatprep.subr.bf16.mxu1 %v870_v1  ;;  %796 = vmatprep.mubr.msk.bf16.mxu0 %vm871_vm0, %v870_v1 }
  0x30   : > { %816 = vmatprep.mubr.msk.bf16.mxu1 %vm871_vm0, %v870_v1 }
  0x31   : > { %783 = vmatpush3.bf16.msra.mxu0 %v848_v23 }
  0x32   : > { %803 = vmatpush3.bf16.msra.mxu1 %v849_v24  ;;  %784 = vmatprep.subr.bf16.mxu0 %v870_v1 }
  0x33   : > { %804 = vmatprep.subr.bf16.mxu1 %v870_v1 }
  0x35   : > { %785 = vmatpush3.bf16.msra.mxu0 %v850_v25 }
  0x36   : > { %805 = vmatpush3.bf16.msra.mxu1 %v851_v26  ;;  %786 = vmatprep.subr.bf16.mxu0 %v870_v1 }
  0x37   : > { %806 = vmatprep.subr.bf16.mxu1 %v870_v1 }
  0x39   : > { %787 = vmatpush3.bf16.msra.mxu0 %v852_v27 }
  0x3a   : > { %807 = vmatpush3.bf16.msra.mxu1 %v853_v28  ;;  %788 = vmatprep.subr.bf16.mxu0 %v870_v1 }
  0x3b   : > { %808 = vmatprep.subr.bf16.mxu1 %v870_v1 }
  0x3d   : > { %789 = vmatpush3.bf16.msra.mxu0 %v854_v29 }
  0x3e   : > { %809 = vmatpush3.bf16.msra.mxu1 %v855_v30  ;;  %790 = vmatprep.subr.bf16.mxu0 %v870_v1 }
  0x3f   : > { %810 = vmatprep.subr.bf16.mxu1 %v870_v1 }
  0x41   : > { %791 = vmatpush3.bf16.msra.mxu0 %v856_v31 }
  0x42   : > { %811 = vmatpush3.bf16.msra.mxu1 %v857_v32  ;;  %792 = vmatprep.subr.bf16.mxu0 %v870_v1 }
  0x43   : > { %812 = vmatprep.subr.bf16.mxu1 %v870_v1 }
  0x45   : > { %793 = vmatpush3.bf16.msra.mxu0 %v858_v33 }
  0x46   : > { %813 = vmatpush3.bf16.msra.mxu1 %v859_v34  ;;  %794 = vmatprep.subr.bf16.mxu0 %v870_v1 }
  0x47   : > { %814 = vmatprep.subr.bf16.mxu1 %v870_v1 }
  0x49   : > { %795 = vmatpush3.bf16.msra.mxu0 %v860_v35 }
  0x4a   : > { %815 = vmatpush3.bf16.msra.mxu1 %v861_v37 }
  0x4c   : > { %797 = vmatmul.mubr.bf16.vlgmr.msra.gmra.mxu0 %v399_v39 }
  0x4d   : > { %817 = vmatmul.mubr.bf16.vlgmr.msra.gmra.mxu1 %v506_v40 }
  0xec   : > { %v288_v41 = vpop.f32.mrf.mxu0 }
  0xed   : > { %v376_v42 = vpop.f32.mrf.mxu1 }
  0xee   : > { %v758_v43 = vpop.f32.mrf.mxu0  ;;  %v377_v49 = vadd.f32 %v376_v42, %v288_v41 }
  0xef   : > { %v778_v44 = vpop.f32.mrf.mxu1 }
  0xf0   : > { %v291_v45 = vpop.f32.mrf.mxu0 }
  0xf1   : > { %v379_v46 = vpop.f32.mrf.mxu1 }
  0xf2   : > { %v759_v47 = vpop.f32.mrf.mxu0 }
  0xf3   : > { %v779_v48 = vpop.f32.mrf.mxu1 }
 0x10c   : > { %v482_v50 = vpop.f32.mrf.mxu0 }
 0x10d   : > { %v488_v51 = vadd.f32 %v482_v50, %v377_v49  ;;  %v589_v52 = vpop.f32.mrf.mxu1 }
 0x10e   : > { %v798_v54 = vpop.f32.mrf.mxu0 }
 0x10f   : > { %v595_v55 = vadd.f32 %v589_v52, %v488_v51  ;;  %v818_v56 = vpop.f32.mrf.mxu1 }
 0x110   : > { %v485_v57 = vpop.f32.mrf.mxu0 }
 0x111   : > { %v603_v58 = vadd.f32 %v700_v53, %v595_v55  ;;  %v592_v59 = vpop.f32.mrf.mxu1 }
 0x112   : > { %v799_v60 = vpop.f32.mrf.mxu0 }
 0x113   : > { %v604_v61 = vmax.f32 %v603_v58, 0.0  ;;  %v819_v62 = vpop.f32.mrf.mxu1 }
 0x115   : > { %606 = vst.msk [vmem:[%s168_s10] sm:$0x3f] %vm605_vm1, %v604_v61 }
 0x116 PF: > { %s13_s12 = sadd.s32 1, %s868_s12  }
 0x117   : > { %p10_p4 = scmp.ge.s32.totalorder %s13_s12, 4  }
 0x119   :  { %12 = sbr.rel (!%p10_p4) target bundleno = 1 (0x1), region = 62 }

// kernel: _lambda_.30
= control target key start
LH: loop header
LB: loop body
LE: loop exit
PB: predicated region body
PF: predicated region fallthrough
CT: control target
= control target key end

     0   :  { %s995_s12 = smov 0   ;;  %s1129_s0 = inlined_call_operand.vmem [shape: f32[2,20,32], index: 0, kind: input, shape index: {}]   ;;  %s1130_s1 = inlined_call_operand.vmem [shape: bf16[288,16], index: 1, kind: input, shape index: {}]   ;;  %s1131_s2 = inlined_call_operand.vmem [shape: f32[1,16], index: 2, kind: input, shape index: {}]   ;;  %s1132_s3 = inlined_call_operand.vmem [shape: f32[2,8,16], index: 3, kind: output, shape index: {}]  }
   0x1 LB: > { %s800_s13 = sadd.s32 4294967295, %s971_s12   ;;  %p804_p0 = scmp.ge.s32.totalorder %s971_s12, 1  ;;  %s971_s12 = sphi %s995_s12, %s13_s12  }
   0x2   : > { %p137_p1 = scmp.lt.s32.totalorder %s971_s12, 3 }
   0x4   : > { %p138_p2 = pnand %p804_p0, %p137_p1 }
   0x5   : > { %p160_p3 = scmp.lt.s32.totalorder (!%p138_p2), %s800_s13, 1 }
   0x6   : > { %141 = sbr.rel (%p138_p2) target bundleno = 252 (0xfc), region = 32 }
   0xb   : > { %v947_v0 = vld [vmem:[%s1130_s1 + $0x18] sm:$0xff]   ;;  %v973_v1 = vmov 0.0   ;;  %v948_v2 = vld [vmem:[%s1130_s1 + $0x8] sm:$0xff]   ;;  %v949_v3 = vld [vmem:[%s1130_s1 + $0x10] sm:$0xff]   ;;  %vm974_vm0 = vmmov 0   ;;  %s1134_s13 = smov (!%p160_p3, %s800_s13), 1 }
   0xc   : > { %864 = vmatprep.subr.bf16.mxu0 %v973_v1  ;;  %872 = vmatprep.subr.bf16.mxu1 %v973_v1  ;;  %v950_v4 = vld [vmem:[%s1130_s1] sm:$0xff]   ;;  %s936_s22 = smul.u32 24, %s1134_s13  ;;  %v951_v7 = vld [vmem:[%s1130_s1 + $0x28] sm:$0xff]   ;;  %v952_v10 = vld [vmem:[%s1130_s1 + $0x38] sm:$0xff]   ;;  %vm196_vm1 = vcmask 261120   ;;  %s806_s4 = sshll.u32 %s1134_s13, 3 }
   0xd   : > { %865 = vmatpush3.bf16.msra.mxu0 %v947_v0  ;;  %868 = vmatprep.mubr.msk.bf16.mxu0 %vm974_vm0, %v973_v1  ;;  %v953_v15 = vld [vmem:[%s1130_s1 + $0x20] sm:$0xff]   ;;  %v954_v18 = vld [vmem:[%s1130_s1 + $0x30] sm:$0xff]   ;;  %v955_v21 = vld [vmem:[%s1130_s1 + $0x48] sm:$0xff]   ;;  %s168_s7 = scalar_lea.vmem %s1132_s3, %s806_s4  ;;  %vm745_vm2 = vcmask 130048  }
   0xe   : > { %873 = vmatpush3.bf16.msra.mxu1 %v948_v2  ;;  %866 = vmatprep.subr.bf16.mxu0 %v973_v1  ;;  %s1030_s25 = scalar_lea.vmem %s1129_s0, %s936_s22  ;;  %v956_v22 = vld [vmem:[%s1130_s1 + $0x58] sm:$0xff]   ;;  %v957_v27 = vld [vmem:[%s1130_s1 + $0x40] sm:$0xff]   ;;  %v958_v28 = vld [vmem:[%s1130_s1 + $0x50] sm:$0xff]  }
   0xf   : > { %874 = vmatprep.subr.bf16.mxu1 %v973_v1  ;;  %876 = vmatprep.mubr.msk.bf16.mxu1 %vm974_vm0, %v973_v1  ;;  %v177_v5 = vld [vmem:[%s1030_s25 + $0x1] sm:$0xff]  ;;  %v960_v32 = vld [vmem:[%s1130_s1 + $0x78] sm:$0xff]   ;;  %v610_v34 = vld [vmem:[%s1030_s25 + $0x9] sm:$0xff] }
  0x10   : > { %v170_v6 = vld [vmem:[%s1030_s25] sm:$0xff]  ;;  %v178_v8 = vmax.f32 %v177_v5, 0.0  ;;  %v959_v31 = vld [vmem:[%s1130_s1 + $0x68] sm:$0xff]   ;;  %v611_v36 = vmax.f32 %v610_v34, 0.0  ;;  %v962_v38 = vld [vmem:[%s1130_s1 + $0x70] sm:$0xff]  }
  0x11   : > { %867 = vmatpush3.bf16.msra.mxu0 %v949_v3  ;;  %v171_v9 = vmax.f32 %v170_v6, 0.0  ;;  %v295_v11 = vld [vmem:[%s1030_s25 + $0x2] sm:$0xff]  ;;  %v673_v42 = vld [vmem:[%s1030_s25 + $0xa] sm:$0xff] }
  0x12   : > { %875 = vmatpush3.bf16.msra.mxu1 %v950_v4  ;;  %880 = vmatprep.subr.bf16.mxu0 %v973_v1  ;;  %v358_v12 = vld [vmem:[%s1030_s25 + $0x4] sm:$0xff]  ;;  %v183_v13 = vpack.c.bf16 %v178_v8, %v178_v8  ;;  %v296_v16 = vmax.f32 %v295_v11, 0.0  ;;  %v616_v40 = vpack.c.bf16 %v611_v36, %v611_v36  ;;  %v674_v43 = vmax.f32 %v673_v42, 0.0 }
  0x13   : > { %888 = vmatprep.subr.bf16.mxu1 %v973_v1  ;;  %v176_v14 = vpack.c.bf16 %v171_v9, %v171_v9  ;;  %v359_v17 = vmax.f32 %v358_v12, 0.0  ;;  %v421_v23 = vld [vmem:[%s1030_s25 + $0x5] sm:$0xff] }
  0x14   : > { %869 = vmatmul.mubr.msk.bf16.vlgmr.msra.gmra.mxu0 %vm196_vm1, %v183_v13  ;;  %v301_v19 = vpack.c.bf16 %v296_v16, %v296_v16  ;;  %v484_v24 = vld [vmem:[%s1030_s25 + $0x6] sm:$0xff]  ;;  %v422_v25 = vmax.f32 %v421_v23, 0.0  ;;  %v679_v45 = vpack.c.bf16 %v674_v43, %v674_v43 }
  0x15   : > { %877 = vmatmul.mubr.msk.bf16.vlgmr.msra.gmra.mxu1 %vm196_vm1, %v176_v14  ;;  %881 = vmatpush3.bf16.msra.mxu0 %v951_v7  ;;  %v364_v20 = vpack.c.bf16 %v359_v17, %v359_v17  ;;  %v485_v26 = vmax.f32 %v484_v24, 0.0  ;;  %v547_v33 = vld [vmem:[%s1030_s25 + $0x8] sm:$0xff]  ;;  %v961_v37 = vld [vmem:[%s1130_s1 + $0x60] sm:$0xff]  }
  0x16   : > { %889 = vmatpush3.bf16.msra.mxu1 %v952_v10  ;;  %882 = vmatprep.subr.bf16.mxu0 %v973_v1  ;;  %v427_v29 = vpack.c.bf16 %v422_v25, %v422_v25  ;;  %v548_v35 = vmax.f32 %v547_v33, 0.0  ;;  %v963_v41 = vld [vmem:[%s1130_s1 + $0x88] sm:$0xff]   ;;  %v964_v44 = vld [vmem:[%s1130_s1 + $0x80] sm:$0xff]  }
  0x17   : > { %890 = vmatprep.subr.bf16.mxu1 %v973_v1  ;;  %884 = vmatprep.mubr.msk.bf16.mxu0 %vm974_vm0, %v973_v1  ;;  %v490_v30 = vpack.c.bf16 %v485_v26, %v485_v26 }
  0x18   : > { %892 = vmatprep.mubr.msk.bf16.mxu1 %vm974_vm0, %v973_v1  ;;  %v553_v39 = vpack.c.bf16 %v548_v35, %v548_v35 }
  0x19   : > { %883 = vmatpush3.bf16.msra.mxu0 %v953_v15 }
  0x1a   : > { %891 = vmatpush3.bf16.msra.mxu1 %v954_v18  ;;  %896 = vmatprep.subr.bf16.mxu0 %v973_v1 }
  0x1b   : > { %904 = vmatprep.subr.bf16.mxu1 %v973_v1 }
  0x1c   : > { %885 = vmatmul.mubr.msk.bf16.vlgmr.msra.gmra.mxu0 %vm196_vm1, %v301_v19 }
  0x1d   : > { %893 = vmatmul.mubr.msk.bf16.vlgmr.msra.gmra.mxu1 %vm196_vm1, %v364_v20  ;;  %897 = vmatpush3.bf16.msra.mxu0 %v955_v21 }
  0x1e   : > { %905 = vmatpush3.bf16.msra.mxu1 %v956_v22  ;;  %898 = vmatprep.subr.bf16.mxu0 %v973_v1  ;;  %v834_v22 = vld [vmem:[%s1131_s2] ss:$0 sm:$0xff] }
  0x1f   : > { %906 = vmatprep.subr.bf16.mxu1 %v973_v1  ;;  %900 = vmatprep.mubr.msk.bf16.mxu0 %vm974_vm0, %v973_v1 }
  0x20   : > { %908 = vmatprep.mubr.msk.bf16.mxu1 %vm974_vm0, %v973_v1 }
  0x21   : > { %899 = vmatpush3.bf16.msra.mxu0 %v957_v27 }
  0x22   : > { %907 = vmatpush3.bf16.msra.mxu1 %v958_v28  ;;  %912 = vmatprep.subr.bf16.mxu0 %v973_v1 }
  0x23   : > { %920 = vmatprep.subr.bf16.mxu1 %v973_v1 }
  0x24   : > { %901 = vmatmul.mubr.msk.bf16.vlgmr.msra.gmra.mxu0 %vm196_vm1, %v427_v29 }
  0x25   : > { %909 = vmatmul.mubr.msk.bf16.vlgmr.msra.gmra.mxu1 %vm196_vm1, %v490_v30  ;;  %913 = vmatpush3.bf16.msra.mxu0 %v959_v31 }
  0x26   : > { %921 = vmatpush3.bf16.msra.mxu1 %v960_v32  ;;  %914 = vmatprep.subr.bf16.mxu0 %v973_v1 }
  0x27   : > { %922 = vmatprep.subr.bf16.mxu1 %v973_v1  ;;  %916 = vmatprep.mubr.msk.bf16.mxu0 %vm974_vm0, %v973_v1 }
  0x28   : > { %924 = vmatprep.mubr.msk.bf16.mxu1 %vm974_vm0, %v973_v1 }
  0x29   : > { %915 = vmatpush3.bf16.msra.mxu0 %v961_v37 }
  0x2a   : > { %923 = vmatpush3.bf16.msra.mxu1 %v962_v38  ;;  %928 = vmatprep.subr.bf16.mxu0 %v973_v1 }
  0x2c   : > { %917 = vmatmul.mubr.msk.bf16.vlgmr.msra.gmra.mxu0 %vm196_vm1, %v553_v39 }
  0x2d   : > { %925 = vmatmul.mubr.msk.bf16.vlgmr.msra.gmra.mxu1 %vm196_vm1, %v616_v40  ;;  %929 = vmatpush3.bf16.msra.mxu0 %v963_v41 }
  0x2e   : > { %932 = vmatprep.mubr.msk.bf16.mxu0 %vm974_vm0, %v973_v1  ;;  %930 = vmatprep.subr.bf16.mxu0 %v973_v1 }
  0x31   : > { %931 = vmatpush3.bf16.msra.mxu0 %v964_v44 }
  0x34   : > { %933 = vmatmul.mubr.msk.bf16.vlgmr.msra.gmra.mxu0 %vm196_vm1, %v679_v45 }
  0xd4   : > { %v234_v46 = vpop.f32.mrf.mxu0 }
  0xd5   : > { %v289_v47 = vpop.f32.mrf.mxu1 }
  0xd6   : > { %v870_v48 = vpop.f32.mrf.mxu0  ;;  %v290_v60 = vadd.f32 %v289_v47, %v234_v46 }
  0xd7   : > { %v878_v49 = vpop.f32.mrf.mxu1 }
  0xd8   : > { %v237_v50 = vpop.f32.mrf.mxu0 }
  0xd9   : > { %v292_v51 = vpop.f32.mrf.mxu1 }
  0xda   : > { %v871_v52 = vpop.f32.mrf.mxu0 }
  0xdb   : > { %v879_v53 = vpop.f32.mrf.mxu1 }
  0xdc   : > { %v351_v54 = vpop.f32.mrf.mxu0 }
  0xdd   : > { %v414_v55 = vpop.f32.mrf.mxu1  ;;  %v357_v63 = vadd.f32 %v351_v54, %v290_v60 }
  0xde   : > { %v886_v56 = vpop.f32.mrf.mxu0 }
  0xdf   : > { %v894_v57 = vpop.f32.mrf.mxu1  ;;  %v420_v4 = vadd.f32 %v414_v55, %v357_v63 }
  0xe0   : > { %v354_v58 = vpop.f32.mrf.mxu0 }
  0xe1   : > { %v417_v59 = vpop.f32.mrf.mxu1 }
  0xe2   : > { %v887_v61 = vpop.f32.mrf.mxu0 }
  0xe3   : > { %v895_v62 = vpop.f32.mrf.mxu1 }
  0xe4   : > { %v477_v0 = vpop.f32.mrf.mxu0 }
  0xe5   : > { %v540_v1 = vpop.f32.mrf.mxu1  ;;  %v483_v7 = vadd.f32 %v477_v0, %v420_v4 }
  0xe6   : > { %v902_v2 = vpop.f32.mrf.mxu0 }
  0xe7   : > { %v910_v3 = vpop.f32.mrf.mxu1  ;;  %v546_v12 = vadd.f32 %v540_v1, %v483_v7 }
  0xe8   : > { %v480_v5 = vpop.f32.mrf.mxu0 }
  0xe9   : > { %v543_v6 = vpop.f32.mrf.mxu1 }
  0xea   : > { %v903_v8 = vpop.f32.mrf.mxu0 }
  0xeb   : > { %v911_v9 = vpop.f32.mrf.mxu1 }
  0xec   : > { %v603_v10 = vpop.f32.mrf.mxu0 }
  0xed   : > { %v666_v11 = vpop.f32.mrf.mxu1  ;;  %v609_v15 = vadd.f32 %v603_v10, %v546_v12 }
  0xee   : > { %v918_v13 = vpop.f32.mrf.mxu0 }
  0xef   : > { %v926_v14 = vpop.f32.mrf.mxu1  ;;  %v672_v20 = vadd.f32 %v666_v11, %v609_v15 }
  0xf0   : > { %v606_v16 = vpop.f32.mrf.mxu0 }
  0xf1   : > { %v669_v17 = vpop.f32.mrf.mxu1 }
  0xf2   : > { %v919_v18 = vpop.f32.mrf.mxu0 }
  0xf3   : > { %v927_v19 = vpop.f32.mrf.mxu1 }
  0xf4   : > { %v729_v21 = vpop.f32.mrf.mxu0 }
  0xf5   : > { %v735_v23 = vadd.f32 %v729_v21, %v672_v20 }
  0xf6   : > { %v934_v24 = vpop.f32.mrf.mxu0 }
  0xf7   : > { %v743_v25 = vadd.f32 %v834_v22, %v735_v23 }
  0xf8   : > { %v732_v26 = vpop.f32.mrf.mxu0 }
  0xf9   : > { %v744_v27 = vmax.f32 %v743_v25, 0.0 }
  0xfa   : > { %v935_v28 = vpop.f32.mrf.mxu0 }
  0xfb   : > { %746 = vst.msk [vmem:[%s168_s7] sm:$0xff] %vm745_vm2, %v744_v27 }
  0xfc PF: > { %s13_s12 = sadd.s32 1, %s971_s12  }
  0xfd   : > { %p10_p4 = scmp.ge.s32.totalorder %s13_s12, 4  }
  0xff   :  { %12 = sbr.rel (!%p10_p4) target bundleno = 1 (0x1), region = 62 }

// kernel: _lambda_.32
= control target key start
LH: loop header
LB: loop body
LE: loop exit
PB: predicated region body
PF: predicated region fallthrough
CT: control target
= control target key end

     0   :  { %s357_s12 = smov 0   ;;  %s383_s0 = inlined_call_operand.vmem [shape: f32[2,6,32], index: 0, kind: input, shape index: {}]   ;;  %s384_s1 = inlined_call_operand.vmem [shape: bf16[32,16], index: 1, kind: input, shape index: {}]   ;;  %s385_s2 = inlined_call_operand.vmem [shape: f32[1,16], index: 2, kind: input, shape index: {}]   ;;  %s386_s3 = inlined_call_operand.vmem [shape: f32[2,4,16], index: 3, kind: output, shape index: {}]  }
   0x1 LB: > { %s291_s13 = sadd.s32 4294967295, %s333_s12   ;;  %p295_p0 = scmp.ge.s32.totalorder %s333_s12, 1  ;;  %s333_s12 = sphi %s357_s12, %s13_s12  }
   0x2   : > { %p136_p1 = scmp.lt.s32.totalorder %s333_s12, 3 }
   0x4   : > { %p137_p2 = pnand %p295_p0, %p136_p1 }
   0x5   : > { %p158_p3 = scmp.lt.s32.totalorder (!%p137_p2), %s291_s13, 1 }
   0x6   : > { %140 = sbr.rel (%p137_p2) target bundleno = 219 (0xdb), region = 32 }
   0xb   : > { %v325_v0 = vld [vmem:[%s384_s1 + $0x8] sm:$0xff]   ;;  %v335_v1 = vmov 0.0   ;;  %v326_v2 = vld [vmem:[%s384_s1] sm:$0xff]   ;;  %vm336_vm0 = vmmov 0   ;;  %s388_s13 = smov (!%p158_p3, %s291_s13), 1  ;;  %vm192_vm1 = vcmask 261120  }
   0xc   : > { %307 = vmatprep.subr.bf16.mxu0 %v335_v1  ;;  %311 = vmatprep.mubr.msk.bf16.mxu0 %vm336_vm0, %v335_v1  ;;  %s296_s18 = sshll.u32 %s388_s13, 3  ;;  %s297_s22 = sshll.u32 %s388_s13, 2  ;;  %v298_v5 = vld [vmem:[%s385_s2] ss:$0 sm:$0xff]  ;;  %vm236_vm2 = vcmask 125952  }
   0xd   : > { %308 = vmatpush3.bf16.msra.mxu0 %v325_v0  ;;  %s161_s21 = scalar_lea.vmem %s383_s0, %s296_s18  ;;  %s165_s27 = scalar_lea.vmem %s386_s3, %s297_s22 }
   0xe   : > { %309 = vmatprep.subr.bf16.mxu0 %v335_v1  ;;  %v167_v3 = vld [vmem:[%s161_s21] sm:$0xf] }
   0xf   : > { %v172_v4 = vpack.c.bf16 %v167_v3, %v167_v3 }
  0x11   : > { %310 = vmatpush3.bf16.msra.mxu0 %v326_v2 }
  0x14   : > { %312 = vmatmul.mubr.msk.bf16.vlgmr.msra.gmra.mxu0 %vm192_vm1, %v172_v4 }
  0xd4   : > { %v230_v6 = vpop.f32.mrf.mxu0 }
  0xd5   : > { %v231_v7 = vadd.f32 %v298_v5, %v230_v6 }
  0xd6   : > { %v313_v8 = vpop.f32.mrf.mxu0 }
  0xd7   : > { %237 = vst.msk [vmem:[%s165_s27] sm:$0xf] %vm236_vm2, %v231_v7 }
  0xd8   : > { %v233_v9 = vpop.f32.mrf.mxu0 }
  0xda   : > { %v314_v10 = vpop.f32.mrf.mxu0 }
  0xdb PF: > { %s13_s12 = sadd.s32 1, %s333_s12  }
  0xdc   : > { %p10_p4 = scmp.ge.s32.totalorder %s13_s12, 4  }
  0xde   :  { %12 = sbr.rel (!%p10_p4) target bundleno = 1 (0x1), region = 62 }

// kernel: _lambda_.40
= control target key start
LH: loop header
LB: loop body
LE: loop exit
PB: predicated region body
PF: predicated region fallthrough
CT: control target
= control target key end

     0   :  { %s868_s12 = smov 0   ;;  %s966_s0 = inlined_call_operand.vmem [shape: f32[2,20,16], index: 0, kind: input, shape index: {}]   ;;  %s967_s1 = inlined_call_operand.vmem [shape: bf16[144,64], index: 1, kind: input, shape index: {}]   ;;  %s968_s2 = inlined_call_operand.vmem [shape: f32[1,64], index: 2, kind: input, shape index: {}]   ;;  %s969_s3 = inlined_call_operand.vmem [shape: f32[2,8,64], index: 3, kind: output, shape index: {}]  }
   0x1 LB: > { %s718_s13 = sadd.s32 4294967295, %s844_s12   ;;  %p722_p0 = scmp.ge.s32.totalorder %s844_s12, 1  ;;  %s844_s12 = sphi %s868_s12, %s13_s12  }
   0x2   : > { %p137_p1 = scmp.lt.s32.totalorder %s844_s12, 3 }
   0x4   : > { %p138_p2 = pnand %p722_p0, %p137_p1 }
   0x5   : > { %p160_p3 = scmp.lt.s32.totalorder (!%p138_p2), %s718_s13, 1 }
   0x6   : > { %141 = sbr.rel (%p138_p2) target bundleno = 249 (0xf9), region = 32 }
   0xb   : > { %v829_v0 = vld [vmem:[%s967_s1 + $0x8] sm:$0xff]   ;;  %v846_v1 = vmov 0.0   ;;  %v830_v2 = vld [vmem:[%s967_s1] sm:$0xff]   ;;  %vm847_vm0 = vmmov 0   ;;  %s971_s13 = smov (!%p160_p3, %s718_s13), 1  ;;  %v831_v3 = vld [vmem:[%s967_s1 + $0x10] sm:$0xff]  }
   0xc   : > { %764 = vmatprep.subr.bf16.mxu0 %v846_v1  ;;  %770 = vmatprep.subr.bf16.mxu1 %v846_v1  ;;  %s818_s18 = smul.u32 24, %s971_s13  ;;  %vm184_vm1 = vcmask 130048   ;;  %v832_v6 = vld [vmem:[%s967_s1 + $0x18] sm:$0xff]   ;;  %v833_v13 = vld [vmem:[%s967_s1 + $0x20] sm:$0xff]   ;;  %v834_v14 = vld [vmem:[%s967_s1 + $0x28] sm:$0xff]   ;;  %s724_s9 = sshll.u32 %s971_s13, 3 }
   0xd   : > { %765 = vmatpush3.bf16.msra.mxu0 %v829_v0  ;;  %766 = vmatprep.mubr.msk.bf16.mxu0 %vm847_vm0, %v846_v1  ;;  %v835_v19 = vld [vmem:[%s967_s1 + $0x30] sm:$0xff]   ;;  %v836_v20 = vld [vmem:[%s967_s1 + $0x38] sm:$0xff]   ;;  %v837_v25 = vld [vmem:[%s967_s1 + $0x40] sm:$0xff]   ;;  %s168_s16 = scalar_lea.vmem %s969_s3, %s724_s9  ;;  %vm663_vm2 = vcmask 523264  }
   0xe   : > { %771 = vmatpush3.bf16.msra.mxu1 %v830_v2  ;;  %772 = vmatprep.mubr.msk.bf16.mxu1 %vm847_vm0, %v846_v1  ;;  %s896_s21 = scalar_lea.vmem %s966_s0, %s818_s18 }
   0xf   : > { %776 = vmatprep.subr.bf16.mxu0 %v846_v1  ;;  %782 = vmatprep.subr.bf16.mxu1 %v846_v1  ;;  %v174_v4 = vld [vmem:[%s896_s21 + $0x1] sm:$0xff]  ;;  %v547_v22 = vld [vmem:[%s896_s21 + $0x9] sm:$0xff] }
  0x10   : > { %v170_v5 = vld [vmem:[%s896_s21] sm:$0xff]  ;;  %v177_v7 = vpack.c.bf16 %v174_v4, %v174_v4  ;;  %v493_v21 = vld [vmem:[%s896_s21 + $0x8] sm:$0xff]  ;;  %v550_v24 = vpack.c.bf16 %v547_v22, %v547_v22 }
  0x11   : > { %v173_v8 = vpack.c.bf16 %v170_v5, %v170_v5  ;;  %v277_v9 = vld [vmem:[%s896_s21 + $0x2] sm:$0xff]  ;;  %v496_v23 = vpack.c.bf16 %v493_v21, %v493_v21  ;;  %v601_v26 = vld [vmem:[%s896_s21 + $0xa] sm:$0xff]  ;;  %v743_v4 = vld [vmem:[%s968_s2] ss:$0 sm:$0xff] }
  0x12   : > { %767 = vmatmul.mubr.msk.bf16.vlgmr.msra.gmra.mxu0 %vm184_vm1, %v177_v7  ;;  %v331_v10 = vld [vmem:[%s896_s21 + $0x4] sm:$0xff]  ;;  %v280_v11 = vpack.c.bf16 %v277_v9, %v277_v9  ;;  %v604_v27 = vpack.c.bf16 %v601_v26, %v601_v26 }
  0x13   : > { %773 = vmatmul.mubr.msk.bf16.vlgmr.msra.gmra.mxu1 %vm184_vm1, %v173_v8  ;;  %777 = vmatpush3.bf16.msra.mxu0 %v831_v3  ;;  %v334_v12 = vpack.c.bf16 %v331_v10, %v331_v10  ;;  %v385_v15 = vld [vmem:[%s896_s21 + $0x5] sm:$0xff] }
  0x14   : > { %783 = vmatpush3.bf16.msra.mxu1 %v832_v6  ;;  %778 = vmatprep.mubr.msk.bf16.mxu0 %vm847_vm0, %v846_v1  ;;  %v439_v16 = vld [vmem:[%s896_s21 + $0x6] sm:$0xff]  ;;  %v388_v17 = vpack.c.bf16 %v385_v15, %v385_v15 }
  0x15   : > { %788 = vmatprep.subr.bf16.mxu0 %v846_v1  ;;  %784 = vmatprep.mubr.msk.bf16.mxu1 %vm847_vm0, %v846_v1  ;;  %v442_v18 = vpack.c.bf16 %v439_v16, %v439_v16 }
  0x16   : > { %794 = vmatprep.subr.bf16.mxu1 %v846_v1 }
  0x1a   : > { %779 = vmatmul.mubr.msk.bf16.vlgmr.msra.gmra.mxu0 %vm184_vm1, %v280_v11 }
  0x1b   : > { %785 = vmatmul.mubr.msk.bf16.vlgmr.msra.gmra.mxu1 %vm184_vm1, %v334_v12  ;;  %789 = vmatpush3.bf16.msra.mxu0 %v833_v13 }
  0x1c   : > { %795 = vmatpush3.bf16.msra.mxu1 %v834_v14  ;;  %790 = vmatprep.mubr.msk.bf16.mxu0 %vm847_vm0, %v846_v1 }
  0x1d   : > { %800 = vmatprep.subr.bf16.mxu0 %v846_v1  ;;  %796 = vmatprep.mubr.msk.bf16.mxu1 %vm847_vm0, %v846_v1 }
  0x1e   : > { %806 = vmatprep.subr.bf16.mxu1 %v846_v1 }
  0x22   : > { %791 = vmatmul.mubr.msk.bf16.vlgmr.msra.gmra.mxu0 %vm184_vm1, %v388_v17 }
  0x23   : > { %797 = vmatmul.mubr.msk.bf16.vlgmr.msra.gmra.mxu1 %vm184_vm1, %v442_v18  ;;  %801 = vmatpush3.bf16.msra.mxu0 %v835_v19 }
  0x24   : > { %807 = vmatpush3.bf16.msra.mxu1 %v836_v20  ;;  %802 = vmatprep.mubr.msk.bf16.mxu0 %vm847_vm0, %v846_v1 }
  0x25   : > { %812 = vmatprep.subr.bf16.mxu0 %v846_v1  ;;  %808 = vmatprep.mubr.msk.bf16.mxu1 %vm847_vm0, %v846_v1 }
  0x2a   : > { %803 = vmatmul.mubr.msk.bf16.vlgmr.msra.gmra.mxu0 %vm184_vm1, %v496_v23 }
  0x2b   : > { %809 = vmatmul.mubr.msk.bf16.vlgmr.msra.gmra.mxu1 %vm184_vm1, %v550_v24  ;;  %813 = vmatpush3.bf16.msra.mxu0 %v837_v25 }
  0x2c   : > { %814 = vmatprep.mubr.msk.bf16.mxu0 %vm847_vm0, %v846_v1 }
  0x32   : > { %815 = vmatmul.mubr.msk.bf16.vlgmr.msra.gmra.mxu0 %vm184_vm1, %v604_v27 }
  0xd2   : > { %v222_v28 = vpop.f32.mrf.mxu0 }
  0xd3   : > { %v271_v29 = vpop.f32.mrf.mxu1 }
  0xd4   : > { %v768_v30 = vpop.f32.mrf.mxu0  ;;  %v272_v42 = vadd.f32 %v271_v29, %v222_v28 }
  0xd5   : > { %v774_v31 = vpop.f32.mrf.mxu1 }
  0xd6   : > { %v225_v32 = vpop.f32.mrf.mxu0 }
  0xd7   : > { %v274_v33 = vpop.f32.mrf.mxu1 }
  0xd8   : > { %v769_v34 = vpop.f32.mrf.mxu0 }
  0xd9   : > { %v775_v35 = vpop.f32.mrf.mxu1 }
  0xda   : > { %v324_v36 = vpop.f32.mrf.mxu0 }
  0xdb   : > { %v378_v37 = vpop.f32.mrf.mxu1  ;;  %v330_v45 = vadd.f32 %v324_v36, %v272_v42 }
  0xdc   : > { %v780_v38 = vpop.f32.mrf.mxu0 }
  0xdd   : > { %v786_v39 = vpop.f32.mrf.mxu1  ;;  %v384_v50 = vadd.f32 %v378_v37, %v330_v45 }
  0xde   : > { %v327_v40 = vpop.f32.mrf.mxu0 }
  0xdf   : > { %v381_v41 = vpop.f32.mrf.mxu1 }
  0xe0   : > { %v781_v43 = vpop.f32.mrf.mxu0 }
  0xe1   : > { %v787_v44 = vpop.f32.mrf.mxu1 }
  0xe2   : > { %v432_v46 = vpop.f32.mrf.mxu0 }
  0xe3   : > { %v486_v47 = vpop.f32.mrf.mxu1  ;;  %v438_v53 = vadd.f32 %v432_v46, %v384_v50 }
  0xe4   : > { %v792_v48 = vpop.f32.mrf.mxu0 }
  0xe5   : > { %v798_v49 = vpop.f32.mrf.mxu1  ;;  %v492_v58 = vadd.f32 %v486_v47, %v438_v53 }
  0xe6   : > { %v435_v51 = vpop.f32.mrf.mxu0 }
  0xe7   : > { %v489_v52 = vpop.f32.mrf.mxu1 }
  0xe8   : > { %v793_v54 = vpop.f32.mrf.mxu0 }
  0xe9   : > { %v799_v55 = vpop.f32.mrf.mxu1 }
  0xea   : > { %v540_v56 = vpop.f32.mrf.mxu0 }
  0xeb   : > { %v594_v57 = vpop.f32.mrf.mxu1  ;;  %v546_v61 = vadd.f32 %v540_v56, %v492_v58 }
  0xec   : > { %v804_v59 = vpop.f32.mrf.mxu0 }
  0xed   : > { %v810_v60 = vpop.f32.mrf.mxu1  ;;  %v600_v2 = vadd.f32 %v594_v57, %v546_v61 }
  0xee   : > { %v543_v62 = vpop.f32.mrf.mxu0 }
  0xef   : > { %v597_v63 = vpop.f32.mrf.mxu1 }
  0xf0   : > { %v805_v0 = vpop.f32.mrf.mxu0 }
  0xf1   : > { %v811_v1 = vpop.f32.mrf.mxu1 }
  0xf2   : > { %v648_v3 = vpop.f32.mrf.mxu0 }
  0xf3   : > { %v654_v5 = vadd.f32 %v648_v3, %v600_v2 }
  0xf4   : > { %v816_v6 = vpop.f32.mrf.mxu0 }
  0xf5   : > { %v662_v7 = vadd.f32 %v743_v4, %v654_v5 }
  0xf6   : > { %v651_v8 = vpop.f32.mrf.mxu0 }
  0xf7   : > { %664 = vst.msk [vmem:[%s168_s16] sm:$0xff] %vm663_vm2, %v662_v7 }
  0xf8   : > { %v817_v9 = vpop.f32.mrf.mxu0 }
  0xf9 PF: > { %s13_s12 = sadd.s32 1, %s844_s12  }
  0xfa   : > { %p10_p4 = scmp.ge.s32.totalorder %s13_s12, 4  }
  0xfc   :  { %12 = sbr.rel (!%p10_p4) target bundleno = 1 (0x1), region = 62 }

// kernel: _lambda_.33
= control target key start
LH: loop header
LB: loop body
LE: loop exit
PB: predicated region body
PF: predicated region fallthrough
CT: control target
= control target key end

     0   :  { %v299_v0 = vmov 0.0   ;;  %vm300_vm0 = vmmov 0   ;;  %vm22_vm1 = vcmask 130048   ;;  %v107_v9 = vlaneseq  ;;  %s429_s1 = inlined_call_operand.vmem [shape: f32[16,128], index: 1, kind: input, shape index: {}]   ;;  %s430_s0 = inlined_call_operand.vmem [shape: f32[8,16], index: 0, kind: input, shape index: {}]   ;;  %s431_s3 = inlined_call_operand.vmem [shape: f32[1,128], index: 3, kind: input, shape index: {}]   ;;  %s432_s2 = inlined_call_operand.vmem [shape: f32[128,16], index: 2, kind: input, shape index: {}]   ;;  %s433_s4 = inlined_call_operand.vmem [shape: f32[8,16], index: 4, kind: output, shape index: {0}]   ;;  %s434_s5 = inlined_call_operand.vmem [shape: f32[8,1], index: 5, kind: output, shape index: {1}]  }
   0x1   :  { %254 = vmatprep.subr.mxu0 %v299_v0  ;;  %v21_v1 = vld [vmem:[%s429_s1 + $0x8] sm:$0xff]  ;;  %v20_v2 = vld [vmem:[%s429_s1] sm:$0xff]  ;;  %258 = vmatprep.mubr.msk.f32.mxu0 %vm300_vm0, %v299_v0  ;;  %v143_v15 = vld [vmem:[%s432_s2 + $0x78] sm:$0xff]  ;;  %v301_v40 = vmov 1.0   ;;  %vm220_vm5 = vcmask 7168  }
   0x2   :  { %255 = vmatpush3.msra.mxu0 %v21_v1  ;;  %v343_v3 = vld [vmem:[%s430_s0] sm:$0xff]  ;;  %261 = vmatprep.subr.mxu1 %v299_v0  ;;  %v353_v10 = vand.u32 127, %v107_v9  ;;  %v142_v16 = vld [vmem:[%s432_s2 + $0x70] sm:$0xff]  ;;  %v141_v17 = vld [vmem:[%s432_s2 + $0x68] sm:$0xff] }
   0x3   :  { %256 = vmatprep.subr.mxu0 %v299_v0  ;;  %293 = vmatprep.mubr.msk.f32.mxu1 %vm300_vm0, %v299_v0  ;;  %v231_v5 = vld [vmem:[%s431_s3] ss:$0 sm:$0xff]  ;;  %v139_v19 = vld [vmem:[%s432_s2 + $0x58] sm:$0xff]  ;;  %v138_v20 = vld [vmem:[%s432_s2 + $0x50] sm:$0xff] }
   0x4   :  { %257 = vmatpush3.msra.mxu0 %v20_v2  ;;  %262 = vmatpush3.msra.mxu1 %v143_v15  ;;  %v140_v18 = vld [vmem:[%s432_s2 + $0x60] sm:$0xff]  ;;  %v137_v21 = vld [vmem:[%s432_s2 + $0x48] sm:$0xff]  ;;  %v135_v23 = vld [vmem:[%s432_s2 + $0x38] sm:$0xff] }
   0x5   :  { %259 = vmatmul.mubr.msk.f32.vlgmr.msra.gmra.mxu0 %vm22_vm1, %v343_v3  ;;  %263 = vmatprep.subr.mxu1 %v299_v0  ;;  %v136_v22 = vld [vmem:[%s432_s2 + $0x40] sm:$0xff]  ;;  %v134_v24 = vld [vmem:[%s432_s2 + $0x30] sm:$0xff]  ;;  %v133_v25 = vld [vmem:[%s432_s2 + $0x28] sm:$0xff] }
   0x6   :  { %264 = vmatpush3.msra.mxu1 %v142_v16  ;;  %v132_v26 = vld [vmem:[%s432_s2 + $0x20] sm:$0xff]  ;;  %v131_v27 = vld [vmem:[%s432_s2 + $0x18] sm:$0xff]  ;;  %v130_v32 = vld [vmem:[%s432_s2 + $0x10] sm:$0xff] }
   0x7   :  { %265 = vmatprep.subr.mxu1 %v299_v0  ;;  %v129_v33 = vld [vmem:[%s432_s2 + $0x8] sm:$0xff]  ;;  %v128_v34 = vld [vmem:[%s432_s2] sm:$0xff] }
   0x8   :  { %266 = vmatpush3.msra.mxu1 %v141_v17 }
   0x9   :  { %267 = vmatprep.subr.mxu1 %v299_v0 }
   0xa   :  { %268 = vmatpush3.msra.mxu1 %v140_v18 }
   0xb   :  { %269 = vmatprep.subr.mxu1 %v299_v0 }
   0xc   :  { %270 = vmatpush3.msra.mxu1 %v139_v19 }
   0xd   :  { %271 = vmatprep.subr.mxu1 %v299_v0 }
   0xe   :  { %272 = vmatpush3.msra.mxu1 %v138_v20 }
   0xf   :  { %273 = vmatprep.subr.mxu1 %v299_v0 }
  0x10   :  { %274 = vmatpush3.msra.mxu1 %v137_v21 }
  0x11   :  { %275 = vmatprep.subr.mxu1 %v299_v0 }
  0x12   :  { %276 = vmatpush3.msra.mxu1 %v136_v22 }
  0x13   :  { %277 = vmatprep.subr.mxu1 %v299_v0 }
  0x14   :  { %278 = vmatpush3.msra.mxu1 %v135_v23 }
  0x15   :  { %279 = vmatprep.subr.mxu1 %v299_v0 }
  0x16   :  { %280 = vmatpush3.msra.mxu1 %v134_v24 }
  0x17   :  { %281 = vmatprep.subr.mxu1 %v299_v0 }
  0x18   :  { %282 = vmatpush3.msra.mxu1 %v133_v25 }
  0x19   :  { %283 = vmatprep.subr.mxu1 %v299_v0 }
  0x1a   :  { %284 = vmatpush3.msra.mxu1 %v132_v26 }
  0x1b   :  { %285 = vmatprep.subr.mxu1 %v299_v0 }
  0x1c   :  { %286 = vmatpush3.msra.mxu1 %v131_v27 }
  0x1d   :  { %287 = vmatprep.subr.mxu1 %v299_v0 }
  0x1e   :  { %288 = vmatpush3.msra.mxu1 %v130_v32 }
  0x1f   :  { %289 = vmatprep.subr.mxu1 %v299_v0 }
  0x20   :  { %290 = vmatpush3.msra.mxu1 %v129_v33 }
  0x21   :  { %291 = vmatprep.subr.mxu1 %v299_v0 }
  0x22   :  { %292 = vmatpush3.msra.mxu1 %v128_v34 }
  0xc5   :  { %v92_v4 = vpop.f32.mrf.mxu0 }
  0xc6   :  { %v96_v6 = vmul.f32 2.0, %v92_v4 }
  0xc7   :  { %v260_v7 = vpop.f32.mrf.mxu0 }
  0xc8   :  { %v104_v8 = vsub.f32 %v96_v6, %v231_v5 }
  0xca   :  { %105 = vmax.xlane.f32.xlu0 %v104_v8 }
 0x153   :  { %v106_v11 = vpop.xlane.xlu0 %105 }
 0x154   :  { %vm109_vm2 = vcmp.eq.f32.partialorder %v104_v8, %v106_v11 }
 0x155   :  { %v110_v12 = vsel %vm109_vm2, %v353_v10, 128 }
 0x156   :  { %v112_v13 = vshra.s32 %v110_v12, 16  ;;  %v111_v28 = vand.u32 65535, %v110_v12 }
 0x158   :  { %v114_v14 = vcvt.s32.f32 %v112_v13  ;;  %v113_v30 = vcvt.s32.f32 %v111_v28 }
 0x15a   :  { %115 = vmin.xlane.f32.xlu0 %v114_v14 }
 0x1e3   :  { %v116_v29 = vpop.xlane.xlu0 %115 }
 0x1e4   :  { %vm117_vm3 = vcmp.eq.f32.partialorder %v114_v14, %v116_v29  ;;  %v122_v35 = vcvt.f32.s32 %v116_v29 }
 0x1e5   :  { %v118_v31 = vsel %vm117_vm3, %v113_v30, inf }
 0x1e6   :  { %119 = vmin.xlane.f32.xlu1 %v118_v31  ;;  %v123_v37 = vshll.u32 %v122_v35, 16 }
 0x26f   :  { %v120_v36 = vpop.xlane.xlu1 %119 }
 0x270   :  { %v121_v38 = vcvt.f32.s32 %v120_v36 }
 0x272   :  { %v124_v39 = vadd.s32 %v123_v37, %v121_v38 }
 0x274   :  { %vm125_vm4 = vcmp.eq.s32.totalorder %v353_v10, %v124_v39 }
 0x275   :  { %294 = vmatmul.mubr.msk.f32.vlgmr.msra.gmra.mxu1 %vm125_vm4, %v301_v40 }
 0x335   :  { %v210_v41 = vpop.f32.mrf.mxu1 }
 0x336   :  { %214 = vst.msk [vmem:[%s433_s4] sm:$0xff] %vm22_vm1, %v210_v41  ;;  %v215_v42 = vsub.f32 %v210_v41, %v343_v3 }
 0x337   :  { %v295_v43 = vpop.f32.mrf.mxu1 }
 0x338   :  { %v216_v44 = vmul.f32 %v215_v42, %v215_v42 }
 0x33a   :  { %v217_v45 = vsel %vm22_vm1, %v216_v44, 0.0 }
 0x33b   :  { %218 = vadd.xlane.f32.xlu1 %v217_v45 }
 0x3c4   :  { %v219_v46 = vpop.xlane.xlu1 %218 }
 0x3c5   :  { %221 = vst.msk [vmem:[%s434_s5] sm:$0xff] %vm220_vm5, %v219_v46 }

// kernel: _lambda_.37
= control target key start
LH: loop header
LB: loop body
LE: loop exit
PB: predicated region body
PF: predicated region fallthrough
CT: control target
= control target key end

     0   :  { %s985_s12 = smov 0   ;;  %s1119_s0 = inlined_call_operand.vmem [shape: f32[2,20,32], index: 0, kind: input, shape index: {}]   ;;  %s1120_s1 = inlined_call_operand.vmem [shape: bf16[288,64], index: 1, kind: input, shape index: {}]   ;;  %s1121_s2 = inlined_call_operand.vmem [shape: f32[1,64], index: 2, kind: input, shape index: {}]   ;;  %s1122_s3 = inlined_call_operand.vmem [shape: f32[2,8,64], index: 3, kind: output, shape index: {}]  }
   0x1 LB: > { %s790_s13 = sadd.s32 4294967295, %s961_s12   ;;  %p794_p0 = scmp.ge.s32.totalorder %s961_s12, 1  ;;  %s961_s12 = sphi %s985_s12, %s13_s12  }
   0x2   : > { %p137_p1 = scmp.lt.s32.totalorder %s961_s12, 3 }
   0x4   : > { %p138_p2 = pnand %p794_p0, %p137_p1 }
   0x5   : > { %p160_p3 = scmp.lt.s32.totalorder (!%p138_p2), %s790_s13, 1 }
   0x6   : > { %141 = sbr.rel (%p138_p2) target bundleno = 251 (0xfb), region = 32 }
   0xb   : > { %v937_v0 = vld [vmem:[%s1120_s1 + $0x18] sm:$0xff]   ;;  %v963_v1 = vmov 0.0   ;;  %v938_v2 = vld [vmem:[%s1120_s1 + $0x8] sm:$0xff]   ;;  %v939_v3 = vld [vmem:[%s1120_s1 + $0x10] sm:$0xff]   ;;  %vm964_vm0 = vmmov 0   ;;  %s1124_s13 = smov (!%p160_p3, %s790_s13), 1 }
   0xc   : > { %854 = vmatprep.subr.bf16.mxu0 %v963_v1  ;;  %862 = vmatprep.subr.bf16.mxu1 %v963_v1  ;;  %v940_v4 = vld [vmem:[%s1120_s1] sm:$0xff]   ;;  %s926_s22 = smul.u32 24, %s1124_s13  ;;  %v941_v5 = vld [vmem:[%s1120_s1 + $0x28] sm:$0xff]   ;;  %vm194_vm1 = vcmask 261120   ;;  %v942_v8 = vld [vmem:[%s1120_s1 + $0x38] sm:$0xff]   ;;  %vm735_vm2 = vcmask 523264  }
   0xd   : > { %855 = vmatpush3.bf16.msra.mxu0 %v937_v0  ;;  %858 = vmatprep.mubr.msk.bf16.mxu0 %vm964_vm0, %v963_v1  ;;  %v943_v11 = vld [vmem:[%s1120_s1 + $0x20] sm:$0xff]   ;;  %v944_v12 = vld [vmem:[%s1120_s1 + $0x30] sm:$0xff]   ;;  %v945_v16 = vld [vmem:[%s1120_s1 + $0x48] sm:$0xff]  }
   0xe   : > { %863 = vmatpush3.bf16.msra.mxu1 %v938_v2  ;;  %856 = vmatprep.subr.bf16.mxu0 %v963_v1  ;;  %s1020_s25 = scalar_lea.vmem %s1119_s0, %s926_s22  ;;  %v946_v18 = vld [vmem:[%s1120_s1 + $0x58] sm:$0xff]   ;;  %v947_v19 = vld [vmem:[%s1120_s1 + $0x40] sm:$0xff]   ;;  %v948_v20 = vld [vmem:[%s1120_s1 + $0x50] sm:$0xff]  }
   0xf   : > { %864 = vmatprep.subr.bf16.mxu1 %v963_v1  ;;  %866 = vmatprep.mubr.msk.bf16.mxu1 %vm964_vm0, %v963_v1  ;;  %v176_v6 = vld [vmem:[%s1020_s25 + $0x1] sm:$0xff]  ;;  %v950_v26 = vld [vmem:[%s1120_s1 + $0x78] sm:$0xff]   ;;  %v952_v28 = vld [vmem:[%s1120_s1 + $0x70] sm:$0xff]  }
  0x10   : > { %v170_v7 = vld [vmem:[%s1020_s25] sm:$0xff]  ;;  %v181_v9 = vpack.c.bf16 %v176_v6, %v176_v6  ;;  %v949_v25 = vld [vmem:[%s1120_s1 + $0x68] sm:$0xff]  }
  0x11   : > { %857 = vmatpush3.bf16.msra.mxu0 %v939_v3  ;;  %v175_v10 = vpack.c.bf16 %v170_v7, %v170_v7  ;;  %v293_v13 = vld [vmem:[%s1020_s25 + $0x2] sm:$0xff]  ;;  %v665_v35 = vld [vmem:[%s1020_s25 + $0xa] sm:$0xff] }
  0x12   : > { %865 = vmatpush3.bf16.msra.mxu1 %v940_v4  ;;  %870 = vmatprep.subr.bf16.mxu0 %v963_v1  ;;  %v355_v14 = vld [vmem:[%s1020_s25 + $0x4] sm:$0xff]  ;;  %v298_v15 = vpack.c.bf16 %v293_v13, %v293_v13  ;;  %v670_v36 = vpack.c.bf16 %v665_v35, %v665_v35  ;;  %v824_v13 = vld [vmem:[%s1121_s2] ss:$0 sm:$0xff] }
  0x13   : > { %878 = vmatprep.subr.bf16.mxu1 %v963_v1  ;;  %v360_v17 = vpack.c.bf16 %v355_v14, %v355_v14  ;;  %v417_v21 = vld [vmem:[%s1020_s25 + $0x5] sm:$0xff] }
  0x14   : > { %859 = vmatmul.mubr.msk.bf16.vlgmr.msra.gmra.mxu0 %vm194_vm1, %v181_v9  ;;  %v479_v22 = vld [vmem:[%s1020_s25 + $0x6] sm:$0xff]  ;;  %v422_v23 = vpack.c.bf16 %v417_v21, %v417_v21 }
  0x15   : > { %867 = vmatmul.mubr.msk.bf16.vlgmr.msra.gmra.mxu1 %vm194_vm1, %v175_v10  ;;  %871 = vmatpush3.bf16.msra.mxu0 %v941_v5  ;;  %v484_v24 = vpack.c.bf16 %v479_v22, %v479_v22  ;;  %v951_v27 = vld [vmem:[%s1120_s1 + $0x60] sm:$0xff]   ;;  %v541_v29 = vld [vmem:[%s1020_s25 + $0x8] sm:$0xff] }
  0x16   : > { %879 = vmatpush3.bf16.msra.mxu1 %v942_v8  ;;  %872 = vmatprep.subr.bf16.mxu0 %v963_v1  ;;  %v603_v30 = vld [vmem:[%s1020_s25 + $0x9] sm:$0xff]  ;;  %v546_v31 = vpack.c.bf16 %v541_v29, %v541_v29  ;;  %v954_v34 = vld [vmem:[%s1120_s1 + $0x80] sm:$0xff]   ;;  %s796_s25 = sshll.u32 %s1124_s13, 3 }
  0x17   : > { %880 = vmatprep.subr.bf16.mxu1 %v963_v1  ;;  %874 = vmatprep.mubr.msk.bf16.mxu0 %vm964_vm0, %v963_v1  ;;  %v608_v32 = vpack.c.bf16 %v603_v30, %v603_v30  ;;  %v953_v33 = vld [vmem:[%s1120_s1 + $0x88] sm:$0xff]   ;;  %s168_s7 = scalar_lea.vmem %s1122_s3, %s796_s25 }
  0x18   : > { %882 = vmatprep.mubr.msk.bf16.mxu1 %vm964_vm0, %v963_v1 }
  0x19   : > { %873 = vmatpush3.bf16.msra.mxu0 %v943_v11 }
  0x1a   : > { %881 = vmatpush3.bf16.msra.mxu1 %v944_v12  ;;  %886 = vmatprep.subr.bf16.mxu0 %v963_v1 }
  0x1b   : > { %894 = vmatprep.subr.bf16.mxu1 %v963_v1 }
  0x1c   : > { %875 = vmatmul.mubr.msk.bf16.vlgmr.msra.gmra.mxu0 %vm194_vm1, %v298_v15 }
  0x1d   : > { %883 = vmatmul.mubr.msk.bf16.vlgmr.msra.gmra.mxu1 %vm194_vm1, %v360_v17  ;;  %887 = vmatpush3.bf16.msra.mxu0 %v945_v16 }
  0x1e   : > { %895 = vmatpush3.bf16.msra.mxu1 %v946_v18  ;;  %888 = vmatprep.subr.bf16.mxu0 %v963_v1 }
  0x1f   : > { %896 = vmatprep.subr.bf16.mxu1 %v963_v1  ;;  %890 = vmatprep.mubr.msk.bf16.mxu0 %vm964_vm0, %v963_v1 }
  0x20   : > { %898 = vmatprep.mubr.msk.bf16.mxu1 %vm964_vm0, %v963_v1 }
  0x21   : > { %889 = vmatpush3.bf16.msra.mxu0 %v947_v19 }
  0x22   : > { %897 = vmatpush3.bf16.msra.mxu1 %v948_v20  ;;  %902 = vmatprep.subr.bf16.mxu0 %v963_v1 }
  0x23   : > { %910 = vmatprep.subr.bf16.mxu1 %v963_v1 }
  0x24   : > { %891 = vmatmul.mubr.msk.bf16.vlgmr.msra.gmra.mxu0 %vm194_vm1, %v422_v23 }
  0x25   : > { %899 = vmatmul.mubr.msk.bf16.vlgmr.msra.gmra.mxu1 %vm194_vm1, %v484_v24  ;;  %903 = vmatpush3.bf16.msra.mxu0 %v949_v25 }
  0x26   : > { %911 = vmatpush3.bf16.msra.mxu1 %v950_v26  ;;  %904 = vmatprep.subr.bf16.mxu0 %v963_v1 }
  0x27   : > { %912 = vmatprep.subr.bf16.mxu1 %v963_v1  ;;  %906 = vmatprep.mubr.msk.bf16.mxu0 %vm964_vm0, %v963_v1 }
  0x28   : > { %914 = vmatprep.mubr.msk.bf16.mxu1 %vm964_vm0, %v963_v1 }
  0x29   : > { %905 = vmatpush3.bf16.msra.mxu0 %v951_v27 }
  0x2a   : > { %913 = vmatpush3.bf16.msra.mxu1 %v952_v28  ;;  %918 = vmatprep.subr.bf16.mxu0 %v963_v1 }
  0x2c   : > { %907 = vmatmul.mubr.msk.bf16.vlgmr.msra.gmra.mxu0 %vm194_vm1, %v546_v31 }
  0x2d   : > { %915 = vmatmul.mubr.msk.bf16.vlgmr.msra.gmra.mxu1 %vm194_vm1, %v608_v32  ;;  %919 = vmatpush3.bf16.msra.mxu0 %v953_v33 }
  0x2e   : > { %922 = vmatprep.mubr.msk.bf16.mxu0 %vm964_vm0, %v963_v1  ;;  %920 = vmatprep.subr.bf16.mxu0 %v963_v1 }
  0x31   : > { %921 = vmatpush3.bf16.msra.mxu0 %v954_v34 }
  0x34   : > { %923 = vmatmul.mubr.msk.bf16.vlgmr.msra.gmra.mxu0 %vm194_vm1, %v670_v36 }
  0xd4   : > { %v232_v37 = vpop.f32.mrf.mxu0 }
  0xd5   : > { %v287_v38 = vpop.f32.mrf.mxu1 }
  0xd6   : > { %v860_v39 = vpop.f32.mrf.mxu0  ;;  %v288_v51 = vadd.f32 %v287_v38, %v232_v37 }
  0xd7   : > { %v868_v40 = vpop.f32.mrf.mxu1 }
  0xd8   : > { %v235_v41 = vpop.f32.mrf.mxu0 }
  0xd9   : > { %v290_v42 = vpop.f32.mrf.mxu1 }
  0xda   : > { %v861_v43 = vpop.f32.mrf.mxu0 }
  0xdb   : > { %v869_v44 = vpop.f32.mrf.mxu1 }
  0xdc   : > { %v348_v45 = vpop.f32.mrf.mxu0 }
  0xdd   : > { %v410_v46 = vpop.f32.mrf.mxu1  ;;  %v354_v54 = vadd.f32 %v348_v45, %v288_v51 }
  0xde   : > { %v876_v47 = vpop.f32.mrf.mxu0 }
  0xdf   : > { %v884_v48 = vpop.f32.mrf.mxu1  ;;  %v416_v59 = vadd.f32 %v410_v46, %v354_v54 }
  0xe0   : > { %v351_v49 = vpop.f32.mrf.mxu0 }
  0xe1   : > { %v413_v50 = vpop.f32.mrf.mxu1 }
  0xe2   : > { %v877_v52 = vpop.f32.mrf.mxu0 }
  0xe3   : > { %v885_v53 = vpop.f32.mrf.mxu1 }
  0xe4   : > { %v472_v55 = vpop.f32.mrf.mxu0 }
  0xe5   : > { %v534_v56 = vpop.f32.mrf.mxu1  ;;  %v478_v62 = vadd.f32 %v472_v55, %v416_v59 }
  0xe6   : > { %v892_v57 = vpop.f32.mrf.mxu0 }
  0xe7   : > { %v900_v58 = vpop.f32.mrf.mxu1  ;;  %v540_v3 = vadd.f32 %v534_v56, %v478_v62 }
  0xe8   : > { %v475_v60 = vpop.f32.mrf.mxu0 }
  0xe9   : > { %v537_v61 = vpop.f32.mrf.mxu1 }
  0xea   : > { %v893_v63 = vpop.f32.mrf.mxu0 }
  0xeb   : > { %v901_v0 = vpop.f32.mrf.mxu1 }
  0xec   : > { %v596_v1 = vpop.f32.mrf.mxu0 }
  0xed   : > { %v658_v2 = vpop.f32.mrf.mxu1  ;;  %v602_v6 = vadd.f32 %v596_v1, %v540_v3 }
  0xee   : > { %v908_v4 = vpop.f32.mrf.mxu0 }
  0xef   : > { %v916_v5 = vpop.f32.mrf.mxu1  ;;  %v664_v11 = vadd.f32 %v658_v2, %v602_v6 }
  0xf0   : > { %v599_v7 = vpop.f32.mrf.mxu0 }
  0xf1   : > { %v661_v8 = vpop.f32.mrf.mxu1 }
  0xf2   : > { %v909_v9 = vpop.f32.mrf.mxu0 }
  0xf3   : > { %v917_v10 = vpop.f32.mrf.mxu1 }
  0xf4   : > { %v720_v12 = vpop.f32.mrf.mxu0 }
  0xf5   : > { %v726_v14 = vadd.f32 %v720_v12, %v664_v11 }
  0xf6   : > { %v924_v15 = vpop.f32.mrf.mxu0 }
  0xf7   : > { %v734_v16 = vadd.f32 %v824_v13, %v726_v14 }
  0xf8   : > { %v723_v17 = vpop.f32.mrf.mxu0 }
  0xf9   : > { %736 = vst.msk [vmem:[%s168_s7] sm:$0xff] %vm735_vm2, %v734_v16 }
  0xfa   : > { %v925_v18 = vpop.f32.mrf.mxu0 }
  0xfb PF: > { %s13_s12 = sadd.s32 1, %s961_s12  }
  0xfc   : > { %p10_p4 = scmp.ge.s32.totalorder %s13_s12, 4  }
  0xfe   :  { %12 = sbr.rel (!%p10_p4) target bundleno = 1 (0x1), region = 62 }

// kernel: _lambda_.38
= control target key start
LH: loop header
LB: loop body
LE: loop exit
PB: predicated region body
PF: predicated region fallthrough
CT: control target
= control target key end

     0   :  { %s383_s12 = smov 0   ;;  %s412_s0 = inlined_call_operand.vmem [shape: f32[2,20,48], index: 0, kind: input, shape index: {}]   ;;  %s413_s1 = inlined_call_operand.vmem [shape: bf16[48,16], index: 1, kind: input, shape index: {}]   ;;  %s414_s2 = inlined_call_operand.vmem [shape: f32[1,16], index: 2, kind: input, shape index: {}]   ;;  %s415_s3 = inlined_call_operand.vmem [shape: f32[2,16,16], index: 3, kind: output, shape index: {}]  }
   0x1 LB: > { %s309_s13 = sadd.s32 4294967295, %s359_s12   ;;  %p313_p0 = scmp.ge.s32.totalorder %s359_s12, 1  ;;  %s359_s12 = sphi %s383_s12, %s13_s12  }
   0x2   : > { %p137_p1 = scmp.lt.s32.totalorder %s359_s12, 3 }
   0x4   : > { %p138_p2 = pnand %p313_p0, %p137_p1 }
   0x5   : > { %p161_p3 = scmp.lt.s32.totalorder (!%p138_p2), %s309_s13, 1 }
   0x6   : > { %141 = sbr.rel (%p138_p2) target bundleno = 224 (0xe0), region = 32 }
   0xb   : > { %v350_v0 = vld [vmem:[%s413_s1 + $0x10] sm:$0xff]   ;;  %v361_v1 = vmov 0.0   ;;  %v351_v2 = vld [vmem:[%s413_s1 + $0x8] sm:$0xff]   ;;  %vm362_vm0 = vmmov 0   ;;  %s417_s13 = smov (!%p161_p3, %s309_s13), 1  ;;  %v352_v3 = vld [vmem:[%s413_s1] sm:$0xff]  }
   0xc   : > { %329 = vmatprep.subr.bf16.mxu0 %v361_v1  ;;  %335 = vmatprep.mubr.msk.bf16.mxu0 %vm362_vm0, %v361_v1  ;;  %s339_s20 = smul.u32 24, %s417_s13  ;;  %vm206_vm1 = vcmask 392192   ;;  %s324_s24 = sshll.u32 %s417_s13, 4  ;;  %v317_v7 = vld [vmem:[%s414_s2] ss:$0 sm:$0xff]  ;;  %vm251_vm2 = vcmask 130048  }
   0xd   : > { %330 = vmatpush3.bf16.msra.mxu0 %v350_v0  ;;  %s170_s29 = scalar_lea.vmem %s415_s3, %s324_s24 }
   0xe   : > { %331 = vmatprep.subr.bf16.mxu0 %v361_v1  ;;  %s165_s23 = scalar_lea.vmem %s412_s0, %s339_s20 }
   0xf   : > { %v172_v4 = vld [vmem:[%s165_s23] sm:$0xff]  ;;  %v173_v5 = vld [vmem:[%s165_s23 + $0x8] sm:$0xff] }
  0x10   : > { %v180_v6 = vpack.c.bf16 %v173_v5, %v172_v4 }
  0x11   : > { %332 = vmatpush3.bf16.msra.mxu0 %v351_v2 }
  0x12   : > { %333 = vmatprep.subr.bf16.mxu0 %v361_v1 }
  0x15   : > { %334 = vmatpush3.bf16.msra.mxu0 %v352_v3 }
  0x18   : > { %336 = vmatmul.mubr.msk.bf16.vlgmr.msra.gmra.mxu0 %vm206_vm1, %v180_v6 }
  0xd8   : > { %v244_v8 = vpop.f32.mrf.mxu0 }
  0xd9   : > { %v245_v9 = vadd.f32 %v317_v7, %v244_v8 }
  0xda   : > { %v337_v10 = vpop.f32.mrf.mxu0 }
  0xdb   : > { %252 = vst.msk [vmem:[%s170_s29] sm:$0xff] %vm251_vm2, %v245_v9 }
  0xdc   : > { %v247_v11 = vpop.f32.mrf.mxu0 }
  0xdd   : > { %v248_v12 = vadd.f32 %v317_v7, %v247_v11 }
  0xde   : > { %v338_v13 = vpop.f32.mrf.mxu0 }
  0xdf   : > { %253 = vst.msk [vmem:[%s170_s29 + $0x8] sm:$0xff] %vm251_vm2, %v248_v12 }
  0xe0 PF: > { %s13_s12 = sadd.s32 1, %s359_s12  }
  0xe1   : > { %p10_p4 = scmp.ge.s32.totalorder %s13_s12, 4  }
  0xe3   :  { %12 = sbr.rel (!%p10_p4) target bundleno = 1 (0x1), region = 62 }

// kernel: _lambda_.39
= control target key start
LH: loop header
LB: loop body
LE: loop exit
PB: predicated region body
PF: predicated region fallthrough
CT: control target
= control target key end

     0   :  { %s711_s18 = smov 0   ;;  %s813_s0 = inlined_call_operand.vmem [shape: f32[32,16], index: 0, kind: input, shape index: {}]   ;;  %s814_s1 = inlined_call_operand.vmem [shape: f32[16,128], index: 1, kind: input, shape index: {}]   ;;  %s815_s2 = inlined_call_operand.vmem [shape: f32[128,16], index: 2, kind: input, shape index: {}]   ;;  %s816_s3 = inlined_call_operand.vmem [shape: f32[1,128], index: 3, kind: input, shape index: {}]   ;;  %s817_s4 = inlined_call_operand.vmem [shape: f32[32,16], index: 4, kind: output, shape index: {0}]   ;;  %s818_s5 = inlined_call_operand.vmem [shape: f32[32,1], index: 5, kind: output, shape index: {1}]  }
   0x1 LB: > { %s579_s19 = sadd.s32 4294967295, %s678_s18   ;;  %p583_p0 = scmp.ge.s32.totalorder %s678_s18, 1  ;;  %s678_s18 = sphi %s711_s18, %s16_s18  }
   0x2   : > { %p191_p1 = scmp.lt.s32.totalorder %s678_s18, 3 }
   0x4   : > { %p192_p2 = pnand %p583_p0, %p191_p1 }
   0x5   : > { %s584_s24 = sshll.u32 (!%p192_p2), %s579_s19, 1 }
   0x6   : > { %195 = sbr.rel (%p192_p2) target bundleno = 985 (0x3d9), region = 36  ;;  %p225_p3 = scmp.lt.s32.totalorder (!%p192_p2), %s584_s24, 3 }
   0xb   : > { %v245_v0 = vld [vmem:[%s814_s1 + $0x8] sm:$0xff]  ;;  %v244_v1 = vld [vmem:[%s814_s1] sm:$0xff]  ;;  %s820_s24 = smov (!%p225_p3, %s584_s24), 3  ;;  %vm246_vm0 = vcmask 130048   ;;  %v343_v11 = vlaneseq  ;;  %v398_v21 = vld [vmem:[%s815_s2 + $0x78] sm:$0xff]  ;;  %v680_v54 = vmov 1.0  }
   0xc   : > { %621 = vmatprep.subr.mxu0 %v245_v0  ;;  %s725_s25 = sshll.u32 %s820_s24, 3  ;;  %v592_v7 = vld [vmem:[%s816_s3] ss:$0 sm:$0xff]  ;;  %v397_v22 = vld [vmem:[%s815_s2 + $0x70] sm:$0xff]  ;;  %628 = vmatprep.subr.mxu1 %v398_v21  ;;  %v396_v23 = vld [vmem:[%s815_s2 + $0x68] sm:$0xff]  ;;  %vm486_vm7 = vcmask 7168  }
   0xd   : > { %622 = vmatpush3.msra.mxu0 %v245_v0  ;;  %s228_s28 = scalar_lea.vmem %s813_s0, %s725_s25  ;;  %v742_v12 = vand.u32 127, %v343_v11  ;;  %629 = vmatpush3.msra.mxu1 %v398_v21  ;;  %v395_v24 = vld [vmem:[%s815_s2 + $0x60] sm:$0xff]  ;;  %v394_v25 = vld [vmem:[%s815_s2 + $0x58] sm:$0xff]  ;;  %v393_v26 = vld [vmem:[%s815_s2 + $0x50] sm:$0xff]  ;;  %s234_s17 = scalar_lea.vmem %s817_s4, %s725_s25 }
   0xe   : > { %623 = vmatprep.subr.mxu0 %v244_v1  ;;  %v731_v2 = vld [vmem:[%s228_s28] sm:$0xff]  ;;  %v733_v3 = vld [vmem:[%s228_s28 + $0x8] sm:$0xff]  ;;  %630 = vmatprep.subr.mxu1 %v397_v22  ;;  %v390_v29 = vld [vmem:[%s815_s2 + $0x38] sm:$0xff]  ;;  %s240_s21 = scalar_lea.vmem %s818_s5, %s725_s25 }
   0xf   : > { %624 = vmatpush3.msra.mxu0 %v244_v1  ;;  %625 = vmatprep.mubr.msk.f32.mxu0 %vm246_vm0, %v731_v2  ;;  %v392_v27 = vld [vmem:[%s815_s2 + $0x48] sm:$0xff]  ;;  %v391_v28 = vld [vmem:[%s815_s2 + $0x40] sm:$0xff]  ;;  %v389_v30 = vld [vmem:[%s815_s2 + $0x30] sm:$0xff] }
  0x10   : > { %626 = vmatmul.mubr.msk.f32.vlgmr.msra.gmra.mxu0 %vm246_vm0, %v733_v3  ;;  %631 = vmatpush3.msra.mxu1 %v397_v22  ;;  %v388_v31 = vld [vmem:[%s815_s2 + $0x28] sm:$0xff]  ;;  %v387_v32 = vld [vmem:[%s815_s2 + $0x20] sm:$0xff]  ;;  %v386_v41 = vld [vmem:[%s815_s2 + $0x18] sm:$0xff] }
  0x11   : > { %632 = vmatprep.subr.mxu1 %v396_v23  ;;  %v385_v42 = vld [vmem:[%s815_s2 + $0x10] sm:$0xff]  ;;  %v384_v43 = vld [vmem:[%s815_s2 + $0x8] sm:$0xff]  ;;  %v383_v44 = vld [vmem:[%s815_s2] sm:$0xff] }
  0x12   : > { %633 = vmatpush3.msra.mxu1 %v396_v23 }
  0x13   : > { %634 = vmatprep.subr.mxu1 %v395_v24 }
  0x14   : > { %635 = vmatpush3.msra.mxu1 %v395_v24 }
  0x15   : > { %636 = vmatprep.subr.mxu1 %v394_v25 }
  0x16   : > { %637 = vmatpush3.msra.mxu1 %v394_v25 }
  0x17   : > { %638 = vmatprep.subr.mxu1 %v393_v26 }
  0x18   : > { %639 = vmatpush3.msra.mxu1 %v393_v26 }
  0x19   : > { %640 = vmatprep.subr.mxu1 %v392_v27 }
  0x1a   : > { %641 = vmatpush3.msra.mxu1 %v392_v27 }
  0x1b   : > { %642 = vmatprep.subr.mxu1 %v391_v28 }
  0x1c   : > { %643 = vmatpush3.msra.mxu1 %v391_v28 }
  0x1d   : > { %644 = vmatprep.subr.mxu1 %v390_v29 }
  0x1e   : > { %645 = vmatpush3.msra.mxu1 %v390_v29 }
  0x1f   : > { %646 = vmatprep.subr.mxu1 %v389_v30 }
  0x20   : > { %647 = vmatpush3.msra.mxu1 %v389_v30 }
  0x21   : > { %648 = vmatprep.subr.mxu1 %v388_v31 }
  0x22   : > { %649 = vmatpush3.msra.mxu1 %v388_v31 }
  0x23   : > { %650 = vmatprep.subr.mxu1 %v387_v32 }
  0x24   : > { %651 = vmatpush3.msra.mxu1 %v387_v32 }
  0x25   : > { %652 = vmatprep.subr.mxu1 %v386_v41 }
  0x26   : > { %653 = vmatpush3.msra.mxu1 %v386_v41 }
  0x27   : > { %654 = vmatprep.subr.mxu1 %v385_v42 }
  0x28   : > { %655 = vmatpush3.msra.mxu1 %v385_v42 }
  0x29   : > { %656 = vmatprep.subr.mxu1 %v384_v43 }
  0x2a   : > { %657 = vmatpush3.msra.mxu1 %v384_v43 }
  0x2b   : > { %658 = vmatprep.subr.mxu1 %v383_v44 }
  0x2c   : > { %659 = vmatpush3.msra.mxu1 %v383_v44 }
  0xd0   : > { %v627_v4 = vpop.f32.mrf.mxu0 }
  0xd1   : > { %v329_v8 = vmul.f32 2.0, %v627_v4 }
  0xd2   : > { %v319_v5 = vpop.f32.mrf.mxu0 }
  0xd3   : > { %v328_v6 = vmul.f32 2.0, %v319_v5  ;;  %v338_v10 = vsub.f32 %v329_v8, %v592_v7 }
  0xd5   : > { %v337_v9 = vsub.f32 %v328_v6, %v592_v7 }
  0xd7   : > { %339 = vmax.xlane.f32.xlu0 %v337_v9 }
  0xdb   : > { %341 = vmax.xlane.f32.xlu0 %v338_v10 }
 0x160   : > { %v340_v13 = vpop.xlane.xlu0 %339 }
 0x161   : > { %vm345_vm1 = vcmp.eq.f32.partialorder %v337_v9, %v340_v13 }
 0x162   : > { %v347_v14 = vsel %vm345_vm1, %v742_v12, 128 }
 0x163   : > { %v350_v15 = vshra.s32 %v347_v14, 16  ;;  %v349_v33 = vand.u32 65535, %v347_v14 }
 0x164   : > { %v342_v16 = vpop.xlane.xlu0 %341 }
 0x165   : > { %vm346_vm2 = vcmp.eq.f32.partialorder %v338_v10, %v342_v16  ;;  %v352_v17 = vcvt.s32.f32 %v350_v15  ;;  %v351_v36 = vcvt.s32.f32 %v349_v33 }
 0x166   : > { %v348_v18 = vsel %vm346_vm2, %v742_v12, 128 }
 0x167   : > { %353 = vmin.xlane.f32.xlu1 %v352_v17  ;;  %v364_v19 = vshra.s32 %v348_v18, 16  ;;  %v363_v34 = vand.u32 65535, %v348_v18 }
 0x169   : > { %v366_v20 = vcvt.s32.f32 %v364_v19  ;;  %v365_v39 = vcvt.s32.f32 %v363_v34 }
 0x16b   : > { %367 = vmin.xlane.f32.xlu1 %v366_v20 }
 0x1f0   : > { %v354_v35 = vpop.xlane.xlu1 %353 }
 0x1f1   : > { %vm355_vm3 = vcmp.eq.f32.partialorder %v352_v17, %v354_v35  ;;  %v360_v45 = vcvt.f32.s32 %v354_v35 }
 0x1f2   : > { %v356_v37 = vsel %vm355_vm3, %v351_v36, inf }
 0x1f3   : > { %357 = vmin.xlane.f32.xlu0 %v356_v37  ;;  %v361_v47 = vshll.u32 %v360_v45, 16 }
 0x1f4   : > { %v368_v38 = vpop.xlane.xlu1 %367 }
 0x1f5   : > { %vm369_vm4 = vcmp.eq.f32.partialorder %v366_v20, %v368_v38  ;;  %v374_v48 = vcvt.f32.s32 %v368_v38 }
 0x1f6   : > { %v370_v40 = vsel %vm369_vm4, %v365_v39, inf }
 0x1f7   : > { %371 = vmin.xlane.f32.xlu1 %v370_v40  ;;  %v375_v52 = vshll.u32 %v374_v48, 16 }
 0x27c   : > { %v358_v46 = vpop.xlane.xlu0 %357 }
 0x27d   : > { %v359_v49 = vcvt.f32.s32 %v358_v46 }
 0x27f   : > { %v362_v50 = vadd.s32 %v361_v47, %v359_v49 }
 0x280   : > { %v372_v51 = vpop.xlane.xlu1 %371 }
 0x281   : > { %v373_v53 = vcvt.f32.s32 %v372_v51  ;;  %vm377_vm5 = vcmp.eq.s32.totalorder %v742_v12, %v362_v50 }
 0x282   : > { %660 = vmatprep.mubr.msk.f32.mxu1 %vm377_vm5, %v680_v54 }
 0x283   : > { %v376_v55 = vadd.s32 %v375_v52, %v373_v53 }
 0x285   : > { %vm378_vm6 = vcmp.eq.s32.totalorder %v742_v12, %v376_v55 }
 0x286   : > { %661 = vmatmul.mubr.msk.f32.vlgmr.msra.gmra.mxu1 %vm378_vm6, %v680_v54 }
 0x346   : > { %v662_v56 = vpop.f32.mrf.mxu1 }
 0x347   : > { %v477_v57 = vsub.f32 %v662_v56, %v733_v3  ;;  %475 = vst.msk [vmem:[%s234_s17 + $0x8] sm:$0xff] %vm246_vm0, %v662_v56 }
 0x348   : > { %v465_v58 = vpop.f32.mrf.mxu1 }
 0x349   : > { %v479_v59 = vmul.f32 %v477_v57, %v477_v57  ;;  %474 = vst.msk [vmem:[%s234_s17] sm:$0xff] %vm246_vm0, %v465_v58  ;;  %v476_v60 = vsub.f32 %v465_v58, %v731_v2 }
 0x34b   : > { %v478_v61 = vmul.f32 %v476_v60, %v476_v60  ;;  %v483_v62 = vsel %vm246_vm0, %v479_v59, 0.0 }
 0x34c   : > { %484 = vadd.xlane.f32.xlu1 %v483_v62 }
 0x34d   : > { %v480_v63 = vsel %vm246_vm0, %v478_v61, 0.0 }
 0x34e   : > { %481 = vadd.xlane.f32.xlu0 %v480_v63 }
 0x3d5   : > { %v485_v1 = vpop.xlane.xlu1 %484 }
 0x3d6   : > { %488 = vst.msk [vmem:[%s240_s21 + $0x8] sm:$0xff] %vm486_vm7, %v485_v1 }
 0x3d7   : > { %v482_v0 = vpop.xlane.xlu0 %481 }
 0x3d8   : > { %487 = vst.msk [vmem:[%s240_s21] sm:$0xff] %vm486_vm7, %v482_v0 }
 0x3d9 PF: > { %s16_s18 = sadd.s32 1, %s678_s18  }
 0x3da   : > { %p13_p4 = scmp.ge.s32.totalorder %s16_s18, 4  }
 0x3dc   :  { %15 = sbr.rel (!%p13_p4) target bundleno = 1 (0x1), region = 78 }

// kernel: _lambda_.44
= control target key start
LH: loop header
LB: loop body
LE: loop exit
PB: predicated region body
PF: predicated region fallthrough
CT: control target
= control target key end

     0   :  { %s1151_s12 = smov 0   ;;  %s1281_s0 = inlined_call_operand.vmem [shape: f32[2,42,32], index: 0, kind: input, shape index: {}]   ;;  %s1282_s1 = inlined_call_operand.vmem [shape: bf16[288,64], index: 1, kind: input, shape index: {}]   ;;  %s1283_s2 = inlined_call_operand.vmem [shape: f32[1,64], index: 2, kind: input, shape index: {}]   ;;  %s1284_s3 = inlined_call_operand.vmem [shape: f32[2,24,64], index: 3, kind: output, shape index: {}]  }
   0x1 LB: > { %s941_s13 = sadd.s32 4294967295, %s1129_s12   ;;  %p945_p0 = scmp.ge.s32.totalorder %s1129_s12, 1  ;;  %s1129_s12 = sphi %s1151_s12, %s13_s12  }
   0x2   : > { %p137_p1 = scmp.lt.s32.totalorder %s1129_s12, 3 }
   0x4   : > { %p138_p2 = pnand %p945_p0, %p137_p1 }
   0x5   : > { %p161_p3 = scmp.lt.s32.totalorder (!%p138_p2), %s941_s13, 1 }
   0x6   : > { %141 = sbr.rel (%p138_p2) target bundleno = 258 (0x102), region = 32 }
   0xb   : > { %v1105_v0 = vld [vmem:[%s1282_s1 + $0x18] sm:$0xff]   ;;  %v1106_v1 = vld [vmem:[%s1282_s1 + $0x8] sm:$0xff]   ;;  %v1107_v2 = vld [vmem:[%s1282_s1 + $0x10] sm:$0xff]   ;;  %s1286_s13 = smov (!%p161_p3, %s941_s13), 1  ;;  %vm202_vm0 = vcmask 261120   ;;  %vm882_vm1 = vcmask 523264  }
   0xc   : > { %1023 = vmatprep.subr.bf16.mxu0 %v1105_v0  ;;  %1031 = vmatprep.subr.bf16.mxu1 %v1106_v1  ;;  %v1108_v3 = vld [vmem:[%s1282_s1] sm:$0xff]   ;;  %s1095_s22 = smul.u32 48, %s1286_s13  ;;  %v1109_v4 = vld [vmem:[%s1282_s1 + $0x28] sm:$0xff]   ;;  %v1110_v5 = vld [vmem:[%s1282_s1 + $0x38] sm:$0xff]  }
   0xd   : > { %1024 = vmatpush3.bf16.msra.mxu0 %v1105_v0  ;;  %1032 = vmatpush3.bf16.msra.mxu1 %v1106_v1  ;;  %v1111_v16 = vld [vmem:[%s1282_s1 + $0x20] sm:$0xff]   ;;  %v1112_v17 = vld [vmem:[%s1282_s1 + $0x30] sm:$0xff]   ;;  %v1113_v25 = vld [vmem:[%s1282_s1 + $0x48] sm:$0xff]  }
   0xe   : > { %1025 = vmatprep.subr.bf16.mxu0 %v1107_v2  ;;  %1033 = vmatprep.subr.bf16.mxu1 %v1108_v3  ;;  %s1183_s29 = scalar_lea.vmem %s1281_s0, %s1095_s22  ;;  %v1114_v27 = vld [vmem:[%s1282_s1 + $0x58] sm:$0xff]   ;;  %v1115_v32 = vld [vmem:[%s1282_s1 + $0x40] sm:$0xff]   ;;  %v1116_v33 = vld [vmem:[%s1282_s1 + $0x50] sm:$0xff]  }
   0xf   : > { %v181_v6 = vld [vmem:[%s1183_s29 + $0x1] sm:$0xff]  ;;  %v182_v7 = vld [vmem:[%s1183_s29 + $0x9] sm:$0xff]  ;;  %v183_v11 = vld [vmem:[%s1183_s29 + $0x11] sm:$0xff] }
  0x10   : > { %v172_v8 = vld [vmem:[%s1183_s29] sm:$0xff]  ;;  %v188_v9 = vpack.c.bf16 %v182_v7, %v181_v6  ;;  %v173_v10 = vld [vmem:[%s1183_s29 + $0x8] sm:$0xff]  ;;  %v174_v12 = vld [vmem:[%s1183_s29 + $0x10] sm:$0xff]  ;;  %v189_v14 = vpack.c.bf16 %v183_v11, %v183_v11 }
  0x11   : > { %1026 = vmatpush3.bf16.msra.mxu0 %v1107_v2  ;;  %1034 = vmatpush3.bf16.msra.mxu1 %v1108_v3  ;;  %v179_v13 = vpack.c.bf16 %v173_v10, %v172_v8  ;;  %v180_v15 = vpack.c.bf16 %v174_v12, %v174_v12  ;;  %v323_v18 = vld [vmem:[%s1183_s29 + $0x2] sm:$0xff]  ;;  %v324_v19 = vld [vmem:[%s1183_s29 + $0xa] sm:$0xff]  ;;  %v325_v23 = vld [vmem:[%s1183_s29 + $0x12] sm:$0xff]  ;;  %v564_v35 = vpack.c.bf16 %v174_v12, %v173_v10 }
  0x12   : > { %1039 = vmatprep.subr.bf16.mxu0 %v1109_v4  ;;  %1047 = vmatprep.subr.bf16.mxu1 %v1110_v5  ;;  %v330_v20 = vpack.c.bf16 %v324_v19, %v323_v18  ;;  %v401_v21 = vld [vmem:[%s1183_s29 + $0x6] sm:$0xff]  ;;  %v1204_v22 = vld [vmem:[%s1183_s29 + $0xe] sm:$0xff]  ;;  %v1213_v26 = vld [vmem:[%s1183_s29 + $0x16] sm:$0xff]  ;;  %v331_v28 = vpack.c.bf16 %v325_v23, %v325_v23 }
  0x13   : > { %1027 = vmatprep.mubr.msk.bf16.mxu0 %vm202_vm0, %v188_v9  ;;  %1035 = vmatprep.mubr.msk.bf16.mxu1 %vm202_vm0, %v179_v13  ;;  %v408_v24 = vpack.c.bf16 %v1204_v22, %v401_v21  ;;  %v409_v29 = vpack.c.bf16 %v1213_v26, %v1213_v26  ;;  %v479_v30 = vld [vmem:[%s1183_s29 + $0x7] sm:$0xff]  ;;  %v480_v31 = vld [vmem:[%s1183_s29 + $0xf] sm:$0xff]  ;;  %v481_v36 = vld [vmem:[%s1183_s29 + $0x17] sm:$0xff]  ;;  %v798_v56 = vpack.c.bf16 %v1213_v26, %v1204_v22 }
  0x14   : > { %1028 = vmatmul.mubr.msk.bf16.vlgmr.msra.gmra.mxu0 %vm202_vm0, %v189_v14  ;;  %1036 = vmatmul.mubr.msk.bf16.vlgmr.msra.gmra.mxu1 %vm202_vm0, %v180_v15  ;;  %v486_v34 = vpack.c.bf16 %v480_v31, %v479_v30  ;;  %v1117_v37 = vld [vmem:[%s1282_s1 + $0x68] sm:$0xff]   ;;  %v559_v38 = vld [vmem:[%s1183_s29 + $0x18] sm:$0xff]  ;;  %v487_v42 = vpack.c.bf16 %v481_v36, %v481_v36  ;;  %v1119_v46 = vld [vmem:[%s1282_s1 + $0x60] sm:$0xff]  }
  0x15   : > { %1040 = vmatpush3.bf16.msra.mxu0 %v1109_v4  ;;  %1048 = vmatpush3.bf16.msra.mxu1 %v1110_v5  ;;  %v1118_v39 = vld [vmem:[%s1282_s1 + $0x78] sm:$0xff]   ;;  %v635_v40 = vld [vmem:[%s1183_s29 + $0xc] sm:$0xff]  ;;  %v565_v44 = vpack.c.bf16 %v559_v38, %v559_v38  ;;  %v1122_v55 = vld [vmem:[%s1282_s1 + $0x80] sm:$0xff]  }
  0x16   : > { %1041 = vmatprep.subr.bf16.mxu0 %v1111_v16  ;;  %1049 = vmatprep.subr.bf16.mxu1 %v1112_v17  ;;  %v636_v41 = vld [vmem:[%s1183_s29 + $0x14] sm:$0xff]  ;;  %v637_v50 = vld [vmem:[%s1183_s29 + $0x1c] sm:$0xff]  ;;  %v1121_v51 = vld [vmem:[%s1282_s1 + $0x88] sm:$0xff]  }
  0x17   : > { %1043 = vmatprep.mubr.msk.bf16.mxu0 %vm202_vm0, %v330_v20  ;;  %1051 = vmatprep.mubr.msk.bf16.mxu1 %vm202_vm0, %v408_v24  ;;  %v713_v43 = vld [vmem:[%s1183_s29 + $0xd] sm:$0xff]  ;;  %v714_v45 = vld [vmem:[%s1183_s29 + $0x15] sm:$0xff]  ;;  %v642_v48 = vpack.c.bf16 %v636_v41, %v635_v40  ;;  %v715_v52 = vld [vmem:[%s1183_s29 + $0x1d] sm:$0xff]  ;;  %v643_v53 = vpack.c.bf16 %v637_v50, %v637_v50 }
  0x18   : > { %v1120_v47 = vld [vmem:[%s1282_s1 + $0x70] sm:$0xff]   ;;  %v720_v49 = vpack.c.bf16 %v714_v45, %v713_v43  ;;  %v721_v54 = vpack.c.bf16 %v715_v52, %v715_v52  ;;  %v793_v57 = vld [vmem:[%s1183_s29 + $0x1e] sm:$0xff]  ;;  %s1096_s29 = smul.u32 24, %s1286_s13 }
  0x19   : > { %1042 = vmatpush3.bf16.msra.mxu0 %v1111_v16  ;;  %1050 = vmatpush3.bf16.msra.mxu1 %v1112_v17  ;;  %v799_v58 = vpack.c.bf16 %v793_v57, %v793_v57  ;;  %v984_v45 = vld [vmem:[%s1283_s2] ss:$0 sm:$0xff] }
  0x1a   : > { %1055 = vmatprep.subr.bf16.mxu0 %v1113_v25  ;;  %1063 = vmatprep.subr.bf16.mxu1 %v1114_v27  ;;  %s170_s7 = scalar_lea.vmem %s1284_s3, %s1096_s29 }
  0x1c   : > { %1044 = vmatmul.mubr.msk.bf16.vlgmr.msra.gmra.mxu0 %vm202_vm0, %v331_v28  ;;  %1052 = vmatmul.mubr.msk.bf16.vlgmr.msra.gmra.mxu1 %vm202_vm0, %v409_v29 }
  0x1d   : > { %1056 = vmatpush3.bf16.msra.mxu0 %v1113_v25  ;;  %1064 = vmatpush3.bf16.msra.mxu1 %v1114_v27 }
  0x1e   : > { %1057 = vmatprep.subr.bf16.mxu0 %v1115_v32  ;;  %1065 = vmatprep.subr.bf16.mxu1 %v1116_v33 }
  0x1f   : > { %1059 = vmatprep.mubr.msk.bf16.mxu0 %vm202_vm0, %v486_v34  ;;  %1067 = vmatprep.mubr.msk.bf16.mxu1 %vm202_vm0, %v564_v35 }
  0x21   : > { %1058 = vmatpush3.bf16.msra.mxu0 %v1115_v32  ;;  %1066 = vmatpush3.bf16.msra.mxu1 %v1116_v33 }
  0x22   : > { %1071 = vmatprep.subr.bf16.mxu0 %v1117_v37  ;;  %1079 = vmatprep.subr.bf16.mxu1 %v1118_v39 }
  0x24   : > { %1060 = vmatmul.mubr.msk.bf16.vlgmr.msra.gmra.mxu0 %vm202_vm0, %v487_v42  ;;  %1068 = vmatmul.mubr.msk.bf16.vlgmr.msra.gmra.mxu1 %vm202_vm0, %v565_v44 }
  0x25   : > { %1072 = vmatpush3.bf16.msra.mxu0 %v1117_v37  ;;  %1080 = vmatpush3.bf16.msra.mxu1 %v1118_v39 }
  0x26   : > { %1073 = vmatprep.subr.bf16.mxu0 %v1119_v46  ;;  %1081 = vmatprep.subr.bf16.mxu1 %v1120_v47 }
  0x27   : > { %1075 = vmatprep.mubr.msk.bf16.mxu0 %vm202_vm0, %v642_v48  ;;  %1083 = vmatprep.mubr.msk.bf16.mxu1 %vm202_vm0, %v720_v49 }
  0x29   : > { %1074 = vmatpush3.bf16.msra.mxu0 %v1119_v46  ;;  %1082 = vmatpush3.bf16.msra.mxu1 %v1120_v47 }
  0x2a   : > { %1087 = vmatprep.subr.bf16.mxu0 %v1121_v51 }
  0x2c   : > { %1076 = vmatmul.mubr.msk.bf16.vlgmr.msra.gmra.mxu0 %vm202_vm0, %v643_v53  ;;  %1084 = vmatmul.mubr.msk.bf16.vlgmr.msra.gmra.mxu1 %vm202_vm0, %v721_v54 }
  0x2d   : > { %1088 = vmatpush3.bf16.msra.mxu0 %v1121_v51  ;;  %1091 = vmatprep.mubr.msk.bf16.mxu0 %vm202_vm0, %v798_v56 }
  0x2e   : > { %1089 = vmatprep.subr.bf16.mxu0 %v1122_v55 }
  0x31   : > { %1090 = vmatpush3.bf16.msra.mxu0 %v1122_v55 }
  0x34   : > { %1092 = vmatmul.mubr.msk.bf16.vlgmr.msra.gmra.mxu0 %vm202_vm0, %v799_v58 }
  0xd4   : > { %v1029_v59 = vpop.f32.mrf.mxu0  ;;  %v1037_v60 = vpop.f32.mrf.mxu1 }
  0xd5   : > { %v318_v8 = vadd.f32 %v1037_v60, %v1029_v59 }
  0xd6   : > { %v243_v61 = vpop.f32.mrf.mxu0  ;;  %v309_v62 = vpop.f32.mrf.mxu1 }
  0xd7   : > { %v310_v11 = vadd.f32 %v309_v62, %v243_v61 }
  0xd8   : > { %v1030_v63 = vpop.f32.mrf.mxu0  ;;  %v1038_v0 = vpop.f32.mrf.mxu1 }
  0xda   : > { %v246_v1 = vpop.f32.mrf.mxu0  ;;  %v312_v2 = vpop.f32.mrf.mxu1 }
  0xdb   : > { %v313_v18 = vadd.f32 %v312_v2, %v246_v1 }
  0xdc   : > { %v1045_v3 = vpop.f32.mrf.mxu0  ;;  %v1053_v4 = vpop.f32.mrf.mxu1 }
  0xdd   : > { %v400_v12 = vadd.f32 %v1045_v3, %v318_v8 }
  0xde   : > { %v384_v5 = vpop.f32.mrf.mxu0  ;;  %v462_v6 = vpop.f32.mrf.mxu1 }
  0xdf   : > { %v398_v15 = vadd.f32 %v384_v5, %v310_v11  ;;  %v478_v19 = vadd.f32 %v1053_v4, %v400_v12 }
  0xe0   : > { %v1046_v7 = vpop.f32.mrf.mxu0  ;;  %v1054_v9 = vpop.f32.mrf.mxu1 }
  0xe1   : > { %v476_v22 = vadd.f32 %v462_v6, %v398_v15 }
  0xe2   : > { %v387_v10 = vpop.f32.mrf.mxu0  ;;  %v465_v13 = vpop.f32.mrf.mxu1 }
  0xe3   : > { %v399_v23 = vadd.f32 %v387_v10, %v313_v18 }
  0xe4   : > { %v1061_v14 = vpop.f32.mrf.mxu0  ;;  %v1069_v16 = vpop.f32.mrf.mxu1 }
  0xe5   : > { %v556_v24 = vadd.f32 %v1061_v14, %v478_v19  ;;  %v477_v30 = vadd.f32 %v465_v13, %v399_v23 }
  0xe6   : > { %v540_v17 = vpop.f32.mrf.mxu0  ;;  %v618_v20 = vpop.f32.mrf.mxu1 }
  0xe7   : > { %v554_v27 = vadd.f32 %v540_v17, %v476_v22  ;;  %v634_v31 = vadd.f32 %v1069_v16, %v556_v24 }
  0xe8   : > { %v1062_v21 = vpop.f32.mrf.mxu0  ;;  %v1070_v25 = vpop.f32.mrf.mxu1 }
  0xe9   : > { %v632_v34 = vadd.f32 %v618_v20, %v554_v27 }
  0xea   : > { %v543_v26 = vpop.f32.mrf.mxu0  ;;  %v621_v28 = vpop.f32.mrf.mxu1 }
  0xeb   : > { %v555_v35 = vadd.f32 %v543_v26, %v477_v30 }
  0xec   : > { %v1077_v29 = vpop.f32.mrf.mxu0  ;;  %v1085_v32 = vpop.f32.mrf.mxu1 }
  0xed   : > { %v712_v36 = vadd.f32 %v1077_v29, %v634_v31  ;;  %v633_v42 = vadd.f32 %v621_v28, %v555_v35 }
  0xee   : > { %v696_v33 = vpop.f32.mrf.mxu0  ;;  %v774_v37 = vpop.f32.mrf.mxu1 }
  0xef   : > { %v710_v39 = vadd.f32 %v696_v33, %v632_v34  ;;  %v790_v43 = vadd.f32 %v1085_v32, %v712_v36 }
  0xf0   : > { %v1078_v38 = vpop.f32.mrf.mxu0  ;;  %v1086_v40 = vpop.f32.mrf.mxu1 }
  0xf1   : > { %v788_v46 = vadd.f32 %v774_v37, %v710_v39 }
  0xf2   : > { %v699_v41 = vpop.f32.mrf.mxu0  ;;  %v777_v52 = vpop.f32.mrf.mxu1 }
  0xf3   : > { %v711_v47 = vadd.f32 %v699_v41, %v633_v42 }
  0xf4   : > { %v1093_v44 = vpop.f32.mrf.mxu0 }
  0xf5   : > { %v868_v48 = vadd.f32 %v1093_v44, %v790_v43  ;;  %v789_v54 = vadd.f32 %v777_v52, %v711_v47 }
  0xf6   : > { %v852_v49 = vpop.f32.mrf.mxu0 }
  0xf7   : > { %v878_v50 = vadd.f32 %v984_v45, %v868_v48  ;;  %v866_v51 = vadd.f32 %v852_v49, %v788_v46 }
  0xf8   : > { %v1094_v53 = vpop.f32.mrf.mxu0 }
  0xf9   : > { %v881_v55 = vmax.f32 %v878_v50, 0.0  ;;  %v876_v56 = vadd.f32 %v984_v45, %v866_v51 }
  0xfa   : > { %v855_v57 = vpop.f32.mrf.mxu0 }
  0xfb   : > { %885 = vst.msk [vmem:[%s170_s7 + $0x10] sm:$0xff] %vm882_vm1, %v881_v55  ;;  %v879_v58 = vmax.f32 %v876_v56, 0.0  ;;  %v867_v59 = vadd.f32 %v855_v57, %v789_v54 }
  0xfd   : > { %883 = vst.msk [vmem:[%s170_s7] sm:$0xff] %vm882_vm1, %v879_v58  ;;  %v877_v60 = vadd.f32 %v984_v45, %v867_v59 }
  0xff   : > { %v880_v61 = vmax.f32 %v877_v60, 0.0 }
 0x101   : > { %884 = vst.msk [vmem:[%s170_s7 + $0x8] sm:$0xff] %vm882_vm1, %v880_v61 }
 0x102 PF: > { %s13_s12 = sadd.s32 1, %s1129_s12  }
 0x103   : > { %p10_p4 = scmp.ge.s32.totalorder %s13_s12, 4  }
 0x105   :  { %12 = sbr.rel (!%p10_p4) target bundleno = 1 (0x1), region = 62 }

// kernel: _lambda_.45
= control target key start
LH: loop header
LB: loop body
LE: loop exit
PB: predicated region body
PF: predicated region fallthrough
CT: control target
= control target key end

     0   :  { %s1694_s12 = smov 0   ;;  %s2061_s0 = inlined_call_operand.vmem [shape: f32[2,110,16], index: 0, kind: input, shape index: {}]   ;;  %s2062_s1 = inlined_call_operand.vmem [shape: bf16[144,12], index: 1, kind: input, shape index: {}]   ;;  %s2063_s2 = inlined_call_operand.vmem [shape: f32[1,12], index: 2, kind: input, shape index: {}]   ;;  %s2064_s3 = inlined_call_operand.vmem [shape: f32[2,80,12], index: 3, kind: output, shape index: {}]  }
   0x1 LB: > { %s1325_s13 = sadd.s32 4294967295, %s1670_s12   ;;  %p1329_p0 = scmp.ge.s32.totalorder %s1670_s12, 1  ;;  %s1670_s12 = sphi %s1694_s12, %s13_s12  }
   0x2   : > { %p137_p1 = scmp.lt.s32.totalorder %s1670_s12, 3 }
   0x4   : > { %p138_p2 = pnand %p1329_p0, %p137_p1 }
   0x5   : > { %p161_p3 = scmp.lt.s32.totalorder (!%p138_p2), %s1325_s13, 1 }
   0x6   : > { %141 = sbr.rel (%p138_p2) target bundleno = 396 (0x18c), region = 32 }
   0xb   : > { %v1655_v0 = vld [vmem:[%s2062_s1 + $0x8] sm:$0xff]   ;;  %v1672_v1 = vmov 0.0   ;;  %vm1673_vm0 = vmmov 0   ;;  %s2066_s13 = smov (!%p161_p3, %s1325_s13), 1  ;;  %v1656_v2 = vld [vmem:[%s2062_s1 + $0x10] sm:$0xff]   ;;  %vm212_vm1 = vcmask 130048  }
   0xc   : > { %1443 = vmatprep.subr.bf16.mxu0 %v1672_v1  ;;  %1641 = vmatprep.subr.bf16.mxu1 %v1672_v1  ;;  %s1643_s16 = smul.u32 112, %s2066_s13  ;;  %v1657_v8 = vld [vmem:[%s2062_s1] sm:$0xff]   ;;  %v1658_v22 = vld [vmem:[%s2062_s1 + $0x18] sm:$0xff]   ;;  %v1660_v52 = vld [vmem:[%s2062_s1 + $0x28] sm:$0xff]   ;;  %vm1259_vm2 = vcmask 97280  }
   0xd   : > { %1444 = vmatpush3.bf16.msra.mxu0 %v1655_v0  ;;  %1642 = vmatpush3.bf16.msra.mxu1 %v1655_v0  ;;  %v1659_v29 = vld [vmem:[%s2062_s1 + $0x20] sm:$0xff]   ;;  %v1661_v57 = vld [vmem:[%s2062_s1 + $0x30] sm:$0xff]   ;;  %s1644_s9 = smul.u32 80, %s2066_s13 }
   0xe   : > { %1445 = vmatprep.mubr.msk.bf16.mxu0 %vm1673_vm0, %v1672_v1  ;;  %1457 = vmatprep.mubr.msk.bf16.mxu1 %vm1673_vm0, %v1672_v1  ;;  %s1719_s19 = scalar_lea.vmem %s2061_s0, %s1643_s16 }
   0xf   : > { %1487 = vmatprep.subr.bf16.mxu0 %v1672_v1  ;;  %1465 = vmatprep.subr.bf16.mxu1 %v1672_v1  ;;  %v189_v3 = vld [vmem:[%s1719_s19 + $0x1] sm:$0xff]  ;;  %v190_v4 = vld [vmem:[%s1719_s19 + $0x9] sm:$0xff]  ;;  %v195_v5 = vld [vmem:[%s1719_s19 + $0x31] sm:$0xff]  ;;  %s2007_s16 = scalar_lea.vmem %s2064_s3, %s1644_s9 }
  0x10   : > { %v201_v6 = vpack.c.bf16 %v190_v4, %v189_v3  ;;  %v196_v7 = vld [vmem:[%s1719_s19 + $0x39] sm:$0xff]  ;;  %v191_v10 = vld [vmem:[%s1719_s19 + $0x11] sm:$0xff]  ;;  %v197_v12 = vld [vmem:[%s1719_s19 + $0x41] sm:$0xff] }
  0x11   : > { %v204_v9 = vpack.c.bf16 %v196_v7, %v195_v5  ;;  %v192_v11 = vld [vmem:[%s1719_s19 + $0x19] sm:$0xff]  ;;  %v198_v13 = vld [vmem:[%s1719_s19 + $0x49] sm:$0xff]  ;;  %v193_v16 = vld [vmem:[%s1719_s19 + $0x21] sm:$0xff] }
  0x12   : > { %1446 = vmatmul.mubr.msk.bf16.vlgmr.msra.gmra.mxu0 %vm212_vm1, %v201_v6  ;;  %v202_v14 = vpack.c.bf16 %v192_v11, %v191_v10  ;;  %v205_v15 = vpack.c.bf16 %v198_v13, %v197_v12  ;;  %v194_v17 = vld [vmem:[%s1719_s19 + $0x29] sm:$0xff]  ;;  %v172_v18 = vld [vmem:[%s1719_s19] sm:$0xff]  ;;  %v175_v26 = vld [vmem:[%s1719_s19 + $0x18] sm:$0xff] }
  0x13   : > { %1458 = vmatmul.mubr.msk.bf16.vlgmr.msra.gmra.mxu1 %vm212_vm1, %v204_v9  ;;  %1488 = vmatpush3.bf16.msra.mxu0 %v1656_v2  ;;  %v173_v19 = vld [vmem:[%s1719_s19 + $0x8] sm:$0xff]  ;;  %v203_v20 = vpack.c.bf16 %v194_v17, %v193_v16  ;;  %v174_v25 = vld [vmem:[%s1719_s19 + $0x10] sm:$0xff]  ;;  %v398_v31 = vld [vmem:[%s1719_s19 + $0x1a] sm:$0xff] }
  0x14   : > { %1466 = vmatpush3.bf16.msra.mxu1 %v1657_v8  ;;  %1449 = vmatprep.mubr.msk.bf16.mxu0 %vm1673_vm0, %v1672_v1  ;;  %v184_v21 = vpack.c.bf16 %v173_v19, %v172_v18  ;;  %v395_v23 = vld [vmem:[%s1719_s19 + $0x2] sm:$0xff]  ;;  %v396_v24 = vld [vmem:[%s1719_s19 + $0xa] sm:$0xff]  ;;  %v185_v28 = vpack.c.bf16 %v175_v26, %v174_v25  ;;  %v397_v30 = vld [vmem:[%s1719_s19 + $0x12] sm:$0xff] }
  0x15   : > { %1461 = vmatprep.mubr.msk.bf16.mxu1 %vm1673_vm0, %v1672_v1  ;;  %1509 = vmatprep.subr.bf16.mxu1 %v1672_v1  ;;  %v407_v27 = vpack.c.bf16 %v396_v24, %v395_v23  ;;  %v176_v32 = vld [vmem:[%s1719_s19 + $0x20] sm:$0xff]  ;;  %v177_v33 = vld [vmem:[%s1719_s19 + $0x28] sm:$0xff]  ;;  %v408_v34 = vpack.c.bf16 %v398_v31, %v397_v30  ;;  %v178_v38 = vld [vmem:[%s1719_s19 + $0x30] sm:$0xff]  ;;  %v528_v51 = vpack.c.bf16 %v397_v30, %v396_v24 }
  0x16   : > { %1531 = vmatprep.subr.bf16.mxu0 %v1672_v1  ;;  %v186_v35 = vpack.c.bf16 %v177_v33, %v176_v32  ;;  %v399_v36 = vld [vmem:[%s1719_s19 + $0x22] sm:$0xff]  ;;  %v400_v37 = vld [vmem:[%s1719_s19 + $0x2a] sm:$0xff]  ;;  %v179_v39 = vld [vmem:[%s1719_s19 + $0x38] sm:$0xff] }
  0x17   : > { %v409_v40 = vpack.c.bf16 %v400_v37, %v399_v36  ;;  %v187_v41 = vpack.c.bf16 %v179_v39, %v178_v38  ;;  %v401_v42 = vld [vmem:[%s1719_s19 + $0x32] sm:$0xff]  ;;  %v402_v43 = vld [vmem:[%s1719_s19 + $0x3a] sm:$0xff]  ;;  %v181_v45 = vld [vmem:[%s1719_s19 + $0x48] sm:$0xff]  ;;  %v529_v56 = vpack.c.bf16 %v399_v36, %v398_v31 }
  0x18   : > { %v180_v44 = vld [vmem:[%s1719_s19 + $0x40] sm:$0xff]  ;;  %v410_v46 = vpack.c.bf16 %v402_v43, %v401_v42  ;;  %v404_v49 = vld [vmem:[%s1719_s19 + $0x4a] sm:$0xff]  ;;  %v638_v54 = vld [vmem:[%s1719_s19 + $0x13] sm:$0xff]  ;;  %v530_v61 = vpack.c.bf16 %v401_v42, %v400_v37 }
  0x19   : > { %v188_v47 = vpack.c.bf16 %v181_v45, %v180_v44  ;;  %v403_v48 = vld [vmem:[%s1719_s19 + $0x42] sm:$0xff]  ;;  %v637_v53 = vld [vmem:[%s1719_s19 + $0xb] sm:$0xff]  ;;  %v642_v63 = vld [vmem:[%s1719_s19 + $0x33] sm:$0xff] }
  0x1a   : > { %1450 = vmatmul.mubr.msk.bf16.gmra.mxu0 %vm212_vm1, %v202_v14  ;;  %v411_v50 = vpack.c.bf16 %v404_v49, %v403_v48  ;;  %v649_v55 = vpack.c.bf16 %v638_v54, %v637_v53  ;;  %v639_v58 = vld [vmem:[%s1719_s19 + $0x1b] sm:$0xff]  ;;  %v640_v59 = vld [vmem:[%s1719_s19 + $0x23] sm:$0xff]  ;;  %v641_v62 = vld [vmem:[%s1719_s19 + $0x2b] sm:$0xff]  ;;  %v531_v2 = vpack.c.bf16 %v403_v48, %v402_v43 }
  0x1b   : > { %1462 = vmatmul.mubr.msk.bf16.gmra.mxu1 %vm212_vm1, %v205_v15  ;;  %1453 = vmatprep.mubr.msk.bf16.mxu0 %vm1673_vm0, %v1672_v1  ;;  %v650_v60 = vpack.c.bf16 %v640_v59, %v639_v58  ;;  %v651_v0 = vpack.c.bf16 %v642_v63, %v641_v62  ;;  %v643_v3 = vld [vmem:[%s1719_s19 + $0x3b] sm:$0xff]  ;;  %v644_v4 = vld [vmem:[%s1719_s19 + $0x43] sm:$0xff]  ;;  %v525_v5 = vld [vmem:[%s1719_s19 + $0x52] sm:$0xff] }
  0x1c   : > { %1467 = vmatprep.mubr.msk.bf16.mxu1 %vm1673_vm0, %v1672_v1  ;;  %v652_v6 = vpack.c.bf16 %v644_v4, %v643_v3  ;;  %v532_v7 = vpack.c.bf16 %v525_v5, %v404_v49  ;;  %v645_v8 = vld [vmem:[%s1719_s19 + $0x4b] sm:$0xff]  ;;  %v646_v9 = vld [vmem:[%s1719_s19 + $0x53] sm:$0xff]  ;;  %v760_v15 = vld [vmem:[%s1719_s19 + $0x1c] sm:$0xff] }
  0x1d   : > { %v758_v10 = vld [vmem:[%s1719_s19 + $0xc] sm:$0xff]  ;;  %v759_v11 = vld [vmem:[%s1719_s19 + $0x14] sm:$0xff]  ;;  %v653_v12 = vpack.c.bf16 %v646_v9, %v645_v8  ;;  %v761_v16 = vld [vmem:[%s1719_s19 + $0x24] sm:$0xff] }
  0x1e   : > { %v770_v13 = vpack.c.bf16 %v759_v11, %v758_v10  ;;  %v1662_v14 = vld [vmem:[%s2062_s1 + $0x38] sm:$0xff]   ;;  %v891_v17 = vpack.c.bf16 %v760_v15, %v759_v11  ;;  %v771_v18 = vpack.c.bf16 %v761_v16, %v760_v15  ;;  %v1663_v19 = vld [vmem:[%s2062_s1 + $0x40] sm:$0xff]   ;;  %v1124_v44 = vld [vmem:[%s1719_s19 + $0x2e] sm:$0xff] }
  0x1f   : > { %v764_v24 = vld [vmem:[%s1719_s19 + $0x3c] sm:$0xff]  ;;  %v765_v25 = vld [vmem:[%s1719_s19 + $0x44] sm:$0xff] }
  0x20   : > { %v888_v32 = vld [vmem:[%s1719_s19 + $0x5c] sm:$0xff]  ;;  %v1002_v39 = vld [vmem:[%s1719_s19 + $0x25] sm:$0xff] }
  0x21   : > { %v1000_v33 = vld [vmem:[%s1719_s19 + $0x15] sm:$0xff]  ;;  %v1122_v38 = vld [vmem:[%s1719_s19 + $0x1e] sm:$0xff]  ;;  %v1123_v43 = vld [vmem:[%s1719_s19 + $0x26] sm:$0xff] }
  0x22   : > { %1454 = vmatmul.mubr.msk.bf16.gmra.mxu0 %vm212_vm1, %v203_v20  ;;  %v762_v20 = vld [vmem:[%s1719_s19 + $0x2c] sm:$0xff]  ;;  %v1121_v37 = vld [vmem:[%s1719_s19 + $0x16] sm:$0xff]  ;;  %v1130_v62 = vld [vmem:[%s1719_s19 + $0x5e] sm:$0xff] }
  0x23   : > { %1468 = vmatmul.mubr.msk.bf16.vlgmr.msra.gmra.mxu1 %vm212_vm1, %v184_v21  ;;  %1489 = vmatprep.mubr.msk.bf16.mxu0 %vm1673_vm0, %v1672_v1  ;;  %v763_v21 = vld [vmem:[%s1719_s19 + $0x34] sm:$0xff]  ;;  %v1009_v58 = vld [vmem:[%s1719_s19 + $0x5d] sm:$0xff] }
  0x24   : > { %1510 = vmatpush3.bf16.msra.mxu1 %v1658_v22  ;;  %1471 = vmatprep.mubr.msk.bf16.mxu1 %vm1673_vm0, %v1672_v1  ;;  %v892_v22 = vpack.c.bf16 %v762_v20, %v761_v16  ;;  %v772_v23 = vpack.c.bf16 %v763_v21, %v762_v20  ;;  %v893_v26 = vpack.c.bf16 %v764_v24, %v763_v21  ;;  %v1004_v45 = vld [vmem:[%s1719_s19 + $0x35] sm:$0xff] }
  0x25   : > { %1553 = vmatprep.subr.bf16.mxu1 %v1672_v1  ;;  %v1125_v49 = vld [vmem:[%s1719_s19 + $0x36] sm:$0xff] }
  0x2a   : > { %1490 = vmatmul.mubr.msk.bf16.vlgmr.msra.gmra.mxu0 %vm212_vm1, %v407_v27  ;;  %v773_v27 = vpack.c.bf16 %v765_v25, %v764_v24 }
  0x2b   : > { %1472 = vmatmul.mubr.msk.bf16.gmra.mxu1 %vm212_vm1, %v185_v28  ;;  %1532 = vmatpush3.bf16.msra.mxu0 %v1659_v29  ;;  %v766_v28 = vld [vmem:[%s1719_s19 + $0x4c] sm:$0xff]  ;;  %v767_v29 = vld [vmem:[%s1719_s19 + $0x54] sm:$0xff] }
  0x2c   : > { %1475 = vmatprep.mubr.msk.bf16.mxu1 %vm1673_vm0, %v1672_v1  ;;  %1493 = vmatprep.mubr.msk.bf16.mxu0 %vm1673_vm0, %v1672_v1  ;;  %v894_v30 = vpack.c.bf16 %v766_v28, %v765_v25  ;;  %v774_v31 = vpack.c.bf16 %v767_v29, %v766_v28 }
  0x2d   : > { %1575 = vmatprep.subr.bf16.mxu0 %v1672_v1 }
  0x32   : > { %1494 = vmatmul.mubr.msk.bf16.gmra.mxu0 %vm212_vm1, %v408_v34  ;;  %v1001_v34 = vld [vmem:[%s1719_s19 + $0x1d] sm:$0xff] }
  0x33   : > { %1476 = vmatmul.mubr.msk.bf16.gmra.mxu1 %vm212_vm1, %v186_v35  ;;  %1497 = vmatprep.mubr.msk.bf16.mxu0 %vm1673_vm0, %v1672_v1  ;;  %v895_v35 = vpack.c.bf16 %v888_v32, %v767_v29  ;;  %v1012_v36 = vpack.c.bf16 %v1001_v34, %v1000_v33 }
  0x34   : > { %1479 = vmatprep.mubr.msk.bf16.mxu1 %vm1673_vm0, %v1672_v1 }
  0x3a   : > { %1498 = vmatmul.mubr.msk.bf16.gmra.mxu0 %vm212_vm1, %v409_v40  ;;  %v1003_v40 = vld [vmem:[%s1719_s19 + $0x2d] sm:$0xff] }
  0x3b   : > { %1480 = vmatmul.mubr.msk.bf16.gmra.mxu1 %vm212_vm1, %v187_v41  ;;  %1501 = vmatprep.mubr.msk.bf16.mxu0 %vm1673_vm0, %v1672_v1  ;;  %v1133_v41 = vpack.c.bf16 %v1122_v38, %v1121_v37  ;;  %v1013_v42 = vpack.c.bf16 %v1003_v40, %v1002_v39 }
  0x3c   : > { %1483 = vmatprep.mubr.msk.bf16.mxu1 %vm1673_vm0, %v1672_v1 }
  0x42   : > { %1502 = vmatmul.mubr.msk.bf16.gmra.mxu0 %vm212_vm1, %v410_v46  ;;  %v1005_v46 = vld [vmem:[%s1719_s19 + $0x3d] sm:$0xff] }
  0x43   : > { %1484 = vmatmul.mubr.msk.bf16.gmra.mxu1 %vm212_vm1, %v188_v47  ;;  %1505 = vmatprep.mubr.msk.bf16.mxu0 %vm1673_vm0, %v1672_v1  ;;  %v1134_v47 = vpack.c.bf16 %v1124_v44, %v1123_v43  ;;  %v1014_v48 = vpack.c.bf16 %v1005_v46, %v1004_v45 }
  0x44   : > { %1511 = vmatprep.mubr.msk.bf16.mxu1 %vm1673_vm0, %v1672_v1 }
  0x4a   : > { %1506 = vmatmul.mubr.msk.bf16.gmra.mxu0 %vm212_vm1, %v411_v50  ;;  %v1126_v50 = vld [vmem:[%s1719_s19 + $0x3e] sm:$0xff] }
  0x4b   : > { %1512 = vmatmul.mubr.msk.bf16.vlgmr.msra.gmra.mxu1 %vm212_vm1, %v528_v51  ;;  %1533 = vmatprep.mubr.msk.bf16.mxu0 %vm1673_vm0, %v1672_v1  ;;  %v1006_v51 = vld [vmem:[%s1719_s19 + $0x45] sm:$0xff]  ;;  %v1135_v53 = vpack.c.bf16 %v1126_v50, %v1125_v49 }
  0x4c   : > { %1554 = vmatpush3.bf16.msra.mxu1 %v1660_v52  ;;  %1515 = vmatprep.mubr.msk.bf16.mxu1 %vm1673_vm0, %v1672_v1  ;;  %v1007_v52 = vld [vmem:[%s1719_s19 + $0x4d] sm:$0xff] }
  0x4d   : > { %1597 = vmatprep.subr.bf16.mxu1 %v1672_v1  ;;  %v1015_v54 = vpack.c.bf16 %v1007_v52, %v1006_v51 }
  0x52   : > { %1534 = vmatmul.mubr.msk.bf16.vlgmr.msra.gmra.mxu0 %vm212_vm1, %v649_v55  ;;  %v1127_v55 = vld [vmem:[%s1719_s19 + $0x46] sm:$0xff] }
  0x53   : > { %1516 = vmatmul.mubr.msk.bf16.gmra.mxu1 %vm212_vm1, %v529_v56  ;;  %1576 = vmatpush3.bf16.msra.mxu0 %v1661_v57  ;;  %v1128_v56 = vld [vmem:[%s1719_s19 + $0x4e] sm:$0xff] }
  0x54   : > { %1519 = vmatprep.mubr.msk.bf16.mxu1 %vm1673_vm0, %v1672_v1  ;;  %1537 = vmatprep.mubr.msk.bf16.mxu0 %vm1673_vm0, %v1672_v1  ;;  %v1008_v57 = vld [vmem:[%s1719_s19 + $0x55] sm:$0xff]  ;;  %v1136_v59 = vpack.c.bf16 %v1128_v56, %v1127_v55 }
  0x55   : > { %1619 = vmatprep.subr.bf16.mxu0 %v1672_v1 }
  0x5a   : > { %1538 = vmatmul.mubr.msk.bf16.gmra.mxu0 %vm212_vm1, %v650_v60  ;;  %v1016_v60 = vpack.c.bf16 %v1009_v58, %v1008_v57 }
  0x5b   : > { %1520 = vmatmul.mubr.msk.bf16.gmra.mxu1 %vm212_vm1, %v530_v61  ;;  %1541 = vmatprep.mubr.msk.bf16.mxu0 %vm1673_vm0, %v1672_v1  ;;  %v1129_v61 = vld [vmem:[%s1719_s19 + $0x56] sm:$0xff] }
  0x5c   : > { %1523 = vmatprep.mubr.msk.bf16.mxu1 %vm1673_vm0, %v1672_v1  ;;  %v1137_v63 = vpack.c.bf16 %v1130_v62, %v1129_v61 }
  0x62   : > { %1542 = vmatmul.mubr.msk.bf16.gmra.mxu0 %vm212_vm1, %v651_v0 }
  0x63   : > { %1524 = vmatmul.mubr.msk.bf16.gmra.mxu1 %vm212_vm1, %v531_v2  ;;  %1545 = vmatprep.mubr.msk.bf16.mxu0 %vm1673_vm0, %v1672_v1 }
  0x64   : > { %1527 = vmatprep.mubr.msk.bf16.mxu1 %vm1673_vm0, %v1672_v1 }
  0x6a   : > { %1546 = vmatmul.mubr.msk.bf16.gmra.mxu0 %vm212_vm1, %v652_v6 }
  0x6b   : > { %1528 = vmatmul.mubr.msk.bf16.gmra.mxu1 %vm212_vm1, %v532_v7  ;;  %1549 = vmatprep.mubr.msk.bf16.mxu0 %vm1673_vm0, %v1672_v1 }
  0x6c   : > { %1555 = vmatprep.mubr.msk.bf16.mxu1 %vm1673_vm0, %v1672_v1 }
  0x72   : > { %1550 = vmatmul.mubr.msk.bf16.gmra.mxu0 %vm212_vm1, %v653_v12 }
  0x73   : > { %1556 = vmatmul.mubr.msk.bf16.vlgmr.msra.gmra.mxu1 %vm212_vm1, %v770_v13  ;;  %1577 = vmatprep.mubr.msk.bf16.mxu0 %vm1673_vm0, %v1672_v1 }
  0x74   : > { %1598 = vmatpush3.bf16.msra.mxu1 %v1662_v14  ;;  %1559 = vmatprep.mubr.msk.bf16.mxu1 %vm1673_vm0, %v1672_v1 }
  0x7a   : > { %1578 = vmatmul.mubr.msk.bf16.vlgmr.msra.gmra.mxu0 %vm212_vm1, %v891_v17 }
  0x7b   : > { %1560 = vmatmul.mubr.msk.bf16.gmra.mxu1 %vm212_vm1, %v771_v18  ;;  %1620 = vmatpush3.bf16.msra.mxu0 %v1663_v19 }
  0x7c   : > { %1563 = vmatprep.mubr.msk.bf16.mxu1 %vm1673_vm0, %v1672_v1  ;;  %1581 = vmatprep.mubr.msk.bf16.mxu0 %vm1673_vm0, %v1672_v1 }
  0x82   : > { %1582 = vmatmul.mubr.msk.bf16.gmra.mxu0 %vm212_vm1, %v892_v22 }
  0x83   : > { %1564 = vmatmul.mubr.msk.bf16.gmra.mxu1 %vm212_vm1, %v772_v23  ;;  %1585 = vmatprep.mubr.msk.bf16.mxu0 %vm1673_vm0, %v1672_v1 }
  0x84   : > { %1567 = vmatprep.mubr.msk.bf16.mxu1 %vm1673_vm0, %v1672_v1 }
  0x8a   : > { %1586 = vmatmul.mubr.msk.bf16.gmra.mxu0 %vm212_vm1, %v893_v26 }
  0x8b   : > { %1568 = vmatmul.mubr.msk.bf16.gmra.mxu1 %vm212_vm1, %v773_v27  ;;  %1589 = vmatprep.mubr.msk.bf16.mxu0 %vm1673_vm0, %v1672_v1 }
  0x8c   : > { %1571 = vmatprep.mubr.msk.bf16.mxu1 %vm1673_vm0, %v1672_v1 }
  0x92   : > { %1590 = vmatmul.mubr.msk.bf16.gmra.mxu0 %vm212_vm1, %v894_v30 }
  0x93   : > { %1572 = vmatmul.mubr.msk.bf16.gmra.mxu1 %vm212_vm1, %v774_v31  ;;  %1593 = vmatprep.mubr.msk.bf16.mxu0 %vm1673_vm0, %v1672_v1 }
  0x94   : > { %1599 = vmatprep.mubr.msk.bf16.mxu1 %vm1673_vm0, %v1672_v1 }
  0x9a   : > { %1594 = vmatmul.mubr.msk.bf16.gmra.mxu0 %vm212_vm1, %v895_v35 }
  0x9b   : > { %1600 = vmatmul.mubr.msk.bf16.vlgmr.msra.gmra.mxu1 %vm212_vm1, %v1012_v36  ;;  %1621 = vmatprep.mubr.msk.bf16.mxu0 %vm1673_vm0, %v1672_v1 }
  0x9c   : > { %1603 = vmatprep.mubr.msk.bf16.mxu1 %vm1673_vm0, %v1672_v1 }
  0xa2   : > { %1622 = vmatmul.mubr.msk.bf16.vlgmr.msra.gmra.mxu0 %vm212_vm1, %v1133_v41 }
  0xa3   : > { %1604 = vmatmul.mubr.msk.bf16.gmra.mxu1 %vm212_vm1, %v1013_v42  ;;  %1625 = vmatprep.mubr.msk.bf16.mxu0 %vm1673_vm0, %v1672_v1 }
  0xa4   : > { %1607 = vmatprep.mubr.msk.bf16.mxu1 %vm1673_vm0, %v1672_v1 }
  0xaa   : > { %1626 = vmatmul.mubr.msk.bf16.gmra.mxu0 %vm212_vm1, %v1134_v47 }
  0xab   : > { %1608 = vmatmul.mubr.msk.bf16.gmra.mxu1 %vm212_vm1, %v1014_v48  ;;  %1629 = vmatprep.mubr.msk.bf16.mxu0 %vm1673_vm0, %v1672_v1 }
  0xac   : > { %1611 = vmatprep.mubr.msk.bf16.mxu1 %vm1673_vm0, %v1672_v1 }
  0xb2   : > { %1630 = vmatmul.mubr.msk.bf16.gmra.mxu0 %vm212_vm1, %v1135_v53 }
  0xb3   : > { %1612 = vmatmul.mubr.msk.bf16.gmra.mxu1 %vm212_vm1, %v1015_v54  ;;  %1633 = vmatprep.mubr.msk.bf16.mxu0 %vm1673_vm0, %v1672_v1 }
  0xb4   : > { %1615 = vmatprep.mubr.msk.bf16.mxu1 %vm1673_vm0, %v1672_v1 }
  0xba   : > { %1634 = vmatmul.mubr.msk.bf16.gmra.mxu0 %vm212_vm1, %v1136_v59 }
  0xbb   : > { %1616 = vmatmul.mubr.msk.bf16.gmra.mxu1 %vm212_vm1, %v1016_v60  ;;  %1637 = vmatprep.mubr.msk.bf16.mxu0 %vm1673_vm0, %v1672_v1 }
  0xc2   : > { %1638 = vmatmul.mubr.msk.bf16.gmra.mxu0 %vm212_vm1, %v1137_v63 }
  0xd2   : > { %v262_v0 = vpop.f32.mrf.mxu0 }
  0xd3   : > { %v286_v2 = vpop.f32.mrf.mxu1 }
  0xd4   : > { %v1447_v3 = vpop.f32.mrf.mxu0 }
  0xd5   : > { %v1459_v4 = vpop.f32.mrf.mxu1 }
  0xd6   : > { %v265_v5 = vpop.f32.mrf.mxu0 }
  0xd7   : > { %v289_v6 = vpop.f32.mrf.mxu1 }
  0xd8   : > { %v1448_v7 = vpop.f32.mrf.mxu0 }
  0xd9   : > { %v1460_v8 = vpop.f32.mrf.mxu1 }
  0xda   : > { %v270_v9 = vpop.f32.mrf.mxu0 }
  0xdb   : > { %v294_v10 = vpop.f32.mrf.mxu1 }
  0xdc   : > { %v1451_v11 = vpop.f32.mrf.mxu0 }
  0xdd   : > { %v1463_v12 = vpop.f32.mrf.mxu1 }
  0xde   : > { %v273_v13 = vpop.f32.mrf.mxu0 }
  0xdf   : > { %v297_v14 = vpop.f32.mrf.mxu1 }
  0xe0   : > { %v1452_v1 = vpop.f32.mrf.mxu0 }
  0xe1   : > { %v1464_v15 = vpop.f32.mrf.mxu1 }
  0xe2   : > { %v278_v16 = vpop.f32.mrf.mxu0 }
  0xe3   : > { %v356_v17 = vpop.f32.mrf.mxu1 }
  0xe4   : > { %v357_v18 = vadd.f32 %v356_v17, %v262_v0  ;;  %v1455_v19 = vpop.f32.mrf.mxu0 }
  0xe5   : > { %v1469_v20 = vpop.f32.mrf.mxu1 }
  0xe6   : > { %v281_v21 = vpop.f32.mrf.mxu0 }
  0xe7   : > { %v359_v22 = vpop.f32.mrf.mxu1 }
  0xe8   : > { %v360_v23 = vadd.f32 %v359_v22, %v265_v5  ;;  %v1456_v24 = vpop.f32.mrf.mxu0 }
  0xe9   : > { %v1470_v25 = vpop.f32.mrf.mxu1 }
  0xea   : > { %v467_v26 = vpop.f32.mrf.mxu0 }
  0xeb   : > { %v364_v27 = vpop.f32.mrf.mxu1  ;;  %v506_v28 = vadd.f32 %v467_v26, %v357_v18 }
  0xec   : > { %v365_v29 = vadd.f32 %v364_v27, %v270_v9  ;;  %v1491_v30 = vpop.f32.mrf.mxu0 }
  0xed   : > { %v1473_v31 = vpop.f32.mrf.mxu1 }
  0xee   : > { %v470_v32 = vpop.f32.mrf.mxu0 }
  0xef   : > { %v367_v33 = vpop.f32.mrf.mxu1  ;;  %v507_v34 = vadd.f32 %v470_v32, %v360_v23 }
  0xf0   : > { %v368_v35 = vadd.f32 %v367_v33, %v273_v13  ;;  %v1492_v36 = vpop.f32.mrf.mxu0 }
  0xf1   : > { %v1474_v37 = vpop.f32.mrf.mxu1 }
  0xf2   : > { %v475_v38 = vpop.f32.mrf.mxu0 }
  0xf3   : > { %v372_v39 = vpop.f32.mrf.mxu1  ;;  %v508_v40 = vadd.f32 %v475_v38, %v365_v29 }
  0xf4   : > { %v373_v41 = vadd.f32 %v372_v39, %v278_v16  ;;  %v1495_v42 = vpop.f32.mrf.mxu0 }
  0xf5   : > { %v1477_v43 = vpop.f32.mrf.mxu1 }
  0xf6   : > { %v478_v44 = vpop.f32.mrf.mxu0 }
  0xf7   : > { %v375_v45 = vpop.f32.mrf.mxu1  ;;  %v509_v46 = vadd.f32 %v478_v44, %v368_v35 }
  0xf8   : > { %v376_v47 = vadd.f32 %v375_v45, %v281_v21  ;;  %v1496_v48 = vpop.f32.mrf.mxu0 }
  0xf9   : > { %v1478_v49 = vpop.f32.mrf.mxu1 }
  0xfa   : > { %v483_v50 = vpop.f32.mrf.mxu0 }
  0xfb   : > { %v380_v51 = vpop.f32.mrf.mxu1  ;;  %v510_v52 = vadd.f32 %v483_v50, %v373_v41 }
  0xfc   : > { %v381_v53 = vadd.f32 %v380_v51, %v286_v2  ;;  %v1499_v54 = vpop.f32.mrf.mxu0 }
  0xfd   : > { %v1481_v55 = vpop.f32.mrf.mxu1 }
  0xfe   : > { %v486_v56 = vpop.f32.mrf.mxu0 }
  0xff   : > { %v383_v57 = vpop.f32.mrf.mxu1  ;;  %v511_v58 = vadd.f32 %v486_v56, %v376_v47 }
 0x100   : > { %v384_v59 = vadd.f32 %v383_v57, %v289_v6  ;;  %v1500_v60 = vpop.f32.mrf.mxu0 }
 0x101   : > { %v1482_v61 = vpop.f32.mrf.mxu1 }
 0x102   : > { %v491_v62 = vpop.f32.mrf.mxu0 }
 0x103   : > { %v388_v63 = vpop.f32.mrf.mxu1  ;;  %v512_v0 = vadd.f32 %v491_v62, %v381_v53 }
 0x104   : > { %v389_v3 = vadd.f32 %v388_v63, %v294_v10  ;;  %v1503_v4 = vpop.f32.mrf.mxu0 }
 0x105   : > { %v1485_v5 = vpop.f32.mrf.mxu1 }
 0x106   : > { %v494_v7 = vpop.f32.mrf.mxu0 }
 0x107   : > { %v391_v8 = vpop.f32.mrf.mxu1  ;;  %v513_v9 = vadd.f32 %v494_v7, %v384_v59 }
 0x108   : > { %v392_v11 = vadd.f32 %v391_v8, %v297_v14  ;;  %v1504_v12 = vpop.f32.mrf.mxu0 }
 0x109   : > { %v1486_v2 = vpop.f32.mrf.mxu1 }
 0x10a   : > { %v499_v13 = vpop.f32.mrf.mxu0 }
 0x10b   : > { %v514_v1 = vadd.f32 %v499_v13, %v389_v3  ;;  %v588_v15 = vpop.f32.mrf.mxu1 }
 0x10c   : > { %v627_v16 = vadd.f32 %v588_v15, %v506_v28  ;;  %v1507_v17 = vpop.f32.mrf.mxu0 }
 0x10d   : > { %v1513_v6 = vpop.f32.mrf.mxu1 }
 0x10e   : > { %v502_v18 = vpop.f32.mrf.mxu0 }
 0x10f   : > { %v515_v19 = vadd.f32 %v502_v18, %v392_v11  ;;  %v591_v20 = vpop.f32.mrf.mxu1 }
 0x110   : > { %v628_v21 = vadd.f32 %v591_v20, %v507_v34  ;;  %v1508_v22 = vpop.f32.mrf.mxu0 }
 0x111   : > { %v1514_v10 = vpop.f32.mrf.mxu1 }
 0x112   : > { %v709_v23 = vpop.f32.mrf.mxu0 }
 0x113   : > { %v596_v24 = vpop.f32.mrf.mxu1  ;;  %v1954_v25 = vadd.f32 %v709_v23, %v627_v16 }
 0x114   : > { %v629_v26 = vadd.f32 %v596_v24, %v508_v40  ;;  %v1535_v14 = vpop.f32.mrf.mxu0 }
 0x115   : > { %v1517_v27 = vpop.f32.mrf.mxu1 }
 0x116   : > { %v712_v29 = vpop.f32.mrf.mxu0 }
 0x117   : > { %v599_v30 = vpop.f32.mrf.mxu1  ;;  %v1956_v31 = vadd.f32 %v712_v29, %v628_v21 }
 0x118   : > { %v630_v28 = vadd.f32 %v599_v30, %v509_v46  ;;  %v1536_v32 = vpop.f32.mrf.mxu0 }
 0x119   : > { %v1518_v33 = vpop.f32.mrf.mxu1 }
 0x11a   : > { %v717_v35 = vpop.f32.mrf.mxu0 }
 0x11b   : > { %v604_v36 = vpop.f32.mrf.mxu1  ;;  %v1958_v37 = vadd.f32 %v717_v35, %v629_v26 }
 0x11c   : > { %v631_v34 = vadd.f32 %v604_v36, %v510_v52  ;;  %v1539_v38 = vpop.f32.mrf.mxu0 }
 0x11d   : > { %v1521_v39 = vpop.f32.mrf.mxu1 }
 0x11e   : > { %v720_v41 = vpop.f32.mrf.mxu0 }
 0x11f   : > { %v607_v42 = vpop.f32.mrf.mxu1  ;;  %v1960_v43 = vadd.f32 %v720_v41, %v630_v28 }
 0x120   : > { %v632_v40 = vadd.f32 %v607_v42, %v511_v58  ;;  %v1540_v44 = vpop.f32.mrf.mxu0 }
 0x121   : > { %v1522_v45 = vpop.f32.mrf.mxu1 }
 0x122   : > { %v725_v47 = vpop.f32.mrf.mxu0 }
 0x123   : > { %v612_v48 = vpop.f32.mrf.mxu1  ;;  %v1962_v49 = vadd.f32 %v725_v47, %v631_v34 }
 0x124   : > { %v633_v46 = vadd.f32 %v612_v48, %v512_v0  ;;  %v1543_v50 = vpop.f32.mrf.mxu0 }
 0x125   : > { %v1525_v51 = vpop.f32.mrf.mxu1 }
 0x126   : > { %v728_v53 = vpop.f32.mrf.mxu0 }
 0x127   : > { %v615_v54 = vpop.f32.mrf.mxu1  ;;  %v1964_v55 = vadd.f32 %v728_v53, %v632_v40 }
 0x128   : > { %v634_v52 = vadd.f32 %v615_v54, %v513_v9  ;;  %v1544_v56 = vpop.f32.mrf.mxu0 }
 0x129   : > { %v1526_v57 = vpop.f32.mrf.mxu1 }
 0x12a   : > { %v733_v59 = vpop.f32.mrf.mxu0 }
 0x12b   : > { %v620_v60 = vpop.f32.mrf.mxu1  ;;  %v1966_v61 = vadd.f32 %v733_v59, %v633_v46 }
 0x12c   : > { %v635_v58 = vadd.f32 %v620_v60, %v514_v1  ;;  %v1547_v62 = vpop.f32.mrf.mxu0 }
 0x12d   : > { %v1529_v63 = vpop.f32.mrf.mxu1 }
 0x12e   : > { %v736_v3 = vpop.f32.mrf.mxu0 }
 0x12f   : > { %v623_v4 = vpop.f32.mrf.mxu1  ;;  %v1968_v5 = vadd.f32 %v736_v3, %v634_v52 }
 0x130   : > { %v636_v0 = vadd.f32 %v623_v4, %v515_v19  ;;  %v1548_v7 = vpop.f32.mrf.mxu0 }
 0x131   : > { %v1530_v8 = vpop.f32.mrf.mxu1 }
 0x132   : > { %v741_v11 = vpop.f32.mrf.mxu0  ;;  %v2002_v8 = vld [vmem:[%s2063_s2] ss:$0 sm:$0xff] }
 0x133   : > { %v1970_v12 = vadd.f32 %v741_v11, %v635_v58  ;;  %v830_v9 = vpop.f32.mrf.mxu1 }
 0x134   : > { %v1551_v2 = vpop.f32.mrf.mxu0  ;;  %v869_v57 = vadd.f32 %v830_v9, %v1954_v25 }
 0x135   : > { %v1557_v13 = vpop.f32.mrf.mxu1 }
 0x136   : > { %v744_v15 = vpop.f32.mrf.mxu0 }
 0x137   : > { %v1972_v16 = vadd.f32 %v744_v15, %v636_v0  ;;  %v833_v17 = vpop.f32.mrf.mxu1 }
 0x138   : > { %v1552_v1 = vpop.f32.mrf.mxu0  ;;  %v870_v3 = vadd.f32 %v833_v17, %v1956_v31 }
 0x139   : > { %v1558_v6 = vpop.f32.mrf.mxu1 }
 0x13a   : > { %v951_v18 = vpop.f32.mrf.mxu0 }
 0x13b   : > { %v838_v20 = vpop.f32.mrf.mxu1  ;;  %v990_v58 = vadd.f32 %v951_v18, %v869_v57 }
 0x13c   : > { %v1579_v21 = vpop.f32.mrf.mxu0  ;;  %v871_v31 = vadd.f32 %v838_v20, %v1958_v37 }
 0x13d   : > { %v1561_v22 = vpop.f32.mrf.mxu1 }
 0x13e   : > { %v954_v10 = vpop.f32.mrf.mxu0 }
 0x13f   : > { %v841_v19 = vpop.f32.mrf.mxu1  ;;  %v991_v11 = vadd.f32 %v954_v10, %v870_v3 }
 0x140   : > { %v1580_v23 = vpop.f32.mrf.mxu0  ;;  %v872_v10 = vadd.f32 %v841_v19, %v1960_v43 }
 0x141   : > { %v1562_v24 = vpop.f32.mrf.mxu1 }
 0x142   : > { %v959_v26 = vpop.f32.mrf.mxu0 }
 0x143   : > { %v1974_v14 = vpop.f32.mrf.mxu1  ;;  %v992_v6 = vadd.f32 %v959_v26, %v871_v31 }
 0x144   : > { %v1583_v27 = vpop.f32.mrf.mxu0  ;;  %v873_v26 = vadd.f32 %v1974_v14, %v1962_v49 }
 0x145   : > { %v1565_v29 = vpop.f32.mrf.mxu1 }
 0x146   : > { %v962_v30 = vpop.f32.mrf.mxu0 }
 0x147   : > { %v1976_v28 = vpop.f32.mrf.mxu1  ;;  %v993_v20 = vadd.f32 %v962_v30, %v872_v10 }
 0x148   : > { %v1584_v32 = vpop.f32.mrf.mxu0 }
 0x149   : > { %v1566_v33 = vpop.f32.mrf.mxu1 }
 0x14a   : > { %v967_v35 = vpop.f32.mrf.mxu0 }
 0x14b   : > { %v1978_v36 = vpop.f32.mrf.mxu1 }
 0x14c   : > { %v1587_v34 = vpop.f32.mrf.mxu0 }
 0x14d   : > { %v1569_v38 = vpop.f32.mrf.mxu1 }
 0x14e   : > { %v1980_v39 = vpop.f32.mrf.mxu0 }
 0x14f   : > { %v1982_v41 = vpop.f32.mrf.mxu1 }
 0x150   : > { %v1588_v42 = vpop.f32.mrf.mxu0 }
 0x151   : > { %v1570_v40 = vpop.f32.mrf.mxu1  ;;  %v994_v42 = vadd.f32 %v967_v35, %v873_v26 }
 0x152   : > { %v1984_v44 = vpop.f32.mrf.mxu0 }
 0x153   : > { %v1986_v45 = vpop.f32.mrf.mxu1 }
 0x154   : > { %v1591_v47 = vpop.f32.mrf.mxu0  ;;  %v877_v31 = vadd.f32 %v1986_v45, %v1970_v12 }
 0x155   : > { %v1573_v48 = vpop.f32.mrf.mxu1 }
 0x156   : > { %v1988_v46 = vpop.f32.mrf.mxu0  ;;  %v874_v48 = vadd.f32 %v1976_v28, %v1964_v55 }
 0x157   : > { %v1990_v50 = vpop.f32.mrf.mxu1 }
 0x158   : > { %v1592_v51 = vpop.f32.mrf.mxu0 }
 0x159   : > { %v1574_v53 = vpop.f32.mrf.mxu1 }
 0x15a   : > { %v1992_v54 = vpop.f32.mrf.mxu0 }
 0x15b   : > { %v1072_v52 = vpop.f32.mrf.mxu1 }
 0x15c   : > { %v1595_v56 = vpop.f32.mrf.mxu0  ;;  %v1111_v4 = vadd.f32 %v1072_v52, %v990_v58  ;;  %v995_v52 = vadd.f32 %v1980_v39, %v874_v48 }
 0x15d   : > { %v1601_v59 = vpop.f32.mrf.mxu1 }
 0x15e   : > { %v1995_v60 = vpop.f32.mrf.mxu0  ;;  %v875_v59 = vadd.f32 %v1978_v36, %v1966_v61 }
 0x15f   : > { %v1075_v62 = vpop.f32.mrf.mxu1 }
 0x160   : > { %v1596_v63 = vpop.f32.mrf.mxu0  ;;  %v1112_v13 = vadd.f32 %v1075_v62, %v991_v11 }
 0x161   : > { %v1602_v0 = vpop.f32.mrf.mxu1  ;;  %v996_v63 = vadd.f32 %v1984_v44, %v875_v59 }
 0x162   : > { %v1193_v7 = vpop.f32.mrf.mxu0  ;;  %v876_v0 = vadd.f32 %v1982_v41, %v1968_v5 }
 0x163   : > { %v1080_v2 = vpop.f32.mrf.mxu1  ;;  %v1232_v25 = vadd.f32 %v1193_v7, %v1111_v4 }
 0x164   : > { %v1623_v9 = vpop.f32.mrf.mxu0  ;;  %v1113_v23 = vadd.f32 %v1080_v2, %v992_v6  ;;  %v997_v2 = vadd.f32 %v1988_v46, %v876_v0 }
 0x165   : > { %v1249_v15 = vadd.f32 %v2002_v8, %v1232_v25  ;;  %v1605_v17 = vpop.f32.mrf.mxu1 }
 0x166   : > { %v1196_v1 = vpop.f32.mrf.mxu0  ;;  %v998_v17 = vadd.f32 %v1992_v54, %v877_v31 }
 0x167   : > { %1260 = vst.msk [vmem:[%s2007_s16] sm:$0xff] %vm1259_vm2, %v1249_v15  ;;  %v1083_v18 = vpop.f32.mrf.mxu1  ;;  %v1233_v21 = vadd.f32 %v1196_v1, %v1112_v13 }
 0x168   : > { %v1624_v22 = vpop.f32.mrf.mxu0  ;;  %v1114_v34 = vadd.f32 %v1083_v18, %v993_v20  ;;  %v878_v18 = vadd.f32 %v1990_v50, %v1972_v16 }
 0x169   : > { %v1250_v24 = vadd.f32 %v2002_v8, %v1233_v21  ;;  %v1606_v27 = vpop.f32.mrf.mxu1 }
 0x16a   : > { %v1201_v37 = vpop.f32.mrf.mxu0  ;;  %v999_v10 = vadd.f32 %v1995_v60, %v878_v18 }
 0x16b   : > { %1261 = vst.msk [vmem:[%s2007_s16 + $0x8] sm:$0xff] %vm1259_vm2, %v1250_v24  ;;  %v1088_v29 = vpop.f32.mrf.mxu1  ;;  %v1234_v32 = vadd.f32 %v1201_v37, %v1113_v23 }
 0x16c   : > { %v1627_v33 = vpop.f32.mrf.mxu0  ;;  %v1115_v51 = vadd.f32 %v1088_v29, %v994_v42 }
 0x16d   : > { %v1251_v38 = vadd.f32 %v2002_v8, %v1234_v32  ;;  %v1609_v43 = vpop.f32.mrf.mxu1 }
 0x16e   : > { %v1204_v19 = vpop.f32.mrf.mxu0 }
 0x16f   : > { %1262 = vst.msk [vmem:[%s2007_s16 + $0x10] sm:$0xff] %vm1259_vm2, %v1251_v38  ;;  %v1091_v40 = vpop.f32.mrf.mxu1  ;;  %v1235_v47 = vadd.f32 %v1204_v19, %v1114_v34 }
 0x170   : > { %v1628_v30 = vpop.f32.mrf.mxu0  ;;  %v1116_v58 = vadd.f32 %v1091_v40, %v995_v52 }
 0x171   : > { %v1252_v53 = vadd.f32 %v2002_v8, %v1235_v47  ;;  %v1610_v49 = vpop.f32.mrf.mxu1 }
 0x172   : > { %v1209_v14 = vpop.f32.mrf.mxu0 }
 0x173   : > { %1263 = vst.msk [vmem:[%s2007_s16 + $0x18] sm:$0xff] %vm1259_vm2, %v1252_v53  ;;  %v1096_v56 = vpop.f32.mrf.mxu1  ;;  %v1236_v35 = vadd.f32 %v1209_v14, %v1115_v51 }
 0x174   : > { %v1631_v57 = vpop.f32.mrf.mxu0  ;;  %v1117_v7 = vadd.f32 %v1096_v56, %v996_v63 }
 0x175   : > { %v1253_v55 = vadd.f32 %v2002_v8, %v1236_v35  ;;  %v1613_v28 = vpop.f32.mrf.mxu1 }
 0x176   : > { %v1212_v62 = vpop.f32.mrf.mxu0 }
 0x177   : > { %1264 = vst.msk [vmem:[%s2007_s16 + $0x20] sm:$0xff] %vm1259_vm2, %v1253_v55  ;;  %v1099_v3 = vpop.f32.mrf.mxu1  ;;  %v1237_v39 = vadd.f32 %v1212_v62, %v1116_v58 }
 0x178   : > { %v1632_v4 = vpop.f32.mrf.mxu0  ;;  %v1118_v13 = vadd.f32 %v1099_v3, %v997_v2 }
 0x179   : > { %v1254_v61 = vadd.f32 %v2002_v8, %v1237_v39  ;;  %v1614_v36 = vpop.f32.mrf.mxu1 }
 0x17a   : > { %v1217_v11 = vpop.f32.mrf.mxu0 }
 0x17b   : > { %1265 = vst.msk [vmem:[%s2007_s16 + $0x28] sm:$0xff] %vm1259_vm2, %v1254_v61  ;;  %v1104_v25 = vpop.f32.mrf.mxu1  ;;  %v1238_v44 = vadd.f32 %v1217_v11, %v1117_v7 }
 0x17c   : > { %v1635_v9 = vpop.f32.mrf.mxu0  ;;  %v1119_v21 = vadd.f32 %v1104_v25, %v998_v17 }
 0x17d   : > { %v1255_v5 = vadd.f32 %v2002_v8, %v1238_v44  ;;  %v1617_v41 = vpop.f32.mrf.mxu1 }
 0x17e   : > { %v1220_v15 = vpop.f32.mrf.mxu0 }
 0x17f   : > { %1266 = vst.msk [vmem:[%s2007_s16 + $0x30] sm:$0xff] %vm1259_vm2, %v1255_v5  ;;  %v1107_v46 = vpop.f32.mrf.mxu1  ;;  %v1239_v1 = vadd.f32 %v1220_v15, %v1118_v13 }
 0x180   : > { %v1636_v6 = vpop.f32.mrf.mxu0  ;;  %v1120_v24 = vadd.f32 %v1107_v46, %v999_v10 }
 0x181   : > { %v1256_v12 = vadd.f32 %v2002_v8, %v1239_v1  ;;  %v1618_v45 = vpop.f32.mrf.mxu1 }
 0x182   : > { %v1225_v22 = vpop.f32.mrf.mxu0 }
 0x183   : > { %1267 = vst.msk [vmem:[%s2007_s16 + $0x38] sm:$0xff] %vm1259_vm2, %v1256_v12  ;;  %v1240_v54 = vadd.f32 %v1225_v22, %v1119_v21 }
 0x184   : > { %v1639_v23 = vpop.f32.mrf.mxu0 }
 0x185   : > { %v1257_v27 = vadd.f32 %v2002_v8, %v1240_v54 }
 0x186   : > { %v1228_v37 = vpop.f32.mrf.mxu0 }
 0x187   : > { %1268 = vst.msk [vmem:[%s2007_s16 + $0x40] sm:$0xff] %vm1259_vm2, %v1257_v27  ;;  %v1241_v20 = vadd.f32 %v1228_v37, %v1120_v24 }
 0x188   : > { %v1640_v16 = vpop.f32.mrf.mxu0 }
 0x189   : > { %v1258_v50 = vadd.f32 %v2002_v8, %v1241_v20 }
 0x18b   : > { %1269 = vst.msk [vmem:[%s2007_s16 + $0x48] sm:$0xff] %vm1259_vm2, %v1258_v50 }
 0x18c PF: > { %s13_s12 = sadd.s32 1, %s1670_s12  }
 0x18d   : > { %p10_p4 = scmp.ge.s32.totalorder %s13_s12, 4  }
 0x18f   :  { %12 = sbr.rel (!%p10_p4) target bundleno = 1 (0x1), region = 62 }

</bundles_post_ra>
